<compile_context>
chip_gen: v5e
topology: v5e:2x2
jax: 0.10.0
libtpu: 0.0.40
codegen_flags: <defaults>
</compile_context>

<pallas_src>
import jax
import jax.numpy as jnp
from jax.experimental import pallas as pl
from jax.experimental.pallas import tpu as pltpu


_ROW_TILE = 1568                 # conv1 pooled-pixel rows per grid step (8 images)
_IMG_TILE = 16                   # images per grid step for the fused conv2+MLP
_VMEM_LIMIT = 32 * 1024 * 1024   # explicit scoped-VMEM budget (fits all gens)


def _round_up(n, m):
    return (n + m - 1) // m * m


# ----------------------------- Pallas kernels -----------------------------

def _conv1_pool_kernel(p_ref, w_ref, b_ref, o_ref):
    """conv1 (5x5 valid) + bias + ReLU + 2x2/2 max-pool.

    p_ref: [4, TM, 75] bf16 im2col patches; leading axis = the four positions
                       of each pooling window (pool(relu(conv+b)) ==
                       relu(max_g conv_g + b): bias-add and ReLU are monotone).
    w_ref: [75, 8]     bf16 conv1 weight, feature order (kh, kw, cin),
                       cout zero-padded 6 -> 8.
    b_ref: [1, 8]      f32 bias (zero-padded).
    o_ref: [TM, 8]     bf16 pooled activations, NHWC row order (b, oh, ow).
    """
    tm = p_ref.shape[1]
    k = p_ref.shape[2]
    n = w_ref.shape[1]
    # Single MXU dot over all four pooling positions (not 4 short dots).
    p = p_ref[...].reshape(4 * tm, k)
    y = jnp.dot(p, w_ref[...], preferred_element_type=jnp.float32)
    y = y.reshape(4, tm, n)
    y = jnp.maximum(jnp.maximum(y[0], y[1]), jnp.maximum(y[2], y[3]))
    y = jnp.maximum(y + b_ref[...], 0.0)          # f32 epilogue (v5e-friendly)
    o_ref[...] = y.astype(o_ref.dtype)


def _conv2_mlp_kernel(p_ref, w2_ref, b2_ref, wf1_ref, bf1_ref,
                      wf2_ref, bf2_ref, wf3_ref, bf3_ref, o_ref):
    """Fused conv2+bias+ReLU+pool -> flatten -> fc1+ReLU -> fc2+ReLU -> fc3.

    p_ref : [4, 25, TB, 200] bf16 conv2 im2col patches
            (pool-group, output position h*5+w, image, feature (kh, kw, c-pad8)).
    w2_ref: [200, 16] bf16  conv2 weight (rows for padded channels are zero).
    b2_ref: [1, 16]   f32
    wf1   : [400, 128] f32  fc1, rows permuted to (h, w, c) flatten order,
                            out cols zero-padded 120 -> 128.
    wf2   : [128, 128] f32  fc2 zero-padded (120 -> 128 rows, 84 -> 128 cols).
    wf3   : [128, 128] f32  fc3 zero-padded (84 -> 128 rows, 10 -> 128 cols).
    o_ref : [TB, 128]  f32  lane-dense logits block (cols 10.. are zero).
    """
    _, npos, tb, k2 = p_ref.shape
    n2 = w2_ref.shape[1]

    # conv2 + pool as one dot over all 4 pooling positions, then max.
    p = p_ref[...].reshape(4 * npos * tb, k2)
    y = jnp.dot(p, w2_ref[...], preferred_element_type=jnp.float32)
    y = y.reshape(4, npos * tb, n2)
    a2 = jnp.maximum(jnp.maximum(y[0], y[1]), jnp.maximum(y[2], y[3]))
    a2 = jnp.maximum(a2 + b2_ref[...], 0.0)       # [25*TB, 16], position-major

    # torch.flatten(x, 1): gather the 25 per-position row blocks into [TB, 400]
    # (aligned sublane slices + lane concat; fc1 rows were permuted to match).
    feats = jnp.concatenate(
        [a2[i * tb:(i + 1) * tb, :] for i in range(npos)], axis=-1)

    h = jnp.dot(feats, wf1_ref[...], preferred_element_type=jnp.float32)
    h = jnp.maximum(h + bf1_ref[...], 0.0)
    h = jnp.dot(h, wf2_ref[...], preferred_element_type=jnp.float32)
    h = jnp.maximum(h + bf2_ref[...], 0.0)
    y3 = jnp.dot(h, wf3_ref[...], preferred_element_type=jnp.float32)
    y3 = y3 + bf3_ref[...]
    # TODO(synk): training-mode dropout(p=0.5) would need pltpu.prng_random_bits
    #             + mask/scale; eval-mode dropout is the identity.
    o_ref[...] = y3.astype(o_ref.dtype)


# ------------------------------ call wrappers ------------------------------

def conv1_pool(p1, w1, b1):
    """p1: [4, M, 75] bf16 -> pooled conv1 activations [M, 8] bf16."""
    _, M, K = p1.shape
    N = w1.shape[1]
    TM = _ROW_TILE
    return pl.pallas_call(
        _conv1_pool_kernel,
        out_shape=jax.ShapeDtypeStruct((M, N), jnp.bfloat16),
        grid=(M // TM,),
        in_specs=[
            pl.BlockSpec((4, TM, K), lambda i: (0, i, 0)),
            pl.BlockSpec((K, N), lambda i: (0, 0)),      # weight resident
            pl.BlockSpec((1, N), lambda i: (0, 0)),      # bias resident
        ],
        out_specs=pl.BlockSpec((TM, N), lambda i: (i, 0)),
        compiler_params=pltpu.CompilerParams(
            dimension_semantics=("parallel",),
            vmem_limit_bytes=_VMEM_LIMIT),
    )(p1, w1, b1)


def conv2_mlp(p2, prep):
    """p2: [4, 25, Bp, 200] bf16 -> logits [Bp, 128] f32 (cols 10.. zero)."""
    w2, b2 = prep["conv2"]
    wf1, bf1 = prep["fc1"]
    wf2, bf2 = prep["fc2"]
    wf3, bf3 = prep["fc3"]
    _, npos, Bp, K2 = p2.shape
    TB = _IMG_TILE
    return pl.pallas_call(
        _conv2_mlp_kernel,
        out_shape=jax.ShapeDtypeStruct((Bp, 128), jnp.float32),
        grid=(Bp // TB,),
        in_specs=[
            pl.BlockSpec((4, npos, TB, K2), lambda i: (0, 0, i, 0)),
            pl.BlockSpec(w2.shape, lambda i: (0, 0)),
            pl.BlockSpec(b2.shape, lambda i: (0, 0)),
            pl.BlockSpec(wf1.shape, lambda i: (0, 0)),
            pl.BlockSpec(bf1.shape, lambda i: (0, 0)),
            pl.BlockSpec(wf2.shape, lambda i: (0, 0)),
            pl.BlockSpec(bf2.shape, lambda i: (0, 0)),
            pl.BlockSpec(wf3.shape, lambda i: (0, 0)),
            pl.BlockSpec(bf3.shape, lambda i: (0, 0)),
        ],
        out_specs=pl.BlockSpec((TB, 128), lambda i: (i, 0)),
        compiler_params=pltpu.CompilerParams(
            dimension_semantics=("parallel",),
            vmem_limit_bytes=_VMEM_LIMIT),
    )(p2, w2, b2, wf1, bf1, wf2, bf2, wf3, bf3)


# ----------------------- im2col layout helpers (XLA side) -----------------------

def _conv1_patches(xh):
    """xh: [B, 32, 32, 3] NHWC bf16 -> [4, B*196, 75] bf16.
       Leading axis: 4 pooling-window positions; rows image-major (b, oh, ow);
       features ordered (kh, kw, c) to match the prepared conv1 weight."""
    B = xh.shape[0]
    groups = []
    for di in range(2):
        for dj in range(2):
            taps = [xh[:, di + kh:di + kh + 27:2, dj + kw:dj + kw + 27:2, :]
                    for kh in range(5) for kw in range(5)]
            p = jnp.concatenate(taps, axis=-1)            # [B, 14, 14, 75]
            groups.append(p.reshape(B * 14 * 14, 75))
    return jnp.stack(groups, axis=0)


def _conv2_patches(a1):
    """a1: [B, 14, 14, 8] NHWC bf16 (channels zero-padded 6 -> 8) ->
       [4, 25, B, 200] bf16, position-major so the fused kernel can slice
       aligned per-position row blocks when flattening."""
    B = a1.shape[0]
    groups = []
    for di in range(2):
        for dj in range(2):
            taps = [a1[:, di + kh:di + kh + 9:2, dj + kw:dj + kw + 9:2, :]
                    for kh in range(5) for kw in range(5)]
            p = jnp.concatenate(taps, axis=-1)            # [B, 5, 5, 200]
            groups.append(p.reshape(B, 25, 200).transpose(1, 0, 2))
    return jnp.stack(groups, axis=0)


# --------------------------------- params ---------------------------------

def _init_layer(key, w_shape, fan_in):
    """PyTorch default init: U(-1/sqrt(fan_in), 1/sqrt(fan_in)) for W and b."""
    kw, kb = jax.random.split(key)
    bound = 1.0 / (fan_in ** 0.5)
    w = jax.random.uniform(kw, w_shape, jnp.float32, -bound, bound)
    b = jax.random.uniform(kb, (w_shape[0],), jnp.float32, -bound, bound)
    return w, b


def init_net_params(key):
    keys = jax.random.split(key, 5)
    return dict(
        conv1=_init_layer(keys[0], (6, 3, 5, 5), 3 * 5 * 5),
        conv2=_init_layer(keys[1], (16, 6, 5, 5), 6 * 5 * 5),
        fc1=_init_layer(keys[2], (120, 16 * 5 * 5), 16 * 5 * 5),
        fc2=_init_layer(keys[3], (84, 120), 120),
        fc3=_init_layer(keys[4], (10, 84), 84),
    )


def prepare_params(params):
    """One-time weight layout prep (outside the jitted forward)."""
    w_c1, b_c1 = params["conv1"]
    w_c2, b_c2 = params["conv2"]
    w_f1, b_f1 = params["fc1"]
    w_f2, b_f2 = params["fc2"]
    w_f3, b_f3 = params["fc3"]

    # conv1: column form [75, 8], feature order (kh, kw, cin), cout 6 -> 8.
    w1 = w_c1.transpose(2, 3, 1, 0).reshape(75, 6)
    w1 = jnp.pad(w1, ((0, 0), (0, 2))).astype(jnp.bfloat16)
    b1 = jnp.pad(b_c1, (0, 2)).reshape(1, 8)

    # conv2: column form [200, 16], feature order (kh, kw, cin-pad8);
    # rows for the two padded input channels are zero.
    w2 = w_c2.transpose(2, 3, 1, 0)                          # [5, 5, 6, 16]
    w2 = jnp.pad(w2, ((0, 0), (0, 0), (0, 2), (0, 0)))
    w2 = w2.reshape(200, 16).astype(jnp.bfloat16)
    b2 = b_c2.reshape(1, 16)

    # fc1: permute rows from torch (c, h, w) flatten order to our (h, w, c)
    # flatten order; pad output cols 120 -> 128.
    wf1 = w_f1.reshape(120, 16, 25).transpose(2, 1, 0).reshape(400, 120)
    wf1 = jnp.pad(wf1, ((0, 0), (0, 8)))                     # [400, 128]
    bf1 = jnp.pad(b_f1, (0, 8)).reshape(1, 128)

    wf2 = jnp.pad(w_f2.T, ((0, 8), (0, 44)))                 # [128, 128]
    bf2 = jnp.pad(b_f2, (0, 44)).reshape(1, 128)

    wf3 = jnp.pad(w_f3.T, ((0, 44), (0, 118)))               # [128, 128]
    bf3 = jnp.pad(b_f3, (0, 118)).reshape(1, 128)

    return dict(conv1=(w1, b1), conv2=(w2, b2),
                fc1=(wf1, bf1), fc2=(wf2, bf2), fc3=(wf3, bf3))


# --------------------------------- forward ---------------------------------

@jax.jit
def net_forward(x_nchw, prep):
    B = x_nchw.shape[0]
    Bp = _round_up(B, _IMG_TILE)
    xh = jnp.transpose(x_nchw, (0, 2, 3, 1))                 # NHWC, once, on input
    if Bp != B:
        xh = jnp.pad(xh, ((0, Bp - B), (0, 0), (0, 0), (0, 0)))
    xh = xh.astype(jnp.bfloat16)

    # x = pool(relu(conv1(x)))
    p1 = _conv1_patches(xh)                                  # [4, Bp*196, 75] bf16
    w1, b1 = prep["conv1"]
    a1 = conv1_pool(p1, w1, b1)                              # [Bp*196, 8] bf16
    a1 = a1.reshape(Bp, 14, 14, 8)                           # NHWC, no transpose

    # x = pool(relu(conv2(x))); flatten; fc1/relu; fc2/relu; fc3; dropout(eval)
    p2 = _conv2_patches(a1)                                  # [4, 25, Bp, 200] bf16
    logits = conv2_mlp(p2, prep)                             # [Bp, 128] f32
    return logits[:B, :10]


if __name__ == "__main__":
    key = jax.random.PRNGKey(0)
    k_params, k_x = jax.random.split(key)

    params = init_net_params(k_params)
    prep = prepare_params(params)          # one-time weight layout preparation

    x = jax.random.normal(k_x, (2, 3, 32, 32), dtype=jnp.float32)

    out = net_forward(x, prep)
    out = jax.block_until_ready(out)
    assert out.shape == (2, 10), out.shape
    print("KERNEL_OK")
</pallas_src>

<mosaic_0001>
module attributes {stable_mosaic.version = 11 : i64} {
  func.func @_conv1_pool_kernel(%arg0: i32, %arg1: memref<4x1568x75xbf16, #tpu.memory_space<vmem>>, %arg2: memref<75x8xbf16, #tpu.memory_space<vmem>>, %arg3: memref<1x8xf32, #tpu.memory_space<vmem>>, %arg4: memref<1568x8xbf16, #tpu.memory_space<vmem>>) attributes {dimension_semantics = [#tpu.dimension_semantics<parallel>], iteration_bounds = array<i64: 2>, scalar_prefetch = 0 : i64, scratch_operands = 0 : i64, tpu.core_type = #tpu.core_type<tc>, window_params = [{transform_indices = @transform_0, window_bounds = array<i64: 4, 1568, 75>}, {pipeline_mode = #tpu.pipeline_mode<synchronous>, transform_indices = @transform_1, window_bounds = array<i64: 75, 8>}, {pipeline_mode = #tpu.pipeline_mode<synchronous>, transform_indices = @transform_2, window_bounds = array<i64: 1, 8>}, {transform_indices = @transform_3, window_bounds = array<i64: 1568, 8>}]} {
    %c0 = arith.constant 0 : index
    %c0_0 = arith.constant 0 : index
    %c0_1 = arith.constant 0 : index
    %0 = vector.load %arg1[%c0, %c0_0, %c0_1] : memref<4x1568x75xbf16, #tpu.memory_space<vmem>>, vector<4x1568x75xbf16>
    %1 = vector.shape_cast %0 : vector<4x1568x75xbf16> to vector<6272x75xbf16>
    %c0_2 = arith.constant 0 : index
    %c0_3 = arith.constant 0 : index
    %2 = vector.load %arg2[%c0_2, %c0_3] : memref<75x8xbf16, #tpu.memory_space<vmem>>, vector<75x8xbf16>
    %cst = arith.constant dense<0.000000e+00> : vector<6272x8xf32>
    %3 = tpu.matmul %1, %2, %cst {dimension_numbers = #tpu.dot_dimension_numbers<[1], [0], [0], [1], [0, 0, 1, 1], [], []>} : vector<6272x75xbf16>, vector<75x8xbf16>, vector<6272x8xf32> -> vector<6272x8xf32>
    %4 = vector.shape_cast %3 : vector<6272x8xf32> to vector<4x1568x8xf32>
    %5 = vector.extract_strided_slice %4 {offsets = [0, 0, 0], sizes = [1, 1568, 8], strides = [1, 1, 1]} : vector<4x1568x8xf32> to vector<1x1568x8xf32>
    %6 = vector.shape_cast %5 : vector<1x1568x8xf32> to vector<1568x8xf32>
    %7 = vector.extract_strided_slice %4 {offsets = [1, 0, 0], sizes = [1, 1568, 8], strides = [1, 1, 1]} : vector<4x1568x8xf32> to vector<1x1568x8xf32>
    %8 = vector.shape_cast %7 : vector<1x1568x8xf32> to vector<1568x8xf32>
    %9 = arith.maximumf %6, %8 : vector<1568x8xf32>
    %10 = vector.extract_strided_slice %4 {offsets = [2, 0, 0], sizes = [1, 1568, 8], strides = [1, 1, 1]} : vector<4x1568x8xf32> to vector<1x1568x8xf32>
    %11 = vector.shape_cast %10 : vector<1x1568x8xf32> to vector<1568x8xf32>
    %12 = vector.extract_strided_slice %4 {offsets = [3, 0, 0], sizes = [1, 1568, 8], strides = [1, 1, 1]} : vector<4x1568x8xf32> to vector<1x1568x8xf32>
    %13 = vector.shape_cast %12 : vector<1x1568x8xf32> to vector<1568x8xf32>
    %14 = arith.maximumf %11, %13 : vector<1568x8xf32>
    %15 = arith.maximumf %9, %14 : vector<1568x8xf32>
    %c0_4 = arith.constant 0 : index
    %c0_5 = arith.constant 0 : index
    %16 = vector.load %arg3[%c0_4, %c0_5] : memref<1x8xf32, #tpu.memory_space<vmem>>, vector<1x8xf32>
    %17 = vector.broadcast %16 : vector<1x8xf32> to vector<1568x8xf32>
    %18 = arith.addf %15, %17 : vector<1568x8xf32>
    %cst_6 = arith.constant 0.000000e+00 : f32
    %19 = vector.broadcast %cst_6 : f32 to vector<1568x8xf32>
    %20 = arith.maximumf %18, %19 : vector<1568x8xf32>
    %21 = arith.truncf %20 : vector<1568x8xf32> to vector<1568x8xbf16>
    %c0_7 = arith.constant 0 : index
    %c0_8 = arith.constant 0 : index
    %22 = vector.load %arg4[%c0_7, %c0_8] : memref<1568x8xbf16, #tpu.memory_space<vmem>>, vector<1568x8xbf16>
    tpu.vector_store %arg4[%c0_7, %c0_8], %21 {strides = array<i32>} : memref<1568x8xbf16, #tpu.memory_space<vmem>>, vector<1568x8xbf16>,
    return
  }
  func.func @transform_0(%arg0: i32) -> (i32, i32, i32) {
    %c0_i32 = arith.constant 0 : i32
    %c0_i32_0 = arith.constant 0 : i32
    %c0_i32_1 = arith.constant 0 : i32
    return %c0_i32, %arg0, %c0_i32_0 : i32, i32, i32
  }
  func.func @transform_1(%arg0: i32) -> (i32, i32) {
    %c0_i32 = arith.constant 0 : i32
    %c0_i32_0 = arith.constant 0 : i32
    %c0_i32_1 = arith.constant 0 : i32
    return %c0_i32, %c0_i32_0 : i32, i32
  }
  func.func @transform_2(%arg0: i32) -> (i32, i32) {
    %c0_i32 = arith.constant 0 : i32
    %c0_i32_0 = arith.constant 0 : i32
    %c0_i32_1 = arith.constant 0 : i32
    return %c0_i32, %c0_i32_0 : i32, i32
  }
  func.func @transform_3(%arg0: i32) -> (i32, i32) {
    %c0_i32 = arith.constant 0 : i32
    %c0_i32_0 = arith.constant 0 : i32
    return %arg0, %c0_i32 : i32, i32
  }
}

module attributes {stable_mosaic.version = 11 : i64} {
  func.func @_conv2_mlp_kernel(%arg0: i32, %arg1: memref<4x25x16x200xbf16, #tpu.memory_space<vmem>>, %arg2: memref<200x16xbf16, #tpu.memory_space<vmem>>, %arg3: memref<1x16xf32, #tpu.memory_space<vmem>>, %arg4: memref<400x128xf32, #tpu.memory_space<vmem>>, %arg5: memref<1x128xf32, #tpu.memory_space<vmem>>, %arg6: memref<128x128xf32, #tpu.memory_space<vmem>>, %arg7: memref<1x128xf32, #tpu.memory_space<vmem>>, %arg8: memref<128x128xf32, #tpu.memory_space<vmem>>, %arg9: memref<1x128xf32, #tpu.memory_space<vmem>>, %arg10: memref<16x128xf32, #tpu.memory_space<vmem>>) attributes {dimension_semantics = [#tpu.dimension_semantics<parallel>], iteration_bounds = array<i64: 1>, scalar_prefetch = 0 : i64, scratch_operands = 0 : i64, tpu.core_type = #tpu.core_type<tc>, window_params = [{transform_indices = @transform_0, window_bounds = array<i64: 4, 25, 16, 200>}, {pipeline_mode = #tpu.pipeline_mode<synchronous>, transform_indices = @transform_1, window_bounds = array<i64: 200, 16>}, {pipeline_mode = #tpu.pipeline_mode<synchronous>, transform_indices = @transform_2, window_bounds = array<i64: 1, 16>}, {pipeline_mode = #tpu.pipeline_mode<synchronous>, transform_indices = @transform_3, window_bounds = array<i64: 400, 128>}, {pipeline_mode = #tpu.pipeline_mode<synchronous>, transform_indices = @transform_4, window_bounds = array<i64: 1, 128>}, {pipeline_mode = #tpu.pipeline_mode<synchronous>, transform_indices = @transform_5, window_bounds = array<i64: 128, 128>}, {pipeline_mode = #tpu.pipeline_mode<synchronous>, transform_indices = @transform_6, window_bounds = array<i64: 1, 128>}, {pipeline_mode = #tpu.pipeline_mode<synchronous>, transform_indices = @transform_7, window_bounds = array<i64: 128, 128>}, {pipeline_mode = #tpu.pipeline_mode<synchronous>, transform_indices = @transform_8, window_bounds = array<i64: 1, 128>}, {transform_indices = @transform_9, window_bounds = array<i64: 16, 128>}]} {
    %c0 = arith.constant 0 : index
    %c0_0 = arith.constant 0 : index
    %c0_1 = arith.constant 0 : index
    %c0_2 = arith.constant 0 : index
    %0 = vector.load %arg1[%c0, %c0_0, %c0_1, %c0_2] : memref<4x25x16x200xbf16, #tpu.memory_space<vmem>>, vector<4x25x16x200xbf16>
    %1 = vector.shape_cast %0 : vector<4x25x16x200xbf16> to vector<1600x200xbf16>
    %c0_3 = arith.constant 0 : index
    %c0_4 = arith.constant 0 : index
    %2 = vector.load %arg2[%c0_3, %c0_4] : memref<200x16xbf16, #tpu.memory_space<vmem>>, vector<200x16xbf16>
    %cst = arith.constant dense<0.000000e+00> : vector<1600x16xf32>
    %3 = tpu.matmul %1, %2, %cst {dimension_numbers = #tpu.dot_dimension_numbers<[1], [0], [0], [1], [0, 0, 1, 1], [], []>} : vector<1600x200xbf16>, vector<200x16xbf16>, vector<1600x16xf32> -> vector<1600x16xf32>
    %4 = vector.shape_cast %3 : vector<1600x16xf32> to vector<4x400x16xf32>
    %5 = vector.extract_strided_slice %4 {offsets = [0, 0, 0], sizes = [1, 400, 16], strides = [1, 1, 1]} : vector<4x400x16xf32> to vector<1x400x16xf32>
    %6 = vector.shape_cast %5 : vector<1x400x16xf32> to vector<400x16xf32>
    %7 = vector.extract_strided_slice %4 {offsets = [1, 0, 0], sizes = [1, 400, 16], strides = [1, 1, 1]} : vector<4x400x16xf32> to vector<1x400x16xf32>
    %8 = vector.shape_cast %7 : vector<1x400x16xf32> to vector<400x16xf32>
    %9 = arith.maximumf %6, %8 : vector<400x16xf32>
    %10 = vector.extract_strided_slice %4 {offsets = [2, 0, 0], sizes = [1, 400, 16], strides = [1, 1, 1]} : vector<4x400x16xf32> to vector<1x400x16xf32>
    %11 = vector.shape_cast %10 : vector<1x400x16xf32> to vector<400x16xf32>
    %12 = vector.extract_strided_slice %4 {offsets = [3, 0, 0], sizes = [1, 400, 16], strides = [1, 1, 1]} : vector<4x400x16xf32> to vector<1x400x16xf32>
    %13 = vector.shape_cast %12 : vector<1x400x16xf32> to vector<400x16xf32>
    %14 = arith.maximumf %11, %13 : vector<400x16xf32>
    %15 = arith.maximumf %9, %14 : vector<400x16xf32>
    %c0_5 = arith.constant 0 : index
    %c0_6 = arith.constant 0 : index
    %16 = vector.load %arg3[%c0_5, %c0_6] : memref<1x16xf32, #tpu.memory_space<vmem>>, vector<1x16xf32>
    %17 = vector.broadcast %16 : vector<1x16xf32> to vector<400x16xf32>
    %18 = arith.addf %15, %17 : vector<400x16xf32>
    %cst_7 = arith.constant 0.000000e+00 : f32
    %19 = vector.broadcast %cst_7 : f32 to vector<400x16xf32>
    %20 = arith.maximumf %18, %19 : vector<400x16xf32>
    %21 = vector.extract_strided_slice %20 {offsets = [0, 0], sizes = [16, 16], strides = [1, 1]} : vector<400x16xf32> to vector<16x16xf32>
    %22 = vector.extract_strided_slice %20 {offsets = [16, 0], sizes = [16, 16], strides = [1, 1]} : vector<400x16xf32> to vector<16x16xf32>
    %23 = vector.extract_strided_slice %20 {offsets = [32, 0], sizes = [16, 16], strides = [1, 1]} : vector<400x16xf32> to vector<16x16xf32>
    %24 = vector.extract_strided_slice %20 {offsets = [48, 0], sizes = [16, 16], strides = [1, 1]} : vector<400x16xf32> to vector<16x16xf32>
    %25 = vector.extract_strided_slice %20 {offsets = [64, 0], sizes = [16, 16], strides = [1, 1]} : vector<400x16xf32> to vector<16x16xf32>
    %26 = vector.extract_strided_slice %20 {offsets = [80, 0], sizes = [16, 16], strides = [1, 1]} : vector<400x16xf32> to vector<16x16xf32>
    %27 = vector.extract_strided_slice %20 {offsets = [96, 0], sizes = [16, 16], strides = [1, 1]} : vector<400x16xf32> to vector<16x16xf32>
    %28 = vector.extract_strided_slice %20 {offsets = [112, 0], sizes = [16, 16], strides = [1, 1]} : vector<400x16xf32> to vector<16x16xf32>
    %29 = vector.extract_strided_slice %20 {offsets = [128, 0], sizes = [16, 16], strides = [1, 1]} : vector<400x16xf32> to vector<16x16xf32>
    %30 = vector.extract_strided_slice %20 {offsets = [144, 0], sizes = [16, 16], strides = [1, 1]} : vector<400x16xf32> to vector<16x16xf32>
    %31 = vector.extract_strided_slice %20 {offsets = [160, 0], sizes = [16, 16], strides = [1, 1]} : vector<400x16xf32> to vector<16x16xf32>
    %32 = vector.extract_strided_slice %20 {offsets = [176, 0], sizes = [16, 16], strides = [1, 1]} : vector<400x16xf32> to vector<16x16xf32>
    %33 = vector.extract_strided_slice %20 {offsets = [192, 0], sizes = [16, 16], strides = [1, 1]} : vector<400x16xf32> to vector<16x16xf32>
    %34 = vector.extract_strided_slice %20 {offsets = [208, 0], sizes = [16, 16], strides = [1, 1]} : vector<400x16xf32> to vector<16x16xf32>
    %35 = vector.extract_strided_slice %20 {offsets = [224, 0], sizes = [16, 16], strides = [1, 1]} : vector<400x16xf32> to vector<16x16xf32>
    %36 = vector.extract_strided_slice %20 {offsets = [240, 0], sizes = [16, 16], strides = [1, 1]} : vector<400x16xf32> to vector<16x16xf32>
    %37 = vector.extract_strided_slice %20 {offsets = [256, 0], sizes = [16, 16], strides = [1, 1]} : vector<400x16xf32> to vector<16x16xf32>
    %38 = vector.extract_strided_slice %20 {offsets = [272, 0], sizes = [16, 16], strides = [1, 1]} : vector<400x16xf32> to vector<16x16xf32>
    %39 = vector.extract_strided_slice %20 {offsets = [288, 0], sizes = [16, 16], strides = [1, 1]} : vector<400x16xf32> to vector<16x16xf32>
    %40 = vector.extract_strided_slice %20 {offsets = [304, 0], sizes = [16, 16], strides = [1, 1]} : vector<400x16xf32> to vector<16x16xf32>
    %41 = vector.extract_strided_slice %20 {offsets = [320, 0], sizes = [16, 16], strides = [1, 1]} : vector<400x16xf32> to vector<16x16xf32>
    %42 = vector.extract_strided_slice %20 {offsets = [336, 0], sizes = [16, 16], strides = [1, 1]} : vector<400x16xf32> to vector<16x16xf32>
    %43 = vector.extract_strided_slice %20 {offsets = [352, 0], sizes = [16, 16], strides = [1, 1]} : vector<400x16xf32> to vector<16x16xf32>
    %44 = vector.extract_strided_slice %20 {offsets = [368, 0], sizes = [16, 16], strides = [1, 1]} : vector<400x16xf32> to vector<16x16xf32>
    %45 = vector.extract_strided_slice %20 {offsets = [384, 0], sizes = [16, 16], strides = [1, 1]} : vector<400x16xf32> to vector<16x16xf32>
    %46 = tpu.concatenate %21, %22, %23, %24, %25, %26, %27, %28, %29, %30, %31, %32, %33, %34, %35, %36 in 1 : vector<16x16xf32>, vector<16x16xf32>, vector<16x16xf32>, vector<16x16xf32>, vector<16x16xf32>, vector<16x16xf32>, vector<16x16xf32>, vector<16x16xf32>, vector<16x16xf32>, vector<16x16xf32>, vector<16x16xf32>, vector<16x16xf32>, vector<16x16xf32>, vector<16x16xf32>, vector<16x16xf32>, vector<16x16xf32> -> vector<16x256xf32>
    %47 = tpu.concatenate %37, %38, %39, %40, %41, %42, %43, %44, %45 in 1 : vector<16x16xf32>, vector<16x16xf32>, vector<16x16xf32>, vector<16x16xf32>, vector<16x16xf32>, vector<16x16xf32>, vector<16x16xf32>, vector<16x16xf32>, vector<16x16xf32> -> vector<16x144xf32>
    %48 = tpu.concatenate %46, %47 in 1 : vector<16x256xf32>, vector<16x144xf32> -> vector<16x400xf32>
    %c0_8 = arith.constant 0 : index
    %c0_9 = arith.constant 0 : index
    %49 = vector.load %arg4[%c0_8, %c0_9] : memref<400x128xf32, #tpu.memory_space<vmem>>, vector<400x128xf32>
    %cst_10 = arith.constant dense<0.000000e+00> : vector<16x128xf32>
    %50 = tpu.matmul %48, %49, %cst_10 {dimension_numbers = #tpu.dot_dimension_numbers<[1], [0], [0], [1], [0, 0, 1, 1], [], []>} : vector<16x400xf32>, vector<400x128xf32>, vector<16x128xf32> -> vector<16x128xf32>
    %c0_11 = arith.constant 0 : index
    %c0_12 = arith.constant 0 : index
    %51 = vector.load %arg5[%c0_11, %c0_12] : memref<1x128xf32, #tpu.memory_space<vmem>>, vector<1x128xf32>
    %52 = vector.broadcast %51 : vector<1x128xf32> to vector<16x128xf32>
    %53 = arith.addf %50, %52 : vector<16x128xf32>
    %cst_13 = arith.constant 0.000000e+00 : f32
    %54 = vector.broadcast %cst_13 : f32 to vector<16x128xf32>
    %55 = arith.maximumf %53, %54 : vector<16x128xf32>
    %c0_14 = arith.constant 0 : index
    %c0_15 = arith.constant 0 : index
    %56 = vector.load %arg6[%c0_14, %c0_15] : memref<128x128xf32, #tpu.memory_space<vmem>>, vector<128x128xf32>
    %cst_16 = arith.constant dense<0.000000e+00> : vector<16x128xf32>
    %57 = tpu.matmul %55, %56, %cst_16 {dimension_numbers = #tpu.dot_dimension_numbers<[1], [0], [0], [1], [0, 0, 1, 1], [], []>} : vector<16x128xf32>, vector<128x128xf32>, vector<16x128xf32> -> vector<16x128xf32>
    %c0_17 = arith.constant 0 : index
    %c0_18 = arith.constant 0 : index
    %58 = vector.load %arg7[%c0_17, %c0_18] : memref<1x128xf32, #tpu.memory_space<vmem>>, vector<1x128xf32>
    %59 = vector.broadcast %58 : vector<1x128xf32> to vector<16x128xf32>
    %60 = arith.addf %57, %59 : vector<16x128xf32>
    %cst_19 = arith.constant 0.000000e+00 : f32
    %61 = vector.broadcast %cst_19 : f32 to vector<16x128xf32>
    %62 = arith.maximumf %60, %61 : vector<16x128xf32>
    %c0_20 = arith.constant 0 : index
    %c0_21 = arith.constant 0 : index
    %63 = vector.load %arg8[%c0_20, %c0_21] : memref<128x128xf32, #tpu.memory_space<vmem>>, vector<128x128xf32>
    %cst_22 = arith.constant dense<0.000000e+00> : vector<16x128xf32>
    %64 = tpu.matmul %62, %63, %cst_22 {dimension_numbers = #tpu.dot_dimension_numbers<[1], [0], [0], [1], [0, 0, 1, 1], [], []>} : vector<16x128xf32>, vector<128x128xf32>, vector<16x128xf32> -> vector<16x128xf32>
    %c0_23 = arith.constant 0 : index
    %c0_24 = arith.constant 0 : index
    %65 = vector.load %arg9[%c0_23, %c0_24] : memref<1x128xf32, #tpu.memory_space<vmem>>, vector<1x128xf32>
    %66 = vector.broadcast %65 : vector<1x128xf32> to vector<16x128xf32>
    %67 = arith.addf %64, %66 : vector<16x128xf32>
    %c0_25 = arith.constant 0 : index
    %c0_26 = arith.constant 0 : index
    %68 = vector.load %arg10[%c0_25, %c0_26] : memref<16x128xf32, #tpu.memory_space<vmem>>, vector<16x128xf32>
    tpu.vector_store %arg10[%c0_25, %c0_26], %67 {strides = array<i32>} : memref<16x128xf32, #tpu.memory_space<vmem>>, vector<16x128xf32>,
    return
  }
  func.func @transform_0(%arg0: i32) -> (i32, i32, i32, i32) {
    %c0_i32 = arith.constant 0 : i32
    %c0_i32_0 = arith.constant 0 : i32
    %c0_i32_1 = arith.constant 0 : i32
    %c0_i32_2 = arith.constant 0 : i32
    return %c0_i32, %c0_i32_0, %arg0, %c0_i32_1 : i32, i32, i32, i32
  }
  func.func @transform_1(%arg0: i32) -> (i32, i32) {
    %c0_i32 = arith.constant 0 : i32
    %c0_i32_0 = arith.constant 0 : i32
    %c0_i32_1 = arith.constant 0 : i32
    return %c0_i32, %c0_i32_0 : i32, i32
  }
  func.func @transform_2(%arg0: i32) -> (i32, i32) {
    %c0_i32 = arith.constant 0 : i32
    %c0_i32_0 = arith.constant 0 : i32
    %c0_i32_1 = arith.constant 0 : i32
    return %c0_i32, %c0_i32_0 : i32, i32
  }
  func.func @transform_3(%arg0: i32) -> (i32, i32) {
    %c0_i32 = arith.constant 0 : i32
    %c0_i32_0 = arith.constant 0 : i32
    %c0_i32_1 = arith.constant 0 : i32
    return %c0_i32, %c0_i32_0 : i32, i32
  }
  func.func @transform_4(%arg0: i32) -> (i32, i32) {
    %c0_i32 = arith.constant 0 : i32
    %c0_i32_0 = arith.constant 0 : i32
    %c0_i32_1 = arith.constant 0 : i32
    return %c0_i32, %c0_i32_0 : i32, i32
  }
  func.func @transform_5(%arg0: i32) -> (i32, i32) {
    %c0_i32 = arith.constant 0 : i32
    %c0_i32_0 = arith.constant 0 : i32
    %c0_i32_1 = arith.constant 0 : i32
    return %c0_i32, %c0_i32_0 : i32, i32
  }
  func.func @transform_6(%arg0: i32) -> (i32, i32) {
    %c0_i32 = arith.constant 0 : i32
    %c0_i32_0 = arith.constant 0 : i32
    %c0_i32_1 = arith.constant 0 : i32
    return %c0_i32, %c0_i32_0 : i32, i32
  }
  func.func @transform_7(%arg0: i32) -> (i32, i32) {
    %c0_i32 = arith.constant 0 : i32
    %c0_i32_0 = arith.constant 0 : i32
    %c0_i32_1 = arith.constant 0 : i32
    return %c0_i32, %c0_i32_0 : i32, i32
  }
  func.func @transform_8(%arg0: i32) -> (i32, i32) {
    %c0_i32 = arith.constant 0 : i32
    %c0_i32_0 = arith.constant 0 : i32
    %c0_i32_1 = arith.constant 0 : i32
    return %c0_i32, %c0_i32_0 : i32, i32
  }
  func.func @transform_9(%arg0: i32) -> (i32, i32) {
    %c0_i32 = arith.constant 0 : i32
    %c0_i32_0 = arith.constant 0 : i32
    return %arg0, %c0_i32 : i32, i32
  }
}

</mosaic_0001>

<bundles_post_ra>
// kernel: net_forward.2
= control target key start
LH: loop header
LB: loop body
LE: loop exit
PB: predicated region body
PF: predicated region fallthrough
CT: control target
= control target key end

     0   :  { %s16375_s12 = smov 0   ;;  %s16377_s13 = smov 0   ;;  %s18639_s0 = inlined_call_operand.vmem [shape: bf16[4,3136,75], index: 0, kind: input, shape index: {}]   ;;  %s18640_s1 = inlined_call_operand.vmem [shape: bf16[75,8], index: 1, kind: input, shape index: {}]   ;;  %s18641_s2 = inlined_call_operand.vmem [shape: f32[1,8], index: 2, kind: input, shape index: {}]   ;;  %s18642_s3 = inlined_call_operand.vmem [shape: bf16[3136,8], index: 3, kind: output, shape index: {}]  }
   0x1   :  { %s16379_s14 = smov 0  }
   0x2 LB: > { %s13895_s15 = sadd.s32 4294967295, %s16352_s14   ;;  %s16392_s16 = sadd.s32 1, %s16352_s14   ;;  %s16352_s14 = sphi %s16379_s14, %s18645_s14   ;;  %s16348_s13 = sphi %s16377_s13, %s18644_s13   ;;  %s16344_s12 = sphi %s16375_s12, %s18643_s12  }
   0x3   : > { %s17_s17 = ssub.s32 %s16352_s14, %s16392_s16  ;;  %s20_s18 = sadd.s32 1, %s16348_s13 }
   0x4   : > { %p18_p0 = scmp.eq.s32.totalorder %s17_s17, 0  ;;  %p27_p1 = scmp.ne.s32.totalorder %s16348_s13, %s16344_s12 }
   0x5   : > { %p28_p2 = scmp.eq.s32.totalorder %s16352_s14, 0  ;;  %p13898_p4 = scmp.ge.s32.totalorder %s16352_s14, 2 }
   0x6   : > { %s16401_s19 = scalar_select %p18_p0, %s16348_s13, %s20_s18  }
   0x7   : > { %p29_p3 = por %p28_p2, %p27_p1  ;;  %127 = sbr.rel (%p13898_p4) target bundleno = 409 (0x199), region = 24 }
   0xc   : > { %130 = sbr.rel (!%p29_p3) target bundleno = 409 (0x199), region = 28  ;;  %s132_s20 = sand.u32 (%p29_p3), 1, %s16348_s13  }
   0xd   : > { %s15884_s21 = smul.u32 (%p29_p3), 784, %s16352_s14 }
   0xe   : > { %s16297_s22 = smul.u32 (%p29_p3), 3136, %s132_s20 }
   0xf   : > { %s16409_s25 = scalar_lea.vmem (%p29_p3), %s18639_s0, %s15884_s21 }
  0x10   : > { %v154_v0 = vld [vmem:[%s16409_s25] sm:$0xff] (%p29_p3)   ;;  %v158_v1 = vld [vmem:[%s16409_s25 + $0x8] sm:$0xff] (%p29_p3)   ;;  %v162_v2 = vld [vmem:[%s16409_s25 + $0x10] sm:$0xff] (%p29_p3)   ;;  %s16414_s26 = scalar_lea.vmem (%p29_p3), [#allocation2], %s16297_s22 }
  0x11   : > { %155 = vst [vmem:[%s16414_s26] sm:$0xff] %v154_v0   ;;  %v166_v3 = vld [vmem:[%s16409_s25 + $0x18] sm:$0xff]   ;;  %v170_v4 = vld [vmem:[%s16409_s25 + $0x20] sm:$0xff]   ;;  %v174_v5 = vld [vmem:[%s16409_s25 + $0x28] sm:$0xff]  }
  0x12   : > { %159 = vst [vmem:[%s16414_s26 + $0x8] sm:$0xff] %v158_v1   ;;  %v178_v6 = vld [vmem:[%s16409_s25 + $0x30] sm:$0xff]   ;;  %v182_v7 = vld [vmem:[%s16409_s25 + $0x38] sm:$0xff]   ;;  %v186_v8 = vld [vmem:[%s16409_s25 + $0x40] sm:$0xff]  }
  0x13   : > { %163 = vst [vmem:[%s16414_s26 + $0x10] sm:$0xff] %v162_v2   ;;  %v190_v9 = vld [vmem:[%s16409_s25 + $0x48] sm:$0xff]   ;;  %v194_v10 = vld [vmem:[%s16409_s25 + $0x50] sm:$0xff]   ;;  %v198_v11 = vld [vmem:[%s16409_s25 + $0x58] sm:$0xff]  }
  0x14   : > { %167 = vst [vmem:[%s16414_s26 + $0x18] sm:$0xff] %v166_v3   ;;  %v202_v12 = vld [vmem:[%s16409_s25 + $0x60] sm:$0xff]   ;;  %v206_v13 = vld [vmem:[%s16409_s25 + $0x68] sm:$0xff]   ;;  %v210_v14 = vld [vmem:[%s16409_s25 + $0x70] sm:$0xff]  }
  0x15   : > { %171 = vst [vmem:[%s16414_s26 + $0x20] sm:$0xff] %v170_v4   ;;  %v214_v15 = vld [vmem:[%s16409_s25 + $0x78] sm:$0xff]   ;;  %v218_v16 = vld [vmem:[%s16409_s25 + $0x80] sm:$0xff]   ;;  %v222_v17 = vld [vmem:[%s16409_s25 + $0x88] sm:$0xff]  }
  0x16   : > { %175 = vst [vmem:[%s16414_s26 + $0x28] sm:$0xff] %v174_v5   ;;  %v226_v18 = vld [vmem:[%s16409_s25 + $0x90] sm:$0xff]   ;;  %v230_v19 = vld [vmem:[%s16409_s25 + $0x98] sm:$0xff]   ;;  %v234_v20 = vld [vmem:[%s16409_s25 + $0xa0] sm:$0xff]  }
  0x17   : > { %179 = vst [vmem:[%s16414_s26 + $0x30] sm:$0xff] %v178_v6   ;;  %v238_v21 = vld [vmem:[%s16409_s25 + $0xa8] sm:$0xff]   ;;  %v242_v22 = vld [vmem:[%s16409_s25 + $0xb0] sm:$0xff]   ;;  %v246_v23 = vld [vmem:[%s16409_s25 + $0xb8] sm:$0xff]  }
  0x18   : > { %183 = vst [vmem:[%s16414_s26 + $0x38] sm:$0xff] %v182_v7   ;;  %v250_v24 = vld [vmem:[%s16409_s25 + $0xc0] sm:$0xff]   ;;  %v254_v25 = vld [vmem:[%s16409_s25 + $0xc8] sm:$0xff]   ;;  %v258_v26 = vld [vmem:[%s16409_s25 + $0xd0] sm:$0xff]  }
  0x19   : > { %187 = vst [vmem:[%s16414_s26 + $0x40] sm:$0xff] %v186_v8   ;;  %v262_v27 = vld [vmem:[%s16409_s25 + $0xd8] sm:$0xff]   ;;  %v266_v28 = vld [vmem:[%s16409_s25 + $0xe0] sm:$0xff]   ;;  %v270_v29 = vld [vmem:[%s16409_s25 + $0xe8] sm:$0xff]  }
  0x1a   : > { %191 = vst [vmem:[%s16414_s26 + $0x48] sm:$0xff] %v190_v9   ;;  %v274_v30 = vld [vmem:[%s16409_s25 + $0xf0] sm:$0xff]   ;;  %v278_v31 = vld [vmem:[%s16409_s25 + $0xf8] sm:$0xff]   ;;  %v282_v32 = vld [vmem:[%s16409_s25 + $0x100] sm:$0xff]  }
  0x1b   : > { %195 = vst [vmem:[%s16414_s26 + $0x50] sm:$0xff] %v194_v10   ;;  %v286_v33 = vld [vmem:[%s16409_s25 + $0x108] sm:$0xff]   ;;  %v290_v34 = vld [vmem:[%s16409_s25 + $0x110] sm:$0xff]   ;;  %v294_v35 = vld [vmem:[%s16409_s25 + $0x118] sm:$0xff]  }
  0x1c   : > { %199 = vst [vmem:[%s16414_s26 + $0x58] sm:$0xff] %v198_v11   ;;  %v298_v36 = vld [vmem:[%s16409_s25 + $0x120] sm:$0xff]   ;;  %v302_v37 = vld [vmem:[%s16409_s25 + $0x128] sm:$0xff]   ;;  %v306_v38 = vld [vmem:[%s16409_s25 + $0x130] sm:$0xff]  }
  0x1d   : > { %203 = vst [vmem:[%s16414_s26 + $0x60] sm:$0xff] %v202_v12   ;;  %v310_v39 = vld [vmem:[%s16409_s25 + $0x138] sm:$0xff]   ;;  %v314_v40 = vld [vmem:[%s16409_s25 + $0x140] sm:$0xff]   ;;  %v318_v41 = vld [vmem:[%s16409_s25 + $0x148] sm:$0xff]  }
  0x1e   : > { %207 = vst [vmem:[%s16414_s26 + $0x68] sm:$0xff] %v206_v13   ;;  %v322_v42 = vld [vmem:[%s16409_s25 + $0x150] sm:$0xff]   ;;  %v326_v43 = vld [vmem:[%s16409_s25 + $0x158] sm:$0xff]   ;;  %v330_v44 = vld [vmem:[%s16409_s25 + $0x160] sm:$0xff]  }
  0x1f   : > { %211 = vst [vmem:[%s16414_s26 + $0x70] sm:$0xff] %v210_v14   ;;  %v334_v45 = vld [vmem:[%s16409_s25 + $0x168] sm:$0xff]   ;;  %v338_v46 = vld [vmem:[%s16409_s25 + $0x170] sm:$0xff]   ;;  %v342_v47 = vld [vmem:[%s16409_s25 + $0x178] sm:$0xff]  }
  0x20   : > { %215 = vst [vmem:[%s16414_s26 + $0x78] sm:$0xff] %v214_v15   ;;  %v346_v48 = vld [vmem:[%s16409_s25 + $0x180] sm:$0xff]   ;;  %v350_v49 = vld [vmem:[%s16409_s25 + $0x188] sm:$0xff]   ;;  %v354_v50 = vld [vmem:[%s16409_s25 + $0x190] sm:$0xff]  }
  0x21   : > { %219 = vst [vmem:[%s16414_s26 + $0x80] sm:$0xff] %v218_v16   ;;  %v358_v51 = vld [vmem:[%s16409_s25 + $0x198] sm:$0xff]   ;;  %v362_v52 = vld [vmem:[%s16409_s25 + $0x1a0] sm:$0xff]   ;;  %v366_v53 = vld [vmem:[%s16409_s25 + $0x1a8] sm:$0xff]  }
  0x22   : > { %223 = vst [vmem:[%s16414_s26 + $0x88] sm:$0xff] %v222_v17   ;;  %v370_v54 = vld [vmem:[%s16409_s25 + $0x1b0] sm:$0xff]   ;;  %v374_v55 = vld [vmem:[%s16409_s25 + $0x1b8] sm:$0xff]   ;;  %v378_v56 = vld [vmem:[%s16409_s25 + $0x1c0] sm:$0xff]  }
  0x23   : > { %227 = vst [vmem:[%s16414_s26 + $0x90] sm:$0xff] %v226_v18   ;;  %v382_v57 = vld [vmem:[%s16409_s25 + $0x1c8] sm:$0xff]   ;;  %v386_v58 = vld [vmem:[%s16409_s25 + $0x1d0] sm:$0xff]   ;;  %v390_v59 = vld [vmem:[%s16409_s25 + $0x1d8] sm:$0xff]  }
  0x24   : > { %231 = vst [vmem:[%s16414_s26 + $0x98] sm:$0xff] %v230_v19   ;;  %v394_v60 = vld [vmem:[%s16409_s25 + $0x1e0] sm:$0xff]   ;;  %v398_v61 = vld [vmem:[%s16409_s25 + $0x1e8] sm:$0xff]   ;;  %v402_v62 = vld [vmem:[%s16409_s25 + $0x1f0] sm:$0xff]  }
  0x25   : > { %235 = vst [vmem:[%s16414_s26 + $0xa0] sm:$0xff] %v234_v20   ;;  %v406_v63 = vld [vmem:[%s16409_s25 + $0x1f8] sm:$0xff]   ;;  %v410_v0 = vld [vmem:[%s16409_s25 + $0x200] sm:$0xff]   ;;  %v414_v1 = vld [vmem:[%s16409_s25 + $0x208] sm:$0xff]  }
  0x26   : > { %239 = vst [vmem:[%s16414_s26 + $0xa8] sm:$0xff] %v238_v21   ;;  %v418_v2 = vld [vmem:[%s16409_s25 + $0x210] sm:$0xff]   ;;  %v422_v3 = vld [vmem:[%s16409_s25 + $0x218] sm:$0xff]   ;;  %v426_v4 = vld [vmem:[%s16409_s25 + $0x220] sm:$0xff]  }
  0x27   : > { %243 = vst [vmem:[%s16414_s26 + $0xb0] sm:$0xff] %v242_v22   ;;  %v430_v5 = vld [vmem:[%s16409_s25 + $0x228] sm:$0xff]   ;;  %v434_v6 = vld [vmem:[%s16409_s25 + $0x230] sm:$0xff]   ;;  %v438_v7 = vld [vmem:[%s16409_s25 + $0x238] sm:$0xff]  }
  0x28   : > { %247 = vst [vmem:[%s16414_s26 + $0xb8] sm:$0xff] %v246_v23   ;;  %v442_v8 = vld [vmem:[%s16409_s25 + $0x240] sm:$0xff]   ;;  %v446_v9 = vld [vmem:[%s16409_s25 + $0x248] sm:$0xff]   ;;  %v450_v10 = vld [vmem:[%s16409_s25 + $0x250] sm:$0xff]  }
  0x29   : > { %251 = vst [vmem:[%s16414_s26 + $0xc0] sm:$0xff] %v250_v24   ;;  %v454_v11 = vld [vmem:[%s16409_s25 + $0x258] sm:$0xff]   ;;  %v458_v12 = vld [vmem:[%s16409_s25 + $0x260] sm:$0xff]   ;;  %v462_v13 = vld [vmem:[%s16409_s25 + $0x268] sm:$0xff]  }
  0x2a   : > { %255 = vst [vmem:[%s16414_s26 + $0xc8] sm:$0xff] %v254_v25   ;;  %v466_v14 = vld [vmem:[%s16409_s25 + $0x270] sm:$0xff]   ;;  %v470_v15 = vld [vmem:[%s16409_s25 + $0x278] sm:$0xff]   ;;  %v474_v16 = vld [vmem:[%s16409_s25 + $0x280] sm:$0xff]  }
  0x2b   : > { %259 = vst [vmem:[%s16414_s26 + $0xd0] sm:$0xff] %v258_v26   ;;  %v478_v17 = vld [vmem:[%s16409_s25 + $0x288] sm:$0xff]   ;;  %v482_v18 = vld [vmem:[%s16409_s25 + $0x290] sm:$0xff]   ;;  %v486_v19 = vld [vmem:[%s16409_s25 + $0x298] sm:$0xff]  }
  0x2c   : > { %263 = vst [vmem:[%s16414_s26 + $0xd8] sm:$0xff] %v262_v27   ;;  %v490_v20 = vld [vmem:[%s16409_s25 + $0x2a0] sm:$0xff]   ;;  %v494_v21 = vld [vmem:[%s16409_s25 + $0x2a8] sm:$0xff]   ;;  %v498_v22 = vld [vmem:[%s16409_s25 + $0x2b0] sm:$0xff]  }
  0x2d   : > { %267 = vst [vmem:[%s16414_s26 + $0xe0] sm:$0xff] %v266_v28   ;;  %v502_v23 = vld [vmem:[%s16409_s25 + $0x2b8] sm:$0xff]   ;;  %v506_v24 = vld [vmem:[%s16409_s25 + $0x2c0] sm:$0xff]   ;;  %v510_v25 = vld [vmem:[%s16409_s25 + $0x2c8] sm:$0xff]  }
  0x2e   : > { %271 = vst [vmem:[%s16414_s26 + $0xe8] sm:$0xff] %v270_v29   ;;  %v514_v26 = vld [vmem:[%s16409_s25 + $0x2d0] sm:$0xff]   ;;  %v518_v27 = vld [vmem:[%s16409_s25 + $0x2d8] sm:$0xff]   ;;  %v522_v28 = vld [vmem:[%s16409_s25 + $0x2e0] sm:$0xff]  }
  0x2f   : > { %275 = vst [vmem:[%s16414_s26 + $0xf0] sm:$0xff] %v274_v30   ;;  %v526_v29 = vld [vmem:[%s16409_s25 + $0x2e8] sm:$0xff]   ;;  %v530_v30 = vld [vmem:[%s16409_s25 + $0x2f0] sm:$0xff]  }
  0x30   : > { %279 = vst [vmem:[%s16414_s26 + $0xf8] sm:$0xff] %v278_v31   ;;  %v534_v31 = vld [vmem:[%s16409_s25 + $0x2f8] sm:$0xff]  }
  0x31   : > { %283 = vst [vmem:[%s16414_s26 + $0x100] sm:$0xff] %v282_v32   ;;  %v538_v32 = vld [vmem:[%s16409_s25 + $0x300] sm:$0xff]  }
  0x32   : > { %287 = vst [vmem:[%s16414_s26 + $0x108] sm:$0xff] %v286_v33   ;;  %v542_v33 = vld [vmem:[%s16409_s25 + $0x308] sm:$0xff]  }
  0x33   : > { %291 = vst [vmem:[%s16414_s26 + $0x110] sm:$0xff] %v290_v34   ;;  %v546_v34 = vld [vmem:[%s16409_s25 + $0x620] sm:$0xff]  }
  0x34   : > { %295 = vst [vmem:[%s16414_s26 + $0x118] sm:$0xff] %v294_v35   ;;  %v550_v35 = vld [vmem:[%s16409_s25 + $0x628] sm:$0xff]  }
  0x35   : > { %299 = vst [vmem:[%s16414_s26 + $0x120] sm:$0xff] %v298_v36   ;;  %v554_v36 = vld [vmem:[%s16409_s25 + $0x630] sm:$0xff]  }
  0x36   : > { %303 = vst [vmem:[%s16414_s26 + $0x128] sm:$0xff] %v302_v37   ;;  %v558_v37 = vld [vmem:[%s16409_s25 + $0x638] sm:$0xff]  }
  0x37   : > { %307 = vst [vmem:[%s16414_s26 + $0x130] sm:$0xff] %v306_v38   ;;  %v562_v38 = vld [vmem:[%s16409_s25 + $0x640] sm:$0xff]  }
  0x38   : > { %311 = vst [vmem:[%s16414_s26 + $0x138] sm:$0xff] %v310_v39   ;;  %v566_v39 = vld [vmem:[%s16409_s25 + $0x648] sm:$0xff]  }
  0x39   : > { %315 = vst [vmem:[%s16414_s26 + $0x140] sm:$0xff] %v314_v40   ;;  %v570_v40 = vld [vmem:[%s16409_s25 + $0x650] sm:$0xff]  }
  0x3a   : > { %319 = vst [vmem:[%s16414_s26 + $0x148] sm:$0xff] %v318_v41   ;;  %v574_v41 = vld [vmem:[%s16409_s25 + $0x658] sm:$0xff]  }
  0x3b   : > { %323 = vst [vmem:[%s16414_s26 + $0x150] sm:$0xff] %v322_v42   ;;  %v578_v42 = vld [vmem:[%s16409_s25 + $0x660] sm:$0xff]  }
  0x3c   : > { %327 = vst [vmem:[%s16414_s26 + $0x158] sm:$0xff] %v326_v43   ;;  %v582_v43 = vld [vmem:[%s16409_s25 + $0x668] sm:$0xff]  }
  0x3d   : > { %331 = vst [vmem:[%s16414_s26 + $0x160] sm:$0xff] %v330_v44   ;;  %v586_v44 = vld [vmem:[%s16409_s25 + $0x670] sm:$0xff]  }
  0x3e   : > { %335 = vst [vmem:[%s16414_s26 + $0x168] sm:$0xff] %v334_v45   ;;  %v590_v45 = vld [vmem:[%s16409_s25 + $0x678] sm:$0xff]  }
  0x3f   : > { %339 = vst [vmem:[%s16414_s26 + $0x170] sm:$0xff] %v338_v46   ;;  %v594_v46 = vld [vmem:[%s16409_s25 + $0x680] sm:$0xff]  }
  0x40   : > { %343 = vst [vmem:[%s16414_s26 + $0x178] sm:$0xff] %v342_v47   ;;  %v598_v47 = vld [vmem:[%s16409_s25 + $0x688] sm:$0xff]  }
  0x41   : > { %347 = vst [vmem:[%s16414_s26 + $0x180] sm:$0xff] %v346_v48   ;;  %v602_v48 = vld [vmem:[%s16409_s25 + $0x690] sm:$0xff]  }
  0x42   : > { %351 = vst [vmem:[%s16414_s26 + $0x188] sm:$0xff] %v350_v49   ;;  %v606_v49 = vld [vmem:[%s16409_s25 + $0x698] sm:$0xff]  }
  0x43   : > { %355 = vst [vmem:[%s16414_s26 + $0x190] sm:$0xff] %v354_v50   ;;  %v610_v50 = vld [vmem:[%s16409_s25 + $0x6a0] sm:$0xff]  }
  0x44   : > { %359 = vst [vmem:[%s16414_s26 + $0x198] sm:$0xff] %v358_v51   ;;  %v614_v51 = vld [vmem:[%s16409_s25 + $0x6a8] sm:$0xff]  }
  0x45   : > { %363 = vst [vmem:[%s16414_s26 + $0x1a0] sm:$0xff] %v362_v52   ;;  %v618_v52 = vld [vmem:[%s16409_s25 + $0x6b0] sm:$0xff]  }
  0x46   : > { %367 = vst [vmem:[%s16414_s26 + $0x1a8] sm:$0xff] %v366_v53   ;;  %v622_v53 = vld [vmem:[%s16409_s25 + $0x6b8] sm:$0xff]  }
  0x47   : > { %371 = vst [vmem:[%s16414_s26 + $0x1b0] sm:$0xff] %v370_v54   ;;  %v626_v54 = vld [vmem:[%s16409_s25 + $0x6c0] sm:$0xff]  }
  0x48   : > { %375 = vst [vmem:[%s16414_s26 + $0x1b8] sm:$0xff] %v374_v55   ;;  %v630_v55 = vld [vmem:[%s16409_s25 + $0x6c8] sm:$0xff]  }
  0x49   : > { %379 = vst [vmem:[%s16414_s26 + $0x1c0] sm:$0xff] %v378_v56   ;;  %v634_v56 = vld [vmem:[%s16409_s25 + $0x6d0] sm:$0xff]  }
  0x4a   : > { %383 = vst [vmem:[%s16414_s26 + $0x1c8] sm:$0xff] %v382_v57   ;;  %v638_v57 = vld [vmem:[%s16409_s25 + $0x6d8] sm:$0xff]  }
  0x4b   : > { %387 = vst [vmem:[%s16414_s26 + $0x1d0] sm:$0xff] %v386_v58   ;;  %v642_v58 = vld [vmem:[%s16409_s25 + $0x6e0] sm:$0xff]  }
  0x4c   : > { %391 = vst [vmem:[%s16414_s26 + $0x1d8] sm:$0xff] %v390_v59   ;;  %v646_v59 = vld [vmem:[%s16409_s25 + $0x6e8] sm:$0xff]  }
  0x4d   : > { %395 = vst [vmem:[%s16414_s26 + $0x1e0] sm:$0xff] %v394_v60   ;;  %v650_v60 = vld [vmem:[%s16409_s25 + $0x6f0] sm:$0xff]  }
  0x4e   : > { %399 = vst [vmem:[%s16414_s26 + $0x1e8] sm:$0xff] %v398_v61   ;;  %v654_v61 = vld [vmem:[%s16409_s25 + $0x6f8] sm:$0xff]  }
  0x4f   : > { %403 = vst [vmem:[%s16414_s26 + $0x1f0] sm:$0xff] %v402_v62   ;;  %v658_v62 = vld [vmem:[%s16409_s25 + $0x700] sm:$0xff]  }
  0x50   : > { %407 = vst [vmem:[%s16414_s26 + $0x1f8] sm:$0xff] %v406_v63   ;;  %v662_v63 = vld [vmem:[%s16409_s25 + $0x708] sm:$0xff]  }
  0x51   : > { %411 = vst [vmem:[%s16414_s26 + $0x200] sm:$0xff] %v410_v0   ;;  %v666_v0 = vld [vmem:[%s16409_s25 + $0x710] sm:$0xff]  }
  0x52   : > { %415 = vst [vmem:[%s16414_s26 + $0x208] sm:$0xff] %v414_v1   ;;  %v670_v1 = vld [vmem:[%s16409_s25 + $0x718] sm:$0xff]  }
  0x53   : > { %419 = vst [vmem:[%s16414_s26 + $0x210] sm:$0xff] %v418_v2   ;;  %v674_v2 = vld [vmem:[%s16409_s25 + $0x720] sm:$0xff]  }
  0x54   : > { %423 = vst [vmem:[%s16414_s26 + $0x218] sm:$0xff] %v422_v3   ;;  %v678_v3 = vld [vmem:[%s16409_s25 + $0x728] sm:$0xff]  }
  0x55   : > { %427 = vst [vmem:[%s16414_s26 + $0x220] sm:$0xff] %v426_v4   ;;  %v682_v4 = vld [vmem:[%s16409_s25 + $0x730] sm:$0xff]  }
  0x56   : > { %431 = vst [vmem:[%s16414_s26 + $0x228] sm:$0xff] %v430_v5   ;;  %v686_v5 = vld [vmem:[%s16409_s25 + $0x738] sm:$0xff]  }
  0x57   : > { %435 = vst [vmem:[%s16414_s26 + $0x230] sm:$0xff] %v434_v6   ;;  %v690_v6 = vld [vmem:[%s16409_s25 + $0x740] sm:$0xff]  }
  0x58   : > { %439 = vst [vmem:[%s16414_s26 + $0x238] sm:$0xff] %v438_v7   ;;  %v694_v7 = vld [vmem:[%s16409_s25 + $0x748] sm:$0xff]  }
  0x59   : > { %443 = vst [vmem:[%s16414_s26 + $0x240] sm:$0xff] %v442_v8   ;;  %v698_v8 = vld [vmem:[%s16409_s25 + $0x750] sm:$0xff]  }
  0x5a   : > { %447 = vst [vmem:[%s16414_s26 + $0x248] sm:$0xff] %v446_v9   ;;  %v702_v9 = vld [vmem:[%s16409_s25 + $0x758] sm:$0xff]  }
  0x5b   : > { %451 = vst [vmem:[%s16414_s26 + $0x250] sm:$0xff] %v450_v10   ;;  %v706_v10 = vld [vmem:[%s16409_s25 + $0x760] sm:$0xff]  }
  0x5c   : > { %455 = vst [vmem:[%s16414_s26 + $0x258] sm:$0xff] %v454_v11   ;;  %v710_v11 = vld [vmem:[%s16409_s25 + $0x768] sm:$0xff]  }
  0x5d   : > { %459 = vst [vmem:[%s16414_s26 + $0x260] sm:$0xff] %v458_v12   ;;  %v714_v12 = vld [vmem:[%s16409_s25 + $0x770] sm:$0xff]  }
  0x5e   : > { %463 = vst [vmem:[%s16414_s26 + $0x268] sm:$0xff] %v462_v13   ;;  %v718_v13 = vld [vmem:[%s16409_s25 + $0x778] sm:$0xff]  }
  0x5f   : > { %467 = vst [vmem:[%s16414_s26 + $0x270] sm:$0xff] %v466_v14   ;;  %v722_v14 = vld [vmem:[%s16409_s25 + $0x780] sm:$0xff]  }
  0x60   : > { %471 = vst [vmem:[%s16414_s26 + $0x278] sm:$0xff] %v470_v15   ;;  %v726_v15 = vld [vmem:[%s16409_s25 + $0x788] sm:$0xff]  }
  0x61   : > { %475 = vst [vmem:[%s16414_s26 + $0x280] sm:$0xff] %v474_v16   ;;  %v730_v16 = vld [vmem:[%s16409_s25 + $0x790] sm:$0xff]  }
  0x62   : > { %479 = vst [vmem:[%s16414_s26 + $0x288] sm:$0xff] %v478_v17   ;;  %v734_v17 = vld [vmem:[%s16409_s25 + $0x798] sm:$0xff]  }
  0x63   : > { %483 = vst [vmem:[%s16414_s26 + $0x290] sm:$0xff] %v482_v18   ;;  %v738_v18 = vld [vmem:[%s16409_s25 + $0x7a0] sm:$0xff]  }
  0x64   : > { %487 = vst [vmem:[%s16414_s26 + $0x298] sm:$0xff] %v486_v19   ;;  %v742_v19 = vld [vmem:[%s16409_s25 + $0x7a8] sm:$0xff]  }
  0x65   : > { %491 = vst [vmem:[%s16414_s26 + $0x2a0] sm:$0xff] %v490_v20   ;;  %v746_v20 = vld [vmem:[%s16409_s25 + $0x7b0] sm:$0xff]  }
  0x66   : > { %495 = vst [vmem:[%s16414_s26 + $0x2a8] sm:$0xff] %v494_v21   ;;  %v750_v21 = vld [vmem:[%s16409_s25 + $0x7b8] sm:$0xff]  }
  0x67   : > { %499 = vst [vmem:[%s16414_s26 + $0x2b0] sm:$0xff] %v498_v22   ;;  %v754_v22 = vld [vmem:[%s16409_s25 + $0x7c0] sm:$0xff]  }
  0x68   : > { %503 = vst [vmem:[%s16414_s26 + $0x2b8] sm:$0xff] %v502_v23   ;;  %v758_v23 = vld [vmem:[%s16409_s25 + $0x7c8] sm:$0xff]  }
  0x69   : > { %507 = vst [vmem:[%s16414_s26 + $0x2c0] sm:$0xff] %v506_v24   ;;  %v762_v24 = vld [vmem:[%s16409_s25 + $0x7d0] sm:$0xff]  }
  0x6a   : > { %511 = vst [vmem:[%s16414_s26 + $0x2c8] sm:$0xff] %v510_v25   ;;  %v766_v25 = vld [vmem:[%s16409_s25 + $0x7d8] sm:$0xff]  }
  0x6b   : > { %515 = vst [vmem:[%s16414_s26 + $0x2d0] sm:$0xff] %v514_v26   ;;  %v770_v26 = vld [vmem:[%s16409_s25 + $0x7e0] sm:$0xff]  }
  0x6c   : > { %519 = vst [vmem:[%s16414_s26 + $0x2d8] sm:$0xff] %v518_v27   ;;  %v774_v27 = vld [vmem:[%s16409_s25 + $0x7e8] sm:$0xff]  }
  0x6d   : > { %523 = vst [vmem:[%s16414_s26 + $0x2e0] sm:$0xff] %v522_v28   ;;  %v778_v28 = vld [vmem:[%s16409_s25 + $0x7f0] sm:$0xff]  }
  0x6e   : > { %527 = vst [vmem:[%s16414_s26 + $0x2e8] sm:$0xff] %v526_v29   ;;  %v782_v29 = vld [vmem:[%s16409_s25 + $0x7f8] sm:$0xff]  }
  0x6f   : > { %531 = vst [vmem:[%s16414_s26 + $0x2f0] sm:$0xff] %v530_v30   ;;  %v786_v30 = vld [vmem:[%s16409_s25 + $0x800] sm:$0xff]  }
  0x70   : > { %535 = vst [vmem:[%s16414_s26 + $0x2f8] sm:$0xff] %v534_v31   ;;  %v790_v31 = vld [vmem:[%s16409_s25 + $0x808] sm:$0xff]  }
  0x71   : > { %539 = vst [vmem:[%s16414_s26 + $0x300] sm:$0xff] %v538_v32   ;;  %v794_v32 = vld [vmem:[%s16409_s25 + $0x810] sm:$0xff]  }
  0x72   : > { %543 = vst [vmem:[%s16414_s26 + $0x308] sm:$0xff] %v542_v33   ;;  %v798_v33 = vld [vmem:[%s16409_s25 + $0x818] sm:$0xff]  }
  0x73   : > { %547 = vst [vmem:[%s16414_s26 + $0x310] sm:$0xff] %v546_v34   ;;  %v802_v34 = vld [vmem:[%s16409_s25 + $0x820] sm:$0xff]  }
  0x74   : > { %551 = vst [vmem:[%s16414_s26 + $0x318] sm:$0xff] %v550_v35   ;;  %v806_v35 = vld [vmem:[%s16409_s25 + $0x828] sm:$0xff]  }
  0x75   : > { %555 = vst [vmem:[%s16414_s26 + $0x320] sm:$0xff] %v554_v36   ;;  %v810_v36 = vld [vmem:[%s16409_s25 + $0x830] sm:$0xff]  }
  0x76   : > { %559 = vst [vmem:[%s16414_s26 + $0x328] sm:$0xff] %v558_v37   ;;  %v814_v37 = vld [vmem:[%s16409_s25 + $0x838] sm:$0xff]  }
  0x77   : > { %563 = vst [vmem:[%s16414_s26 + $0x330] sm:$0xff] %v562_v38   ;;  %v818_v38 = vld [vmem:[%s16409_s25 + $0x840] sm:$0xff]  }
  0x78   : > { %567 = vst [vmem:[%s16414_s26 + $0x338] sm:$0xff] %v566_v39   ;;  %v822_v39 = vld [vmem:[%s16409_s25 + $0x848] sm:$0xff]  }
  0x79   : > { %571 = vst [vmem:[%s16414_s26 + $0x340] sm:$0xff] %v570_v40   ;;  %v826_v40 = vld [vmem:[%s16409_s25 + $0x850] sm:$0xff]  }
  0x7a   : > { %575 = vst [vmem:[%s16414_s26 + $0x348] sm:$0xff] %v574_v41   ;;  %v830_v41 = vld [vmem:[%s16409_s25 + $0x858] sm:$0xff]  }
  0x7b   : > { %579 = vst [vmem:[%s16414_s26 + $0x350] sm:$0xff] %v578_v42   ;;  %v834_v42 = vld [vmem:[%s16409_s25 + $0x860] sm:$0xff]  }
  0x7c   : > { %583 = vst [vmem:[%s16414_s26 + $0x358] sm:$0xff] %v582_v43   ;;  %v838_v43 = vld [vmem:[%s16409_s25 + $0x868] sm:$0xff]  }
  0x7d   : > { %587 = vst [vmem:[%s16414_s26 + $0x360] sm:$0xff] %v586_v44   ;;  %v842_v44 = vld [vmem:[%s16409_s25 + $0x870] sm:$0xff]  }
  0x7e   : > { %591 = vst [vmem:[%s16414_s26 + $0x368] sm:$0xff] %v590_v45   ;;  %v846_v45 = vld [vmem:[%s16409_s25 + $0x878] sm:$0xff]  }
  0x7f   : > { %595 = vst [vmem:[%s16414_s26 + $0x370] sm:$0xff] %v594_v46   ;;  %v850_v46 = vld [vmem:[%s16409_s25 + $0x880] sm:$0xff]  }
  0x80   : > { %599 = vst [vmem:[%s16414_s26 + $0x378] sm:$0xff] %v598_v47   ;;  %v854_v47 = vld [vmem:[%s16409_s25 + $0x888] sm:$0xff]  }
  0x81   : > { %603 = vst [vmem:[%s16414_s26 + $0x380] sm:$0xff] %v602_v48   ;;  %v858_v48 = vld [vmem:[%s16409_s25 + $0x890] sm:$0xff]  }
  0x82   : > { %607 = vst [vmem:[%s16414_s26 + $0x388] sm:$0xff] %v606_v49   ;;  %v862_v49 = vld [vmem:[%s16409_s25 + $0x898] sm:$0xff]  }
  0x83   : > { %611 = vst [vmem:[%s16414_s26 + $0x390] sm:$0xff] %v610_v50   ;;  %v866_v50 = vld [vmem:[%s16409_s25 + $0x8a0] sm:$0xff]  }
  0x84   : > { %615 = vst [vmem:[%s16414_s26 + $0x398] sm:$0xff] %v614_v51   ;;  %v870_v51 = vld [vmem:[%s16409_s25 + $0x8a8] sm:$0xff]  }
  0x85   : > { %619 = vst [vmem:[%s16414_s26 + $0x3a0] sm:$0xff] %v618_v52   ;;  %v874_v52 = vld [vmem:[%s16409_s25 + $0x8b0] sm:$0xff]  }
  0x86   : > { %623 = vst [vmem:[%s16414_s26 + $0x3a8] sm:$0xff] %v622_v53   ;;  %v878_v53 = vld [vmem:[%s16409_s25 + $0x8b8] sm:$0xff]  }
  0x87   : > { %627 = vst [vmem:[%s16414_s26 + $0x3b0] sm:$0xff] %v626_v54   ;;  %v882_v54 = vld [vmem:[%s16409_s25 + $0x8c0] sm:$0xff]  }
  0x88   : > { %631 = vst [vmem:[%s16414_s26 + $0x3b8] sm:$0xff] %v630_v55   ;;  %v886_v55 = vld [vmem:[%s16409_s25 + $0x8c8] sm:$0xff]  }
  0x89   : > { %635 = vst [vmem:[%s16414_s26 + $0x3c0] sm:$0xff] %v634_v56   ;;  %v890_v56 = vld [vmem:[%s16409_s25 + $0x8d0] sm:$0xff]  }
  0x8a   : > { %639 = vst [vmem:[%s16414_s26 + $0x3c8] sm:$0xff] %v638_v57   ;;  %v894_v57 = vld [vmem:[%s16409_s25 + $0x8d8] sm:$0xff]  }
  0x8b   : > { %643 = vst [vmem:[%s16414_s26 + $0x3d0] sm:$0xff] %v642_v58   ;;  %v898_v58 = vld [vmem:[%s16409_s25 + $0x8e0] sm:$0xff]  }
  0x8c   : > { %647 = vst [vmem:[%s16414_s26 + $0x3d8] sm:$0xff] %v646_v59   ;;  %v902_v59 = vld [vmem:[%s16409_s25 + $0x8e8] sm:$0xff]  }
  0x8d   : > { %651 = vst [vmem:[%s16414_s26 + $0x3e0] sm:$0xff] %v650_v60   ;;  %v906_v60 = vld [vmem:[%s16409_s25 + $0x8f0] sm:$0xff]  }
  0x8e   : > { %655 = vst [vmem:[%s16414_s26 + $0x3e8] sm:$0xff] %v654_v61   ;;  %v910_v61 = vld [vmem:[%s16409_s25 + $0x8f8] sm:$0xff]  }
  0x8f   : > { %659 = vst [vmem:[%s16414_s26 + $0x3f0] sm:$0xff] %v658_v62   ;;  %v914_v62 = vld [vmem:[%s16409_s25 + $0x900] sm:$0xff]  }
  0x90   : > { %663 = vst [vmem:[%s16414_s26 + $0x3f8] sm:$0xff] %v662_v63   ;;  %v918_v63 = vld [vmem:[%s16409_s25 + $0x908] sm:$0xff]  }
  0x91   : > { %667 = vst [vmem:[%s16414_s26 + $0x400] sm:$0xff] %v666_v0   ;;  %v922_v0 = vld [vmem:[%s16409_s25 + $0x910] sm:$0xff]  }
  0x92   : > { %671 = vst [vmem:[%s16414_s26 + $0x408] sm:$0xff] %v670_v1   ;;  %v926_v1 = vld [vmem:[%s16409_s25 + $0x918] sm:$0xff]  }
  0x93   : > { %675 = vst [vmem:[%s16414_s26 + $0x410] sm:$0xff] %v674_v2   ;;  %v930_v2 = vld [vmem:[%s16409_s25 + $0x920] sm:$0xff]  }
  0x94   : > { %679 = vst [vmem:[%s16414_s26 + $0x418] sm:$0xff] %v678_v3   ;;  %v934_v3 = vld [vmem:[%s16409_s25 + $0x928] sm:$0xff]  }
  0x95   : > { %683 = vst [vmem:[%s16414_s26 + $0x420] sm:$0xff] %v682_v4   ;;  %v938_v4 = vld [vmem:[%s16409_s25 + $0xc40] sm:$0xff]  }
  0x96   : > { %687 = vst [vmem:[%s16414_s26 + $0x428] sm:$0xff] %v686_v5   ;;  %v942_v5 = vld [vmem:[%s16409_s25 + $0xc48] sm:$0xff]  }
  0x97   : > { %691 = vst [vmem:[%s16414_s26 + $0x430] sm:$0xff] %v690_v6   ;;  %v946_v6 = vld [vmem:[%s16409_s25 + $0xc50] sm:$0xff]  }
  0x98   : > { %695 = vst [vmem:[%s16414_s26 + $0x438] sm:$0xff] %v694_v7   ;;  %v950_v7 = vld [vmem:[%s16409_s25 + $0xc58] sm:$0xff]  }
  0x99   : > { %699 = vst [vmem:[%s16414_s26 + $0x440] sm:$0xff] %v698_v8   ;;  %v954_v8 = vld [vmem:[%s16409_s25 + $0xc60] sm:$0xff]  }
  0x9a   : > { %703 = vst [vmem:[%s16414_s26 + $0x448] sm:$0xff] %v702_v9   ;;  %v958_v9 = vld [vmem:[%s16409_s25 + $0xc68] sm:$0xff]  }
  0x9b   : > { %707 = vst [vmem:[%s16414_s26 + $0x450] sm:$0xff] %v706_v10   ;;  %v962_v10 = vld [vmem:[%s16409_s25 + $0xc70] sm:$0xff]  }
  0x9c   : > { %711 = vst [vmem:[%s16414_s26 + $0x458] sm:$0xff] %v710_v11   ;;  %v966_v11 = vld [vmem:[%s16409_s25 + $0xc78] sm:$0xff]  }
  0x9d   : > { %715 = vst [vmem:[%s16414_s26 + $0x460] sm:$0xff] %v714_v12   ;;  %v970_v12 = vld [vmem:[%s16409_s25 + $0xc80] sm:$0xff]  }
  0x9e   : > { %719 = vst [vmem:[%s16414_s26 + $0x468] sm:$0xff] %v718_v13   ;;  %v974_v13 = vld [vmem:[%s16409_s25 + $0xc88] sm:$0xff]  }
  0x9f   : > { %723 = vst [vmem:[%s16414_s26 + $0x470] sm:$0xff] %v722_v14   ;;  %v978_v14 = vld [vmem:[%s16409_s25 + $0xc90] sm:$0xff]  }
  0xa0   : > { %727 = vst [vmem:[%s16414_s26 + $0x478] sm:$0xff] %v726_v15   ;;  %v982_v15 = vld [vmem:[%s16409_s25 + $0xc98] sm:$0xff]  }
  0xa1   : > { %731 = vst [vmem:[%s16414_s26 + $0x480] sm:$0xff] %v730_v16   ;;  %v986_v16 = vld [vmem:[%s16409_s25 + $0xca0] sm:$0xff]  }
  0xa2   : > { %735 = vst [vmem:[%s16414_s26 + $0x488] sm:$0xff] %v734_v17   ;;  %v990_v17 = vld [vmem:[%s16409_s25 + $0xca8] sm:$0xff]  }
  0xa3   : > { %739 = vst [vmem:[%s16414_s26 + $0x490] sm:$0xff] %v738_v18   ;;  %v994_v18 = vld [vmem:[%s16409_s25 + $0xcb0] sm:$0xff]  }
  0xa4   : > { %743 = vst [vmem:[%s16414_s26 + $0x498] sm:$0xff] %v742_v19   ;;  %v998_v19 = vld [vmem:[%s16409_s25 + $0xcb8] sm:$0xff]  }
  0xa5   : > { %747 = vst [vmem:[%s16414_s26 + $0x4a0] sm:$0xff] %v746_v20   ;;  %v1002_v20 = vld [vmem:[%s16409_s25 + $0xcc0] sm:$0xff]  }
  0xa6   : > { %751 = vst [vmem:[%s16414_s26 + $0x4a8] sm:$0xff] %v750_v21   ;;  %v1006_v21 = vld [vmem:[%s16409_s25 + $0xcc8] sm:$0xff]  }
  0xa7   : > { %755 = vst [vmem:[%s16414_s26 + $0x4b0] sm:$0xff] %v754_v22   ;;  %v1010_v22 = vld [vmem:[%s16409_s25 + $0xcd0] sm:$0xff]  }
  0xa8   : > { %759 = vst [vmem:[%s16414_s26 + $0x4b8] sm:$0xff] %v758_v23   ;;  %v1014_v23 = vld [vmem:[%s16409_s25 + $0xcd8] sm:$0xff]  }
  0xa9   : > { %763 = vst [vmem:[%s16414_s26 + $0x4c0] sm:$0xff] %v762_v24   ;;  %v1018_v24 = vld [vmem:[%s16409_s25 + $0xce0] sm:$0xff]  }
  0xaa   : > { %767 = vst [vmem:[%s16414_s26 + $0x4c8] sm:$0xff] %v766_v25   ;;  %v1022_v25 = vld [vmem:[%s16409_s25 + $0xce8] sm:$0xff]  }
  0xab   : > { %771 = vst [vmem:[%s16414_s26 + $0x4d0] sm:$0xff] %v770_v26   ;;  %v1026_v26 = vld [vmem:[%s16409_s25 + $0xcf0] sm:$0xff]  }
  0xac   : > { %775 = vst [vmem:[%s16414_s26 + $0x4d8] sm:$0xff] %v774_v27   ;;  %v1030_v27 = vld [vmem:[%s16409_s25 + $0xcf8] sm:$0xff]  }
  0xad   : > { %779 = vst [vmem:[%s16414_s26 + $0x4e0] sm:$0xff] %v778_v28   ;;  %v1034_v28 = vld [vmem:[%s16409_s25 + $0xd00] sm:$0xff]  }
  0xae   : > { %783 = vst [vmem:[%s16414_s26 + $0x4e8] sm:$0xff] %v782_v29   ;;  %v1038_v29 = vld [vmem:[%s16409_s25 + $0xd08] sm:$0xff]  }
  0xaf   : > { %787 = vst [vmem:[%s16414_s26 + $0x4f0] sm:$0xff] %v786_v30   ;;  %v1042_v30 = vld [vmem:[%s16409_s25 + $0xd10] sm:$0xff]  }
  0xb0   : > { %791 = vst [vmem:[%s16414_s26 + $0x4f8] sm:$0xff] %v790_v31   ;;  %v1046_v31 = vld [vmem:[%s16409_s25 + $0xd18] sm:$0xff]  }
  0xb1   : > { %795 = vst [vmem:[%s16414_s26 + $0x500] sm:$0xff] %v794_v32   ;;  %v1050_v32 = vld [vmem:[%s16409_s25 + $0xd20] sm:$0xff]  }
  0xb2   : > { %799 = vst [vmem:[%s16414_s26 + $0x508] sm:$0xff] %v798_v33   ;;  %v1054_v33 = vld [vmem:[%s16409_s25 + $0xd28] sm:$0xff]  }
  0xb3   : > { %803 = vst [vmem:[%s16414_s26 + $0x510] sm:$0xff] %v802_v34   ;;  %v1058_v34 = vld [vmem:[%s16409_s25 + $0xd30] sm:$0xff]  }
  0xb4   : > { %807 = vst [vmem:[%s16414_s26 + $0x518] sm:$0xff] %v806_v35   ;;  %v1062_v35 = vld [vmem:[%s16409_s25 + $0xd38] sm:$0xff]  }
  0xb5   : > { %811 = vst [vmem:[%s16414_s26 + $0x520] sm:$0xff] %v810_v36   ;;  %v1066_v36 = vld [vmem:[%s16409_s25 + $0xd40] sm:$0xff]  }
  0xb6   : > { %815 = vst [vmem:[%s16414_s26 + $0x528] sm:$0xff] %v814_v37   ;;  %v1070_v37 = vld [vmem:[%s16409_s25 + $0xd48] sm:$0xff]  }
  0xb7   : > { %819 = vst [vmem:[%s16414_s26 + $0x530] sm:$0xff] %v818_v38   ;;  %v1074_v38 = vld [vmem:[%s16409_s25 + $0xd50] sm:$0xff]  }
  0xb8   : > { %823 = vst [vmem:[%s16414_s26 + $0x538] sm:$0xff] %v822_v39   ;;  %v1078_v39 = vld [vmem:[%s16409_s25 + $0xd58] sm:$0xff]  }
  0xb9   : > { %827 = vst [vmem:[%s16414_s26 + $0x540] sm:$0xff] %v826_v40   ;;  %v1082_v40 = vld [vmem:[%s16409_s25 + $0xd60] sm:$0xff]  }
  0xba   : > { %831 = vst [vmem:[%s16414_s26 + $0x548] sm:$0xff] %v830_v41   ;;  %v1086_v41 = vld [vmem:[%s16409_s25 + $0xd68] sm:$0xff]  }
  0xbb   : > { %835 = vst [vmem:[%s16414_s26 + $0x550] sm:$0xff] %v834_v42   ;;  %v1090_v42 = vld [vmem:[%s16409_s25 + $0xd70] sm:$0xff]  }
  0xbc   : > { %839 = vst [vmem:[%s16414_s26 + $0x558] sm:$0xff] %v838_v43   ;;  %v1094_v43 = vld [vmem:[%s16409_s25 + $0xd78] sm:$0xff]  }
  0xbd   : > { %843 = vst [vmem:[%s16414_s26 + $0x560] sm:$0xff] %v842_v44   ;;  %v1098_v44 = vld [vmem:[%s16409_s25 + $0xd80] sm:$0xff]  }
  0xbe   : > { %847 = vst [vmem:[%s16414_s26 + $0x568] sm:$0xff] %v846_v45   ;;  %v1102_v45 = vld [vmem:[%s16409_s25 + $0xd88] sm:$0xff]  }
  0xbf   : > { %851 = vst [vmem:[%s16414_s26 + $0x570] sm:$0xff] %v850_v46   ;;  %v1106_v46 = vld [vmem:[%s16409_s25 + $0xd90] sm:$0xff]  }
  0xc0   : > { %855 = vst [vmem:[%s16414_s26 + $0x578] sm:$0xff] %v854_v47   ;;  %v1110_v47 = vld [vmem:[%s16409_s25 + $0xd98] sm:$0xff]  }
  0xc1   : > { %859 = vst [vmem:[%s16414_s26 + $0x580] sm:$0xff] %v858_v48   ;;  %v1114_v48 = vld [vmem:[%s16409_s25 + $0xda0] sm:$0xff]  }
  0xc2   : > { %863 = vst [vmem:[%s16414_s26 + $0x588] sm:$0xff] %v862_v49   ;;  %v1118_v49 = vld [vmem:[%s16409_s25 + $0xda8] sm:$0xff]  }
  0xc3   : > { %867 = vst [vmem:[%s16414_s26 + $0x590] sm:$0xff] %v866_v50   ;;  %v1122_v50 = vld [vmem:[%s16409_s25 + $0xdb0] sm:$0xff]  }
  0xc4   : > { %871 = vst [vmem:[%s16414_s26 + $0x598] sm:$0xff] %v870_v51   ;;  %v1126_v51 = vld [vmem:[%s16409_s25 + $0xdb8] sm:$0xff]  }
  0xc5   : > { %875 = vst [vmem:[%s16414_s26 + $0x5a0] sm:$0xff] %v874_v52   ;;  %v1130_v52 = vld [vmem:[%s16409_s25 + $0xdc0] sm:$0xff]  }
  0xc6   : > { %879 = vst [vmem:[%s16414_s26 + $0x5a8] sm:$0xff] %v878_v53   ;;  %v1134_v53 = vld [vmem:[%s16409_s25 + $0xdc8] sm:$0xff]  }
  0xc7   : > { %883 = vst [vmem:[%s16414_s26 + $0x5b0] sm:$0xff] %v882_v54   ;;  %v1138_v54 = vld [vmem:[%s16409_s25 + $0xdd0] sm:$0xff]  }
  0xc8   : > { %887 = vst [vmem:[%s16414_s26 + $0x5b8] sm:$0xff] %v886_v55   ;;  %v1142_v55 = vld [vmem:[%s16409_s25 + $0xdd8] sm:$0xff]  }
  0xc9   : > { %891 = vst [vmem:[%s16414_s26 + $0x5c0] sm:$0xff] %v890_v56   ;;  %v1146_v56 = vld [vmem:[%s16409_s25 + $0xde0] sm:$0xff]  }
  0xca   : > { %895 = vst [vmem:[%s16414_s26 + $0x5c8] sm:$0xff] %v894_v57   ;;  %v1150_v57 = vld [vmem:[%s16409_s25 + $0xde8] sm:$0xff]  }
  0xcb   : > { %899 = vst [vmem:[%s16414_s26 + $0x5d0] sm:$0xff] %v898_v58   ;;  %v1154_v58 = vld [vmem:[%s16409_s25 + $0xdf0] sm:$0xff]  }
  0xcc   : > { %903 = vst [vmem:[%s16414_s26 + $0x5d8] sm:$0xff] %v902_v59   ;;  %v1158_v59 = vld [vmem:[%s16409_s25 + $0xdf8] sm:$0xff]  }
  0xcd   : > { %907 = vst [vmem:[%s16414_s26 + $0x5e0] sm:$0xff] %v906_v60   ;;  %v1162_v60 = vld [vmem:[%s16409_s25 + $0xe00] sm:$0xff]  }
  0xce   : > { %911 = vst [vmem:[%s16414_s26 + $0x5e8] sm:$0xff] %v910_v61   ;;  %v1166_v61 = vld [vmem:[%s16409_s25 + $0xe08] sm:$0xff]  }
  0xcf   : > { %915 = vst [vmem:[%s16414_s26 + $0x5f0] sm:$0xff] %v914_v62   ;;  %v1170_v62 = vld [vmem:[%s16409_s25 + $0xe10] sm:$0xff]  }
  0xd0   : > { %919 = vst [vmem:[%s16414_s26 + $0x5f8] sm:$0xff] %v918_v63   ;;  %v1174_v63 = vld [vmem:[%s16409_s25 + $0xe18] sm:$0xff]  }
  0xd1   : > { %923 = vst [vmem:[%s16414_s26 + $0x600] sm:$0xff] %v922_v0   ;;  %v1178_v0 = vld [vmem:[%s16409_s25 + $0xe20] sm:$0xff]  }
  0xd2   : > { %927 = vst [vmem:[%s16414_s26 + $0x608] sm:$0xff] %v926_v1   ;;  %v1182_v1 = vld [vmem:[%s16409_s25 + $0xe28] sm:$0xff]  }
  0xd3   : > { %931 = vst [vmem:[%s16414_s26 + $0x610] sm:$0xff] %v930_v2   ;;  %v1186_v2 = vld [vmem:[%s16409_s25 + $0xe30] sm:$0xff]  }
  0xd4   : > { %935 = vst [vmem:[%s16414_s26 + $0x618] sm:$0xff] %v934_v3   ;;  %v1190_v3 = vld [vmem:[%s16409_s25 + $0xe38] sm:$0xff]  }
  0xd5   : > { %939 = vst [vmem:[%s16414_s26 + $0x620] sm:$0xff] %v938_v4   ;;  %v1194_v4 = vld [vmem:[%s16409_s25 + $0xe40] sm:$0xff]  }
  0xd6   : > { %943 = vst [vmem:[%s16414_s26 + $0x628] sm:$0xff] %v942_v5   ;;  %v1198_v5 = vld [vmem:[%s16409_s25 + $0xe48] sm:$0xff]  }
  0xd7   : > { %947 = vst [vmem:[%s16414_s26 + $0x630] sm:$0xff] %v946_v6   ;;  %v1202_v6 = vld [vmem:[%s16409_s25 + $0xe50] sm:$0xff]  }
  0xd8   : > { %951 = vst [vmem:[%s16414_s26 + $0x638] sm:$0xff] %v950_v7   ;;  %v1206_v7 = vld [vmem:[%s16409_s25 + $0xe58] sm:$0xff]  }
  0xd9   : > { %955 = vst [vmem:[%s16414_s26 + $0x640] sm:$0xff] %v954_v8   ;;  %v1210_v8 = vld [vmem:[%s16409_s25 + $0xe60] sm:$0xff]  }
  0xda   : > { %959 = vst [vmem:[%s16414_s26 + $0x648] sm:$0xff] %v958_v9   ;;  %v1214_v9 = vld [vmem:[%s16409_s25 + $0xe68] sm:$0xff]  }
  0xdb   : > { %963 = vst [vmem:[%s16414_s26 + $0x650] sm:$0xff] %v962_v10   ;;  %v1218_v10 = vld [vmem:[%s16409_s25 + $0xe70] sm:$0xff]  }
  0xdc   : > { %967 = vst [vmem:[%s16414_s26 + $0x658] sm:$0xff] %v966_v11   ;;  %v1222_v11 = vld [vmem:[%s16409_s25 + $0xe78] sm:$0xff]  }
  0xdd   : > { %971 = vst [vmem:[%s16414_s26 + $0x660] sm:$0xff] %v970_v12   ;;  %v1226_v12 = vld [vmem:[%s16409_s25 + $0xe80] sm:$0xff]  }
  0xde   : > { %975 = vst [vmem:[%s16414_s26 + $0x668] sm:$0xff] %v974_v13   ;;  %v1230_v13 = vld [vmem:[%s16409_s25 + $0xe88] sm:$0xff]  }
  0xdf   : > { %979 = vst [vmem:[%s16414_s26 + $0x670] sm:$0xff] %v978_v14   ;;  %v1234_v14 = vld [vmem:[%s16409_s25 + $0xe90] sm:$0xff]  }
  0xe0   : > { %983 = vst [vmem:[%s16414_s26 + $0x678] sm:$0xff] %v982_v15   ;;  %v1238_v15 = vld [vmem:[%s16409_s25 + $0xe98] sm:$0xff]  }
  0xe1   : > { %987 = vst [vmem:[%s16414_s26 + $0x680] sm:$0xff] %v986_v16   ;;  %v1242_v16 = vld [vmem:[%s16409_s25 + $0xea0] sm:$0xff]  }
  0xe2   : > { %991 = vst [vmem:[%s16414_s26 + $0x688] sm:$0xff] %v990_v17   ;;  %v1246_v17 = vld [vmem:[%s16409_s25 + $0xea8] sm:$0xff]  }
  0xe3   : > { %995 = vst [vmem:[%s16414_s26 + $0x690] sm:$0xff] %v994_v18   ;;  %v1250_v18 = vld [vmem:[%s16409_s25 + $0xeb0] sm:$0xff]  }
  0xe4   : > { %999 = vst [vmem:[%s16414_s26 + $0x698] sm:$0xff] %v998_v19   ;;  %v1254_v19 = vld [vmem:[%s16409_s25 + $0xeb8] sm:$0xff]  }
  0xe5   : > { %1003 = vst [vmem:[%s16414_s26 + $0x6a0] sm:$0xff] %v1002_v20   ;;  %v1258_v20 = vld [vmem:[%s16409_s25 + $0xec0] sm:$0xff]  }
  0xe6   : > { %1007 = vst [vmem:[%s16414_s26 + $0x6a8] sm:$0xff] %v1006_v21   ;;  %v1262_v21 = vld [vmem:[%s16409_s25 + $0xec8] sm:$0xff]  }
  0xe7   : > { %1011 = vst [vmem:[%s16414_s26 + $0x6b0] sm:$0xff] %v1010_v22   ;;  %v1266_v22 = vld [vmem:[%s16409_s25 + $0xed0] sm:$0xff]  }
  0xe8   : > { %1015 = vst [vmem:[%s16414_s26 + $0x6b8] sm:$0xff] %v1014_v23   ;;  %v1270_v23 = vld [vmem:[%s16409_s25 + $0xed8] sm:$0xff]  }
  0xe9   : > { %1019 = vst [vmem:[%s16414_s26 + $0x6c0] sm:$0xff] %v1018_v24   ;;  %v1274_v24 = vld [vmem:[%s16409_s25 + $0xee0] sm:$0xff]  }
  0xea   : > { %1023 = vst [vmem:[%s16414_s26 + $0x6c8] sm:$0xff] %v1022_v25   ;;  %v1278_v25 = vld [vmem:[%s16409_s25 + $0xee8] sm:$0xff]  }
  0xeb   : > { %1027 = vst [vmem:[%s16414_s26 + $0x6d0] sm:$0xff] %v1026_v26   ;;  %v1282_v26 = vld [vmem:[%s16409_s25 + $0xef0] sm:$0xff]  }
  0xec   : > { %1031 = vst [vmem:[%s16414_s26 + $0x6d8] sm:$0xff] %v1030_v27   ;;  %v1286_v27 = vld [vmem:[%s16409_s25 + $0xef8] sm:$0xff]  }
  0xed   : > { %1035 = vst [vmem:[%s16414_s26 + $0x6e0] sm:$0xff] %v1034_v28   ;;  %v1290_v28 = vld [vmem:[%s16409_s25 + $0xf00] sm:$0xff]  }
  0xee   : > { %1039 = vst [vmem:[%s16414_s26 + $0x6e8] sm:$0xff] %v1038_v29   ;;  %v1294_v29 = vld [vmem:[%s16409_s25 + $0xf08] sm:$0xff]  }
  0xef   : > { %1043 = vst [vmem:[%s16414_s26 + $0x6f0] sm:$0xff] %v1042_v30   ;;  %v1298_v30 = vld [vmem:[%s16409_s25 + $0xf10] sm:$0xff]  }
  0xf0   : > { %1047 = vst [vmem:[%s16414_s26 + $0x6f8] sm:$0xff] %v1046_v31   ;;  %v1302_v31 = vld [vmem:[%s16409_s25 + $0xf18] sm:$0xff]  }
  0xf1   : > { %1051 = vst [vmem:[%s16414_s26 + $0x700] sm:$0xff] %v1050_v32   ;;  %v1306_v32 = vld [vmem:[%s16409_s25 + $0xf20] sm:$0xff]  }
  0xf2   : > { %1055 = vst [vmem:[%s16414_s26 + $0x708] sm:$0xff] %v1054_v33   ;;  %v1310_v33 = vld [vmem:[%s16409_s25 + $0xf28] sm:$0xff]  }
  0xf3   : > { %1059 = vst [vmem:[%s16414_s26 + $0x710] sm:$0xff] %v1058_v34   ;;  %v1314_v34 = vld [vmem:[%s16409_s25 + $0xf30] sm:$0xff]  }
  0xf4   : > { %1063 = vst [vmem:[%s16414_s26 + $0x718] sm:$0xff] %v1062_v35   ;;  %v1318_v35 = vld [vmem:[%s16409_s25 + $0xf38] sm:$0xff]  }
  0xf5   : > { %1067 = vst [vmem:[%s16414_s26 + $0x720] sm:$0xff] %v1066_v36   ;;  %v1322_v36 = vld [vmem:[%s16409_s25 + $0xf40] sm:$0xff]  }
  0xf6   : > { %1071 = vst [vmem:[%s16414_s26 + $0x728] sm:$0xff] %v1070_v37   ;;  %v1326_v37 = vld [vmem:[%s16409_s25 + $0xf48] sm:$0xff]  }
  0xf7   : > { %1075 = vst [vmem:[%s16414_s26 + $0x730] sm:$0xff] %v1074_v38   ;;  %v1330_v38 = vld [vmem:[%s16409_s25 + $0x1260] sm:$0xff]  }
  0xf8   : > { %1079 = vst [vmem:[%s16414_s26 + $0x738] sm:$0xff] %v1078_v39   ;;  %v1334_v39 = vld [vmem:[%s16409_s25 + $0x1268] sm:$0xff]  }
  0xf9   : > { %1083 = vst [vmem:[%s16414_s26 + $0x740] sm:$0xff] %v1082_v40   ;;  %v1338_v40 = vld [vmem:[%s16409_s25 + $0x1270] sm:$0xff]  }
  0xfa   : > { %1087 = vst [vmem:[%s16414_s26 + $0x748] sm:$0xff] %v1086_v41   ;;  %v1342_v41 = vld [vmem:[%s16409_s25 + $0x1278] sm:$0xff]  }
  0xfb   : > { %1091 = vst [vmem:[%s16414_s26 + $0x750] sm:$0xff] %v1090_v42   ;;  %v1346_v42 = vld [vmem:[%s16409_s25 + $0x1280] sm:$0xff]  }
  0xfc   : > { %1095 = vst [vmem:[%s16414_s26 + $0x758] sm:$0xff] %v1094_v43   ;;  %v1350_v43 = vld [vmem:[%s16409_s25 + $0x1288] sm:$0xff]  }
  0xfd   : > { %1099 = vst [vmem:[%s16414_s26 + $0x760] sm:$0xff] %v1098_v44   ;;  %v1354_v44 = vld [vmem:[%s16409_s25 + $0x1290] sm:$0xff]  }
  0xfe   : > { %1103 = vst [vmem:[%s16414_s26 + $0x768] sm:$0xff] %v1102_v45   ;;  %v1358_v45 = vld [vmem:[%s16409_s25 + $0x1298] sm:$0xff]  }
  0xff   : > { %1107 = vst [vmem:[%s16414_s26 + $0x770] sm:$0xff] %v1106_v46   ;;  %v1362_v46 = vld [vmem:[%s16409_s25 + $0x12a0] sm:$0xff]  }
 0x100   : > { %1111 = vst [vmem:[%s16414_s26 + $0x778] sm:$0xff] %v1110_v47   ;;  %v1366_v47 = vld [vmem:[%s16409_s25 + $0x12a8] sm:$0xff]  }
 0x101   : > { %1115 = vst [vmem:[%s16414_s26 + $0x780] sm:$0xff] %v1114_v48   ;;  %v1370_v48 = vld [vmem:[%s16409_s25 + $0x12b0] sm:$0xff]  }
 0x102   : > { %1119 = vst [vmem:[%s16414_s26 + $0x788] sm:$0xff] %v1118_v49   ;;  %v1374_v49 = vld [vmem:[%s16409_s25 + $0x12b8] sm:$0xff]  }
 0x103   : > { %1123 = vst [vmem:[%s16414_s26 + $0x790] sm:$0xff] %v1122_v50   ;;  %v1378_v50 = vld [vmem:[%s16409_s25 + $0x12c0] sm:$0xff]  }
 0x104   : > { %1127 = vst [vmem:[%s16414_s26 + $0x798] sm:$0xff] %v1126_v51   ;;  %v1382_v51 = vld [vmem:[%s16409_s25 + $0x12c8] sm:$0xff]  }
 0x105   : > { %1131 = vst [vmem:[%s16414_s26 + $0x7a0] sm:$0xff] %v1130_v52   ;;  %v1386_v52 = vld [vmem:[%s16409_s25 + $0x12d0] sm:$0xff]  }
 0x106   : > { %1135 = vst [vmem:[%s16414_s26 + $0x7a8] sm:$0xff] %v1134_v53   ;;  %v1390_v53 = vld [vmem:[%s16409_s25 + $0x12d8] sm:$0xff]  }
 0x107   : > { %1139 = vst [vmem:[%s16414_s26 + $0x7b0] sm:$0xff] %v1138_v54   ;;  %v1394_v54 = vld [vmem:[%s16409_s25 + $0x12e0] sm:$0xff]  }
 0x108   : > { %1143 = vst [vmem:[%s16414_s26 + $0x7b8] sm:$0xff] %v1142_v55   ;;  %v1398_v55 = vld [vmem:[%s16409_s25 + $0x12e8] sm:$0xff]  }
 0x109   : > { %1147 = vst [vmem:[%s16414_s26 + $0x7c0] sm:$0xff] %v1146_v56   ;;  %v1402_v56 = vld [vmem:[%s16409_s25 + $0x12f0] sm:$0xff]  }
 0x10a   : > { %1151 = vst [vmem:[%s16414_s26 + $0x7c8] sm:$0xff] %v1150_v57   ;;  %v1406_v57 = vld [vmem:[%s16409_s25 + $0x12f8] sm:$0xff]  }
 0x10b   : > { %1155 = vst [vmem:[%s16414_s26 + $0x7d0] sm:$0xff] %v1154_v58   ;;  %v1410_v58 = vld [vmem:[%s16409_s25 + $0x1300] sm:$0xff]  }
 0x10c   : > { %1159 = vst [vmem:[%s16414_s26 + $0x7d8] sm:$0xff] %v1158_v59   ;;  %v1414_v59 = vld [vmem:[%s16409_s25 + $0x1308] sm:$0xff]  }
 0x10d   : > { %1163 = vst [vmem:[%s16414_s26 + $0x7e0] sm:$0xff] %v1162_v60   ;;  %v1418_v60 = vld [vmem:[%s16409_s25 + $0x1310] sm:$0xff]  }
 0x10e   : > { %1167 = vst [vmem:[%s16414_s26 + $0x7e8] sm:$0xff] %v1166_v61   ;;  %v1422_v61 = vld [vmem:[%s16409_s25 + $0x1318] sm:$0xff]  }
 0x10f   : > { %1171 = vst [vmem:[%s16414_s26 + $0x7f0] sm:$0xff] %v1170_v62   ;;  %v1426_v62 = vld [vmem:[%s16409_s25 + $0x1320] sm:$0xff]  }
 0x110   : > { %1175 = vst [vmem:[%s16414_s26 + $0x7f8] sm:$0xff] %v1174_v63   ;;  %v1430_v63 = vld [vmem:[%s16409_s25 + $0x1328] sm:$0xff]  }
 0x111   : > { %1179 = vst [vmem:[%s16414_s26 + $0x800] sm:$0xff] %v1178_v0   ;;  %v1434_v0 = vld [vmem:[%s16409_s25 + $0x1330] sm:$0xff]  }
 0x112   : > { %1183 = vst [vmem:[%s16414_s26 + $0x808] sm:$0xff] %v1182_v1   ;;  %v1438_v1 = vld [vmem:[%s16409_s25 + $0x1338] sm:$0xff]  }
 0x113   : > { %1187 = vst [vmem:[%s16414_s26 + $0x810] sm:$0xff] %v1186_v2   ;;  %v1442_v2 = vld [vmem:[%s16409_s25 + $0x1340] sm:$0xff]  }
 0x114   : > { %1191 = vst [vmem:[%s16414_s26 + $0x818] sm:$0xff] %v1190_v3   ;;  %v1446_v3 = vld [vmem:[%s16409_s25 + $0x1348] sm:$0xff]  }
 0x115   : > { %1195 = vst [vmem:[%s16414_s26 + $0x820] sm:$0xff] %v1194_v4   ;;  %v1450_v4 = vld [vmem:[%s16409_s25 + $0x1350] sm:$0xff]  }
 0x116   : > { %1199 = vst [vmem:[%s16414_s26 + $0x828] sm:$0xff] %v1198_v5   ;;  %v1454_v5 = vld [vmem:[%s16409_s25 + $0x1358] sm:$0xff]  }
 0x117   : > { %1203 = vst [vmem:[%s16414_s26 + $0x830] sm:$0xff] %v1202_v6   ;;  %v1458_v6 = vld [vmem:[%s16409_s25 + $0x1360] sm:$0xff]  }
 0x118   : > { %1207 = vst [vmem:[%s16414_s26 + $0x838] sm:$0xff] %v1206_v7   ;;  %v1462_v7 = vld [vmem:[%s16409_s25 + $0x1368] sm:$0xff]  }
 0x119   : > { %1211 = vst [vmem:[%s16414_s26 + $0x840] sm:$0xff] %v1210_v8   ;;  %v1466_v8 = vld [vmem:[%s16409_s25 + $0x1370] sm:$0xff]  }
 0x11a   : > { %1215 = vst [vmem:[%s16414_s26 + $0x848] sm:$0xff] %v1214_v9   ;;  %v1470_v9 = vld [vmem:[%s16409_s25 + $0x1378] sm:$0xff]  }
 0x11b   : > { %1219 = vst [vmem:[%s16414_s26 + $0x850] sm:$0xff] %v1218_v10   ;;  %v1474_v10 = vld [vmem:[%s16409_s25 + $0x1380] sm:$0xff]  }
 0x11c   : > { %1223 = vst [vmem:[%s16414_s26 + $0x858] sm:$0xff] %v1222_v11   ;;  %v1478_v11 = vld [vmem:[%s16409_s25 + $0x1388] sm:$0xff]  }
 0x11d   : > { %1227 = vst [vmem:[%s16414_s26 + $0x860] sm:$0xff] %v1226_v12   ;;  %v1482_v12 = vld [vmem:[%s16409_s25 + $0x1390] sm:$0xff]  }
 0x11e   : > { %1231 = vst [vmem:[%s16414_s26 + $0x868] sm:$0xff] %v1230_v13   ;;  %v1486_v13 = vld [vmem:[%s16409_s25 + $0x1398] sm:$0xff]  }
 0x11f   : > { %1235 = vst [vmem:[%s16414_s26 + $0x870] sm:$0xff] %v1234_v14   ;;  %v1490_v14 = vld [vmem:[%s16409_s25 + $0x13a0] sm:$0xff]  }
 0x120   : > { %1239 = vst [vmem:[%s16414_s26 + $0x878] sm:$0xff] %v1238_v15   ;;  %v1494_v15 = vld [vmem:[%s16409_s25 + $0x13a8] sm:$0xff]  }
 0x121   : > { %1243 = vst [vmem:[%s16414_s26 + $0x880] sm:$0xff] %v1242_v16   ;;  %v1498_v16 = vld [vmem:[%s16409_s25 + $0x13b0] sm:$0xff]  }
 0x122   : > { %1247 = vst [vmem:[%s16414_s26 + $0x888] sm:$0xff] %v1246_v17   ;;  %v1502_v17 = vld [vmem:[%s16409_s25 + $0x13b8] sm:$0xff]  }
 0x123   : > { %1251 = vst [vmem:[%s16414_s26 + $0x890] sm:$0xff] %v1250_v18   ;;  %v1506_v18 = vld [vmem:[%s16409_s25 + $0x13c0] sm:$0xff]  }
 0x124   : > { %1255 = vst [vmem:[%s16414_s26 + $0x898] sm:$0xff] %v1254_v19   ;;  %v1510_v19 = vld [vmem:[%s16409_s25 + $0x13c8] sm:$0xff]  }
 0x125   : > { %1259 = vst [vmem:[%s16414_s26 + $0x8a0] sm:$0xff] %v1258_v20   ;;  %v1514_v20 = vld [vmem:[%s16409_s25 + $0x13d0] sm:$0xff]  }
 0x126   : > { %1263 = vst [vmem:[%s16414_s26 + $0x8a8] sm:$0xff] %v1262_v21   ;;  %v1518_v21 = vld [vmem:[%s16409_s25 + $0x13d8] sm:$0xff]  }
 0x127   : > { %1267 = vst [vmem:[%s16414_s26 + $0x8b0] sm:$0xff] %v1266_v22   ;;  %v1522_v22 = vld [vmem:[%s16409_s25 + $0x13e0] sm:$0xff]  }
 0x128   : > { %1271 = vst [vmem:[%s16414_s26 + $0x8b8] sm:$0xff] %v1270_v23   ;;  %v1526_v23 = vld [vmem:[%s16409_s25 + $0x13e8] sm:$0xff]  }
 0x129   : > { %1275 = vst [vmem:[%s16414_s26 + $0x8c0] sm:$0xff] %v1274_v24   ;;  %v1530_v24 = vld [vmem:[%s16409_s25 + $0x13f0] sm:$0xff]  }
 0x12a   : > { %1279 = vst [vmem:[%s16414_s26 + $0x8c8] sm:$0xff] %v1278_v25   ;;  %v1534_v25 = vld [vmem:[%s16409_s25 + $0x13f8] sm:$0xff]  }
 0x12b   : > { %1283 = vst [vmem:[%s16414_s26 + $0x8d0] sm:$0xff] %v1282_v26   ;;  %v1538_v26 = vld [vmem:[%s16409_s25 + $0x1400] sm:$0xff]  }
 0x12c   : > { %1287 = vst [vmem:[%s16414_s26 + $0x8d8] sm:$0xff] %v1286_v27   ;;  %v1542_v27 = vld [vmem:[%s16409_s25 + $0x1408] sm:$0xff]  }
 0x12d   : > { %1291 = vst [vmem:[%s16414_s26 + $0x8e0] sm:$0xff] %v1290_v28   ;;  %v1546_v28 = vld [vmem:[%s16409_s25 + $0x1410] sm:$0xff]  }
 0x12e   : > { %1295 = vst [vmem:[%s16414_s26 + $0x8e8] sm:$0xff] %v1294_v29   ;;  %v1550_v29 = vld [vmem:[%s16409_s25 + $0x1418] sm:$0xff]  }
 0x12f   : > { %1299 = vst [vmem:[%s16414_s26 + $0x8f0] sm:$0xff] %v1298_v30   ;;  %v1554_v30 = vld [vmem:[%s16409_s25 + $0x1420] sm:$0xff]  }
 0x130   : > { %1303 = vst [vmem:[%s16414_s26 + $0x8f8] sm:$0xff] %v1302_v31   ;;  %v1558_v31 = vld [vmem:[%s16409_s25 + $0x1428] sm:$0xff]  }
 0x131   : > { %1307 = vst [vmem:[%s16414_s26 + $0x900] sm:$0xff] %v1306_v32   ;;  %v1562_v32 = vld [vmem:[%s16409_s25 + $0x1430] sm:$0xff]  }
 0x132   : > { %1311 = vst [vmem:[%s16414_s26 + $0x908] sm:$0xff] %v1310_v33   ;;  %v1566_v33 = vld [vmem:[%s16409_s25 + $0x1438] sm:$0xff]  }
 0x133   : > { %1315 = vst [vmem:[%s16414_s26 + $0x910] sm:$0xff] %v1314_v34   ;;  %v1570_v34 = vld [vmem:[%s16409_s25 + $0x1440] sm:$0xff]  }
 0x134   : > { %1319 = vst [vmem:[%s16414_s26 + $0x918] sm:$0xff] %v1318_v35   ;;  %v1574_v35 = vld [vmem:[%s16409_s25 + $0x1448] sm:$0xff]  }
 0x135   : > { %1323 = vst [vmem:[%s16414_s26 + $0x920] sm:$0xff] %v1322_v36   ;;  %v1578_v36 = vld [vmem:[%s16409_s25 + $0x1450] sm:$0xff]  }
 0x136   : > { %1327 = vst [vmem:[%s16414_s26 + $0x928] sm:$0xff] %v1326_v37   ;;  %v1582_v37 = vld [vmem:[%s16409_s25 + $0x1458] sm:$0xff]  }
 0x137   : > { %1331 = vst [vmem:[%s16414_s26 + $0x930] sm:$0xff] %v1330_v38   ;;  %v1586_v38 = vld [vmem:[%s16409_s25 + $0x1460] sm:$0xff]  }
 0x138   : > { %1335 = vst [vmem:[%s16414_s26 + $0x938] sm:$0xff] %v1334_v39   ;;  %v1590_v39 = vld [vmem:[%s16409_s25 + $0x1468] sm:$0xff]  }
 0x139   : > { %1339 = vst [vmem:[%s16414_s26 + $0x940] sm:$0xff] %v1338_v40   ;;  %v1594_v40 = vld [vmem:[%s16409_s25 + $0x1470] sm:$0xff]  }
 0x13a   : > { %1343 = vst [vmem:[%s16414_s26 + $0x948] sm:$0xff] %v1342_v41   ;;  %v1598_v41 = vld [vmem:[%s16409_s25 + $0x1478] sm:$0xff]  }
 0x13b   : > { %1347 = vst [vmem:[%s16414_s26 + $0x950] sm:$0xff] %v1346_v42   ;;  %v1602_v42 = vld [vmem:[%s16409_s25 + $0x1480] sm:$0xff]  }
 0x13c   : > { %1351 = vst [vmem:[%s16414_s26 + $0x958] sm:$0xff] %v1350_v43   ;;  %v1606_v43 = vld [vmem:[%s16409_s25 + $0x1488] sm:$0xff]  }
 0x13d   : > { %1355 = vst [vmem:[%s16414_s26 + $0x960] sm:$0xff] %v1354_v44   ;;  %v1610_v44 = vld [vmem:[%s16409_s25 + $0x1490] sm:$0xff]  }
 0x13e   : > { %1359 = vst [vmem:[%s16414_s26 + $0x968] sm:$0xff] %v1358_v45   ;;  %v1614_v45 = vld [vmem:[%s16409_s25 + $0x1498] sm:$0xff]  }
 0x13f   : > { %1363 = vst [vmem:[%s16414_s26 + $0x970] sm:$0xff] %v1362_v46   ;;  %v1618_v46 = vld [vmem:[%s16409_s25 + $0x14a0] sm:$0xff]  }
 0x140   : > { %1367 = vst [vmem:[%s16414_s26 + $0x978] sm:$0xff] %v1366_v47   ;;  %v1622_v47 = vld [vmem:[%s16409_s25 + $0x14a8] sm:$0xff]  }
 0x141   : > { %1371 = vst [vmem:[%s16414_s26 + $0x980] sm:$0xff] %v1370_v48   ;;  %v1626_v48 = vld [vmem:[%s16409_s25 + $0x14b0] sm:$0xff]  }
 0x142   : > { %1375 = vst [vmem:[%s16414_s26 + $0x988] sm:$0xff] %v1374_v49   ;;  %v1630_v49 = vld [vmem:[%s16409_s25 + $0x14b8] sm:$0xff]  }
 0x143   : > { %1379 = vst [vmem:[%s16414_s26 + $0x990] sm:$0xff] %v1378_v50   ;;  %v1634_v50 = vld [vmem:[%s16409_s25 + $0x14c0] sm:$0xff]  }
 0x144   : > { %1383 = vst [vmem:[%s16414_s26 + $0x998] sm:$0xff] %v1382_v51   ;;  %v1638_v51 = vld [vmem:[%s16409_s25 + $0x14c8] sm:$0xff]  }
 0x145   : > { %1387 = vst [vmem:[%s16414_s26 + $0x9a0] sm:$0xff] %v1386_v52   ;;  %v1642_v52 = vld [vmem:[%s16409_s25 + $0x14d0] sm:$0xff]  }
 0x146   : > { %1391 = vst [vmem:[%s16414_s26 + $0x9a8] sm:$0xff] %v1390_v53   ;;  %v1646_v53 = vld [vmem:[%s16409_s25 + $0x14d8] sm:$0xff]  }
 0x147   : > { %1395 = vst [vmem:[%s16414_s26 + $0x9b0] sm:$0xff] %v1394_v54   ;;  %v1650_v54 = vld [vmem:[%s16409_s25 + $0x14e0] sm:$0xff]  }
 0x148   : > { %1399 = vst [vmem:[%s16414_s26 + $0x9b8] sm:$0xff] %v1398_v55   ;;  %v1654_v55 = vld [vmem:[%s16409_s25 + $0x14e8] sm:$0xff]  }
 0x149   : > { %1403 = vst [vmem:[%s16414_s26 + $0x9c0] sm:$0xff] %v1402_v56   ;;  %v1658_v56 = vld [vmem:[%s16409_s25 + $0x14f0] sm:$0xff]  }
 0x14a   : > { %1407 = vst [vmem:[%s16414_s26 + $0x9c8] sm:$0xff] %v1406_v57   ;;  %v1662_v57 = vld [vmem:[%s16409_s25 + $0x14f8] sm:$0xff]  }
 0x14b   : > { %1411 = vst [vmem:[%s16414_s26 + $0x9d0] sm:$0xff] %v1410_v58   ;;  %v1666_v58 = vld [vmem:[%s16409_s25 + $0x1500] sm:$0xff]  }
 0x14c   : > { %1415 = vst [vmem:[%s16414_s26 + $0x9d8] sm:$0xff] %v1414_v59   ;;  %v1670_v59 = vld [vmem:[%s16409_s25 + $0x1508] sm:$0xff]  }
 0x14d   : > { %1419 = vst [vmem:[%s16414_s26 + $0x9e0] sm:$0xff] %v1418_v60   ;;  %v1674_v60 = vld [vmem:[%s16409_s25 + $0x1510] sm:$0xff]  }
 0x14e   : > { %1423 = vst [vmem:[%s16414_s26 + $0x9e8] sm:$0xff] %v1422_v61   ;;  %v1678_v61 = vld [vmem:[%s16409_s25 + $0x1518] sm:$0xff]  }
 0x14f   : > { %1427 = vst [vmem:[%s16414_s26 + $0x9f0] sm:$0xff] %v1426_v62   ;;  %v1682_v62 = vld [vmem:[%s16409_s25 + $0x1520] sm:$0xff]  }
 0x150   : > { %1431 = vst [vmem:[%s16414_s26 + $0x9f8] sm:$0xff] %v1430_v63   ;;  %v1686_v63 = vld [vmem:[%s16409_s25 + $0x1528] sm:$0xff]  }
 0x151   : > { %1435 = vst [vmem:[%s16414_s26 + $0xa00] sm:$0xff] %v1434_v0   ;;  %v1690_v0 = vld [vmem:[%s16409_s25 + $0x1530] sm:$0xff]  }
 0x152   : > { %1439 = vst [vmem:[%s16414_s26 + $0xa08] sm:$0xff] %v1438_v1   ;;  %v1694_v1 = vld [vmem:[%s16409_s25 + $0x1538] sm:$0xff]  }
 0x153   : > { %1443 = vst [vmem:[%s16414_s26 + $0xa10] sm:$0xff] %v1442_v2   ;;  %v1698_v2 = vld [vmem:[%s16409_s25 + $0x1540] sm:$0xff]  }
 0x154   : > { %1447 = vst [vmem:[%s16414_s26 + $0xa18] sm:$0xff] %v1446_v3   ;;  %v1702_v3 = vld [vmem:[%s16409_s25 + $0x1548] sm:$0xff]  }
 0x155   : > { %1451 = vst [vmem:[%s16414_s26 + $0xa20] sm:$0xff] %v1450_v4   ;;  %v1706_v4 = vld [vmem:[%s16409_s25 + $0x1550] sm:$0xff]  }
 0x156   : > { %1455 = vst [vmem:[%s16414_s26 + $0xa28] sm:$0xff] %v1454_v5   ;;  %v1710_v5 = vld [vmem:[%s16409_s25 + $0x1558] sm:$0xff]  }
 0x157   : > { %1459 = vst [vmem:[%s16414_s26 + $0xa30] sm:$0xff] %v1458_v6   ;;  %v1714_v6 = vld [vmem:[%s16409_s25 + $0x1560] sm:$0xff]  }
 0x158   : > { %1463 = vst [vmem:[%s16414_s26 + $0xa38] sm:$0xff] %v1462_v7   ;;  %v1718_v7 = vld [vmem:[%s16409_s25 + $0x1568] sm:$0xff]  }
 0x159   : > { %1467 = vst [vmem:[%s16414_s26 + $0xa40] sm:$0xff] %v1466_v8  }
 0x15a   : > { %1471 = vst [vmem:[%s16414_s26 + $0xa48] sm:$0xff] %v1470_v9  }
 0x15b   : > { %1475 = vst [vmem:[%s16414_s26 + $0xa50] sm:$0xff] %v1474_v10  }
 0x15c   : > { %1479 = vst [vmem:[%s16414_s26 + $0xa58] sm:$0xff] %v1478_v11  }
 0x15d   : > { %1483 = vst [vmem:[%s16414_s26 + $0xa60] sm:$0xff] %v1482_v12  }
 0x15e   : > { %1487 = vst [vmem:[%s16414_s26 + $0xa68] sm:$0xff] %v1486_v13  }
 0x15f   : > { %1491 = vst [vmem:[%s16414_s26 + $0xa70] sm:$0xff] %v1490_v14  }
 0x160   : > { %1495 = vst [vmem:[%s16414_s26 + $0xa78] sm:$0xff] %v1494_v15  }
 0x161   : > { %1499 = vst [vmem:[%s16414_s26 + $0xa80] sm:$0xff] %v1498_v16  }
 0x162   : > { %1503 = vst [vmem:[%s16414_s26 + $0xa88] sm:$0xff] %v1502_v17  }
 0x163   : > { %1507 = vst [vmem:[%s16414_s26 + $0xa90] sm:$0xff] %v1506_v18  }
 0x164   : > { %1511 = vst [vmem:[%s16414_s26 + $0xa98] sm:$0xff] %v1510_v19  }
 0x165   : > { %1515 = vst [vmem:[%s16414_s26 + $0xaa0] sm:$0xff] %v1514_v20  }
 0x166   : > { %1519 = vst [vmem:[%s16414_s26 + $0xaa8] sm:$0xff] %v1518_v21  }
 0x167   : > { %1523 = vst [vmem:[%s16414_s26 + $0xab0] sm:$0xff] %v1522_v22  }
 0x168   : > { %1527 = vst [vmem:[%s16414_s26 + $0xab8] sm:$0xff] %v1526_v23  }
 0x169   : > { %1531 = vst [vmem:[%s16414_s26 + $0xac0] sm:$0xff] %v1530_v24  }
 0x16a   : > { %1535 = vst [vmem:[%s16414_s26 + $0xac8] sm:$0xff] %v1534_v25  }
 0x16b   : > { %1539 = vst [vmem:[%s16414_s26 + $0xad0] sm:$0xff] %v1538_v26  }
 0x16c   : > { %1543 = vst [vmem:[%s16414_s26 + $0xad8] sm:$0xff] %v1542_v27  }
 0x16d   : > { %1547 = vst [vmem:[%s16414_s26 + $0xae0] sm:$0xff] %v1546_v28  }
 0x16e   : > { %1551 = vst [vmem:[%s16414_s26 + $0xae8] sm:$0xff] %v1550_v29  }
 0x16f   : > { %1555 = vst [vmem:[%s16414_s26 + $0xaf0] sm:$0xff] %v1554_v30  }
 0x170   : > { %1559 = vst [vmem:[%s16414_s26 + $0xaf8] sm:$0xff] %v1558_v31  }
 0x171   : > { %1563 = vst [vmem:[%s16414_s26 + $0xb00] sm:$0xff] %v1562_v32  }
 0x172   : > { %1567 = vst [vmem:[%s16414_s26 + $0xb08] sm:$0xff] %v1566_v33  }
 0x173   : > { %1571 = vst [vmem:[%s16414_s26 + $0xb10] sm:$0xff] %v1570_v34  }
 0x174   : > { %1575 = vst [vmem:[%s16414_s26 + $0xb18] sm:$0xff] %v1574_v35  }
 0x175   : > { %1579 = vst [vmem:[%s16414_s26 + $0xb20] sm:$0xff] %v1578_v36  }
 0x176   : > { %1583 = vst [vmem:[%s16414_s26 + $0xb28] sm:$0xff] %v1582_v37  }
 0x177   : > { %1587 = vst [vmem:[%s16414_s26 + $0xb30] sm:$0xff] %v1586_v38  }
 0x178   : > { %1591 = vst [vmem:[%s16414_s26 + $0xb38] sm:$0xff] %v1590_v39  }
 0x179   : > { %1595 = vst [vmem:[%s16414_s26 + $0xb40] sm:$0xff] %v1594_v40  }
 0x17a   : > { %1599 = vst [vmem:[%s16414_s26 + $0xb48] sm:$0xff] %v1598_v41  }
 0x17b   : > { %1603 = vst [vmem:[%s16414_s26 + $0xb50] sm:$0xff] %v1602_v42  }
 0x17c   : > { %1607 = vst [vmem:[%s16414_s26 + $0xb58] sm:$0xff] %v1606_v43  }
 0x17d   : > { %1611 = vst [vmem:[%s16414_s26 + $0xb60] sm:$0xff] %v1610_v44  }
 0x17e   : > { %1615 = vst [vmem:[%s16414_s26 + $0xb68] sm:$0xff] %v1614_v45  }
 0x17f   : > { %1619 = vst [vmem:[%s16414_s26 + $0xb70] sm:$0xff] %v1618_v46  }
 0x180   : > { %1623 = vst [vmem:[%s16414_s26 + $0xb78] sm:$0xff] %v1622_v47  }
 0x181   : > { %1627 = vst [vmem:[%s16414_s26 + $0xb80] sm:$0xff] %v1626_v48  }
 0x182   : > { %1631 = vst [vmem:[%s16414_s26 + $0xb88] sm:$0xff] %v1630_v49  }
 0x183   : > { %1635 = vst [vmem:[%s16414_s26 + $0xb90] sm:$0xff] %v1634_v50  }
 0x184   : > { %1639 = vst [vmem:[%s16414_s26 + $0xb98] sm:$0xff] %v1638_v51  }
 0x185   : > { %1643 = vst [vmem:[%s16414_s26 + $0xba0] sm:$0xff] %v1642_v52  }
 0x186   : > { %1647 = vst [vmem:[%s16414_s26 + $0xba8] sm:$0xff] %v1646_v53  }
 0x187   : > { %1651 = vst [vmem:[%s16414_s26 + $0xbb0] sm:$0xff] %v1650_v54  }
 0x188   : > { %1655 = vst [vmem:[%s16414_s26 + $0xbb8] sm:$0xff] %v1654_v55  }
 0x189   : > { %1659 = vst [vmem:[%s16414_s26 + $0xbc0] sm:$0xff] %v1658_v56  }
 0x18a   : > { %1663 = vst [vmem:[%s16414_s26 + $0xbc8] sm:$0xff] %v1662_v57  }
 0x18b   : > { %1667 = vst [vmem:[%s16414_s26 + $0xbd0] sm:$0xff] %v1666_v58  }
 0x18c   : > { %1671 = vst [vmem:[%s16414_s26 + $0xbd8] sm:$0xff] %v1670_v59  }
 0x18d   : > { %1675 = vst [vmem:[%s16414_s26 + $0xbe0] sm:$0xff] %v1674_v60  }
 0x18e   : > { %1679 = vst [vmem:[%s16414_s26 + $0xbe8] sm:$0xff] %v1678_v61  }
 0x18f   : > { %1683 = vst [vmem:[%s16414_s26 + $0xbf0] sm:$0xff] %v1682_v62  }
 0x190   : > { %1687 = vst [vmem:[%s16414_s26 + $0xbf8] sm:$0xff] %v1686_v63  }
 0x191   : > { %1691 = vst [vmem:[%s16414_s26 + $0xc00] sm:$0xff] %v1690_v0  }
 0x192   : > { %1695 = vst [vmem:[%s16414_s26 + $0xc08] sm:$0xff] %v1694_v1  }
 0x193   : > { %1699 = vst [vmem:[%s16414_s26 + $0xc10] sm:$0xff] %v1698_v2  }
 0x194   : > { %1703 = vst [vmem:[%s16414_s26 + $0xc18] sm:$0xff] %v1702_v3  }
 0x195   : > { %1707 = vst [vmem:[%s16414_s26 + $0xc20] sm:$0xff] %v1706_v4  }
 0x196   : > { %1711 = vst [vmem:[%s16414_s26 + $0xc28] sm:$0xff] %v1710_v5  }
 0x197   : > { %1715 = vst [vmem:[%s16414_s26 + $0xc30] sm:$0xff] %v1714_v6  }
 0x198   : > { %1719 = vst [vmem:[%s16414_s26 + $0xc38] sm:$0xff] %v1718_v7  }
 0x199 PF: > { %p13900_p5 = scmp.ge.s32.totalorder %s16352_s14, 1  ;;  %p6474_p6 = scmp.lt.s32.totalorder %s16352_s14, 3 }
 0x19b   : > { %p6475_p7 = pnand %p13900_p5, %p6474_p6 }
 0x19c   : > { %s6481_s8 = sand.u32 (!%p6475_p7), 1, %s16344_s12   ;;  %s6505_s12 = smul.u32 (!%p6475_p7), 196, %s13895_s15 }
 0x19d   : > { %6478 = sbr.rel (%p6475_p7) target bundleno = 2147 (0x863), region = 80 }
 0x19e   : > { %s16298_s11 = smul.u32 (!%p6475_p7), 3136, %s6481_s8  ;;  %p6506_p8 = scmp.lt.s32.totalorder (!%p6475_p7), %s6505_s12, 391 }
 0x1a0   : > { %s17218_s20 = scalar_lea.vmem (!%p6475_p7), [#allocation2], %s16298_s11 }
 0x1a2   : > { %v15488_v8 = vld [vmem:[%s18640_s1 + $0x20] sm:$0xf]  ;;  %v16281_v9 = vld [vmem:[%s18640_s1 + $0x20] sm:$0x30]  ;;  %vm10472_vm0 = vcmask 1044480   ;;  %vm10473_vm1 = vcmask 1045504  }
 0x1a3   : > { %v15489_v10 = vor.u32 %v16281_v9, %v15488_v8  ;;  %v16354_v11 = vmov 65535   ;;  %v16280_v15 = vld [vmem:[%s18640_s1 + $0x18] sm:$0xff]  ;;  %v16279_v16 = vld [vmem:[%s18640_s1 + $0x10] sm:$0xff]  ;;  %v16278_v17 = vld [vmem:[%s18640_s1 + $0x8] sm:$0xff]  ;;  %vm9295_vm2 = vcmask 613376   ;;  %s18647_s12 = smov (!%p6506_p8, %s6505_s12), 391 }
 0x1a4   : > { %v10474_v12 = vsel %vm10472_vm0, 4294967295, %v16354_v11  ;;  %v16277_v18 = vld [vmem:[%s18640_s1] sm:$0xff]  ;;  %v15983_v20 = vld [vmem:[%s17218_s20 + $0x310] sm:$0xff]  ;;  %v15886_v23 = vld [vmem:[%s17218_s20 + $0x8] sm:$0xff]  ;;  %s13901_s14 = sshll.u32 %s18647_s12, 2  ;;  %vm13628_vm3 = vcmask 60416  }
 0x1a5   : > { %v10475_v13 = vsel %vm10473_vm1, %v10474_v12, 0  ;;  %v15885_v19 = vld [vmem:[%s17218_s20] sm:$0xff]  ;;  %v16179_v22 = vld [vmem:[%s17218_s20 + $0x930] sm:$0xff]  ;;  %v15984_v24 = vld [vmem:[%s17218_s20 + $0x318] sm:$0xff]  ;;  %s17303_s24 = scalar_lea.vmem %s18642_s3, %s13901_s14 }
 0x1a6   : > { %v10477_v14 = vand.u32 %v15489_v10, %v10475_v13  ;;  %v16081_v21 = vld [vmem:[%s17218_s20 + $0x620] sm:$0xff]  ;;  %v16082_v25 = vld [vmem:[%s17218_s20 + $0x628] sm:$0xff]  ;;  %v16180_v26 = vld [vmem:[%s17218_s20 + $0x938] sm:$0xff] }
 0x1a7   : > { %v15887_v27 = vld [vmem:[%s17218_s20 + $0x10] sm:$0xff]  ;;  %v15985_v28 = vld [vmem:[%s17218_s20 + $0x320] sm:$0xff]  ;;  %v15888_v31 = vld [vmem:[%s17218_s20 + $0x18] sm:$0xff] }
 0x1a8   : > { %10482 = vmatpush.bf16.msra.mxu0 %v10477_v14  ;;  %16282 = vmatpush.bf16.msra.mxu1 %v10477_v14  ;;  %v16083_v29 = vld [vmem:[%s17218_s20 + $0x630] sm:$0xff]  ;;  %v16181_v30 = vld [vmem:[%s17218_s20 + $0x940] sm:$0xff]  ;;  %v15986_v32 = vld [vmem:[%s17218_s20 + $0x328] sm:$0xff] }
 0x1a9   : > { %16283 = vmatpush.bf16.msra.mxu2 %v10477_v14  ;;  %16284 = vmatpush.bf16.msra.mxu3 %v10477_v14  ;;  %v16084_v33 = vld [vmem:[%s17218_s20 + $0x638] sm:$0xff]  ;;  %v16182_v34 = vld [vmem:[%s17218_s20 + $0x948] sm:$0xff]  ;;  %v15889_v35 = vld [vmem:[%s17218_s20 + $0x20] sm:$0xff] }
 0x1aa   : > { %v15987_v36 = vld [vmem:[%s17218_s20 + $0x330] sm:$0xff]  ;;  %v16085_v37 = vld [vmem:[%s17218_s20 + $0x640] sm:$0xff]  ;;  %v15890_v39 = vld [vmem:[%s17218_s20 + $0x28] sm:$0xff] }
 0x1ab   : > { %v16183_v38 = vld [vmem:[%s17218_s20 + $0x950] sm:$0xff]  ;;  %v15988_v40 = vld [vmem:[%s17218_s20 + $0x338] sm:$0xff]  ;;  %v16086_v41 = vld [vmem:[%s17218_s20 + $0x648] sm:$0xff] }
 0x1ac   : > { %10483 = vmatpush.bf16.msra.mxu0 %v16280_v15  ;;  %16285 = vmatpush.bf16.msra.mxu1 %v16280_v15  ;;  %v16184_v42 = vld [vmem:[%s17218_s20 + $0x958] sm:$0xff]  ;;  %v15891_v43 = vld [vmem:[%s17218_s20 + $0x30] sm:$0xff]  ;;  %v15989_v44 = vld [vmem:[%s17218_s20 + $0x340] sm:$0xff] }
 0x1ad   : > { %16286 = vmatpush.bf16.msra.mxu2 %v16280_v15  ;;  %16287 = vmatpush.bf16.msra.mxu3 %v16280_v15  ;;  %v16087_v45 = vld [vmem:[%s17218_s20 + $0x650] sm:$0xff]  ;;  %v16185_v46 = vld [vmem:[%s17218_s20 + $0x960] sm:$0xff]  ;;  %v15892_v47 = vld [vmem:[%s17218_s20 + $0x38] sm:$0xff] }
 0x1ae   : > { %v15990_v48 = vld [vmem:[%s17218_s20 + $0x348] sm:$0xff]  ;;  %v16088_v49 = vld [vmem:[%s17218_s20 + $0x658] sm:$0xff]  ;;  %v15893_v51 = vld [vmem:[%s17218_s20 + $0x40] sm:$0xff] }
 0x1af   : > { %v16186_v50 = vld [vmem:[%s17218_s20 + $0x968] sm:$0xff]  ;;  %v15991_v52 = vld [vmem:[%s17218_s20 + $0x350] sm:$0xff]  ;;  %v16089_v55 = vld [vmem:[%s17218_s20 + $0x660] sm:$0xff] }
 0x1b0   : > { %10484 = vmatpush.bf16.msra.mxu0 %v16279_v16  ;;  %16288 = vmatpush.bf16.msra.mxu1 %v16279_v16  ;;  %v16187_v56 = vld [vmem:[%s17218_s20 + $0x970] sm:$0xff]  ;;  %v17297_v61 = vld [vmem:[%s18641_s2] ss:$0 sm:$0xff]  ;;  %v15894_v5 = vld [vmem:[%s17218_s20 + $0x48] sm:$0xff] }
 0x1b1   : > { %16289 = vmatpush.bf16.msra.mxu2 %v16279_v16  ;;  %16290 = vmatpush.bf16.msra.mxu3 %v16279_v16  ;;  %v15992_v6 = vld [vmem:[%s17218_s20 + $0x358] sm:$0xff]  ;;  %v16090_v12 = vld [vmem:[%s17218_s20 + $0x668] sm:$0xff] }
 0x1b2   : > { %v16188_v13 = vld [vmem:[%s17218_s20 + $0x978] sm:$0xff] }
 0x1b4   : > { %10485 = vmatpush.bf16.msra.mxu0 %v16278_v17  ;;  %16291 = vmatpush.bf16.msra.mxu1 %v16278_v17 }
 0x1b5   : > { %16292 = vmatpush.bf16.msra.mxu2 %v16278_v17  ;;  %16293 = vmatpush.bf16.msra.mxu3 %v16278_v17 }
 0x1b8   : > { %10486 = vmatpush.bf16.msra.mxu0 %v16277_v18  ;;  %16294 = vmatpush.bf16.msra.mxu1 %v16277_v18 }
 0x1b9   : > { %16295 = vmatpush.bf16.msra.mxu2 %v16277_v18  ;;  %16296 = vmatpush.bf16.msra.mxu3 %v16277_v18 }
 0x1bb   : > { %15490 = vmatmul.msk.bf16.vlgmr.msra.gmra.mxu0 %vm9295_vm2, %v15885_v19  ;;  %15588 = vmatmul.msk.bf16.vlgmr.msra.gmra.mxu1 %vm9295_vm2, %v15983_v20 }
 0x1bc   : > { %15686 = vmatmul.msk.bf16.vlgmr.msra.gmra.mxu2 %vm9295_vm2, %v16081_v21  ;;  %15784 = vmatmul.msk.bf16.vlgmr.msra.gmra.mxu3 %vm9295_vm2, %v16179_v22 }
 0x1cb   : > { %15491 = vmatmul.msk.bf16.gmra.mxu0 %vm9295_vm2, %v15886_v23  ;;  %15589 = vmatmul.msk.bf16.gmra.mxu1 %vm9295_vm2, %v15984_v24 }
 0x1cc   : > { %15687 = vmatmul.msk.bf16.gmra.mxu2 %vm9295_vm2, %v16082_v25  ;;  %15785 = vmatmul.msk.bf16.gmra.mxu3 %vm9295_vm2, %v16180_v26 }
 0x1db   : > { %15492 = vmatmul.msk.bf16.gmra.mxu0 %vm9295_vm2, %v15887_v27  ;;  %15590 = vmatmul.msk.bf16.gmra.mxu1 %vm9295_vm2, %v15985_v28 }
 0x1dc   : > { %15688 = vmatmul.msk.bf16.gmra.mxu2 %vm9295_vm2, %v16083_v29  ;;  %15786 = vmatmul.msk.bf16.gmra.mxu3 %vm9295_vm2, %v16181_v30  ;;  %v15895_v29 = vld [vmem:[%s17218_s20 + $0x50] sm:$0xff]  ;;  %v15993_v30 = vld [vmem:[%s17218_s20 + $0x360] sm:$0xff] }
 0x1eb   : > { %15493 = vmatmul.msk.bf16.gmra.mxu0 %vm9295_vm2, %v15888_v31  ;;  %15591 = vmatmul.msk.bf16.gmra.mxu1 %vm9295_vm2, %v15986_v32 }
 0x1ec   : > { %15689 = vmatmul.msk.bf16.gmra.mxu2 %vm9295_vm2, %v16084_v33  ;;  %15787 = vmatmul.msk.bf16.gmra.mxu3 %vm9295_vm2, %v16182_v34 }
 0x1fb   : > { %15494 = vmatmul.msk.bf16.gmra.mxu0 %vm9295_vm2, %v15889_v35  ;;  %15592 = vmatmul.msk.bf16.gmra.mxu1 %vm9295_vm2, %v15987_v36  ;;  %v16091_v36 = vld [vmem:[%s17218_s20 + $0x670] sm:$0xff] }
 0x1fc   : > { %15690 = vmatmul.msk.bf16.gmra.mxu2 %vm9295_vm2, %v16085_v37  ;;  %15788 = vmatmul.msk.bf16.gmra.mxu3 %vm9295_vm2, %v16183_v38  ;;  %v16189_v37 = vld [vmem:[%s17218_s20 + $0x980] sm:$0xff] }
 0x20b   : > { %15495 = vmatmul.msk.bf16.gmra.mxu0 %vm9295_vm2, %v15890_v39  ;;  %15593 = vmatmul.msk.bf16.gmra.mxu1 %vm9295_vm2, %v15988_v40 }
 0x20c   : > { %15691 = vmatmul.msk.bf16.gmra.mxu2 %vm9295_vm2, %v16086_v41  ;;  %15789 = vmatmul.msk.bf16.gmra.mxu3 %vm9295_vm2, %v16184_v42 }
 0x21b   : > { %15496 = vmatmul.msk.bf16.gmra.mxu0 %vm9295_vm2, %v15891_v43  ;;  %15594 = vmatmul.msk.bf16.gmra.mxu1 %vm9295_vm2, %v15989_v44 }
 0x21c   : > { %15692 = vmatmul.msk.bf16.gmra.mxu2 %vm9295_vm2, %v16087_v45  ;;  %15790 = vmatmul.msk.bf16.gmra.mxu3 %vm9295_vm2, %v16185_v46 }
 0x22b   : > { %15497 = vmatmul.msk.bf16.gmra.mxu0 %vm9295_vm2, %v15892_v47  ;;  %15595 = vmatmul.msk.bf16.gmra.mxu1 %vm9295_vm2, %v15990_v48 }
 0x22c   : > { %15693 = vmatmul.msk.bf16.gmra.mxu2 %vm9295_vm2, %v16088_v49  ;;  %15791 = vmatmul.msk.bf16.gmra.mxu3 %vm9295_vm2, %v16186_v50 }
 0x238   : > { %v10488_v53 = vpop.f32.mrf.mxu0  ;;  %v10978_v54 = vpop.f32.mrf.mxu1 }
 0x239   : > { %v12448_v57 = vmax.f32 %v10488_v53, %v10978_v54  ;;  %v15896_v53 = vld [vmem:[%s17218_s20 + $0x58] sm:$0xff]  ;;  %v15994_v54 = vld [vmem:[%s17218_s20 + $0x368] sm:$0xff] }
 0x23b   : > { %15498 = vmatmul.msk.bf16.gmra.mxu0 %vm9295_vm2, %v15893_v51  ;;  %15596 = vmatmul.msk.bf16.gmra.mxu1 %vm9295_vm2, %v15991_v52 }
 0x23c   : > { %15694 = vmatmul.msk.bf16.gmra.mxu2 %vm9295_vm2, %v16089_v55  ;;  %15792 = vmatmul.msk.bf16.gmra.mxu3 %vm9295_vm2, %v16187_v56 }
 0x23f   : > { %v11468_v58 = vpop.f32.mrf.mxu2  ;;  %v11958_v59 = vpop.f32.mrf.mxu3 }
 0x240   : > { %v12644_v60 = vmax.f32 %v11468_v58, %v11958_v59  ;;  %v10490_v62 = vpop.f32.mrf.mxu0  ;;  %v10980_v63 = vpop.f32.mrf.mxu1 }
 0x241   : > { %v12449_v8 = vmax.f32 %v10490_v62, %v10980_v63  ;;  %v16190_v62 = vld [vmem:[%s17218_s20 + $0x988] sm:$0xff] }
 0x242   : > { %v12840_v0 = vmax.f32 %v12448_v57, %v12644_v60  ;;  %v16092_v60 = vld [vmem:[%s17218_s20 + $0x678] sm:$0xff] }
 0x244   : > { %v13040_v1 = vadd.f32 %v17297_v61, %v12840_v0 }
 0x246   : > { %v13236_v2 = vmax.f32 %v13040_v1, 0.0 }
 0x247   : > { %v11470_v3 = vpop.f32.mrf.mxu2  ;;  %v11960_v4 = vpop.f32.mrf.mxu3 }
 0x248   : > { %v13432_v7 = vpack.c.bf16 %v13236_v2, %v13236_v2  ;;  %v12645_v9 = vmax.f32 %v11470_v3, %v11960_v4  ;;  %v10493_v10 = vpop.f32.mrf.mxu0  ;;  %v10983_v11 = vpop.f32.mrf.mxu1 }
 0x249   : > { %v12450_v17 = vmax.f32 %v10493_v10, %v10983_v11 }
 0x24a   : > { %13629 = vst.msk [vmem:[%s17303_s24] sm:$0xf] %vm13628_vm3, %v13432_v7  ;;  %v12841_v14 = vmax.f32 %v12449_v8, %v12645_v9 }
 0x24b   : > { %15499 = vmatmul.msk.bf16.gmra.mxu0 %vm9295_vm2, %v15894_v5  ;;  %15597 = vmatmul.msk.bf16.gmra.mxu1 %vm9295_vm2, %v15992_v6 }
 0x24c   : > { %v13041_v15 = vadd.f32 %v17297_v61, %v12841_v14  ;;  %15695 = vmatmul.msk.bf16.gmra.mxu2 %vm9295_vm2, %v16090_v12  ;;  %15793 = vmatmul.msk.bf16.gmra.mxu3 %vm9295_vm2, %v16188_v13  ;;  %v15897_v14 = vld [vmem:[%s17218_s20 + $0x60] sm:$0xff] }
 0x24e   : > { %v13237_v16 = vmax.f32 %v13041_v15, 0.0  ;;  %v15995_v15 = vld [vmem:[%s17218_s20 + $0x370] sm:$0xff] }
 0x24f   : > { %v11473_v18 = vpop.f32.mrf.mxu2  ;;  %v11963_v19 = vpop.f32.mrf.mxu3 }
 0x250   : > { %v13433_v20 = vpack.c.bf16 %v13237_v16, %v13237_v16  ;;  %v12646_v21 = vmax.f32 %v11473_v18, %v11963_v19  ;;  %v10495_v22 = vpop.f32.mrf.mxu0  ;;  %v10985_v23 = vpop.f32.mrf.mxu1 }
 0x251   : > { %v12451_v32 = vmax.f32 %v10495_v22, %v10985_v23  ;;  %v16191_v22 = vld [vmem:[%s17218_s20 + $0x990] sm:$0xff] }
 0x252   : > { %13630 = vst.msk [vmem:[%s17303_s24 + $0x4] sm:$0xf] %vm13628_vm3, %v13433_v20  ;;  %v12842_v24 = vmax.f32 %v12450_v17, %v12646_v21  ;;  %v16093_v21 = vld [vmem:[%s17218_s20 + $0x680] sm:$0xff] }
 0x254   : > { %v13042_v25 = vadd.f32 %v17297_v61, %v12842_v24 }
 0x256   : > { %v13238_v26 = vmax.f32 %v13042_v25, 0.0 }
 0x257   : > { %v11475_v27 = vpop.f32.mrf.mxu2  ;;  %v11965_v28 = vpop.f32.mrf.mxu3 }
 0x258   : > { %v13434_v31 = vpack.c.bf16 %v13238_v26, %v13238_v26  ;;  %v12647_v33 = vmax.f32 %v11475_v27, %v11965_v28  ;;  %v10498_v34 = vpop.f32.mrf.mxu0  ;;  %v10988_v35 = vpop.f32.mrf.mxu1 }
 0x259   : > { %v12452_v41 = vmax.f32 %v10498_v34, %v10988_v35 }
 0x25a   : > { %13631 = vst.msk [vmem:[%s17303_s24 + $0x8] sm:$0xf] %vm13628_vm3, %v13434_v31  ;;  %v12843_v38 = vmax.f32 %v12451_v32, %v12647_v33 }
 0x25b   : > { %15500 = vmatmul.msk.bf16.gmra.mxu0 %vm9295_vm2, %v15895_v29  ;;  %15598 = vmatmul.msk.bf16.gmra.mxu1 %vm9295_vm2, %v15993_v30 }
 0x25c   : > { %v13043_v39 = vadd.f32 %v17297_v61, %v12843_v38  ;;  %15696 = vmatmul.msk.bf16.gmra.mxu2 %vm9295_vm2, %v16091_v36  ;;  %15794 = vmatmul.msk.bf16.gmra.mxu3 %vm9295_vm2, %v16189_v37  ;;  %v15898_v38 = vld [vmem:[%s17218_s20 + $0x68] sm:$0xff] }
 0x25e   : > { %v13239_v40 = vmax.f32 %v13043_v39, 0.0  ;;  %v15996_v39 = vld [vmem:[%s17218_s20 + $0x378] sm:$0xff] }
 0x25f   : > { %v11478_v42 = vpop.f32.mrf.mxu2  ;;  %v11968_v43 = vpop.f32.mrf.mxu3 }
 0x260   : > { %v13435_v44 = vpack.c.bf16 %v13239_v40, %v13239_v40  ;;  %v12648_v45 = vmax.f32 %v11478_v42, %v11968_v43  ;;  %v10500_v46 = vpop.f32.mrf.mxu0  ;;  %v10990_v47 = vpop.f32.mrf.mxu1 }
 0x261   : > { %v12453_v56 = vmax.f32 %v10500_v46, %v10990_v47  ;;  %v16192_v46 = vld [vmem:[%s17218_s20 + $0x998] sm:$0xff] }
 0x262   : > { %13632 = vst.msk [vmem:[%s17303_s24 + $0xc] sm:$0xf] %vm13628_vm3, %v13435_v44  ;;  %v12844_v48 = vmax.f32 %v12452_v41, %v12648_v45  ;;  %v16094_v45 = vld [vmem:[%s17218_s20 + $0x688] sm:$0xff] }
 0x264   : > { %v13044_v49 = vadd.f32 %v17297_v61, %v12844_v48 }
 0x266   : > { %v13240_v50 = vmax.f32 %v13044_v49, 0.0 }
 0x267   : > { %v11480_v51 = vpop.f32.mrf.mxu2  ;;  %v11970_v52 = vpop.f32.mrf.mxu3 }
 0x268   : > { %v13436_v55 = vpack.c.bf16 %v13240_v50, %v13240_v50  ;;  %v12649_v57 = vmax.f32 %v11480_v51, %v11970_v52  ;;  %v10503_v58 = vpop.f32.mrf.mxu0  ;;  %v10993_v59 = vpop.f32.mrf.mxu1 }
 0x269   : > { %v12454_v2 = vmax.f32 %v10503_v58, %v10993_v59 }
 0x26a   : > { %13633 = vst.msk [vmem:[%s17303_s24 + $0x10] sm:$0xf] %vm13628_vm3, %v13436_v55  ;;  %v12845_v63 = vmax.f32 %v12453_v56, %v12649_v57 }
 0x26b   : > { %15501 = vmatmul.msk.bf16.gmra.mxu0 %vm9295_vm2, %v15896_v53  ;;  %15599 = vmatmul.msk.bf16.gmra.mxu1 %vm9295_vm2, %v15994_v54 }
 0x26c   : > { %v13045_v0 = vadd.f32 %v17297_v61, %v12845_v63  ;;  %15697 = vmatmul.msk.bf16.gmra.mxu2 %vm9295_vm2, %v16092_v60  ;;  %15795 = vmatmul.msk.bf16.gmra.mxu3 %vm9295_vm2, %v16190_v62  ;;  %v15899_v63 = vld [vmem:[%s17218_s20 + $0x70] sm:$0xff] }
 0x26e   : > { %v13241_v1 = vmax.f32 %v13045_v0, 0.0  ;;  %v15997_v0 = vld [vmem:[%s17218_s20 + $0x380] sm:$0xff] }
 0x26f   : > { %v11483_v3 = vpop.f32.mrf.mxu2  ;;  %v11973_v4 = vpop.f32.mrf.mxu3 }
 0x270   : > { %v13437_v5 = vpack.c.bf16 %v13241_v1, %v13241_v1  ;;  %v12650_v6 = vmax.f32 %v11483_v3, %v11973_v4  ;;  %v10505_v7 = vpop.f32.mrf.mxu0  ;;  %v10995_v8 = vpop.f32.mrf.mxu1 }
 0x271   : > { %v12455_v17 = vmax.f32 %v10505_v7, %v10995_v8  ;;  %v16193_v7 = vld [vmem:[%s17218_s20 + $0x9a0] sm:$0xff] }
 0x272   : > { %13634 = vst.msk [vmem:[%s17303_s24 + $0x14] sm:$0xf] %vm13628_vm3, %v13437_v5  ;;  %v12846_v9 = vmax.f32 %v12454_v2, %v12650_v6  ;;  %v16095_v6 = vld [vmem:[%s17218_s20 + $0x690] sm:$0xff] }
 0x274   : > { %v13046_v10 = vadd.f32 %v17297_v61, %v12846_v9 }
 0x276   : > { %v13242_v11 = vmax.f32 %v13046_v10, 0.0 }
 0x277   : > { %v11485_v12 = vpop.f32.mrf.mxu2  ;;  %v11975_v13 = vpop.f32.mrf.mxu3 }
 0x278   : > { %v13438_v16 = vpack.c.bf16 %v13242_v11, %v13242_v11  ;;  %v12651_v18 = vmax.f32 %v11485_v12, %v11975_v13  ;;  %v10508_v19 = vpop.f32.mrf.mxu0  ;;  %v10998_v20 = vpop.f32.mrf.mxu1 }
 0x279   : > { %v12456_v26 = vmax.f32 %v10508_v19, %v10998_v20 }
 0x27a   : > { %13635 = vst.msk [vmem:[%s17303_s24 + $0x18] sm:$0xf] %vm13628_vm3, %v13438_v16  ;;  %v12847_v23 = vmax.f32 %v12455_v17, %v12651_v18 }
 0x27b   : > { %15502 = vmatmul.msk.bf16.gmra.mxu0 %vm9295_vm2, %v15897_v14  ;;  %15600 = vmatmul.msk.bf16.gmra.mxu1 %vm9295_vm2, %v15995_v15 }
 0x27c   : > { %v13047_v24 = vadd.f32 %v17297_v61, %v12847_v23  ;;  %15698 = vmatmul.msk.bf16.gmra.mxu2 %vm9295_vm2, %v16093_v21  ;;  %15796 = vmatmul.msk.bf16.gmra.mxu3 %vm9295_vm2, %v16191_v22  ;;  %v15900_v23 = vld [vmem:[%s17218_s20 + $0x78] sm:$0xff] }
 0x27e   : > { %v13243_v25 = vmax.f32 %v13047_v24, 0.0  ;;  %v15998_v24 = vld [vmem:[%s17218_s20 + $0x388] sm:$0xff] }
 0x27f   : > { %v11488_v27 = vpop.f32.mrf.mxu2  ;;  %v11978_v28 = vpop.f32.mrf.mxu3 }
 0x280   : > { %v13439_v29 = vpack.c.bf16 %v13243_v25, %v13243_v25  ;;  %v12652_v30 = vmax.f32 %v11488_v27, %v11978_v28  ;;  %v10510_v31 = vpop.f32.mrf.mxu0  ;;  %v11000_v32 = vpop.f32.mrf.mxu1 }
 0x281   : > { %v12457_v41 = vmax.f32 %v10510_v31, %v11000_v32  ;;  %v16194_v31 = vld [vmem:[%s17218_s20 + $0x9a8] sm:$0xff] }
 0x282   : > { %13636 = vst.msk [vmem:[%s17303_s24 + $0x1c] sm:$0xf] %vm13628_vm3, %v13439_v29  ;;  %v12848_v33 = vmax.f32 %v12456_v26, %v12652_v30  ;;  %v16096_v30 = vld [vmem:[%s17218_s20 + $0x698] sm:$0xff] }
 0x284   : > { %v13048_v34 = vadd.f32 %v17297_v61, %v12848_v33 }
 0x286   : > { %v13244_v35 = vmax.f32 %v13048_v34, 0.0 }
 0x287   : > { %v11490_v36 = vpop.f32.mrf.mxu2  ;;  %v11980_v37 = vpop.f32.mrf.mxu3 }
 0x288   : > { %v13440_v40 = vpack.c.bf16 %v13244_v35, %v13244_v35  ;;  %v12653_v42 = vmax.f32 %v11490_v36, %v11980_v37  ;;  %v10513_v43 = vpop.f32.mrf.mxu0  ;;  %v11003_v44 = vpop.f32.mrf.mxu1 }
 0x289   : > { %v12458_v50 = vmax.f32 %v10513_v43, %v11003_v44 }
 0x28a   : > { %13637 = vst.msk [vmem:[%s17303_s24 + $0x20] sm:$0xf] %vm13628_vm3, %v13440_v40  ;;  %v12849_v47 = vmax.f32 %v12457_v41, %v12653_v42 }
 0x28b   : > { %15503 = vmatmul.msk.bf16.gmra.mxu0 %vm9295_vm2, %v15898_v38  ;;  %15601 = vmatmul.msk.bf16.gmra.mxu1 %vm9295_vm2, %v15996_v39 }
 0x28c   : > { %v13049_v48 = vadd.f32 %v17297_v61, %v12849_v47  ;;  %15699 = vmatmul.msk.bf16.gmra.mxu2 %vm9295_vm2, %v16094_v45  ;;  %15797 = vmatmul.msk.bf16.gmra.mxu3 %vm9295_vm2, %v16192_v46  ;;  %v15901_v47 = vld [vmem:[%s17218_s20 + $0x80] sm:$0xff] }
 0x28e   : > { %v13245_v49 = vmax.f32 %v13049_v48, 0.0  ;;  %v15999_v48 = vld [vmem:[%s17218_s20 + $0x390] sm:$0xff] }
 0x28f   : > { %v11493_v51 = vpop.f32.mrf.mxu2  ;;  %v11983_v52 = vpop.f32.mrf.mxu3 }
 0x290   : > { %v13441_v53 = vpack.c.bf16 %v13245_v49, %v13245_v49  ;;  %v12654_v54 = vmax.f32 %v11493_v51, %v11983_v52  ;;  %v10515_v55 = vpop.f32.mrf.mxu0  ;;  %v11005_v56 = vpop.f32.mrf.mxu1 }
 0x291   : > { %v12459_v2 = vmax.f32 %v10515_v55, %v11005_v56  ;;  %v16195_v55 = vld [vmem:[%s17218_s20 + $0x9b0] sm:$0xff] }
 0x292   : > { %13638 = vst.msk [vmem:[%s17303_s24 + $0x24] sm:$0xf] %vm13628_vm3, %v13441_v53  ;;  %v12850_v57 = vmax.f32 %v12458_v50, %v12654_v54  ;;  %v16097_v54 = vld [vmem:[%s17218_s20 + $0x6a0] sm:$0xff] }
 0x294   : > { %v13050_v58 = vadd.f32 %v17297_v61, %v12850_v57 }
 0x296   : > { %v13246_v59 = vmax.f32 %v13050_v58, 0.0 }
 0x297   : > { %v11495_v60 = vpop.f32.mrf.mxu2  ;;  %v11985_v62 = vpop.f32.mrf.mxu3 }
 0x298   : > { %v13442_v1 = vpack.c.bf16 %v13246_v59, %v13246_v59  ;;  %v12655_v3 = vmax.f32 %v11495_v60, %v11985_v62  ;;  %v10518_v4 = vpop.f32.mrf.mxu0  ;;  %v11008_v5 = vpop.f32.mrf.mxu1 }
 0x299   : > { %v12460_v11 = vmax.f32 %v10518_v4, %v11008_v5 }
 0x29a   : > { %13639 = vst.msk [vmem:[%s17303_s24 + $0x28] sm:$0xf] %vm13628_vm3, %v13442_v1  ;;  %v12851_v8 = vmax.f32 %v12459_v2, %v12655_v3 }
 0x29b   : > { %15504 = vmatmul.msk.bf16.gmra.mxu0 %vm9295_vm2, %v15899_v63  ;;  %15602 = vmatmul.msk.bf16.gmra.mxu1 %vm9295_vm2, %v15997_v0 }
 0x29c   : > { %v13051_v9 = vadd.f32 %v17297_v61, %v12851_v8  ;;  %15700 = vmatmul.msk.bf16.gmra.mxu2 %vm9295_vm2, %v16095_v6  ;;  %15798 = vmatmul.msk.bf16.gmra.mxu3 %vm9295_vm2, %v16193_v7  ;;  %v15902_v8 = vld [vmem:[%s17218_s20 + $0x88] sm:$0xff] }
 0x29e   : > { %v13247_v10 = vmax.f32 %v13051_v9, 0.0  ;;  %v16000_v9 = vld [vmem:[%s17218_s20 + $0x398] sm:$0xff] }
 0x29f   : > { %v11498_v12 = vpop.f32.mrf.mxu2  ;;  %v11988_v13 = vpop.f32.mrf.mxu3 }
 0x2a0   : > { %v13443_v14 = vpack.c.bf16 %v13247_v10, %v13247_v10  ;;  %v12656_v15 = vmax.f32 %v11498_v12, %v11988_v13  ;;  %v10520_v16 = vpop.f32.mrf.mxu0  ;;  %v11010_v17 = vpop.f32.mrf.mxu1 }
 0x2a1   : > { %v12461_v26 = vmax.f32 %v10520_v16, %v11010_v17  ;;  %v16196_v16 = vld [vmem:[%s17218_s20 + $0x9b8] sm:$0xff] }
 0x2a2   : > { %13640 = vst.msk [vmem:[%s17303_s24 + $0x2c] sm:$0xf] %vm13628_vm3, %v13443_v14  ;;  %v12852_v18 = vmax.f32 %v12460_v11, %v12656_v15  ;;  %v16098_v15 = vld [vmem:[%s17218_s20 + $0x6a8] sm:$0xff] }
 0x2a4   : > { %v13052_v19 = vadd.f32 %v17297_v61, %v12852_v18 }
 0x2a6   : > { %v13248_v20 = vmax.f32 %v13052_v19, 0.0 }
 0x2a7   : > { %v11500_v21 = vpop.f32.mrf.mxu2  ;;  %v11990_v22 = vpop.f32.mrf.mxu3 }
 0x2a8   : > { %v13444_v25 = vpack.c.bf16 %v13248_v20, %v13248_v20  ;;  %v12657_v27 = vmax.f32 %v11500_v21, %v11990_v22  ;;  %v10523_v28 = vpop.f32.mrf.mxu0  ;;  %v11013_v29 = vpop.f32.mrf.mxu1 }
 0x2a9   : > { %v12462_v35 = vmax.f32 %v10523_v28, %v11013_v29 }
 0x2aa   : > { %13641 = vst.msk [vmem:[%s17303_s24 + $0x30] sm:$0xf] %vm13628_vm3, %v13444_v25  ;;  %v12853_v32 = vmax.f32 %v12461_v26, %v12657_v27 }
 0x2ab   : > { %15505 = vmatmul.msk.bf16.gmra.mxu0 %vm9295_vm2, %v15900_v23  ;;  %15603 = vmatmul.msk.bf16.gmra.mxu1 %vm9295_vm2, %v15998_v24 }
 0x2ac   : > { %v13053_v33 = vadd.f32 %v17297_v61, %v12853_v32  ;;  %15701 = vmatmul.msk.bf16.gmra.mxu2 %vm9295_vm2, %v16096_v30  ;;  %15799 = vmatmul.msk.bf16.gmra.mxu3 %vm9295_vm2, %v16194_v31  ;;  %v15903_v32 = vld [vmem:[%s17218_s20 + $0x90] sm:$0xff] }
 0x2ae   : > { %v13249_v34 = vmax.f32 %v13053_v33, 0.0  ;;  %v16001_v33 = vld [vmem:[%s17218_s20 + $0x3a0] sm:$0xff] }
 0x2af   : > { %v11503_v36 = vpop.f32.mrf.mxu2  ;;  %v11993_v37 = vpop.f32.mrf.mxu3 }
 0x2b0   : > { %v13445_v38 = vpack.c.bf16 %v13249_v34, %v13249_v34  ;;  %v12658_v39 = vmax.f32 %v11503_v36, %v11993_v37  ;;  %v10525_v40 = vpop.f32.mrf.mxu0  ;;  %v11015_v41 = vpop.f32.mrf.mxu1 }
 0x2b1   : > { %v12463_v50 = vmax.f32 %v10525_v40, %v11015_v41  ;;  %v16197_v40 = vld [vmem:[%s17218_s20 + $0x9c0] sm:$0xff] }
 0x2b2   : > { %13642 = vst.msk [vmem:[%s17303_s24 + $0x34] sm:$0xf] %vm13628_vm3, %v13445_v38  ;;  %v12854_v42 = vmax.f32 %v12462_v35, %v12658_v39  ;;  %v16099_v39 = vld [vmem:[%s17218_s20 + $0x6b0] sm:$0xff] }
 0x2b4   : > { %v13054_v43 = vadd.f32 %v17297_v61, %v12854_v42 }
 0x2b6   : > { %v13250_v44 = vmax.f32 %v13054_v43, 0.0 }
 0x2b7   : > { %v11505_v45 = vpop.f32.mrf.mxu2  ;;  %v11995_v46 = vpop.f32.mrf.mxu3 }
 0x2b8   : > { %v13446_v49 = vpack.c.bf16 %v13250_v44, %v13250_v44  ;;  %v12659_v51 = vmax.f32 %v11505_v45, %v11995_v46  ;;  %v10528_v52 = vpop.f32.mrf.mxu0  ;;  %v11018_v53 = vpop.f32.mrf.mxu1 }
 0x2b9   : > { %v12464_v59 = vmax.f32 %v10528_v52, %v11018_v53 }
 0x2ba   : > { %13643 = vst.msk [vmem:[%s17303_s24 + $0x38] sm:$0xf] %vm13628_vm3, %v13446_v49  ;;  %v12855_v56 = vmax.f32 %v12463_v50, %v12659_v51 }
 0x2bb   : > { %15506 = vmatmul.msk.bf16.gmra.mxu0 %vm9295_vm2, %v15901_v47  ;;  %15604 = vmatmul.msk.bf16.gmra.mxu1 %vm9295_vm2, %v15999_v48 }
 0x2bc   : > { %v13055_v57 = vadd.f32 %v17297_v61, %v12855_v56  ;;  %15702 = vmatmul.msk.bf16.gmra.mxu2 %vm9295_vm2, %v16097_v54  ;;  %15800 = vmatmul.msk.bf16.gmra.mxu3 %vm9295_vm2, %v16195_v55  ;;  %v15904_v56 = vld [vmem:[%s17218_s20 + $0x98] sm:$0xff] }
 0x2be   : > { %v13251_v58 = vmax.f32 %v13055_v57, 0.0  ;;  %v16002_v57 = vld [vmem:[%s17218_s20 + $0x3a8] sm:$0xff] }
 0x2bf   : > { %v11508_v60 = vpop.f32.mrf.mxu2  ;;  %v11998_v62 = vpop.f32.mrf.mxu3 }
 0x2c0   : > { %v13447_v63 = vpack.c.bf16 %v13251_v58, %v13251_v58  ;;  %v12660_v0 = vmax.f32 %v11508_v60, %v11998_v62  ;;  %v10530_v1 = vpop.f32.mrf.mxu0  ;;  %v11020_v2 = vpop.f32.mrf.mxu1 }
 0x2c1   : > { %v12465_v11 = vmax.f32 %v10530_v1, %v11020_v2  ;;  %v16198_v1 = vld [vmem:[%s17218_s20 + $0x9c8] sm:$0xff] }
 0x2c2   : > { %13644 = vst.msk [vmem:[%s17303_s24 + $0x3c] sm:$0xf] %vm13628_vm3, %v13447_v63  ;;  %v12856_v3 = vmax.f32 %v12464_v59, %v12660_v0  ;;  %v16100_v0 = vld [vmem:[%s17218_s20 + $0x6b8] sm:$0xff] }
 0x2c4   : > { %v13056_v4 = vadd.f32 %v17297_v61, %v12856_v3 }
 0x2c6   : > { %v13252_v5 = vmax.f32 %v13056_v4, 0.0 }
 0x2c7   : > { %v11510_v6 = vpop.f32.mrf.mxu2  ;;  %v12000_v7 = vpop.f32.mrf.mxu3 }
 0x2c8   : > { %v13448_v10 = vpack.c.bf16 %v13252_v5, %v13252_v5  ;;  %v12661_v12 = vmax.f32 %v11510_v6, %v12000_v7  ;;  %v10533_v13 = vpop.f32.mrf.mxu0  ;;  %v11023_v14 = vpop.f32.mrf.mxu1 }
 0x2c9   : > { %v12466_v20 = vmax.f32 %v10533_v13, %v11023_v14 }
 0x2ca   : > { %13645 = vst.msk [vmem:[%s17303_s24 + $0x40] sm:$0xf] %vm13628_vm3, %v13448_v10  ;;  %v12857_v17 = vmax.f32 %v12465_v11, %v12661_v12 }
 0x2cb   : > { %15507 = vmatmul.msk.bf16.gmra.mxu0 %vm9295_vm2, %v15902_v8  ;;  %15605 = vmatmul.msk.bf16.gmra.mxu1 %vm9295_vm2, %v16000_v9 }
 0x2cc   : > { %v13057_v18 = vadd.f32 %v17297_v61, %v12857_v17  ;;  %15703 = vmatmul.msk.bf16.gmra.mxu2 %vm9295_vm2, %v16098_v15  ;;  %15801 = vmatmul.msk.bf16.gmra.mxu3 %vm9295_vm2, %v16196_v16  ;;  %v15905_v17 = vld [vmem:[%s17218_s20 + $0xa0] sm:$0xff] }
 0x2ce   : > { %v13253_v19 = vmax.f32 %v13057_v18, 0.0  ;;  %v16003_v18 = vld [vmem:[%s17218_s20 + $0x3b0] sm:$0xff] }
 0x2cf   : > { %v11513_v21 = vpop.f32.mrf.mxu2  ;;  %v12003_v22 = vpop.f32.mrf.mxu3 }
 0x2d0   : > { %v13449_v23 = vpack.c.bf16 %v13253_v19, %v13253_v19  ;;  %v12662_v24 = vmax.f32 %v11513_v21, %v12003_v22  ;;  %v10535_v25 = vpop.f32.mrf.mxu0  ;;  %v11025_v26 = vpop.f32.mrf.mxu1 }
 0x2d1   : > { %v12467_v35 = vmax.f32 %v10535_v25, %v11025_v26  ;;  %v16199_v25 = vld [vmem:[%s17218_s20 + $0x9d0] sm:$0xff] }
 0x2d2   : > { %13646 = vst.msk [vmem:[%s17303_s24 + $0x44] sm:$0xf] %vm13628_vm3, %v13449_v23  ;;  %v12858_v27 = vmax.f32 %v12466_v20, %v12662_v24  ;;  %v16101_v24 = vld [vmem:[%s17218_s20 + $0x6c0] sm:$0xff] }
 0x2d4   : > { %v13058_v28 = vadd.f32 %v17297_v61, %v12858_v27 }
 0x2d6   : > { %v13254_v29 = vmax.f32 %v13058_v28, 0.0 }
 0x2d7   : > { %v11515_v30 = vpop.f32.mrf.mxu2  ;;  %v12005_v31 = vpop.f32.mrf.mxu3 }
 0x2d8   : > { %v13450_v34 = vpack.c.bf16 %v13254_v29, %v13254_v29  ;;  %v12663_v36 = vmax.f32 %v11515_v30, %v12005_v31  ;;  %v10538_v37 = vpop.f32.mrf.mxu0  ;;  %v11028_v38 = vpop.f32.mrf.mxu1 }
 0x2d9   : > { %v12468_v44 = vmax.f32 %v10538_v37, %v11028_v38 }
 0x2da   : > { %13647 = vst.msk [vmem:[%s17303_s24 + $0x48] sm:$0xf] %vm13628_vm3, %v13450_v34  ;;  %v12859_v41 = vmax.f32 %v12467_v35, %v12663_v36 }
 0x2db   : > { %15508 = vmatmul.msk.bf16.gmra.mxu0 %vm9295_vm2, %v15903_v32  ;;  %15606 = vmatmul.msk.bf16.gmra.mxu1 %vm9295_vm2, %v16001_v33 }
 0x2dc   : > { %v13059_v42 = vadd.f32 %v17297_v61, %v12859_v41  ;;  %15704 = vmatmul.msk.bf16.gmra.mxu2 %vm9295_vm2, %v16099_v39  ;;  %15802 = vmatmul.msk.bf16.gmra.mxu3 %vm9295_vm2, %v16197_v40  ;;  %v15906_v41 = vld [vmem:[%s17218_s20 + $0xa8] sm:$0xff] }
 0x2de   : > { %v13255_v43 = vmax.f32 %v13059_v42, 0.0  ;;  %v16004_v42 = vld [vmem:[%s17218_s20 + $0x3b8] sm:$0xff] }
 0x2df   : > { %v11518_v45 = vpop.f32.mrf.mxu2  ;;  %v12008_v46 = vpop.f32.mrf.mxu3 }
 0x2e0   : > { %v13451_v47 = vpack.c.bf16 %v13255_v43, %v13255_v43  ;;  %v12664_v48 = vmax.f32 %v11518_v45, %v12008_v46  ;;  %v10540_v49 = vpop.f32.mrf.mxu0  ;;  %v11030_v50 = vpop.f32.mrf.mxu1 }
 0x2e1   : > { %v12469_v59 = vmax.f32 %v10540_v49, %v11030_v50  ;;  %v16200_v49 = vld [vmem:[%s17218_s20 + $0x9d8] sm:$0xff] }
 0x2e2   : > { %13648 = vst.msk [vmem:[%s17303_s24 + $0x4c] sm:$0xf] %vm13628_vm3, %v13451_v47  ;;  %v12860_v51 = vmax.f32 %v12468_v44, %v12664_v48  ;;  %v16102_v48 = vld [vmem:[%s17218_s20 + $0x6c8] sm:$0xff] }
 0x2e4   : > { %v13060_v52 = vadd.f32 %v17297_v61, %v12860_v51 }
 0x2e6   : > { %v13256_v53 = vmax.f32 %v13060_v52, 0.0 }
 0x2e7   : > { %v11520_v54 = vpop.f32.mrf.mxu2  ;;  %v12010_v55 = vpop.f32.mrf.mxu3 }
 0x2e8   : > { %v13452_v58 = vpack.c.bf16 %v13256_v53, %v13256_v53  ;;  %v12665_v60 = vmax.f32 %v11520_v54, %v12010_v55  ;;  %v10543_v62 = vpop.f32.mrf.mxu0  ;;  %v11033_v63 = vpop.f32.mrf.mxu1 }
 0x2e9   : > { %v12470_v5 = vmax.f32 %v10543_v62, %v11033_v63 }
 0x2ea   : > { %13649 = vst.msk [vmem:[%s17303_s24 + $0x50] sm:$0xf] %vm13628_vm3, %v13452_v58  ;;  %v12861_v2 = vmax.f32 %v12469_v59, %v12665_v60 }
 0x2eb   : > { %15509 = vmatmul.msk.bf16.gmra.mxu0 %vm9295_vm2, %v15904_v56  ;;  %15607 = vmatmul.msk.bf16.gmra.mxu1 %vm9295_vm2, %v16002_v57 }
 0x2ec   : > { %v13061_v3 = vadd.f32 %v17297_v61, %v12861_v2  ;;  %15705 = vmatmul.msk.bf16.gmra.mxu2 %vm9295_vm2, %v16100_v0  ;;  %15803 = vmatmul.msk.bf16.gmra.mxu3 %vm9295_vm2, %v16198_v1  ;;  %v15907_v2 = vld [vmem:[%s17218_s20 + $0xb0] sm:$0xff] }
 0x2ee   : > { %v13257_v4 = vmax.f32 %v13061_v3, 0.0  ;;  %v16005_v3 = vld [vmem:[%s17218_s20 + $0x3c0] sm:$0xff] }
 0x2ef   : > { %v11523_v6 = vpop.f32.mrf.mxu2  ;;  %v12013_v7 = vpop.f32.mrf.mxu3 }
 0x2f0   : > { %v13453_v8 = vpack.c.bf16 %v13257_v4, %v13257_v4  ;;  %v12666_v9 = vmax.f32 %v11523_v6, %v12013_v7  ;;  %v10545_v10 = vpop.f32.mrf.mxu0  ;;  %v11035_v11 = vpop.f32.mrf.mxu1 }
 0x2f1   : > { %v12471_v20 = vmax.f32 %v10545_v10, %v11035_v11  ;;  %v16201_v10 = vld [vmem:[%s17218_s20 + $0x9e0] sm:$0xff] }
 0x2f2   : > { %13650 = vst.msk [vmem:[%s17303_s24 + $0x54] sm:$0xf] %vm13628_vm3, %v13453_v8  ;;  %v12862_v12 = vmax.f32 %v12470_v5, %v12666_v9  ;;  %v16103_v9 = vld [vmem:[%s17218_s20 + $0x6d0] sm:$0xff] }
 0x2f4   : > { %v13062_v13 = vadd.f32 %v17297_v61, %v12862_v12 }
 0x2f6   : > { %v13258_v14 = vmax.f32 %v13062_v13, 0.0 }
 0x2f7   : > { %v11525_v15 = vpop.f32.mrf.mxu2  ;;  %v12015_v16 = vpop.f32.mrf.mxu3 }
 0x2f8   : > { %v13454_v19 = vpack.c.bf16 %v13258_v14, %v13258_v14  ;;  %v12667_v21 = vmax.f32 %v11525_v15, %v12015_v16  ;;  %v10548_v22 = vpop.f32.mrf.mxu0  ;;  %v11038_v23 = vpop.f32.mrf.mxu1 }
 0x2f9   : > { %v12472_v29 = vmax.f32 %v10548_v22, %v11038_v23 }
 0x2fa   : > { %13651 = vst.msk [vmem:[%s17303_s24 + $0x58] sm:$0xf] %vm13628_vm3, %v13454_v19  ;;  %v12863_v26 = vmax.f32 %v12471_v20, %v12667_v21 }
 0x2fb   : > { %15510 = vmatmul.msk.bf16.gmra.mxu0 %vm9295_vm2, %v15905_v17  ;;  %15608 = vmatmul.msk.bf16.gmra.mxu1 %vm9295_vm2, %v16003_v18 }
 0x2fc   : > { %v13063_v27 = vadd.f32 %v17297_v61, %v12863_v26  ;;  %15706 = vmatmul.msk.bf16.gmra.mxu2 %vm9295_vm2, %v16101_v24  ;;  %15804 = vmatmul.msk.bf16.gmra.mxu3 %vm9295_vm2, %v16199_v25  ;;  %v15908_v26 = vld [vmem:[%s17218_s20 + $0xb8] sm:$0xff] }
 0x2fe   : > { %v13259_v28 = vmax.f32 %v13063_v27, 0.0  ;;  %v16006_v27 = vld [vmem:[%s17218_s20 + $0x3c8] sm:$0xff] }
 0x2ff   : > { %v11528_v30 = vpop.f32.mrf.mxu2  ;;  %v12018_v31 = vpop.f32.mrf.mxu3 }
 0x300   : > { %v13455_v32 = vpack.c.bf16 %v13259_v28, %v13259_v28  ;;  %v12668_v33 = vmax.f32 %v11528_v30, %v12018_v31  ;;  %v10550_v34 = vpop.f32.mrf.mxu0  ;;  %v11040_v35 = vpop.f32.mrf.mxu1 }
 0x301   : > { %v12473_v44 = vmax.f32 %v10550_v34, %v11040_v35  ;;  %v16202_v34 = vld [vmem:[%s17218_s20 + $0x9e8] sm:$0xff] }
 0x302   : > { %13652 = vst.msk [vmem:[%s17303_s24 + $0x5c] sm:$0xf] %vm13628_vm3, %v13455_v32  ;;  %v12864_v36 = vmax.f32 %v12472_v29, %v12668_v33  ;;  %v16104_v33 = vld [vmem:[%s17218_s20 + $0x6d8] sm:$0xff] }
 0x304   : > { %v13064_v37 = vadd.f32 %v17297_v61, %v12864_v36 }
 0x306   : > { %v13260_v38 = vmax.f32 %v13064_v37, 0.0 }
 0x307   : > { %v11530_v39 = vpop.f32.mrf.mxu2  ;;  %v12020_v40 = vpop.f32.mrf.mxu3 }
 0x308   : > { %v13456_v43 = vpack.c.bf16 %v13260_v38, %v13260_v38  ;;  %v12669_v45 = vmax.f32 %v11530_v39, %v12020_v40  ;;  %v10553_v46 = vpop.f32.mrf.mxu0  ;;  %v11043_v47 = vpop.f32.mrf.mxu1 }
 0x309   : > { %v12474_v53 = vmax.f32 %v10553_v46, %v11043_v47 }
 0x30a   : > { %13653 = vst.msk [vmem:[%s17303_s24 + $0x60] sm:$0xf] %vm13628_vm3, %v13456_v43  ;;  %v12865_v50 = vmax.f32 %v12473_v44, %v12669_v45 }
 0x30b   : > { %15511 = vmatmul.msk.bf16.gmra.mxu0 %vm9295_vm2, %v15906_v41  ;;  %15609 = vmatmul.msk.bf16.gmra.mxu1 %vm9295_vm2, %v16004_v42 }
 0x30c   : > { %v13065_v51 = vadd.f32 %v17297_v61, %v12865_v50  ;;  %15707 = vmatmul.msk.bf16.gmra.mxu2 %vm9295_vm2, %v16102_v48  ;;  %15805 = vmatmul.msk.bf16.gmra.mxu3 %vm9295_vm2, %v16200_v49  ;;  %v15909_v50 = vld [vmem:[%s17218_s20 + $0xc0] sm:$0xff] }
 0x30e   : > { %v13261_v52 = vmax.f32 %v13065_v51, 0.0  ;;  %v16007_v51 = vld [vmem:[%s17218_s20 + $0x3d0] sm:$0xff] }
 0x30f   : > { %v11533_v54 = vpop.f32.mrf.mxu2  ;;  %v12023_v55 = vpop.f32.mrf.mxu3 }
 0x310   : > { %v13457_v56 = vpack.c.bf16 %v13261_v52, %v13261_v52  ;;  %v12670_v57 = vmax.f32 %v11533_v54, %v12023_v55  ;;  %v10555_v58 = vpop.f32.mrf.mxu0  ;;  %v11045_v59 = vpop.f32.mrf.mxu1 }
 0x311   : > { %v12475_v5 = vmax.f32 %v10555_v58, %v11045_v59  ;;  %v16203_v58 = vld [vmem:[%s17218_s20 + $0x9f0] sm:$0xff] }
 0x312   : > { %13654 = vst.msk [vmem:[%s17303_s24 + $0x64] sm:$0xf] %vm13628_vm3, %v13457_v56  ;;  %v12866_v60 = vmax.f32 %v12474_v53, %v12670_v57  ;;  %v16105_v57 = vld [vmem:[%s17218_s20 + $0x6e0] sm:$0xff] }
 0x314   : > { %v13066_v62 = vadd.f32 %v17297_v61, %v12866_v60 }
 0x316   : > { %v13262_v63 = vmax.f32 %v13066_v62, 0.0 }
 0x317   : > { %v11535_v0 = vpop.f32.mrf.mxu2  ;;  %v12025_v1 = vpop.f32.mrf.mxu3 }
 0x318   : > { %v13458_v4 = vpack.c.bf16 %v13262_v63, %v13262_v63  ;;  %v12671_v6 = vmax.f32 %v11535_v0, %v12025_v1  ;;  %v10558_v7 = vpop.f32.mrf.mxu0  ;;  %v11048_v8 = vpop.f32.mrf.mxu1 }
 0x319   : > { %v12476_v14 = vmax.f32 %v10558_v7, %v11048_v8 }
 0x31a   : > { %13655 = vst.msk [vmem:[%s17303_s24 + $0x68] sm:$0xf] %vm13628_vm3, %v13458_v4  ;;  %v12867_v11 = vmax.f32 %v12475_v5, %v12671_v6 }
 0x31b   : > { %15512 = vmatmul.msk.bf16.gmra.mxu0 %vm9295_vm2, %v15907_v2  ;;  %15610 = vmatmul.msk.bf16.gmra.mxu1 %vm9295_vm2, %v16005_v3 }
 0x31c   : > { %v13067_v12 = vadd.f32 %v17297_v61, %v12867_v11  ;;  %15708 = vmatmul.msk.bf16.gmra.mxu2 %vm9295_vm2, %v16103_v9  ;;  %15806 = vmatmul.msk.bf16.gmra.mxu3 %vm9295_vm2, %v16201_v10  ;;  %v15910_v11 = vld [vmem:[%s17218_s20 + $0xc8] sm:$0xff] }
 0x31e   : > { %v13263_v13 = vmax.f32 %v13067_v12, 0.0  ;;  %v16008_v12 = vld [vmem:[%s17218_s20 + $0x3d8] sm:$0xff] }
 0x31f   : > { %v11538_v15 = vpop.f32.mrf.mxu2  ;;  %v12028_v16 = vpop.f32.mrf.mxu3 }
 0x320   : > { %v13459_v17 = vpack.c.bf16 %v13263_v13, %v13263_v13  ;;  %v12672_v18 = vmax.f32 %v11538_v15, %v12028_v16  ;;  %v10560_v19 = vpop.f32.mrf.mxu0  ;;  %v11050_v20 = vpop.f32.mrf.mxu1 }
 0x321   : > { %v12477_v29 = vmax.f32 %v10560_v19, %v11050_v20  ;;  %v16204_v19 = vld [vmem:[%s17218_s20 + $0x9f8] sm:$0xff] }
 0x322   : > { %13656 = vst.msk [vmem:[%s17303_s24 + $0x6c] sm:$0xf] %vm13628_vm3, %v13459_v17  ;;  %v12868_v21 = vmax.f32 %v12476_v14, %v12672_v18  ;;  %v16106_v18 = vld [vmem:[%s17218_s20 + $0x6e8] sm:$0xff] }
 0x324   : > { %v13068_v22 = vadd.f32 %v17297_v61, %v12868_v21 }
 0x326   : > { %v13264_v23 = vmax.f32 %v13068_v22, 0.0 }
 0x327   : > { %v11540_v24 = vpop.f32.mrf.mxu2  ;;  %v12030_v25 = vpop.f32.mrf.mxu3 }
 0x328   : > { %v13460_v28 = vpack.c.bf16 %v13264_v23, %v13264_v23  ;;  %v12673_v30 = vmax.f32 %v11540_v24, %v12030_v25  ;;  %v10563_v31 = vpop.f32.mrf.mxu0  ;;  %v11053_v32 = vpop.f32.mrf.mxu1 }
 0x329   : > { %v12478_v38 = vmax.f32 %v10563_v31, %v11053_v32 }
 0x32a   : > { %13657 = vst.msk [vmem:[%s17303_s24 + $0x70] sm:$0xf] %vm13628_vm3, %v13460_v28  ;;  %v12869_v35 = vmax.f32 %v12477_v29, %v12673_v30  ;;  %v17545_v30 = vld [vmem:[%s18641_s2] ss:$0 sm:$0xff] }
 0x32b   : > { %15513 = vmatmul.msk.bf16.gmra.mxu0 %vm9295_vm2, %v15908_v26  ;;  %15611 = vmatmul.msk.bf16.gmra.mxu1 %vm9295_vm2, %v16006_v27 }
 0x32c   : > { %v13069_v36 = vadd.f32 %v17297_v61, %v12869_v35  ;;  %15709 = vmatmul.msk.bf16.gmra.mxu2 %vm9295_vm2, %v16104_v33  ;;  %15807 = vmatmul.msk.bf16.gmra.mxu3 %vm9295_vm2, %v16202_v34  ;;  %v15911_v35 = vld [vmem:[%s17218_s20 + $0xd0] sm:$0xff] }
 0x32e   : > { %v13265_v37 = vmax.f32 %v13069_v36, 0.0  ;;  %v16009_v36 = vld [vmem:[%s17218_s20 + $0x3e0] sm:$0xff] }
 0x32f   : > { %v11543_v39 = vpop.f32.mrf.mxu2  ;;  %v12033_v40 = vpop.f32.mrf.mxu3 }
 0x330   : > { %v13461_v41 = vpack.c.bf16 %v13265_v37, %v13265_v37  ;;  %v12674_v42 = vmax.f32 %v11543_v39, %v12033_v40  ;;  %v10565_v43 = vpop.f32.mrf.mxu0  ;;  %v11055_v44 = vpop.f32.mrf.mxu1 }
 0x331   : > { %v12479_v53 = vmax.f32 %v10565_v43, %v11055_v44  ;;  %v16205_v43 = vld [vmem:[%s17218_s20 + $0xa00] sm:$0xff] }
 0x332   : > { %13658 = vst.msk [vmem:[%s17303_s24 + $0x74] sm:$0xf] %vm13628_vm3, %v13461_v41  ;;  %v12870_v45 = vmax.f32 %v12478_v38, %v12674_v42  ;;  %v16107_v42 = vld [vmem:[%s17218_s20 + $0x6f0] sm:$0xff] }
 0x334   : > { %v13070_v46 = vadd.f32 %v17297_v61, %v12870_v45 }
 0x336   : > { %v13266_v47 = vmax.f32 %v13070_v46, 0.0 }
 0x337   : > { %v11545_v48 = vpop.f32.mrf.mxu2  ;;  %v12035_v49 = vpop.f32.mrf.mxu3 }
 0x338   : > { %v13462_v52 = vpack.c.bf16 %v13266_v47, %v13266_v47  ;;  %v12675_v54 = vmax.f32 %v11545_v48, %v12035_v49  ;;  %v10568_v55 = vpop.f32.mrf.mxu0  ;;  %v11058_v56 = vpop.f32.mrf.mxu1 }
 0x339   : > { %v12480_v63 = vmax.f32 %v10568_v55, %v11058_v56 }
 0x33a   : > { %13659 = vst.msk [vmem:[%s17303_s24 + $0x78] sm:$0xf] %vm13628_vm3, %v13462_v52  ;;  %v12871_v59 = vmax.f32 %v12479_v53, %v12675_v54 }
 0x33b   : > { %15514 = vmatmul.msk.bf16.gmra.mxu0 %vm9295_vm2, %v15909_v50  ;;  %15612 = vmatmul.msk.bf16.gmra.mxu1 %vm9295_vm2, %v16007_v51 }
 0x33c   : > { %v13071_v60 = vadd.f32 %v17297_v61, %v12871_v59  ;;  %15710 = vmatmul.msk.bf16.gmra.mxu2 %vm9295_vm2, %v16105_v57  ;;  %15808 = vmatmul.msk.bf16.gmra.mxu3 %vm9295_vm2, %v16203_v58  ;;  %v15912_v59 = vld [vmem:[%s17218_s20 + $0xd8] sm:$0xff] }
 0x33e   : > { %v13267_v62 = vmax.f32 %v13071_v60, 0.0  ;;  %v16010_v60 = vld [vmem:[%s17218_s20 + $0x3e8] sm:$0xff] }
 0x33f   : > { %v11548_v0 = vpop.f32.mrf.mxu2  ;;  %v12038_v1 = vpop.f32.mrf.mxu3 }
 0x340   : > { %v13463_v2 = vpack.c.bf16 %v13267_v62, %v13267_v62  ;;  %v12676_v3 = vmax.f32 %v11548_v0, %v12038_v1  ;;  %v10570_v4 = vpop.f32.mrf.mxu0  ;;  %v11060_v5 = vpop.f32.mrf.mxu1 }
 0x341   : > { %v12481_v14 = vmax.f32 %v10570_v4, %v11060_v5  ;;  %v16206_v4 = vld [vmem:[%s17218_s20 + $0xa08] sm:$0xff] }
 0x342   : > { %13660 = vst.msk [vmem:[%s17303_s24 + $0x7c] sm:$0xf] %vm13628_vm3, %v13463_v2  ;;  %v12872_v6 = vmax.f32 %v12480_v63, %v12676_v3  ;;  %v16108_v3 = vld [vmem:[%s17218_s20 + $0x6f8] sm:$0xff] }
 0x344   : > { %v13072_v7 = vadd.f32 %v17297_v61, %v12872_v6 }
 0x346   : > { %v13268_v8 = vmax.f32 %v13072_v7, 0.0 }
 0x347   : > { %v11550_v9 = vpop.f32.mrf.mxu2  ;;  %v12040_v10 = vpop.f32.mrf.mxu3 }
 0x348   : > { %v13464_v13 = vpack.c.bf16 %v13268_v8, %v13268_v8  ;;  %v12677_v15 = vmax.f32 %v11550_v9, %v12040_v10  ;;  %v10573_v16 = vpop.f32.mrf.mxu0  ;;  %v11063_v17 = vpop.f32.mrf.mxu1 }
 0x349   : > { %v12482_v23 = vmax.f32 %v10573_v16, %v11063_v17 }
 0x34a   : > { %13661 = vst.msk [vmem:[%s17303_s24 + $0x80] sm:$0xf] %vm13628_vm3, %v13464_v13  ;;  %v12873_v20 = vmax.f32 %v12481_v14, %v12677_v15 }
 0x34b   : > { %15515 = vmatmul.msk.bf16.gmra.mxu0 %vm9295_vm2, %v15910_v11  ;;  %15613 = vmatmul.msk.bf16.gmra.mxu1 %vm9295_vm2, %v16008_v12 }
 0x34c   : > { %v13073_v21 = vadd.f32 %v17297_v61, %v12873_v20  ;;  %15711 = vmatmul.msk.bf16.gmra.mxu2 %vm9295_vm2, %v16106_v18  ;;  %15809 = vmatmul.msk.bf16.gmra.mxu3 %vm9295_vm2, %v16204_v19  ;;  %v15913_v20 = vld [vmem:[%s17218_s20 + $0xe0] sm:$0xff] }
 0x34e   : > { %v13269_v22 = vmax.f32 %v13073_v21, 0.0  ;;  %v16011_v21 = vld [vmem:[%s17218_s20 + $0x3f0] sm:$0xff] }
 0x34f   : > { %v11553_v24 = vpop.f32.mrf.mxu2  ;;  %v12043_v25 = vpop.f32.mrf.mxu3 }
 0x350   : > { %v13465_v26 = vpack.c.bf16 %v13269_v22, %v13269_v22  ;;  %v12678_v27 = vmax.f32 %v11553_v24, %v12043_v25  ;;  %v10575_v28 = vpop.f32.mrf.mxu0  ;;  %v11065_v29 = vpop.f32.mrf.mxu1 }
 0x351   : > { %v12483_v38 = vmax.f32 %v10575_v28, %v11065_v29  ;;  %v16207_v28 = vld [vmem:[%s17218_s20 + $0xa10] sm:$0xff] }
 0x352   : > { %13662 = vst.msk [vmem:[%s17303_s24 + $0x84] sm:$0xf] %vm13628_vm3, %v13465_v26  ;;  %v12874_v61 = vmax.f32 %v12482_v23, %v12678_v27  ;;  %v16109_v27 = vld [vmem:[%s17218_s20 + $0x700] sm:$0xff] }
 0x354   : > { %v13074_v31 = vadd.f32 %v17545_v30, %v12874_v61 }
 0x356   : > { %v13270_v32 = vmax.f32 %v13074_v31, 0.0 }
 0x357   : > { %v11555_v33 = vpop.f32.mrf.mxu2  ;;  %v12045_v34 = vpop.f32.mrf.mxu3 }
 0x358   : > { %v13466_v37 = vpack.c.bf16 %v13270_v32, %v13270_v32  ;;  %v12679_v39 = vmax.f32 %v11555_v33, %v12045_v34  ;;  %v10578_v40 = vpop.f32.mrf.mxu0  ;;  %v11068_v41 = vpop.f32.mrf.mxu1 }
 0x359   : > { %v12484_v47 = vmax.f32 %v10578_v40, %v11068_v41 }
 0x35a   : > { %13663 = vst.msk [vmem:[%s17303_s24 + $0x88] sm:$0xf] %vm13628_vm3, %v13466_v37  ;;  %v12875_v44 = vmax.f32 %v12483_v38, %v12679_v39 }
 0x35b   : > { %15516 = vmatmul.msk.bf16.gmra.mxu0 %vm9295_vm2, %v15911_v35  ;;  %15614 = vmatmul.msk.bf16.gmra.mxu1 %vm9295_vm2, %v16009_v36 }
 0x35c   : > { %v13075_v45 = vadd.f32 %v17545_v30, %v12875_v44  ;;  %15712 = vmatmul.msk.bf16.gmra.mxu2 %vm9295_vm2, %v16107_v42  ;;  %15810 = vmatmul.msk.bf16.gmra.mxu3 %vm9295_vm2, %v16205_v43  ;;  %v15914_v44 = vld [vmem:[%s17218_s20 + $0xe8] sm:$0xff] }
 0x35e   : > { %v13271_v46 = vmax.f32 %v13075_v45, 0.0  ;;  %v16012_v45 = vld [vmem:[%s17218_s20 + $0x3f8] sm:$0xff] }
 0x35f   : > { %v11558_v48 = vpop.f32.mrf.mxu2  ;;  %v12048_v49 = vpop.f32.mrf.mxu3 }
 0x360   : > { %v13467_v50 = vpack.c.bf16 %v13271_v46, %v13271_v46  ;;  %v12680_v51 = vmax.f32 %v11558_v48, %v12048_v49  ;;  %v10580_v52 = vpop.f32.mrf.mxu0  ;;  %v11070_v53 = vpop.f32.mrf.mxu1 }
 0x361   : > { %v12485_v63 = vmax.f32 %v10580_v52, %v11070_v53  ;;  %v16208_v52 = vld [vmem:[%s17218_s20 + $0xa18] sm:$0xff] }
 0x362   : > { %13664 = vst.msk [vmem:[%s17303_s24 + $0x8c] sm:$0xf] %vm13628_vm3, %v13467_v50  ;;  %v12876_v54 = vmax.f32 %v12484_v47, %v12680_v51  ;;  %v16110_v51 = vld [vmem:[%s17218_s20 + $0x708] sm:$0xff] }
 0x364   : > { %v13076_v55 = vadd.f32 %v17545_v30, %v12876_v54 }
 0x366   : > { %v13272_v56 = vmax.f32 %v13076_v55, 0.0 }
 0x367   : > { %v11560_v57 = vpop.f32.mrf.mxu2  ;;  %v12050_v58 = vpop.f32.mrf.mxu3 }
 0x368   : > { %v13468_v62 = vpack.c.bf16 %v13272_v56, %v13272_v56  ;;  %v12681_v0 = vmax.f32 %v11560_v57, %v12050_v58  ;;  %v10583_v1 = vpop.f32.mrf.mxu0  ;;  %v11073_v2 = vpop.f32.mrf.mxu1 }
 0x369   : > { %v12486_v8 = vmax.f32 %v10583_v1, %v11073_v2 }
 0x36a   : > { %13665 = vst.msk [vmem:[%s17303_s24 + $0x90] sm:$0xf] %vm13628_vm3, %v13468_v62  ;;  %v12877_v5 = vmax.f32 %v12485_v63, %v12681_v0 }
 0x36b   : > { %15517 = vmatmul.msk.bf16.gmra.mxu0 %vm9295_vm2, %v15912_v59  ;;  %15615 = vmatmul.msk.bf16.gmra.mxu1 %vm9295_vm2, %v16010_v60 }
 0x36c   : > { %v13077_v6 = vadd.f32 %v17545_v30, %v12877_v5  ;;  %15713 = vmatmul.msk.bf16.gmra.mxu2 %vm9295_vm2, %v16108_v3  ;;  %15811 = vmatmul.msk.bf16.gmra.mxu3 %vm9295_vm2, %v16206_v4  ;;  %v15915_v5 = vld [vmem:[%s17218_s20 + $0xf0] sm:$0xff] }
 0x36e   : > { %v13273_v7 = vmax.f32 %v13077_v6, 0.0  ;;  %v16013_v6 = vld [vmem:[%s17218_s20 + $0x400] sm:$0xff] }
 0x36f   : > { %v11563_v9 = vpop.f32.mrf.mxu2  ;;  %v12053_v10 = vpop.f32.mrf.mxu3 }
 0x370   : > { %v13469_v11 = vpack.c.bf16 %v13273_v7, %v13273_v7  ;;  %v12682_v12 = vmax.f32 %v11563_v9, %v12053_v10  ;;  %v10585_v13 = vpop.f32.mrf.mxu0  ;;  %v11075_v14 = vpop.f32.mrf.mxu1 }
 0x371   : > { %v12487_v23 = vmax.f32 %v10585_v13, %v11075_v14  ;;  %v16209_v13 = vld [vmem:[%s17218_s20 + $0xa20] sm:$0xff] }
 0x372   : > { %13666 = vst.msk [vmem:[%s17303_s24 + $0x94] sm:$0xf] %vm13628_vm3, %v13469_v11  ;;  %v12878_v15 = vmax.f32 %v12486_v8, %v12682_v12  ;;  %v16111_v12 = vld [vmem:[%s17218_s20 + $0x710] sm:$0xff] }
 0x374   : > { %v13078_v16 = vadd.f32 %v17545_v30, %v12878_v15 }
 0x376   : > { %v13274_v17 = vmax.f32 %v13078_v16, 0.0 }
 0x377   : > { %v11565_v18 = vpop.f32.mrf.mxu2  ;;  %v12055_v19 = vpop.f32.mrf.mxu3 }
 0x378   : > { %v13470_v22 = vpack.c.bf16 %v13274_v17, %v13274_v17  ;;  %v12683_v24 = vmax.f32 %v11565_v18, %v12055_v19  ;;  %v10588_v25 = vpop.f32.mrf.mxu0  ;;  %v11078_v26 = vpop.f32.mrf.mxu1 }
 0x379   : > { %v12488_v32 = vmax.f32 %v10588_v25, %v11078_v26 }
 0x37a   : > { %13667 = vst.msk [vmem:[%s17303_s24 + $0x98] sm:$0xf] %vm13628_vm3, %v13470_v22  ;;  %v12879_v29 = vmax.f32 %v12487_v23, %v12683_v24 }
 0x37b   : > { %15518 = vmatmul.msk.bf16.gmra.mxu0 %vm9295_vm2, %v15913_v20  ;;  %15616 = vmatmul.msk.bf16.gmra.mxu1 %vm9295_vm2, %v16011_v21 }
 0x37c   : > { %v13079_v61 = vadd.f32 %v17545_v30, %v12879_v29  ;;  %15714 = vmatmul.msk.bf16.gmra.mxu2 %vm9295_vm2, %v16109_v27  ;;  %15812 = vmatmul.msk.bf16.gmra.mxu3 %vm9295_vm2, %v16207_v28  ;;  %v15916_v29 = vld [vmem:[%s17218_s20 + $0xf8] sm:$0xff] }
 0x37e   : > { %v13275_v31 = vmax.f32 %v13079_v61, 0.0  ;;  %v16014_v61 = vld [vmem:[%s17218_s20 + $0x408] sm:$0xff] }
 0x37f   : > { %v11568_v33 = vpop.f32.mrf.mxu2  ;;  %v12058_v34 = vpop.f32.mrf.mxu3 }
 0x380   : > { %v13471_v35 = vpack.c.bf16 %v13275_v31, %v13275_v31  ;;  %v12684_v36 = vmax.f32 %v11568_v33, %v12058_v34  ;;  %v10590_v37 = vpop.f32.mrf.mxu0  ;;  %v11080_v38 = vpop.f32.mrf.mxu1 }
 0x381   : > { %v12489_v47 = vmax.f32 %v10590_v37, %v11080_v38  ;;  %v16210_v37 = vld [vmem:[%s17218_s20 + $0xa28] sm:$0xff] }
 0x382   : > { %13668 = vst.msk [vmem:[%s17303_s24 + $0x9c] sm:$0xf] %vm13628_vm3, %v13471_v35  ;;  %v12880_v39 = vmax.f32 %v12488_v32, %v12684_v36  ;;  %v16112_v36 = vld [vmem:[%s17218_s20 + $0x718] sm:$0xff] }
 0x384   : > { %v13080_v40 = vadd.f32 %v17545_v30, %v12880_v39 }
 0x386   : > { %v13276_v41 = vmax.f32 %v13080_v40, 0.0 }
 0x387   : > { %v11570_v42 = vpop.f32.mrf.mxu2  ;;  %v12060_v43 = vpop.f32.mrf.mxu3 }
 0x388   : > { %v13472_v46 = vpack.c.bf16 %v13276_v41, %v13276_v41  ;;  %v12685_v48 = vmax.f32 %v11570_v42, %v12060_v43  ;;  %v10593_v49 = vpop.f32.mrf.mxu0  ;;  %v11083_v50 = vpop.f32.mrf.mxu1 }
 0x389   : > { %v12490_v56 = vmax.f32 %v10593_v49, %v11083_v50 }
 0x38a   : > { %13669 = vst.msk [vmem:[%s17303_s24 + $0xa0] sm:$0xf] %vm13628_vm3, %v13472_v46  ;;  %v12881_v53 = vmax.f32 %v12489_v47, %v12685_v48 }
 0x38b   : > { %15519 = vmatmul.msk.bf16.gmra.mxu0 %vm9295_vm2, %v15914_v44  ;;  %15617 = vmatmul.msk.bf16.gmra.mxu1 %vm9295_vm2, %v16012_v45 }
 0x38c   : > { %v13081_v54 = vadd.f32 %v17545_v30, %v12881_v53  ;;  %15715 = vmatmul.msk.bf16.gmra.mxu2 %vm9295_vm2, %v16110_v51  ;;  %15813 = vmatmul.msk.bf16.gmra.mxu3 %vm9295_vm2, %v16208_v52  ;;  %v15917_v53 = vld [vmem:[%s17218_s20 + $0x100] sm:$0xff] }
 0x38e   : > { %v13277_v55 = vmax.f32 %v13081_v54, 0.0  ;;  %v16015_v54 = vld [vmem:[%s17218_s20 + $0x410] sm:$0xff] }
 0x38f   : > { %v11573_v57 = vpop.f32.mrf.mxu2  ;;  %v12063_v58 = vpop.f32.mrf.mxu3 }
 0x390   : > { %v13473_v59 = vpack.c.bf16 %v13277_v55, %v13277_v55  ;;  %v12686_v60 = vmax.f32 %v11573_v57, %v12063_v58  ;;  %v10595_v62 = vpop.f32.mrf.mxu0  ;;  %v11085_v63 = vpop.f32.mrf.mxu1 }
 0x391   : > { %v12491_v8 = vmax.f32 %v10595_v62, %v11085_v63  ;;  %v16211_v62 = vld [vmem:[%s17218_s20 + $0xa30] sm:$0xff] }
 0x392   : > { %13670 = vst.msk [vmem:[%s17303_s24 + $0xa4] sm:$0xf] %vm13628_vm3, %v13473_v59  ;;  %v12882_v0 = vmax.f32 %v12490_v56, %v12686_v60  ;;  %v16113_v60 = vld [vmem:[%s17218_s20 + $0x720] sm:$0xff] }
 0x394   : > { %v13082_v1 = vadd.f32 %v17545_v30, %v12882_v0 }
 0x396   : > { %v13278_v2 = vmax.f32 %v13082_v1, 0.0 }
 0x397   : > { %v11575_v3 = vpop.f32.mrf.mxu2  ;;  %v12065_v4 = vpop.f32.mrf.mxu3 }
 0x398   : > { %v13474_v7 = vpack.c.bf16 %v13278_v2, %v13278_v2  ;;  %v12687_v9 = vmax.f32 %v11575_v3, %v12065_v4  ;;  %v10598_v10 = vpop.f32.mrf.mxu0  ;;  %v11088_v11 = vpop.f32.mrf.mxu1 }
 0x399   : > { %v12492_v17 = vmax.f32 %v10598_v10, %v11088_v11 }
 0x39a   : > { %13671 = vst.msk [vmem:[%s17303_s24 + $0xa8] sm:$0xf] %vm13628_vm3, %v13474_v7  ;;  %v12883_v14 = vmax.f32 %v12491_v8, %v12687_v9 }
 0x39b   : > { %15520 = vmatmul.msk.bf16.gmra.mxu0 %vm9295_vm2, %v15915_v5  ;;  %15618 = vmatmul.msk.bf16.gmra.mxu1 %vm9295_vm2, %v16013_v6 }
 0x39c   : > { %v13083_v15 = vadd.f32 %v17545_v30, %v12883_v14  ;;  %15716 = vmatmul.msk.bf16.gmra.mxu2 %vm9295_vm2, %v16111_v12  ;;  %15814 = vmatmul.msk.bf16.gmra.mxu3 %vm9295_vm2, %v16209_v13  ;;  %v15918_v14 = vld [vmem:[%s17218_s20 + $0x108] sm:$0xff] }
 0x39e   : > { %v13279_v16 = vmax.f32 %v13083_v15, 0.0  ;;  %v16016_v15 = vld [vmem:[%s17218_s20 + $0x418] sm:$0xff] }
 0x39f   : > { %v11578_v18 = vpop.f32.mrf.mxu2  ;;  %v12068_v19 = vpop.f32.mrf.mxu3 }
 0x3a0   : > { %v13475_v20 = vpack.c.bf16 %v13279_v16, %v13279_v16  ;;  %v12688_v21 = vmax.f32 %v11578_v18, %v12068_v19  ;;  %v10600_v22 = vpop.f32.mrf.mxu0  ;;  %v11090_v23 = vpop.f32.mrf.mxu1 }
 0x3a1   : > { %v12493_v32 = vmax.f32 %v10600_v22, %v11090_v23  ;;  %v16212_v22 = vld [vmem:[%s17218_s20 + $0xa38] sm:$0xff] }
 0x3a2   : > { %13672 = vst.msk [vmem:[%s17303_s24 + $0xac] sm:$0xf] %vm13628_vm3, %v13475_v20  ;;  %v12884_v24 = vmax.f32 %v12492_v17, %v12688_v21  ;;  %v16114_v21 = vld [vmem:[%s17218_s20 + $0x728] sm:$0xff] }
 0x3a4   : > { %v13084_v25 = vadd.f32 %v17545_v30, %v12884_v24 }
 0x3a6   : > { %v13280_v26 = vmax.f32 %v13084_v25, 0.0 }
 0x3a7   : > { %v11580_v27 = vpop.f32.mrf.mxu2  ;;  %v12070_v28 = vpop.f32.mrf.mxu3 }
 0x3a8   : > { %v13476_v31 = vpack.c.bf16 %v13280_v26, %v13280_v26  ;;  %v12689_v33 = vmax.f32 %v11580_v27, %v12070_v28  ;;  %v10603_v34 = vpop.f32.mrf.mxu0  ;;  %v11093_v35 = vpop.f32.mrf.mxu1 }
 0x3a9   : > { %v12494_v41 = vmax.f32 %v10603_v34, %v11093_v35 }
 0x3aa   : > { %13673 = vst.msk [vmem:[%s17303_s24 + $0xb0] sm:$0xf] %vm13628_vm3, %v13476_v31  ;;  %v12885_v38 = vmax.f32 %v12493_v32, %v12689_v33 }
 0x3ab   : > { %15521 = vmatmul.msk.bf16.gmra.mxu0 %vm9295_vm2, %v15916_v29  ;;  %15619 = vmatmul.msk.bf16.gmra.mxu1 %vm9295_vm2, %v16014_v61 }
 0x3ac   : > { %v13085_v39 = vadd.f32 %v17545_v30, %v12885_v38  ;;  %15717 = vmatmul.msk.bf16.gmra.mxu2 %vm9295_vm2, %v16112_v36  ;;  %15815 = vmatmul.msk.bf16.gmra.mxu3 %vm9295_vm2, %v16210_v37  ;;  %v15919_v38 = vld [vmem:[%s17218_s20 + $0x110] sm:$0xff] }
 0x3ae   : > { %v13281_v40 = vmax.f32 %v13085_v39, 0.0  ;;  %v16017_v39 = vld [vmem:[%s17218_s20 + $0x420] sm:$0xff] }
 0x3af   : > { %v11583_v42 = vpop.f32.mrf.mxu2  ;;  %v12073_v43 = vpop.f32.mrf.mxu3 }
 0x3b0   : > { %v13477_v44 = vpack.c.bf16 %v13281_v40, %v13281_v40  ;;  %v12690_v45 = vmax.f32 %v11583_v42, %v12073_v43  ;;  %v10605_v46 = vpop.f32.mrf.mxu0  ;;  %v11095_v47 = vpop.f32.mrf.mxu1 }
 0x3b1   : > { %v12495_v56 = vmax.f32 %v10605_v46, %v11095_v47  ;;  %v16213_v46 = vld [vmem:[%s17218_s20 + $0xa40] sm:$0xff] }
 0x3b2   : > { %13674 = vst.msk [vmem:[%s17303_s24 + $0xb4] sm:$0xf] %vm13628_vm3, %v13477_v44  ;;  %v12886_v48 = vmax.f32 %v12494_v41, %v12690_v45  ;;  %v16115_v45 = vld [vmem:[%s17218_s20 + $0x730] sm:$0xff] }
 0x3b4   : > { %v13086_v49 = vadd.f32 %v17545_v30, %v12886_v48 }
 0x3b6   : > { %v13282_v50 = vmax.f32 %v13086_v49, 0.0 }
 0x3b7   : > { %v11585_v51 = vpop.f32.mrf.mxu2  ;;  %v12075_v52 = vpop.f32.mrf.mxu3 }
 0x3b8   : > { %v13478_v55 = vpack.c.bf16 %v13282_v50, %v13282_v50  ;;  %v12691_v57 = vmax.f32 %v11585_v51, %v12075_v52  ;;  %v10608_v58 = vpop.f32.mrf.mxu0  ;;  %v11098_v59 = vpop.f32.mrf.mxu1 }
 0x3b9   : > { %v12496_v2 = vmax.f32 %v10608_v58, %v11098_v59 }
 0x3ba   : > { %13675 = vst.msk [vmem:[%s17303_s24 + $0xb8] sm:$0xf] %vm13628_vm3, %v13478_v55  ;;  %v12887_v63 = vmax.f32 %v12495_v56, %v12691_v57 }
 0x3bb   : > { %15522 = vmatmul.msk.bf16.gmra.mxu0 %vm9295_vm2, %v15917_v53  ;;  %15620 = vmatmul.msk.bf16.gmra.mxu1 %vm9295_vm2, %v16015_v54 }
 0x3bc   : > { %v13087_v0 = vadd.f32 %v17545_v30, %v12887_v63  ;;  %15718 = vmatmul.msk.bf16.gmra.mxu2 %vm9295_vm2, %v16113_v60  ;;  %15816 = vmatmul.msk.bf16.gmra.mxu3 %vm9295_vm2, %v16211_v62  ;;  %v15920_v63 = vld [vmem:[%s17218_s20 + $0x118] sm:$0xff] }
 0x3be   : > { %v13283_v1 = vmax.f32 %v13087_v0, 0.0  ;;  %v16018_v0 = vld [vmem:[%s17218_s20 + $0x428] sm:$0xff] }
 0x3bf   : > { %v11588_v3 = vpop.f32.mrf.mxu2  ;;  %v12078_v4 = vpop.f32.mrf.mxu3 }
 0x3c0   : > { %v13479_v5 = vpack.c.bf16 %v13283_v1, %v13283_v1  ;;  %v12692_v6 = vmax.f32 %v11588_v3, %v12078_v4  ;;  %v10610_v7 = vpop.f32.mrf.mxu0  ;;  %v11100_v8 = vpop.f32.mrf.mxu1 }
 0x3c1   : > { %v12497_v17 = vmax.f32 %v10610_v7, %v11100_v8  ;;  %v16214_v7 = vld [vmem:[%s17218_s20 + $0xa48] sm:$0xff] }
 0x3c2   : > { %13676 = vst.msk [vmem:[%s17303_s24 + $0xbc] sm:$0xf] %vm13628_vm3, %v13479_v5  ;;  %v12888_v9 = vmax.f32 %v12496_v2, %v12692_v6  ;;  %v16116_v6 = vld [vmem:[%s17218_s20 + $0x738] sm:$0xff] }
 0x3c4   : > { %v13088_v10 = vadd.f32 %v17545_v30, %v12888_v9 }
 0x3c6   : > { %v13284_v11 = vmax.f32 %v13088_v10, 0.0 }
 0x3c7   : > { %v11590_v12 = vpop.f32.mrf.mxu2  ;;  %v12080_v13 = vpop.f32.mrf.mxu3 }
 0x3c8   : > { %v13480_v16 = vpack.c.bf16 %v13284_v11, %v13284_v11  ;;  %v12693_v18 = vmax.f32 %v11590_v12, %v12080_v13  ;;  %v10613_v19 = vpop.f32.mrf.mxu0  ;;  %v11103_v20 = vpop.f32.mrf.mxu1 }
 0x3c9   : > { %v12498_v26 = vmax.f32 %v10613_v19, %v11103_v20 }
 0x3ca   : > { %13677 = vst.msk [vmem:[%s17303_s24 + $0xc0] sm:$0xf] %vm13628_vm3, %v13480_v16  ;;  %v12889_v23 = vmax.f32 %v12497_v17, %v12693_v18 }
 0x3cb   : > { %15523 = vmatmul.msk.bf16.gmra.mxu0 %vm9295_vm2, %v15918_v14  ;;  %15621 = vmatmul.msk.bf16.gmra.mxu1 %vm9295_vm2, %v16016_v15 }
 0x3cc   : > { %v13089_v24 = vadd.f32 %v17545_v30, %v12889_v23  ;;  %15719 = vmatmul.msk.bf16.gmra.mxu2 %vm9295_vm2, %v16114_v21  ;;  %15817 = vmatmul.msk.bf16.gmra.mxu3 %vm9295_vm2, %v16212_v22  ;;  %v15921_v23 = vld [vmem:[%s17218_s20 + $0x120] sm:$0xff] }
 0x3ce   : > { %v13285_v25 = vmax.f32 %v13089_v24, 0.0  ;;  %v16019_v24 = vld [vmem:[%s17218_s20 + $0x430] sm:$0xff] }
 0x3cf   : > { %v11593_v27 = vpop.f32.mrf.mxu2  ;;  %v12083_v28 = vpop.f32.mrf.mxu3 }
 0x3d0   : > { %v13481_v29 = vpack.c.bf16 %v13285_v25, %v13285_v25  ;;  %v12694_v61 = vmax.f32 %v11593_v27, %v12083_v28  ;;  %v10615_v31 = vpop.f32.mrf.mxu0  ;;  %v11105_v32 = vpop.f32.mrf.mxu1 }
 0x3d1   : > { %v12499_v41 = vmax.f32 %v10615_v31, %v11105_v32  ;;  %v16215_v31 = vld [vmem:[%s17218_s20 + $0xa50] sm:$0xff] }
 0x3d2   : > { %13678 = vst.msk [vmem:[%s17303_s24 + $0xc4] sm:$0xf] %vm13628_vm3, %v13481_v29  ;;  %v12890_v33 = vmax.f32 %v12498_v26, %v12694_v61  ;;  %v16117_v61 = vld [vmem:[%s17218_s20 + $0x740] sm:$0xff] }
 0x3d4   : > { %v13090_v34 = vadd.f32 %v17545_v30, %v12890_v33 }
 0x3d6   : > { %v13286_v35 = vmax.f32 %v13090_v34, 0.0 }
 0x3d7   : > { %v11595_v36 = vpop.f32.mrf.mxu2  ;;  %v12085_v37 = vpop.f32.mrf.mxu3 }
 0x3d8   : > { %v13482_v40 = vpack.c.bf16 %v13286_v35, %v13286_v35  ;;  %v12695_v42 = vmax.f32 %v11595_v36, %v12085_v37  ;;  %v10618_v43 = vpop.f32.mrf.mxu0  ;;  %v11108_v44 = vpop.f32.mrf.mxu1 }
 0x3d9   : > { %v12500_v50 = vmax.f32 %v10618_v43, %v11108_v44 }
 0x3da   : > { %13679 = vst.msk [vmem:[%s17303_s24 + $0xc8] sm:$0xf] %vm13628_vm3, %v13482_v40  ;;  %v12891_v47 = vmax.f32 %v12499_v41, %v12695_v42 }
 0x3db   : > { %15524 = vmatmul.msk.bf16.gmra.mxu0 %vm9295_vm2, %v15919_v38  ;;  %15622 = vmatmul.msk.bf16.gmra.mxu1 %vm9295_vm2, %v16017_v39 }
 0x3dc   : > { %v13091_v48 = vadd.f32 %v17545_v30, %v12891_v47  ;;  %15720 = vmatmul.msk.bf16.gmra.mxu2 %vm9295_vm2, %v16115_v45  ;;  %15818 = vmatmul.msk.bf16.gmra.mxu3 %vm9295_vm2, %v16213_v46  ;;  %v15922_v47 = vld [vmem:[%s17218_s20 + $0x128] sm:$0xff] }
 0x3de   : > { %v13287_v49 = vmax.f32 %v13091_v48, 0.0  ;;  %v16020_v48 = vld [vmem:[%s17218_s20 + $0x438] sm:$0xff] }
 0x3df   : > { %v11598_v51 = vpop.f32.mrf.mxu2  ;;  %v12088_v52 = vpop.f32.mrf.mxu3 }
 0x3e0   : > { %v13483_v53 = vpack.c.bf16 %v13287_v49, %v13287_v49  ;;  %v12696_v54 = vmax.f32 %v11598_v51, %v12088_v52  ;;  %v10620_v55 = vpop.f32.mrf.mxu0  ;;  %v11110_v56 = vpop.f32.mrf.mxu1 }
 0x3e1   : > { %v12501_v2 = vmax.f32 %v10620_v55, %v11110_v56  ;;  %v16216_v55 = vld [vmem:[%s17218_s20 + $0xa58] sm:$0xff] }
 0x3e2   : > { %13680 = vst.msk [vmem:[%s17303_s24 + $0xcc] sm:$0xf] %vm13628_vm3, %v13483_v53  ;;  %v12892_v57 = vmax.f32 %v12500_v50, %v12696_v54  ;;  %v16118_v54 = vld [vmem:[%s17218_s20 + $0x748] sm:$0xff] }
 0x3e4   : > { %v13092_v58 = vadd.f32 %v17545_v30, %v12892_v57 }
 0x3e6   : > { %v13288_v59 = vmax.f32 %v13092_v58, 0.0 }
 0x3e7   : > { %v11600_v60 = vpop.f32.mrf.mxu2  ;;  %v12090_v62 = vpop.f32.mrf.mxu3 }
 0x3e8   : > { %v13484_v1 = vpack.c.bf16 %v13288_v59, %v13288_v59  ;;  %v12697_v3 = vmax.f32 %v11600_v60, %v12090_v62  ;;  %v10623_v4 = vpop.f32.mrf.mxu0  ;;  %v11113_v5 = vpop.f32.mrf.mxu1 }
 0x3e9   : > { %v12502_v11 = vmax.f32 %v10623_v4, %v11113_v5 }
 0x3ea   : > { %13681 = vst.msk [vmem:[%s17303_s24 + $0xd0] sm:$0xf] %vm13628_vm3, %v13484_v1  ;;  %v12893_v8 = vmax.f32 %v12501_v2, %v12697_v3 }
 0x3eb   : > { %15525 = vmatmul.msk.bf16.gmra.mxu0 %vm9295_vm2, %v15920_v63  ;;  %15623 = vmatmul.msk.bf16.gmra.mxu1 %vm9295_vm2, %v16018_v0 }
 0x3ec   : > { %v13093_v9 = vadd.f32 %v17545_v30, %v12893_v8  ;;  %15721 = vmatmul.msk.bf16.gmra.mxu2 %vm9295_vm2, %v16116_v6  ;;  %15819 = vmatmul.msk.bf16.gmra.mxu3 %vm9295_vm2, %v16214_v7  ;;  %v15923_v8 = vld [vmem:[%s17218_s20 + $0x130] sm:$0xff] }
 0x3ee   : > { %v13289_v10 = vmax.f32 %v13093_v9, 0.0  ;;  %v16021_v9 = vld [vmem:[%s17218_s20 + $0x440] sm:$0xff] }
 0x3ef   : > { %v11603_v12 = vpop.f32.mrf.mxu2  ;;  %v12093_v13 = vpop.f32.mrf.mxu3 }
 0x3f0   : > { %v13485_v14 = vpack.c.bf16 %v13289_v10, %v13289_v10  ;;  %v12698_v15 = vmax.f32 %v11603_v12, %v12093_v13  ;;  %v10625_v16 = vpop.f32.mrf.mxu0  ;;  %v11115_v17 = vpop.f32.mrf.mxu1 }
 0x3f1   : > { %v12503_v26 = vmax.f32 %v10625_v16, %v11115_v17  ;;  %v16217_v16 = vld [vmem:[%s17218_s20 + $0xa60] sm:$0xff] }
 0x3f2   : > { %13682 = vst.msk [vmem:[%s17303_s24 + $0xd4] sm:$0xf] %vm13628_vm3, %v13485_v14  ;;  %v12894_v18 = vmax.f32 %v12502_v11, %v12698_v15  ;;  %v16119_v15 = vld [vmem:[%s17218_s20 + $0x750] sm:$0xff] }
 0x3f4   : > { %v13094_v19 = vadd.f32 %v17545_v30, %v12894_v18 }
 0x3f6   : > { %v13290_v20 = vmax.f32 %v13094_v19, 0.0 }
 0x3f7   : > { %v11605_v21 = vpop.f32.mrf.mxu2  ;;  %v12095_v22 = vpop.f32.mrf.mxu3 }
 0x3f8   : > { %v13486_v25 = vpack.c.bf16 %v13290_v20, %v13290_v20  ;;  %v12699_v27 = vmax.f32 %v11605_v21, %v12095_v22  ;;  %v10628_v28 = vpop.f32.mrf.mxu0  ;;  %v11118_v29 = vpop.f32.mrf.mxu1 }
 0x3f9   : > { %v12504_v35 = vmax.f32 %v10628_v28, %v11118_v29 }
 0x3fa   : > { %13683 = vst.msk [vmem:[%s17303_s24 + $0xd8] sm:$0xf] %vm13628_vm3, %v13486_v25  ;;  %v12895_v32 = vmax.f32 %v12503_v26, %v12699_v27 }
 0x3fb   : > { %15526 = vmatmul.msk.bf16.gmra.mxu0 %vm9295_vm2, %v15921_v23  ;;  %15624 = vmatmul.msk.bf16.gmra.mxu1 %vm9295_vm2, %v16019_v24 }
 0x3fc   : > { %v13095_v33 = vadd.f32 %v17545_v30, %v12895_v32  ;;  %15722 = vmatmul.msk.bf16.gmra.mxu2 %vm9295_vm2, %v16117_v61  ;;  %15820 = vmatmul.msk.bf16.gmra.mxu3 %vm9295_vm2, %v16215_v31  ;;  %v15924_v32 = vld [vmem:[%s17218_s20 + $0x138] sm:$0xff] }
 0x3fe   : > { %v13291_v34 = vmax.f32 %v13095_v33, 0.0  ;;  %v16022_v33 = vld [vmem:[%s17218_s20 + $0x448] sm:$0xff] }
 0x3ff   : > { %v11608_v36 = vpop.f32.mrf.mxu2  ;;  %v12098_v37 = vpop.f32.mrf.mxu3 }
 0x400   : > { %v13487_v38 = vpack.c.bf16 %v13291_v34, %v13291_v34  ;;  %v12700_v39 = vmax.f32 %v11608_v36, %v12098_v37  ;;  %v10630_v40 = vpop.f32.mrf.mxu0  ;;  %v11120_v41 = vpop.f32.mrf.mxu1 }
 0x401   : > { %v12505_v50 = vmax.f32 %v10630_v40, %v11120_v41  ;;  %v16218_v40 = vld [vmem:[%s17218_s20 + $0xa68] sm:$0xff] }
 0x402   : > { %13684 = vst.msk [vmem:[%s17303_s24 + $0xdc] sm:$0xf] %vm13628_vm3, %v13487_v38  ;;  %v12896_v42 = vmax.f32 %v12504_v35, %v12700_v39  ;;  %v16120_v39 = vld [vmem:[%s17218_s20 + $0x758] sm:$0xff] }
 0x404   : > { %v13096_v43 = vadd.f32 %v17545_v30, %v12896_v42 }
 0x406   : > { %v13292_v44 = vmax.f32 %v13096_v43, 0.0 }
 0x407   : > { %v11610_v45 = vpop.f32.mrf.mxu2  ;;  %v12100_v46 = vpop.f32.mrf.mxu3 }
 0x408   : > { %v13488_v49 = vpack.c.bf16 %v13292_v44, %v13292_v44  ;;  %v12701_v51 = vmax.f32 %v11610_v45, %v12100_v46  ;;  %v10633_v52 = vpop.f32.mrf.mxu0  ;;  %v11123_v53 = vpop.f32.mrf.mxu1 }
 0x409   : > { %v12506_v59 = vmax.f32 %v10633_v52, %v11123_v53 }
 0x40a   : > { %13685 = vst.msk [vmem:[%s17303_s24 + $0xe0] sm:$0xf] %vm13628_vm3, %v13488_v49  ;;  %v12897_v56 = vmax.f32 %v12505_v50, %v12701_v51 }
 0x40b   : > { %15527 = vmatmul.msk.bf16.gmra.mxu0 %vm9295_vm2, %v15922_v47  ;;  %15625 = vmatmul.msk.bf16.gmra.mxu1 %vm9295_vm2, %v16020_v48 }
 0x40c   : > { %v13097_v57 = vadd.f32 %v17545_v30, %v12897_v56  ;;  %15723 = vmatmul.msk.bf16.gmra.mxu2 %vm9295_vm2, %v16118_v54  ;;  %15821 = vmatmul.msk.bf16.gmra.mxu3 %vm9295_vm2, %v16216_v55  ;;  %v15925_v56 = vld [vmem:[%s17218_s20 + $0x140] sm:$0xff] }
 0x40e   : > { %v13293_v58 = vmax.f32 %v13097_v57, 0.0  ;;  %v16023_v57 = vld [vmem:[%s17218_s20 + $0x450] sm:$0xff] }
 0x40f   : > { %v11613_v60 = vpop.f32.mrf.mxu2  ;;  %v12103_v62 = vpop.f32.mrf.mxu3 }
 0x410   : > { %v13489_v63 = vpack.c.bf16 %v13293_v58, %v13293_v58  ;;  %v12702_v0 = vmax.f32 %v11613_v60, %v12103_v62  ;;  %v10635_v1 = vpop.f32.mrf.mxu0  ;;  %v11125_v2 = vpop.f32.mrf.mxu1 }
 0x411   : > { %v12507_v11 = vmax.f32 %v10635_v1, %v11125_v2  ;;  %v16219_v1 = vld [vmem:[%s17218_s20 + $0xa70] sm:$0xff] }
 0x412   : > { %13686 = vst.msk [vmem:[%s17303_s24 + $0xe4] sm:$0xf] %vm13628_vm3, %v13489_v63  ;;  %v12898_v3 = vmax.f32 %v12506_v59, %v12702_v0  ;;  %v16121_v0 = vld [vmem:[%s17218_s20 + $0x760] sm:$0xff] }
 0x414   : > { %v13098_v4 = vadd.f32 %v17545_v30, %v12898_v3 }
 0x416   : > { %v13294_v5 = vmax.f32 %v13098_v4, 0.0 }
 0x417   : > { %v11615_v6 = vpop.f32.mrf.mxu2  ;;  %v12105_v7 = vpop.f32.mrf.mxu3 }
 0x418   : > { %v13490_v10 = vpack.c.bf16 %v13294_v5, %v13294_v5  ;;  %v12703_v12 = vmax.f32 %v11615_v6, %v12105_v7  ;;  %v10638_v13 = vpop.f32.mrf.mxu0  ;;  %v11128_v14 = vpop.f32.mrf.mxu1 }
 0x419   : > { %v12508_v20 = vmax.f32 %v10638_v13, %v11128_v14 }
 0x41a   : > { %13687 = vst.msk [vmem:[%s17303_s24 + $0xe8] sm:$0xf] %vm13628_vm3, %v13490_v10  ;;  %v12899_v17 = vmax.f32 %v12507_v11, %v12703_v12 }
 0x41b   : > { %15528 = vmatmul.msk.bf16.gmra.mxu0 %vm9295_vm2, %v15923_v8  ;;  %15626 = vmatmul.msk.bf16.gmra.mxu1 %vm9295_vm2, %v16021_v9 }
 0x41c   : > { %v13099_v18 = vadd.f32 %v17545_v30, %v12899_v17  ;;  %15724 = vmatmul.msk.bf16.gmra.mxu2 %vm9295_vm2, %v16119_v15  ;;  %15822 = vmatmul.msk.bf16.gmra.mxu3 %vm9295_vm2, %v16217_v16  ;;  %v15926_v17 = vld [vmem:[%s17218_s20 + $0x148] sm:$0xff] }
 0x41e   : > { %v13295_v19 = vmax.f32 %v13099_v18, 0.0  ;;  %v16024_v18 = vld [vmem:[%s17218_s20 + $0x458] sm:$0xff] }
 0x41f   : > { %v11618_v21 = vpop.f32.mrf.mxu2  ;;  %v12108_v22 = vpop.f32.mrf.mxu3 }
 0x420   : > { %v13491_v23 = vpack.c.bf16 %v13295_v19, %v13295_v19  ;;  %v12704_v24 = vmax.f32 %v11618_v21, %v12108_v22  ;;  %v10640_v25 = vpop.f32.mrf.mxu0  ;;  %v11130_v26 = vpop.f32.mrf.mxu1 }
 0x421   : > { %v12509_v35 = vmax.f32 %v10640_v25, %v11130_v26  ;;  %v16220_v25 = vld [vmem:[%s17218_s20 + $0xa78] sm:$0xff] }
 0x422   : > { %13688 = vst.msk [vmem:[%s17303_s24 + $0xec] sm:$0xf] %vm13628_vm3, %v13491_v23  ;;  %v12900_v27 = vmax.f32 %v12508_v20, %v12704_v24  ;;  %v16122_v24 = vld [vmem:[%s17218_s20 + $0x768] sm:$0xff] }
 0x424   : > { %v13100_v28 = vadd.f32 %v17545_v30, %v12900_v27 }
 0x426   : > { %v13296_v29 = vmax.f32 %v13100_v28, 0.0 }
 0x427   : > { %v11620_v61 = vpop.f32.mrf.mxu2  ;;  %v12110_v31 = vpop.f32.mrf.mxu3 }
 0x428   : > { %v13492_v34 = vpack.c.bf16 %v13296_v29, %v13296_v29  ;;  %v12705_v36 = vmax.f32 %v11620_v61, %v12110_v31  ;;  %v10643_v37 = vpop.f32.mrf.mxu0  ;;  %v11133_v38 = vpop.f32.mrf.mxu1 }
 0x429   : > { %v12510_v44 = vmax.f32 %v10643_v37, %v11133_v38 }
 0x42a   : > { %13689 = vst.msk [vmem:[%s17303_s24 + $0xf0] sm:$0xf] %vm13628_vm3, %v13492_v34  ;;  %v12901_v41 = vmax.f32 %v12509_v35, %v12705_v36 }
 0x42b   : > { %15529 = vmatmul.msk.bf16.gmra.mxu0 %vm9295_vm2, %v15924_v32  ;;  %15627 = vmatmul.msk.bf16.gmra.mxu1 %vm9295_vm2, %v16022_v33 }
 0x42c   : > { %v13101_v42 = vadd.f32 %v17545_v30, %v12901_v41  ;;  %15725 = vmatmul.msk.bf16.gmra.mxu2 %vm9295_vm2, %v16120_v39  ;;  %15823 = vmatmul.msk.bf16.gmra.mxu3 %vm9295_vm2, %v16218_v40  ;;  %v15927_v41 = vld [vmem:[%s17218_s20 + $0x150] sm:$0xff] }
 0x42e   : > { %v13297_v43 = vmax.f32 %v13101_v42, 0.0  ;;  %v16025_v42 = vld [vmem:[%s17218_s20 + $0x460] sm:$0xff] }
 0x42f   : > { %v11623_v45 = vpop.f32.mrf.mxu2  ;;  %v12113_v46 = vpop.f32.mrf.mxu3 }
 0x430   : > { %v13493_v47 = vpack.c.bf16 %v13297_v43, %v13297_v43  ;;  %v12706_v48 = vmax.f32 %v11623_v45, %v12113_v46  ;;  %v10645_v49 = vpop.f32.mrf.mxu0  ;;  %v11135_v50 = vpop.f32.mrf.mxu1 }
 0x431   : > { %v12511_v59 = vmax.f32 %v10645_v49, %v11135_v50  ;;  %v16221_v49 = vld [vmem:[%s17218_s20 + $0xa80] sm:$0xff] }
 0x432   : > { %13690 = vst.msk [vmem:[%s17303_s24 + $0xf4] sm:$0xf] %vm13628_vm3, %v13493_v47  ;;  %v12902_v51 = vmax.f32 %v12510_v44, %v12706_v48  ;;  %v16123_v48 = vld [vmem:[%s17218_s20 + $0x770] sm:$0xff] }
 0x434   : > { %v13102_v52 = vadd.f32 %v17545_v30, %v12902_v51 }
 0x436   : > { %v13298_v53 = vmax.f32 %v13102_v52, 0.0 }
 0x437   : > { %v11625_v54 = vpop.f32.mrf.mxu2  ;;  %v12115_v55 = vpop.f32.mrf.mxu3 }
 0x438   : > { %v13494_v58 = vpack.c.bf16 %v13298_v53, %v13298_v53  ;;  %v12707_v60 = vmax.f32 %v11625_v54, %v12115_v55  ;;  %v10648_v62 = vpop.f32.mrf.mxu0  ;;  %v11138_v63 = vpop.f32.mrf.mxu1 }
 0x439   : > { %v12512_v5 = vmax.f32 %v10648_v62, %v11138_v63 }
 0x43a   : > { %13691 = vst.msk [vmem:[%s17303_s24 + $0xf8] sm:$0xf] %vm13628_vm3, %v13494_v58  ;;  %v12903_v2 = vmax.f32 %v12511_v59, %v12707_v60 }
 0x43b   : > { %15530 = vmatmul.msk.bf16.gmra.mxu0 %vm9295_vm2, %v15925_v56  ;;  %15628 = vmatmul.msk.bf16.gmra.mxu1 %vm9295_vm2, %v16023_v57 }
 0x43c   : > { %v13103_v3 = vadd.f32 %v17545_v30, %v12903_v2  ;;  %15726 = vmatmul.msk.bf16.gmra.mxu2 %vm9295_vm2, %v16121_v0  ;;  %15824 = vmatmul.msk.bf16.gmra.mxu3 %vm9295_vm2, %v16219_v1  ;;  %v15928_v2 = vld [vmem:[%s17218_s20 + $0x158] sm:$0xff] }
 0x43e   : > { %v13299_v4 = vmax.f32 %v13103_v3, 0.0  ;;  %v16026_v3 = vld [vmem:[%s17218_s20 + $0x468] sm:$0xff] }
 0x43f   : > { %v11628_v6 = vpop.f32.mrf.mxu2  ;;  %v12118_v7 = vpop.f32.mrf.mxu3 }
 0x440   : > { %v13495_v8 = vpack.c.bf16 %v13299_v4, %v13299_v4  ;;  %v12708_v9 = vmax.f32 %v11628_v6, %v12118_v7  ;;  %v10650_v10 = vpop.f32.mrf.mxu0  ;;  %v11140_v11 = vpop.f32.mrf.mxu1 }
 0x441   : > { %v12513_v20 = vmax.f32 %v10650_v10, %v11140_v11  ;;  %v16222_v10 = vld [vmem:[%s17218_s20 + $0xa88] sm:$0xff] }
 0x442   : > { %13692 = vst.msk [vmem:[%s17303_s24 + $0xfc] sm:$0xf] %vm13628_vm3, %v13495_v8  ;;  %v12904_v12 = vmax.f32 %v12512_v5, %v12708_v9  ;;  %v16124_v9 = vld [vmem:[%s17218_s20 + $0x778] sm:$0xff] }
 0x444   : > { %v13104_v13 = vadd.f32 %v17545_v30, %v12904_v12 }
 0x446   : > { %v13300_v14 = vmax.f32 %v13104_v13, 0.0 }
 0x447   : > { %v11630_v15 = vpop.f32.mrf.mxu2  ;;  %v12120_v16 = vpop.f32.mrf.mxu3 }
 0x448   : > { %v13496_v19 = vpack.c.bf16 %v13300_v14, %v13300_v14  ;;  %v12709_v21 = vmax.f32 %v11630_v15, %v12120_v16  ;;  %v10653_v22 = vpop.f32.mrf.mxu0  ;;  %v11143_v23 = vpop.f32.mrf.mxu1 }
 0x449   : > { %v12514_v29 = vmax.f32 %v10653_v22, %v11143_v23 }
 0x44a   : > { %13693 = vst.msk [vmem:[%s17303_s24 + $0x100] sm:$0xf] %vm13628_vm3, %v13496_v19  ;;  %v12905_v26 = vmax.f32 %v12513_v20, %v12709_v21 }
 0x44b   : > { %15531 = vmatmul.msk.bf16.gmra.mxu0 %vm9295_vm2, %v15926_v17  ;;  %15629 = vmatmul.msk.bf16.gmra.mxu1 %vm9295_vm2, %v16024_v18 }
 0x44c   : > { %v13105_v27 = vadd.f32 %v17545_v30, %v12905_v26  ;;  %15727 = vmatmul.msk.bf16.gmra.mxu2 %vm9295_vm2, %v16122_v24  ;;  %15825 = vmatmul.msk.bf16.gmra.mxu3 %vm9295_vm2, %v16220_v25  ;;  %v15929_v26 = vld [vmem:[%s17218_s20 + $0x160] sm:$0xff] }
 0x44e   : > { %v13301_v28 = vmax.f32 %v13105_v27, 0.0  ;;  %v16027_v27 = vld [vmem:[%s17218_s20 + $0x470] sm:$0xff] }
 0x44f   : > { %v11633_v61 = vpop.f32.mrf.mxu2  ;;  %v12123_v31 = vpop.f32.mrf.mxu3 }
 0x450   : > { %v13497_v32 = vpack.c.bf16 %v13301_v28, %v13301_v28  ;;  %v12710_v33 = vmax.f32 %v11633_v61, %v12123_v31  ;;  %v10655_v34 = vpop.f32.mrf.mxu0  ;;  %v11145_v35 = vpop.f32.mrf.mxu1 }
 0x451   : > { %v12515_v44 = vmax.f32 %v10655_v34, %v11145_v35  ;;  %v16223_v34 = vld [vmem:[%s17218_s20 + $0xa90] sm:$0xff] }
 0x452   : > { %13694 = vst.msk [vmem:[%s17303_s24 + $0x104] sm:$0xf] %vm13628_vm3, %v13497_v32  ;;  %v12906_v36 = vmax.f32 %v12514_v29, %v12710_v33  ;;  %v16125_v33 = vld [vmem:[%s17218_s20 + $0x780] sm:$0xff] }
 0x454   : > { %v13106_v37 = vadd.f32 %v17545_v30, %v12906_v36 }
 0x456   : > { %v13302_v38 = vmax.f32 %v13106_v37, 0.0 }
 0x457   : > { %v11635_v39 = vpop.f32.mrf.mxu2  ;;  %v12125_v40 = vpop.f32.mrf.mxu3 }
 0x458   : > { %v13498_v43 = vpack.c.bf16 %v13302_v38, %v13302_v38  ;;  %v12711_v45 = vmax.f32 %v11635_v39, %v12125_v40  ;;  %v10658_v46 = vpop.f32.mrf.mxu0  ;;  %v11148_v47 = vpop.f32.mrf.mxu1 }
 0x459   : > { %v12516_v53 = vmax.f32 %v10658_v46, %v11148_v47 }
 0x45a   : > { %13695 = vst.msk [vmem:[%s17303_s24 + $0x108] sm:$0xf] %vm13628_vm3, %v13498_v43  ;;  %v12907_v50 = vmax.f32 %v12515_v44, %v12711_v45 }
 0x45b   : > { %15532 = vmatmul.msk.bf16.gmra.mxu0 %vm9295_vm2, %v15927_v41  ;;  %15630 = vmatmul.msk.bf16.gmra.mxu1 %vm9295_vm2, %v16025_v42 }
 0x45c   : > { %v13107_v51 = vadd.f32 %v17545_v30, %v12907_v50  ;;  %15728 = vmatmul.msk.bf16.gmra.mxu2 %vm9295_vm2, %v16123_v48  ;;  %15826 = vmatmul.msk.bf16.gmra.mxu3 %vm9295_vm2, %v16221_v49  ;;  %v15930_v50 = vld [vmem:[%s17218_s20 + $0x168] sm:$0xff] }
 0x45e   : > { %v13303_v52 = vmax.f32 %v13107_v51, 0.0  ;;  %v16028_v51 = vld [vmem:[%s17218_s20 + $0x478] sm:$0xff] }
 0x45f   : > { %v11638_v54 = vpop.f32.mrf.mxu2  ;;  %v12128_v55 = vpop.f32.mrf.mxu3 }
 0x460   : > { %v13499_v56 = vpack.c.bf16 %v13303_v52, %v13303_v52  ;;  %v12712_v57 = vmax.f32 %v11638_v54, %v12128_v55  ;;  %v10660_v58 = vpop.f32.mrf.mxu0  ;;  %v11150_v59 = vpop.f32.mrf.mxu1 }
 0x461   : > { %v12517_v5 = vmax.f32 %v10660_v58, %v11150_v59  ;;  %v16224_v58 = vld [vmem:[%s17218_s20 + $0xa98] sm:$0xff] }
 0x462   : > { %13696 = vst.msk [vmem:[%s17303_s24 + $0x10c] sm:$0xf] %vm13628_vm3, %v13499_v56  ;;  %v12908_v60 = vmax.f32 %v12516_v53, %v12712_v57  ;;  %v16126_v57 = vld [vmem:[%s17218_s20 + $0x788] sm:$0xff] }
 0x464   : > { %v13108_v62 = vadd.f32 %v17545_v30, %v12908_v60  ;;  %v17797_v30 = vld [vmem:[%s18641_s2] ss:$0 sm:$0xff] }
 0x466   : > { %v13304_v63 = vmax.f32 %v13108_v62, 0.0 }
 0x467   : > { %v11640_v0 = vpop.f32.mrf.mxu2  ;;  %v12130_v1 = vpop.f32.mrf.mxu3 }
 0x468   : > { %v13500_v4 = vpack.c.bf16 %v13304_v63, %v13304_v63  ;;  %v12713_v6 = vmax.f32 %v11640_v0, %v12130_v1  ;;  %v10663_v7 = vpop.f32.mrf.mxu0  ;;  %v11153_v8 = vpop.f32.mrf.mxu1 }
 0x469   : > { %v12518_v14 = vmax.f32 %v10663_v7, %v11153_v8 }
 0x46a   : > { %13697 = vst.msk [vmem:[%s17303_s24 + $0x110] sm:$0xf] %vm13628_vm3, %v13500_v4  ;;  %v12909_v11 = vmax.f32 %v12517_v5, %v12713_v6 }
 0x46b   : > { %15533 = vmatmul.msk.bf16.gmra.mxu0 %vm9295_vm2, %v15928_v2  ;;  %15631 = vmatmul.msk.bf16.gmra.mxu1 %vm9295_vm2, %v16026_v3 }
 0x46c   : > { %v13109_v12 = vadd.f32 %v17797_v30, %v12909_v11  ;;  %15729 = vmatmul.msk.bf16.gmra.mxu2 %vm9295_vm2, %v16124_v9  ;;  %15827 = vmatmul.msk.bf16.gmra.mxu3 %vm9295_vm2, %v16222_v10  ;;  %v15931_v11 = vld [vmem:[%s17218_s20 + $0x170] sm:$0xff] }
 0x46e   : > { %v13305_v13 = vmax.f32 %v13109_v12, 0.0  ;;  %v16029_v12 = vld [vmem:[%s17218_s20 + $0x480] sm:$0xff] }
 0x46f   : > { %v11643_v15 = vpop.f32.mrf.mxu2  ;;  %v12133_v16 = vpop.f32.mrf.mxu3 }
 0x470   : > { %v13501_v17 = vpack.c.bf16 %v13305_v13, %v13305_v13  ;;  %v12714_v18 = vmax.f32 %v11643_v15, %v12133_v16  ;;  %v10665_v19 = vpop.f32.mrf.mxu0  ;;  %v11155_v20 = vpop.f32.mrf.mxu1 }
 0x471   : > { %v12519_v29 = vmax.f32 %v10665_v19, %v11155_v20  ;;  %v16225_v19 = vld [vmem:[%s17218_s20 + $0xaa0] sm:$0xff] }
 0x472   : > { %13698 = vst.msk [vmem:[%s17303_s24 + $0x114] sm:$0xf] %vm13628_vm3, %v13501_v17  ;;  %v12910_v21 = vmax.f32 %v12518_v14, %v12714_v18  ;;  %v16127_v18 = vld [vmem:[%s17218_s20 + $0x790] sm:$0xff] }
 0x474   : > { %v13110_v22 = vadd.f32 %v17797_v30, %v12910_v21 }
 0x476   : > { %v13306_v23 = vmax.f32 %v13110_v22, 0.0 }
 0x477   : > { %v11645_v24 = vpop.f32.mrf.mxu2  ;;  %v12135_v25 = vpop.f32.mrf.mxu3 }
 0x478   : > { %v13502_v28 = vpack.c.bf16 %v13306_v23, %v13306_v23  ;;  %v12715_v61 = vmax.f32 %v11645_v24, %v12135_v25  ;;  %v10668_v31 = vpop.f32.mrf.mxu0  ;;  %v11158_v32 = vpop.f32.mrf.mxu1 }
 0x479   : > { %v12520_v38 = vmax.f32 %v10668_v31, %v11158_v32 }
 0x47a   : > { %13699 = vst.msk [vmem:[%s17303_s24 + $0x118] sm:$0xf] %vm13628_vm3, %v13502_v28  ;;  %v12911_v35 = vmax.f32 %v12519_v29, %v12715_v61 }
 0x47b   : > { %15534 = vmatmul.msk.bf16.gmra.mxu0 %vm9295_vm2, %v15929_v26  ;;  %15632 = vmatmul.msk.bf16.gmra.mxu1 %vm9295_vm2, %v16027_v27 }
 0x47c   : > { %v13111_v36 = vadd.f32 %v17797_v30, %v12911_v35  ;;  %15730 = vmatmul.msk.bf16.gmra.mxu2 %vm9295_vm2, %v16125_v33  ;;  %15828 = vmatmul.msk.bf16.gmra.mxu3 %vm9295_vm2, %v16223_v34  ;;  %v15932_v35 = vld [vmem:[%s17218_s20 + $0x178] sm:$0xff] }
 0x47e   : > { %v13307_v37 = vmax.f32 %v13111_v36, 0.0  ;;  %v16030_v36 = vld [vmem:[%s17218_s20 + $0x488] sm:$0xff] }
 0x47f   : > { %v11648_v39 = vpop.f32.mrf.mxu2  ;;  %v12138_v40 = vpop.f32.mrf.mxu3 }
 0x480   : > { %v13503_v41 = vpack.c.bf16 %v13307_v37, %v13307_v37  ;;  %v12716_v42 = vmax.f32 %v11648_v39, %v12138_v40  ;;  %v10670_v43 = vpop.f32.mrf.mxu0  ;;  %v11160_v44 = vpop.f32.mrf.mxu1 }
 0x481   : > { %v12521_v53 = vmax.f32 %v10670_v43, %v11160_v44  ;;  %v16226_v43 = vld [vmem:[%s17218_s20 + $0xaa8] sm:$0xff] }
 0x482   : > { %13700 = vst.msk [vmem:[%s17303_s24 + $0x11c] sm:$0xf] %vm13628_vm3, %v13503_v41  ;;  %v12912_v45 = vmax.f32 %v12520_v38, %v12716_v42  ;;  %v16128_v42 = vld [vmem:[%s17218_s20 + $0x798] sm:$0xff] }
 0x484   : > { %v13112_v46 = vadd.f32 %v17797_v30, %v12912_v45 }
 0x486   : > { %v13308_v47 = vmax.f32 %v13112_v46, 0.0 }
 0x487   : > { %v11650_v48 = vpop.f32.mrf.mxu2  ;;  %v12140_v49 = vpop.f32.mrf.mxu3 }
 0x488   : > { %v13504_v52 = vpack.c.bf16 %v13308_v47, %v13308_v47  ;;  %v12717_v54 = vmax.f32 %v11650_v48, %v12140_v49  ;;  %v10673_v55 = vpop.f32.mrf.mxu0  ;;  %v11163_v56 = vpop.f32.mrf.mxu1 }
 0x489   : > { %v12522_v63 = vmax.f32 %v10673_v55, %v11163_v56 }
 0x48a   : > { %13701 = vst.msk [vmem:[%s17303_s24 + $0x120] sm:$0xf] %vm13628_vm3, %v13504_v52  ;;  %v12913_v59 = vmax.f32 %v12521_v53, %v12717_v54 }
 0x48b   : > { %15535 = vmatmul.msk.bf16.gmra.mxu0 %vm9295_vm2, %v15930_v50  ;;  %15633 = vmatmul.msk.bf16.gmra.mxu1 %vm9295_vm2, %v16028_v51 }
 0x48c   : > { %v13113_v60 = vadd.f32 %v17797_v30, %v12913_v59  ;;  %15731 = vmatmul.msk.bf16.gmra.mxu2 %vm9295_vm2, %v16126_v57  ;;  %15829 = vmatmul.msk.bf16.gmra.mxu3 %vm9295_vm2, %v16224_v58  ;;  %v15933_v59 = vld [vmem:[%s17218_s20 + $0x180] sm:$0xff] }
 0x48e   : > { %v13309_v62 = vmax.f32 %v13113_v60, 0.0  ;;  %v16031_v60 = vld [vmem:[%s17218_s20 + $0x490] sm:$0xff] }
 0x48f   : > { %v11653_v0 = vpop.f32.mrf.mxu2  ;;  %v12143_v1 = vpop.f32.mrf.mxu3 }
 0x490   : > { %v13505_v2 = vpack.c.bf16 %v13309_v62, %v13309_v62  ;;  %v12718_v3 = vmax.f32 %v11653_v0, %v12143_v1  ;;  %v10675_v4 = vpop.f32.mrf.mxu0  ;;  %v11165_v5 = vpop.f32.mrf.mxu1 }
 0x491   : > { %v12523_v14 = vmax.f32 %v10675_v4, %v11165_v5  ;;  %v16227_v4 = vld [vmem:[%s17218_s20 + $0xab0] sm:$0xff] }
 0x492   : > { %13702 = vst.msk [vmem:[%s17303_s24 + $0x124] sm:$0xf] %vm13628_vm3, %v13505_v2  ;;  %v12914_v6 = vmax.f32 %v12522_v63, %v12718_v3  ;;  %v16129_v3 = vld [vmem:[%s17218_s20 + $0x7a0] sm:$0xff] }
 0x494   : > { %v13114_v7 = vadd.f32 %v17797_v30, %v12914_v6 }
 0x496   : > { %v13310_v8 = vmax.f32 %v13114_v7, 0.0 }
 0x497   : > { %v11655_v9 = vpop.f32.mrf.mxu2  ;;  %v12145_v10 = vpop.f32.mrf.mxu3 }
 0x498   : > { %v13506_v13 = vpack.c.bf16 %v13310_v8, %v13310_v8  ;;  %v12719_v15 = vmax.f32 %v11655_v9, %v12145_v10  ;;  %v10678_v16 = vpop.f32.mrf.mxu0  ;;  %v11168_v17 = vpop.f32.mrf.mxu1 }
 0x499   : > { %v12524_v23 = vmax.f32 %v10678_v16, %v11168_v17 }
 0x49a   : > { %13703 = vst.msk [vmem:[%s17303_s24 + $0x128] sm:$0xf] %vm13628_vm3, %v13506_v13  ;;  %v12915_v20 = vmax.f32 %v12523_v14, %v12719_v15 }
 0x49b   : > { %15536 = vmatmul.msk.bf16.gmra.mxu0 %vm9295_vm2, %v15931_v11  ;;  %15634 = vmatmul.msk.bf16.gmra.mxu1 %vm9295_vm2, %v16029_v12 }
 0x49c   : > { %v13115_v21 = vadd.f32 %v17797_v30, %v12915_v20  ;;  %15732 = vmatmul.msk.bf16.gmra.mxu2 %vm9295_vm2, %v16127_v18  ;;  %15830 = vmatmul.msk.bf16.gmra.mxu3 %vm9295_vm2, %v16225_v19  ;;  %v15934_v20 = vld [vmem:[%s17218_s20 + $0x188] sm:$0xff] }
 0x49e   : > { %v13311_v22 = vmax.f32 %v13115_v21, 0.0  ;;  %v16032_v21 = vld [vmem:[%s17218_s20 + $0x498] sm:$0xff] }
 0x49f   : > { %v11658_v24 = vpop.f32.mrf.mxu2  ;;  %v12148_v25 = vpop.f32.mrf.mxu3 }
 0x4a0   : > { %v13507_v26 = vpack.c.bf16 %v13311_v22, %v13311_v22  ;;  %v12720_v27 = vmax.f32 %v11658_v24, %v12148_v25  ;;  %v10680_v28 = vpop.f32.mrf.mxu0  ;;  %v11170_v29 = vpop.f32.mrf.mxu1 }
 0x4a1   : > { %v12525_v38 = vmax.f32 %v10680_v28, %v11170_v29  ;;  %v16228_v28 = vld [vmem:[%s17218_s20 + $0xab8] sm:$0xff] }
 0x4a2   : > { %13704 = vst.msk [vmem:[%s17303_s24 + $0x12c] sm:$0xf] %vm13628_vm3, %v13507_v26  ;;  %v12916_v61 = vmax.f32 %v12524_v23, %v12720_v27  ;;  %v16130_v27 = vld [vmem:[%s17218_s20 + $0x7a8] sm:$0xff] }
 0x4a4   : > { %v13116_v31 = vadd.f32 %v17797_v30, %v12916_v61 }
 0x4a6   : > { %v13312_v32 = vmax.f32 %v13116_v31, 0.0 }
 0x4a7   : > { %v11660_v33 = vpop.f32.mrf.mxu2  ;;  %v12150_v34 = vpop.f32.mrf.mxu3 }
 0x4a8   : > { %v13508_v37 = vpack.c.bf16 %v13312_v32, %v13312_v32  ;;  %v12721_v39 = vmax.f32 %v11660_v33, %v12150_v34  ;;  %v10683_v40 = vpop.f32.mrf.mxu0  ;;  %v11173_v41 = vpop.f32.mrf.mxu1 }
 0x4a9   : > { %v12526_v47 = vmax.f32 %v10683_v40, %v11173_v41 }
 0x4aa   : > { %13705 = vst.msk [vmem:[%s17303_s24 + $0x130] sm:$0xf] %vm13628_vm3, %v13508_v37  ;;  %v12917_v44 = vmax.f32 %v12525_v38, %v12721_v39 }
 0x4ab   : > { %15537 = vmatmul.msk.bf16.gmra.mxu0 %vm9295_vm2, %v15932_v35  ;;  %15635 = vmatmul.msk.bf16.gmra.mxu1 %vm9295_vm2, %v16030_v36 }
 0x4ac   : > { %v13117_v45 = vadd.f32 %v17797_v30, %v12917_v44  ;;  %15733 = vmatmul.msk.bf16.gmra.mxu2 %vm9295_vm2, %v16128_v42  ;;  %15831 = vmatmul.msk.bf16.gmra.mxu3 %vm9295_vm2, %v16226_v43  ;;  %v15935_v44 = vld [vmem:[%s17218_s20 + $0x190] sm:$0xff] }
 0x4ae   : > { %v13313_v46 = vmax.f32 %v13117_v45, 0.0  ;;  %v16033_v45 = vld [vmem:[%s17218_s20 + $0x4a0] sm:$0xff] }
 0x4af   : > { %v11663_v48 = vpop.f32.mrf.mxu2  ;;  %v12153_v49 = vpop.f32.mrf.mxu3 }
 0x4b0   : > { %v13509_v50 = vpack.c.bf16 %v13313_v46, %v13313_v46  ;;  %v12722_v51 = vmax.f32 %v11663_v48, %v12153_v49  ;;  %v10685_v52 = vpop.f32.mrf.mxu0  ;;  %v11175_v53 = vpop.f32.mrf.mxu1 }
 0x4b1   : > { %v12527_v63 = vmax.f32 %v10685_v52, %v11175_v53  ;;  %v16229_v52 = vld [vmem:[%s17218_s20 + $0xac0] sm:$0xff] }
 0x4b2   : > { %13706 = vst.msk [vmem:[%s17303_s24 + $0x134] sm:$0xf] %vm13628_vm3, %v13509_v50  ;;  %v12918_v54 = vmax.f32 %v12526_v47, %v12722_v51  ;;  %v16131_v51 = vld [vmem:[%s17218_s20 + $0x7b0] sm:$0xff] }
 0x4b4   : > { %v13118_v55 = vadd.f32 %v17797_v30, %v12918_v54 }
 0x4b6   : > { %v13314_v56 = vmax.f32 %v13118_v55, 0.0 }
 0x4b7   : > { %v11665_v57 = vpop.f32.mrf.mxu2  ;;  %v12155_v58 = vpop.f32.mrf.mxu3 }
 0x4b8   : > { %v13510_v62 = vpack.c.bf16 %v13314_v56, %v13314_v56  ;;  %v12723_v0 = vmax.f32 %v11665_v57, %v12155_v58  ;;  %v10688_v1 = vpop.f32.mrf.mxu0  ;;  %v11178_v2 = vpop.f32.mrf.mxu1 }
 0x4b9   : > { %v12528_v8 = vmax.f32 %v10688_v1, %v11178_v2 }
 0x4ba   : > { %13707 = vst.msk [vmem:[%s17303_s24 + $0x138] sm:$0xf] %vm13628_vm3, %v13510_v62  ;;  %v12919_v5 = vmax.f32 %v12527_v63, %v12723_v0 }
 0x4bb   : > { %15538 = vmatmul.msk.bf16.gmra.mxu0 %vm9295_vm2, %v15933_v59  ;;  %15636 = vmatmul.msk.bf16.gmra.mxu1 %vm9295_vm2, %v16031_v60 }
 0x4bc   : > { %v13119_v6 = vadd.f32 %v17797_v30, %v12919_v5  ;;  %15734 = vmatmul.msk.bf16.gmra.mxu2 %vm9295_vm2, %v16129_v3  ;;  %15832 = vmatmul.msk.bf16.gmra.mxu3 %vm9295_vm2, %v16227_v4  ;;  %v15936_v5 = vld [vmem:[%s17218_s20 + $0x198] sm:$0xff] }
 0x4be   : > { %v13315_v7 = vmax.f32 %v13119_v6, 0.0  ;;  %v16034_v6 = vld [vmem:[%s17218_s20 + $0x4a8] sm:$0xff] }
 0x4bf   : > { %v11668_v9 = vpop.f32.mrf.mxu2  ;;  %v12158_v10 = vpop.f32.mrf.mxu3 }
 0x4c0   : > { %v13511_v11 = vpack.c.bf16 %v13315_v7, %v13315_v7  ;;  %v12724_v12 = vmax.f32 %v11668_v9, %v12158_v10  ;;  %v10690_v13 = vpop.f32.mrf.mxu0  ;;  %v11180_v14 = vpop.f32.mrf.mxu1 }
 0x4c1   : > { %v12529_v23 = vmax.f32 %v10690_v13, %v11180_v14  ;;  %v16230_v13 = vld [vmem:[%s17218_s20 + $0xac8] sm:$0xff] }
 0x4c2   : > { %13708 = vst.msk [vmem:[%s17303_s24 + $0x13c] sm:$0xf] %vm13628_vm3, %v13511_v11  ;;  %v12920_v15 = vmax.f32 %v12528_v8, %v12724_v12  ;;  %v16132_v12 = vld [vmem:[%s17218_s20 + $0x7b8] sm:$0xff] }
 0x4c4   : > { %v13120_v16 = vadd.f32 %v17797_v30, %v12920_v15 }
 0x4c6   : > { %v13316_v17 = vmax.f32 %v13120_v16, 0.0 }
 0x4c7   : > { %v11670_v18 = vpop.f32.mrf.mxu2  ;;  %v12160_v19 = vpop.f32.mrf.mxu3 }
 0x4c8   : > { %v13512_v22 = vpack.c.bf16 %v13316_v17, %v13316_v17  ;;  %v12725_v24 = vmax.f32 %v11670_v18, %v12160_v19  ;;  %v10693_v25 = vpop.f32.mrf.mxu0  ;;  %v11183_v26 = vpop.f32.mrf.mxu1 }
 0x4c9   : > { %v12530_v32 = vmax.f32 %v10693_v25, %v11183_v26 }
 0x4ca   : > { %13709 = vst.msk [vmem:[%s17303_s24 + $0x140] sm:$0xf] %vm13628_vm3, %v13512_v22  ;;  %v12921_v29 = vmax.f32 %v12529_v23, %v12725_v24 }
 0x4cb   : > { %15539 = vmatmul.msk.bf16.gmra.mxu0 %vm9295_vm2, %v15934_v20  ;;  %15637 = vmatmul.msk.bf16.gmra.mxu1 %vm9295_vm2, %v16032_v21 }
 0x4cc   : > { %v13121_v61 = vadd.f32 %v17797_v30, %v12921_v29  ;;  %15735 = vmatmul.msk.bf16.gmra.mxu2 %vm9295_vm2, %v16130_v27  ;;  %15833 = vmatmul.msk.bf16.gmra.mxu3 %vm9295_vm2, %v16228_v28  ;;  %v15937_v29 = vld [vmem:[%s17218_s20 + $0x1a0] sm:$0xff] }
 0x4ce   : > { %v13317_v31 = vmax.f32 %v13121_v61, 0.0  ;;  %v16035_v61 = vld [vmem:[%s17218_s20 + $0x4b0] sm:$0xff] }
 0x4cf   : > { %v11673_v33 = vpop.f32.mrf.mxu2  ;;  %v12163_v34 = vpop.f32.mrf.mxu3 }
 0x4d0   : > { %v13513_v35 = vpack.c.bf16 %v13317_v31, %v13317_v31  ;;  %v12726_v36 = vmax.f32 %v11673_v33, %v12163_v34  ;;  %v10695_v37 = vpop.f32.mrf.mxu0  ;;  %v11185_v38 = vpop.f32.mrf.mxu1 }
 0x4d1   : > { %v12531_v47 = vmax.f32 %v10695_v37, %v11185_v38  ;;  %v16231_v37 = vld [vmem:[%s17218_s20 + $0xad0] sm:$0xff] }
 0x4d2   : > { %13710 = vst.msk [vmem:[%s17303_s24 + $0x144] sm:$0xf] %vm13628_vm3, %v13513_v35  ;;  %v12922_v39 = vmax.f32 %v12530_v32, %v12726_v36  ;;  %v16133_v36 = vld [vmem:[%s17218_s20 + $0x7c0] sm:$0xff] }
 0x4d4   : > { %v13122_v40 = vadd.f32 %v17797_v30, %v12922_v39 }
 0x4d6   : > { %v13318_v41 = vmax.f32 %v13122_v40, 0.0 }
 0x4d7   : > { %v11675_v42 = vpop.f32.mrf.mxu2  ;;  %v12165_v43 = vpop.f32.mrf.mxu3 }
 0x4d8   : > { %v13514_v46 = vpack.c.bf16 %v13318_v41, %v13318_v41  ;;  %v12727_v48 = vmax.f32 %v11675_v42, %v12165_v43  ;;  %v10698_v49 = vpop.f32.mrf.mxu0  ;;  %v11188_v50 = vpop.f32.mrf.mxu1 }
 0x4d9   : > { %v12532_v56 = vmax.f32 %v10698_v49, %v11188_v50 }
 0x4da   : > { %13711 = vst.msk [vmem:[%s17303_s24 + $0x148] sm:$0xf] %vm13628_vm3, %v13514_v46  ;;  %v12923_v53 = vmax.f32 %v12531_v47, %v12727_v48 }
 0x4db   : > { %15540 = vmatmul.msk.bf16.gmra.mxu0 %vm9295_vm2, %v15935_v44  ;;  %15638 = vmatmul.msk.bf16.gmra.mxu1 %vm9295_vm2, %v16033_v45 }
 0x4dc   : > { %v13123_v54 = vadd.f32 %v17797_v30, %v12923_v53  ;;  %15736 = vmatmul.msk.bf16.gmra.mxu2 %vm9295_vm2, %v16131_v51  ;;  %15834 = vmatmul.msk.bf16.gmra.mxu3 %vm9295_vm2, %v16229_v52  ;;  %v15938_v53 = vld [vmem:[%s17218_s20 + $0x1a8] sm:$0xff] }
 0x4de   : > { %v13319_v55 = vmax.f32 %v13123_v54, 0.0  ;;  %v16036_v54 = vld [vmem:[%s17218_s20 + $0x4b8] sm:$0xff] }
 0x4df   : > { %v11678_v57 = vpop.f32.mrf.mxu2  ;;  %v12168_v58 = vpop.f32.mrf.mxu3 }
 0x4e0   : > { %v13515_v59 = vpack.c.bf16 %v13319_v55, %v13319_v55  ;;  %v12728_v60 = vmax.f32 %v11678_v57, %v12168_v58  ;;  %v10700_v62 = vpop.f32.mrf.mxu0  ;;  %v11190_v63 = vpop.f32.mrf.mxu1 }
 0x4e1   : > { %v12533_v8 = vmax.f32 %v10700_v62, %v11190_v63  ;;  %v16232_v62 = vld [vmem:[%s17218_s20 + $0xad8] sm:$0xff] }
 0x4e2   : > { %13712 = vst.msk [vmem:[%s17303_s24 + $0x14c] sm:$0xf] %vm13628_vm3, %v13515_v59  ;;  %v12924_v0 = vmax.f32 %v12532_v56, %v12728_v60  ;;  %v16134_v60 = vld [vmem:[%s17218_s20 + $0x7c8] sm:$0xff] }
 0x4e4   : > { %v13124_v1 = vadd.f32 %v17797_v30, %v12924_v0 }
 0x4e6   : > { %v13320_v2 = vmax.f32 %v13124_v1, 0.0 }
 0x4e7   : > { %v11680_v3 = vpop.f32.mrf.mxu2  ;;  %v12170_v4 = vpop.f32.mrf.mxu3 }
 0x4e8   : > { %v13516_v7 = vpack.c.bf16 %v13320_v2, %v13320_v2  ;;  %v12729_v9 = vmax.f32 %v11680_v3, %v12170_v4  ;;  %v10703_v10 = vpop.f32.mrf.mxu0  ;;  %v11193_v11 = vpop.f32.mrf.mxu1 }
 0x4e9   : > { %v12534_v17 = vmax.f32 %v10703_v10, %v11193_v11 }
 0x4ea   : > { %13713 = vst.msk [vmem:[%s17303_s24 + $0x150] sm:$0xf] %vm13628_vm3, %v13516_v7  ;;  %v12925_v14 = vmax.f32 %v12533_v8, %v12729_v9 }
 0x4eb   : > { %15541 = vmatmul.msk.bf16.gmra.mxu0 %vm9295_vm2, %v15936_v5  ;;  %15639 = vmatmul.msk.bf16.gmra.mxu1 %vm9295_vm2, %v16034_v6 }
 0x4ec   : > { %v13125_v15 = vadd.f32 %v17797_v30, %v12925_v14  ;;  %15737 = vmatmul.msk.bf16.gmra.mxu2 %vm9295_vm2, %v16132_v12  ;;  %15835 = vmatmul.msk.bf16.gmra.mxu3 %vm9295_vm2, %v16230_v13  ;;  %v15939_v14 = vld [vmem:[%s17218_s20 + $0x1b0] sm:$0xff] }
 0x4ee   : > { %v13321_v16 = vmax.f32 %v13125_v15, 0.0  ;;  %v16037_v15 = vld [vmem:[%s17218_s20 + $0x4c0] sm:$0xff] }
 0x4ef   : > { %v11683_v18 = vpop.f32.mrf.mxu2  ;;  %v12173_v19 = vpop.f32.mrf.mxu3 }
 0x4f0   : > { %v13517_v20 = vpack.c.bf16 %v13321_v16, %v13321_v16  ;;  %v12730_v21 = vmax.f32 %v11683_v18, %v12173_v19  ;;  %v10705_v22 = vpop.f32.mrf.mxu0  ;;  %v11195_v23 = vpop.f32.mrf.mxu1 }
 0x4f1   : > { %v12535_v32 = vmax.f32 %v10705_v22, %v11195_v23  ;;  %v16233_v22 = vld [vmem:[%s17218_s20 + $0xae0] sm:$0xff] }
 0x4f2   : > { %13714 = vst.msk [vmem:[%s17303_s24 + $0x154] sm:$0xf] %vm13628_vm3, %v13517_v20  ;;  %v12926_v24 = vmax.f32 %v12534_v17, %v12730_v21  ;;  %v16135_v21 = vld [vmem:[%s17218_s20 + $0x7d0] sm:$0xff] }
 0x4f4   : > { %v13126_v25 = vadd.f32 %v17797_v30, %v12926_v24 }
 0x4f6   : > { %v13322_v26 = vmax.f32 %v13126_v25, 0.0 }
 0x4f7   : > { %v11685_v27 = vpop.f32.mrf.mxu2  ;;  %v12175_v28 = vpop.f32.mrf.mxu3 }
 0x4f8   : > { %v13518_v31 = vpack.c.bf16 %v13322_v26, %v13322_v26  ;;  %v12731_v33 = vmax.f32 %v11685_v27, %v12175_v28  ;;  %v10708_v34 = vpop.f32.mrf.mxu0  ;;  %v11198_v35 = vpop.f32.mrf.mxu1 }
 0x4f9   : > { %v12536_v41 = vmax.f32 %v10708_v34, %v11198_v35 }
 0x4fa   : > { %13715 = vst.msk [vmem:[%s17303_s24 + $0x158] sm:$0xf] %vm13628_vm3, %v13518_v31  ;;  %v12927_v38 = vmax.f32 %v12535_v32, %v12731_v33 }
 0x4fb   : > { %15542 = vmatmul.msk.bf16.gmra.mxu0 %vm9295_vm2, %v15937_v29  ;;  %15640 = vmatmul.msk.bf16.gmra.mxu1 %vm9295_vm2, %v16035_v61 }
 0x4fc   : > { %v13127_v39 = vadd.f32 %v17797_v30, %v12927_v38  ;;  %15738 = vmatmul.msk.bf16.gmra.mxu2 %vm9295_vm2, %v16133_v36  ;;  %15836 = vmatmul.msk.bf16.gmra.mxu3 %vm9295_vm2, %v16231_v37  ;;  %v15940_v38 = vld [vmem:[%s17218_s20 + $0x1b8] sm:$0xff] }
 0x4fe   : > { %v13323_v40 = vmax.f32 %v13127_v39, 0.0  ;;  %v16038_v39 = vld [vmem:[%s17218_s20 + $0x4c8] sm:$0xff] }
 0x4ff   : > { %v11688_v42 = vpop.f32.mrf.mxu2  ;;  %v12178_v43 = vpop.f32.mrf.mxu3 }
 0x500   : > { %v13519_v44 = vpack.c.bf16 %v13323_v40, %v13323_v40  ;;  %v12732_v45 = vmax.f32 %v11688_v42, %v12178_v43  ;;  %v10710_v46 = vpop.f32.mrf.mxu0  ;;  %v11200_v47 = vpop.f32.mrf.mxu1 }
 0x501   : > { %v12537_v56 = vmax.f32 %v10710_v46, %v11200_v47  ;;  %v16234_v46 = vld [vmem:[%s17218_s20 + $0xae8] sm:$0xff] }
 0x502   : > { %13716 = vst.msk [vmem:[%s17303_s24 + $0x15c] sm:$0xf] %vm13628_vm3, %v13519_v44  ;;  %v12928_v48 = vmax.f32 %v12536_v41, %v12732_v45  ;;  %v16136_v45 = vld [vmem:[%s17218_s20 + $0x7d8] sm:$0xff] }
 0x504   : > { %v13128_v49 = vadd.f32 %v17797_v30, %v12928_v48 }
 0x506   : > { %v13324_v50 = vmax.f32 %v13128_v49, 0.0 }
 0x507   : > { %v11690_v51 = vpop.f32.mrf.mxu2  ;;  %v12180_v52 = vpop.f32.mrf.mxu3 }
 0x508   : > { %v13520_v55 = vpack.c.bf16 %v13324_v50, %v13324_v50  ;;  %v12733_v57 = vmax.f32 %v11690_v51, %v12180_v52  ;;  %v10713_v58 = vpop.f32.mrf.mxu0  ;;  %v11203_v59 = vpop.f32.mrf.mxu1 }
 0x509   : > { %v12538_v2 = vmax.f32 %v10713_v58, %v11203_v59 }
 0x50a   : > { %13717 = vst.msk [vmem:[%s17303_s24 + $0x160] sm:$0xf] %vm13628_vm3, %v13520_v55  ;;  %v12929_v63 = vmax.f32 %v12537_v56, %v12733_v57 }
 0x50b   : > { %15543 = vmatmul.msk.bf16.gmra.mxu0 %vm9295_vm2, %v15938_v53  ;;  %15641 = vmatmul.msk.bf16.gmra.mxu1 %vm9295_vm2, %v16036_v54 }
 0x50c   : > { %v13129_v0 = vadd.f32 %v17797_v30, %v12929_v63  ;;  %15739 = vmatmul.msk.bf16.gmra.mxu2 %vm9295_vm2, %v16134_v60  ;;  %15837 = vmatmul.msk.bf16.gmra.mxu3 %vm9295_vm2, %v16232_v62  ;;  %v15941_v63 = vld [vmem:[%s17218_s20 + $0x1c0] sm:$0xff] }
 0x50e   : > { %v13325_v1 = vmax.f32 %v13129_v0, 0.0  ;;  %v16039_v0 = vld [vmem:[%s17218_s20 + $0x4d0] sm:$0xff] }
 0x50f   : > { %v11693_v3 = vpop.f32.mrf.mxu2  ;;  %v12183_v4 = vpop.f32.mrf.mxu3 }
 0x510   : > { %v13521_v5 = vpack.c.bf16 %v13325_v1, %v13325_v1  ;;  %v12734_v6 = vmax.f32 %v11693_v3, %v12183_v4  ;;  %v10715_v7 = vpop.f32.mrf.mxu0  ;;  %v11205_v8 = vpop.f32.mrf.mxu1 }
 0x511   : > { %v12539_v17 = vmax.f32 %v10715_v7, %v11205_v8  ;;  %v16235_v7 = vld [vmem:[%s17218_s20 + $0xaf0] sm:$0xff] }
 0x512   : > { %13718 = vst.msk [vmem:[%s17303_s24 + $0x164] sm:$0xf] %vm13628_vm3, %v13521_v5  ;;  %v12930_v9 = vmax.f32 %v12538_v2, %v12734_v6  ;;  %v16137_v6 = vld [vmem:[%s17218_s20 + $0x7e0] sm:$0xff] }
 0x514   : > { %v13130_v10 = vadd.f32 %v17797_v30, %v12930_v9 }
 0x516   : > { %v13326_v11 = vmax.f32 %v13130_v10, 0.0 }
 0x517   : > { %v11695_v12 = vpop.f32.mrf.mxu2  ;;  %v12185_v13 = vpop.f32.mrf.mxu3 }
 0x518   : > { %v13522_v16 = vpack.c.bf16 %v13326_v11, %v13326_v11  ;;  %v12735_v18 = vmax.f32 %v11695_v12, %v12185_v13  ;;  %v10718_v19 = vpop.f32.mrf.mxu0  ;;  %v11208_v20 = vpop.f32.mrf.mxu1 }
 0x519   : > { %v12540_v26 = vmax.f32 %v10718_v19, %v11208_v20 }
 0x51a   : > { %13719 = vst.msk [vmem:[%s17303_s24 + $0x168] sm:$0xf] %vm13628_vm3, %v13522_v16  ;;  %v12931_v23 = vmax.f32 %v12539_v17, %v12735_v18 }
 0x51b   : > { %15544 = vmatmul.msk.bf16.gmra.mxu0 %vm9295_vm2, %v15939_v14  ;;  %15642 = vmatmul.msk.bf16.gmra.mxu1 %vm9295_vm2, %v16037_v15 }
 0x51c   : > { %v13131_v24 = vadd.f32 %v17797_v30, %v12931_v23  ;;  %15740 = vmatmul.msk.bf16.gmra.mxu2 %vm9295_vm2, %v16135_v21  ;;  %15838 = vmatmul.msk.bf16.gmra.mxu3 %vm9295_vm2, %v16233_v22  ;;  %v15942_v23 = vld [vmem:[%s17218_s20 + $0x1c8] sm:$0xff] }
 0x51e   : > { %v13327_v25 = vmax.f32 %v13131_v24, 0.0  ;;  %v16040_v24 = vld [vmem:[%s17218_s20 + $0x4d8] sm:$0xff] }
 0x51f   : > { %v11698_v27 = vpop.f32.mrf.mxu2  ;;  %v12188_v28 = vpop.f32.mrf.mxu3 }
 0x520   : > { %v13523_v29 = vpack.c.bf16 %v13327_v25, %v13327_v25  ;;  %v12736_v61 = vmax.f32 %v11698_v27, %v12188_v28  ;;  %v10720_v31 = vpop.f32.mrf.mxu0  ;;  %v11210_v32 = vpop.f32.mrf.mxu1 }
 0x521   : > { %v12541_v41 = vmax.f32 %v10720_v31, %v11210_v32  ;;  %v16236_v31 = vld [vmem:[%s17218_s20 + $0xaf8] sm:$0xff] }
 0x522   : > { %13720 = vst.msk [vmem:[%s17303_s24 + $0x16c] sm:$0xf] %vm13628_vm3, %v13523_v29  ;;  %v12932_v33 = vmax.f32 %v12540_v26, %v12736_v61  ;;  %v16138_v61 = vld [vmem:[%s17218_s20 + $0x7e8] sm:$0xff] }
 0x524   : > { %v13132_v34 = vadd.f32 %v17797_v30, %v12932_v33 }
 0x526   : > { %v13328_v35 = vmax.f32 %v13132_v34, 0.0 }
 0x527   : > { %v11700_v36 = vpop.f32.mrf.mxu2  ;;  %v12190_v37 = vpop.f32.mrf.mxu3 }
 0x528   : > { %v13524_v40 = vpack.c.bf16 %v13328_v35, %v13328_v35  ;;  %v12737_v42 = vmax.f32 %v11700_v36, %v12190_v37  ;;  %v10723_v43 = vpop.f32.mrf.mxu0  ;;  %v11213_v44 = vpop.f32.mrf.mxu1 }
 0x529   : > { %v12542_v50 = vmax.f32 %v10723_v43, %v11213_v44 }
 0x52a   : > { %13721 = vst.msk [vmem:[%s17303_s24 + $0x170] sm:$0xf] %vm13628_vm3, %v13524_v40  ;;  %v12933_v47 = vmax.f32 %v12541_v41, %v12737_v42 }
 0x52b   : > { %15545 = vmatmul.msk.bf16.gmra.mxu0 %vm9295_vm2, %v15940_v38  ;;  %15643 = vmatmul.msk.bf16.gmra.mxu1 %vm9295_vm2, %v16038_v39 }
 0x52c   : > { %v13133_v48 = vadd.f32 %v17797_v30, %v12933_v47  ;;  %15741 = vmatmul.msk.bf16.gmra.mxu2 %vm9295_vm2, %v16136_v45  ;;  %15839 = vmatmul.msk.bf16.gmra.mxu3 %vm9295_vm2, %v16234_v46  ;;  %v15943_v47 = vld [vmem:[%s17218_s20 + $0x1d0] sm:$0xff] }
 0x52e   : > { %v13329_v49 = vmax.f32 %v13133_v48, 0.0  ;;  %v16041_v48 = vld [vmem:[%s17218_s20 + $0x4e0] sm:$0xff] }
 0x52f   : > { %v11703_v51 = vpop.f32.mrf.mxu2  ;;  %v12193_v52 = vpop.f32.mrf.mxu3 }
 0x530   : > { %v13525_v53 = vpack.c.bf16 %v13329_v49, %v13329_v49  ;;  %v12738_v54 = vmax.f32 %v11703_v51, %v12193_v52  ;;  %v10725_v55 = vpop.f32.mrf.mxu0  ;;  %v11215_v56 = vpop.f32.mrf.mxu1 }
 0x531   : > { %v12543_v2 = vmax.f32 %v10725_v55, %v11215_v56  ;;  %v16237_v55 = vld [vmem:[%s17218_s20 + $0xb00] sm:$0xff] }
 0x532   : > { %13722 = vst.msk [vmem:[%s17303_s24 + $0x174] sm:$0xf] %vm13628_vm3, %v13525_v53  ;;  %v12934_v57 = vmax.f32 %v12542_v50, %v12738_v54  ;;  %v16139_v54 = vld [vmem:[%s17218_s20 + $0x7f0] sm:$0xff] }
 0x534   : > { %v13134_v58 = vadd.f32 %v17797_v30, %v12934_v57 }
 0x536   : > { %v13330_v59 = vmax.f32 %v13134_v58, 0.0 }
 0x537   : > { %v11705_v60 = vpop.f32.mrf.mxu2  ;;  %v12195_v62 = vpop.f32.mrf.mxu3 }
 0x538   : > { %v13526_v1 = vpack.c.bf16 %v13330_v59, %v13330_v59  ;;  %v12739_v3 = vmax.f32 %v11705_v60, %v12195_v62  ;;  %v10728_v4 = vpop.f32.mrf.mxu0  ;;  %v11218_v5 = vpop.f32.mrf.mxu1 }
 0x539   : > { %v12544_v11 = vmax.f32 %v10728_v4, %v11218_v5 }
 0x53a   : > { %13723 = vst.msk [vmem:[%s17303_s24 + $0x178] sm:$0xf] %vm13628_vm3, %v13526_v1  ;;  %v12935_v8 = vmax.f32 %v12543_v2, %v12739_v3 }
 0x53b   : > { %15546 = vmatmul.msk.bf16.gmra.mxu0 %vm9295_vm2, %v15941_v63  ;;  %15644 = vmatmul.msk.bf16.gmra.mxu1 %vm9295_vm2, %v16039_v0 }
 0x53c   : > { %v13135_v9 = vadd.f32 %v17797_v30, %v12935_v8  ;;  %15742 = vmatmul.msk.bf16.gmra.mxu2 %vm9295_vm2, %v16137_v6  ;;  %15840 = vmatmul.msk.bf16.gmra.mxu3 %vm9295_vm2, %v16235_v7  ;;  %v15944_v8 = vld [vmem:[%s17218_s20 + $0x1d8] sm:$0xff] }
 0x53e   : > { %v13331_v10 = vmax.f32 %v13135_v9, 0.0  ;;  %v16042_v9 = vld [vmem:[%s17218_s20 + $0x4e8] sm:$0xff] }
 0x53f   : > { %v11708_v12 = vpop.f32.mrf.mxu2  ;;  %v12198_v13 = vpop.f32.mrf.mxu3 }
 0x540   : > { %v13527_v14 = vpack.c.bf16 %v13331_v10, %v13331_v10  ;;  %v12740_v15 = vmax.f32 %v11708_v12, %v12198_v13  ;;  %v10730_v16 = vpop.f32.mrf.mxu0  ;;  %v11220_v17 = vpop.f32.mrf.mxu1 }
 0x541   : > { %v12545_v26 = vmax.f32 %v10730_v16, %v11220_v17  ;;  %v16238_v16 = vld [vmem:[%s17218_s20 + $0xb08] sm:$0xff] }
 0x542   : > { %13724 = vst.msk [vmem:[%s17303_s24 + $0x17c] sm:$0xf] %vm13628_vm3, %v13527_v14  ;;  %v12936_v18 = vmax.f32 %v12544_v11, %v12740_v15  ;;  %v16140_v15 = vld [vmem:[%s17218_s20 + $0x7f8] sm:$0xff] }
 0x544   : > { %v13136_v19 = vadd.f32 %v17797_v30, %v12936_v18 }
 0x546   : > { %v13332_v20 = vmax.f32 %v13136_v19, 0.0 }
 0x547   : > { %v11710_v21 = vpop.f32.mrf.mxu2  ;;  %v12200_v22 = vpop.f32.mrf.mxu3 }
 0x548   : > { %v13528_v25 = vpack.c.bf16 %v13332_v20, %v13332_v20  ;;  %v12741_v27 = vmax.f32 %v11710_v21, %v12200_v22  ;;  %v10733_v28 = vpop.f32.mrf.mxu0  ;;  %v11223_v29 = vpop.f32.mrf.mxu1 }
 0x549   : > { %v12546_v35 = vmax.f32 %v10733_v28, %v11223_v29 }
 0x54a   : > { %13725 = vst.msk [vmem:[%s17303_s24 + $0x180] sm:$0xf] %vm13628_vm3, %v13528_v25  ;;  %v12937_v32 = vmax.f32 %v12545_v26, %v12741_v27 }
 0x54b   : > { %15547 = vmatmul.msk.bf16.gmra.mxu0 %vm9295_vm2, %v15942_v23  ;;  %15645 = vmatmul.msk.bf16.gmra.mxu1 %vm9295_vm2, %v16040_v24 }
 0x54c   : > { %v13137_v33 = vadd.f32 %v17797_v30, %v12937_v32  ;;  %15743 = vmatmul.msk.bf16.gmra.mxu2 %vm9295_vm2, %v16138_v61  ;;  %15841 = vmatmul.msk.bf16.gmra.mxu3 %vm9295_vm2, %v16236_v31  ;;  %v15945_v32 = vld [vmem:[%s17218_s20 + $0x1e0] sm:$0xff] }
 0x54e   : > { %v13333_v34 = vmax.f32 %v13137_v33, 0.0  ;;  %v16043_v33 = vld [vmem:[%s17218_s20 + $0x4f0] sm:$0xff] }
 0x54f   : > { %v11713_v36 = vpop.f32.mrf.mxu2  ;;  %v12203_v37 = vpop.f32.mrf.mxu3 }
 0x550   : > { %v13529_v38 = vpack.c.bf16 %v13333_v34, %v13333_v34  ;;  %v12742_v39 = vmax.f32 %v11713_v36, %v12203_v37  ;;  %v10735_v40 = vpop.f32.mrf.mxu0  ;;  %v11225_v41 = vpop.f32.mrf.mxu1 }
 0x551   : > { %v12547_v50 = vmax.f32 %v10735_v40, %v11225_v41  ;;  %v16239_v40 = vld [vmem:[%s17218_s20 + $0xb10] sm:$0xff] }
 0x552   : > { %13726 = vst.msk [vmem:[%s17303_s24 + $0x184] sm:$0xf] %vm13628_vm3, %v13529_v38  ;;  %v12938_v42 = vmax.f32 %v12546_v35, %v12742_v39  ;;  %v16141_v39 = vld [vmem:[%s17218_s20 + $0x800] sm:$0xff] }
 0x554   : > { %v13138_v43 = vadd.f32 %v17797_v30, %v12938_v42 }
 0x556   : > { %v13334_v44 = vmax.f32 %v13138_v43, 0.0 }
 0x557   : > { %v11715_v45 = vpop.f32.mrf.mxu2  ;;  %v12205_v46 = vpop.f32.mrf.mxu3 }
 0x558   : > { %v13530_v49 = vpack.c.bf16 %v13334_v44, %v13334_v44  ;;  %v12743_v51 = vmax.f32 %v11715_v45, %v12205_v46  ;;  %v10738_v52 = vpop.f32.mrf.mxu0  ;;  %v11228_v53 = vpop.f32.mrf.mxu1 }
 0x559   : > { %v12548_v59 = vmax.f32 %v10738_v52, %v11228_v53 }
 0x55a   : > { %13727 = vst.msk [vmem:[%s17303_s24 + $0x188] sm:$0xf] %vm13628_vm3, %v13530_v49  ;;  %v12939_v56 = vmax.f32 %v12547_v50, %v12743_v51  ;;  %v18045_v51 = vld [vmem:[%s18641_s2] ss:$0 sm:$0xff] }
 0x55b   : > { %15548 = vmatmul.msk.bf16.gmra.mxu0 %vm9295_vm2, %v15943_v47  ;;  %15646 = vmatmul.msk.bf16.gmra.mxu1 %vm9295_vm2, %v16041_v48 }
 0x55c   : > { %v13139_v57 = vadd.f32 %v17797_v30, %v12939_v56  ;;  %15744 = vmatmul.msk.bf16.gmra.mxu2 %vm9295_vm2, %v16139_v54  ;;  %15842 = vmatmul.msk.bf16.gmra.mxu3 %vm9295_vm2, %v16237_v55  ;;  %v15946_v56 = vld [vmem:[%s17218_s20 + $0x1e8] sm:$0xff] }
 0x55e   : > { %v13335_v58 = vmax.f32 %v13139_v57, 0.0  ;;  %v16044_v57 = vld [vmem:[%s17218_s20 + $0x4f8] sm:$0xff] }
 0x55f   : > { %v11718_v60 = vpop.f32.mrf.mxu2  ;;  %v12208_v62 = vpop.f32.mrf.mxu3 }
 0x560   : > { %v13531_v63 = vpack.c.bf16 %v13335_v58, %v13335_v58  ;;  %v12744_v0 = vmax.f32 %v11718_v60, %v12208_v62  ;;  %v10740_v1 = vpop.f32.mrf.mxu0  ;;  %v11230_v2 = vpop.f32.mrf.mxu1 }
 0x561   : > { %v12549_v11 = vmax.f32 %v10740_v1, %v11230_v2  ;;  %v16240_v1 = vld [vmem:[%s17218_s20 + $0xb18] sm:$0xff] }
 0x562   : > { %13728 = vst.msk [vmem:[%s17303_s24 + $0x18c] sm:$0xf] %vm13628_vm3, %v13531_v63  ;;  %v12940_v3 = vmax.f32 %v12548_v59, %v12744_v0  ;;  %v16142_v0 = vld [vmem:[%s17218_s20 + $0x808] sm:$0xff] }
 0x564   : > { %v13140_v4 = vadd.f32 %v17797_v30, %v12940_v3 }
 0x566   : > { %v13336_v5 = vmax.f32 %v13140_v4, 0.0 }
 0x567   : > { %v11720_v6 = vpop.f32.mrf.mxu2  ;;  %v12210_v7 = vpop.f32.mrf.mxu3 }
 0x568   : > { %v13532_v10 = vpack.c.bf16 %v13336_v5, %v13336_v5  ;;  %v12745_v12 = vmax.f32 %v11720_v6, %v12210_v7  ;;  %v10743_v13 = vpop.f32.mrf.mxu0  ;;  %v11233_v14 = vpop.f32.mrf.mxu1 }
 0x569   : > { %v12550_v20 = vmax.f32 %v10743_v13, %v11233_v14 }
 0x56a   : > { %13729 = vst.msk [vmem:[%s17303_s24 + $0x190] sm:$0xf] %vm13628_vm3, %v13532_v10  ;;  %v12941_v17 = vmax.f32 %v12549_v11, %v12745_v12 }
 0x56b   : > { %15549 = vmatmul.msk.bf16.gmra.mxu0 %vm9295_vm2, %v15944_v8  ;;  %15647 = vmatmul.msk.bf16.gmra.mxu1 %vm9295_vm2, %v16042_v9 }
 0x56c   : > { %v13141_v18 = vadd.f32 %v17797_v30, %v12941_v17  ;;  %15745 = vmatmul.msk.bf16.gmra.mxu2 %vm9295_vm2, %v16140_v15  ;;  %15843 = vmatmul.msk.bf16.gmra.mxu3 %vm9295_vm2, %v16238_v16  ;;  %v15947_v17 = vld [vmem:[%s17218_s20 + $0x1f0] sm:$0xff] }
 0x56e   : > { %v13337_v19 = vmax.f32 %v13141_v18, 0.0  ;;  %v16045_v18 = vld [vmem:[%s17218_s20 + $0x500] sm:$0xff] }
 0x56f   : > { %v11723_v21 = vpop.f32.mrf.mxu2  ;;  %v12213_v22 = vpop.f32.mrf.mxu3 }
 0x570   : > { %v13533_v23 = vpack.c.bf16 %v13337_v19, %v13337_v19  ;;  %v12746_v24 = vmax.f32 %v11723_v21, %v12213_v22  ;;  %v10745_v25 = vpop.f32.mrf.mxu0  ;;  %v11235_v26 = vpop.f32.mrf.mxu1 }
 0x571   : > { %v12551_v35 = vmax.f32 %v10745_v25, %v11235_v26  ;;  %v16241_v25 = vld [vmem:[%s17218_s20 + $0xb20] sm:$0xff] }
 0x572   : > { %13730 = vst.msk [vmem:[%s17303_s24 + $0x194] sm:$0xf] %vm13628_vm3, %v13533_v23  ;;  %v12942_v27 = vmax.f32 %v12550_v20, %v12746_v24  ;;  %v16143_v24 = vld [vmem:[%s17218_s20 + $0x810] sm:$0xff] }
 0x574   : > { %v13142_v28 = vadd.f32 %v17797_v30, %v12942_v27 }
 0x576   : > { %v13338_v29 = vmax.f32 %v13142_v28, 0.0 }
 0x577   : > { %v11725_v61 = vpop.f32.mrf.mxu2  ;;  %v12215_v31 = vpop.f32.mrf.mxu3 }
 0x578   : > { %v13534_v34 = vpack.c.bf16 %v13338_v29, %v13338_v29  ;;  %v12747_v36 = vmax.f32 %v11725_v61, %v12215_v31  ;;  %v10748_v37 = vpop.f32.mrf.mxu0  ;;  %v11238_v38 = vpop.f32.mrf.mxu1 }
 0x579   : > { %v12552_v44 = vmax.f32 %v10748_v37, %v11238_v38 }
 0x57a   : > { %13731 = vst.msk [vmem:[%s17303_s24 + $0x198] sm:$0xf] %vm13628_vm3, %v13534_v34  ;;  %v12943_v41 = vmax.f32 %v12551_v35, %v12747_v36 }
 0x57b   : > { %15550 = vmatmul.msk.bf16.gmra.mxu0 %vm9295_vm2, %v15945_v32  ;;  %15648 = vmatmul.msk.bf16.gmra.mxu1 %vm9295_vm2, %v16043_v33 }
 0x57c   : > { %v13143_v42 = vadd.f32 %v17797_v30, %v12943_v41  ;;  %15746 = vmatmul.msk.bf16.gmra.mxu2 %vm9295_vm2, %v16141_v39  ;;  %15844 = vmatmul.msk.bf16.gmra.mxu3 %vm9295_vm2, %v16239_v40  ;;  %v15948_v41 = vld [vmem:[%s17218_s20 + $0x1f8] sm:$0xff] }
 0x57e   : > { %v13339_v43 = vmax.f32 %v13143_v42, 0.0  ;;  %v16046_v42 = vld [vmem:[%s17218_s20 + $0x508] sm:$0xff] }
 0x57f   : > { %v11728_v45 = vpop.f32.mrf.mxu2  ;;  %v12218_v46 = vpop.f32.mrf.mxu3 }
 0x580   : > { %v13535_v47 = vpack.c.bf16 %v13339_v43, %v13339_v43  ;;  %v12748_v48 = vmax.f32 %v11728_v45, %v12218_v46  ;;  %v10750_v49 = vpop.f32.mrf.mxu0  ;;  %v11240_v50 = vpop.f32.mrf.mxu1 }
 0x581   : > { %v12553_v59 = vmax.f32 %v10750_v49, %v11240_v50  ;;  %v16242_v49 = vld [vmem:[%s17218_s20 + $0xb28] sm:$0xff] }
 0x582   : > { %13732 = vst.msk [vmem:[%s17303_s24 + $0x19c] sm:$0xf] %vm13628_vm3, %v13535_v47  ;;  %v12944_v30 = vmax.f32 %v12552_v44, %v12748_v48  ;;  %v16144_v48 = vld [vmem:[%s17218_s20 + $0x818] sm:$0xff] }
 0x584   : > { %v13144_v52 = vadd.f32 %v18045_v51, %v12944_v30 }
 0x586   : > { %v13340_v53 = vmax.f32 %v13144_v52, 0.0 }
 0x587   : > { %v11730_v54 = vpop.f32.mrf.mxu2  ;;  %v12220_v55 = vpop.f32.mrf.mxu3 }
 0x588   : > { %v13536_v58 = vpack.c.bf16 %v13340_v53, %v13340_v53  ;;  %v12749_v60 = vmax.f32 %v11730_v54, %v12220_v55  ;;  %v10753_v62 = vpop.f32.mrf.mxu0  ;;  %v11243_v63 = vpop.f32.mrf.mxu1 }
 0x589   : > { %v12554_v5 = vmax.f32 %v10753_v62, %v11243_v63 }
 0x58a   : > { %13733 = vst.msk [vmem:[%s17303_s24 + $0x1a0] sm:$0xf] %vm13628_vm3, %v13536_v58  ;;  %v12945_v2 = vmax.f32 %v12553_v59, %v12749_v60 }
 0x58b   : > { %15551 = vmatmul.msk.bf16.gmra.mxu0 %vm9295_vm2, %v15946_v56  ;;  %15649 = vmatmul.msk.bf16.gmra.mxu1 %vm9295_vm2, %v16044_v57 }
 0x58c   : > { %v13145_v3 = vadd.f32 %v18045_v51, %v12945_v2  ;;  %15747 = vmatmul.msk.bf16.gmra.mxu2 %vm9295_vm2, %v16142_v0  ;;  %15845 = vmatmul.msk.bf16.gmra.mxu3 %vm9295_vm2, %v16240_v1  ;;  %v15949_v2 = vld [vmem:[%s17218_s20 + $0x200] sm:$0xff] }
 0x58e   : > { %v13341_v4 = vmax.f32 %v13145_v3, 0.0  ;;  %v16047_v3 = vld [vmem:[%s17218_s20 + $0x510] sm:$0xff] }
 0x58f   : > { %v11733_v6 = vpop.f32.mrf.mxu2  ;;  %v12223_v7 = vpop.f32.mrf.mxu3 }
 0x590   : > { %v13537_v8 = vpack.c.bf16 %v13341_v4, %v13341_v4  ;;  %v12750_v9 = vmax.f32 %v11733_v6, %v12223_v7  ;;  %v10755_v10 = vpop.f32.mrf.mxu0  ;;  %v11245_v11 = vpop.f32.mrf.mxu1 }
 0x591   : > { %v12555_v20 = vmax.f32 %v10755_v10, %v11245_v11  ;;  %v16243_v10 = vld [vmem:[%s17218_s20 + $0xb30] sm:$0xff] }
 0x592   : > { %13734 = vst.msk [vmem:[%s17303_s24 + $0x1a4] sm:$0xf] %vm13628_vm3, %v13537_v8  ;;  %v12946_v12 = vmax.f32 %v12554_v5, %v12750_v9  ;;  %v16145_v9 = vld [vmem:[%s17218_s20 + $0x820] sm:$0xff] }
 0x594   : > { %v13146_v13 = vadd.f32 %v18045_v51, %v12946_v12 }
 0x596   : > { %v13342_v14 = vmax.f32 %v13146_v13, 0.0 }
 0x597   : > { %v11735_v15 = vpop.f32.mrf.mxu2  ;;  %v12225_v16 = vpop.f32.mrf.mxu3 }
 0x598   : > { %v13538_v19 = vpack.c.bf16 %v13342_v14, %v13342_v14  ;;  %v12751_v21 = vmax.f32 %v11735_v15, %v12225_v16  ;;  %v10758_v22 = vpop.f32.mrf.mxu0  ;;  %v11248_v23 = vpop.f32.mrf.mxu1 }
 0x599   : > { %v12556_v29 = vmax.f32 %v10758_v22, %v11248_v23 }
 0x59a   : > { %13735 = vst.msk [vmem:[%s17303_s24 + $0x1a8] sm:$0xf] %vm13628_vm3, %v13538_v19  ;;  %v12947_v26 = vmax.f32 %v12555_v20, %v12751_v21 }
 0x59b   : > { %15552 = vmatmul.msk.bf16.gmra.mxu0 %vm9295_vm2, %v15947_v17  ;;  %15650 = vmatmul.msk.bf16.gmra.mxu1 %vm9295_vm2, %v16045_v18 }
 0x59c   : > { %v13147_v27 = vadd.f32 %v18045_v51, %v12947_v26  ;;  %15748 = vmatmul.msk.bf16.gmra.mxu2 %vm9295_vm2, %v16143_v24  ;;  %15846 = vmatmul.msk.bf16.gmra.mxu3 %vm9295_vm2, %v16241_v25  ;;  %v15950_v26 = vld [vmem:[%s17218_s20 + $0x208] sm:$0xff] }
 0x59e   : > { %v13343_v28 = vmax.f32 %v13147_v27, 0.0  ;;  %v16048_v27 = vld [vmem:[%s17218_s20 + $0x518] sm:$0xff] }
 0x59f   : > { %v11738_v61 = vpop.f32.mrf.mxu2  ;;  %v12228_v31 = vpop.f32.mrf.mxu3 }
 0x5a0   : > { %v13539_v32 = vpack.c.bf16 %v13343_v28, %v13343_v28  ;;  %v12752_v33 = vmax.f32 %v11738_v61, %v12228_v31  ;;  %v10760_v34 = vpop.f32.mrf.mxu0  ;;  %v11250_v35 = vpop.f32.mrf.mxu1 }
 0x5a1   : > { %v12557_v44 = vmax.f32 %v10760_v34, %v11250_v35  ;;  %v16244_v34 = vld [vmem:[%s17218_s20 + $0xb38] sm:$0xff] }
 0x5a2   : > { %13736 = vst.msk [vmem:[%s17303_s24 + $0x1ac] sm:$0xf] %vm13628_vm3, %v13539_v32  ;;  %v12948_v36 = vmax.f32 %v12556_v29, %v12752_v33  ;;  %v16146_v33 = vld [vmem:[%s17218_s20 + $0x828] sm:$0xff] }
 0x5a4   : > { %v13148_v37 = vadd.f32 %v18045_v51, %v12948_v36 }
 0x5a6   : > { %v13344_v38 = vmax.f32 %v13148_v37, 0.0 }
 0x5a7   : > { %v11740_v39 = vpop.f32.mrf.mxu2  ;;  %v12230_v40 = vpop.f32.mrf.mxu3 }
 0x5a8   : > { %v13540_v43 = vpack.c.bf16 %v13344_v38, %v13344_v38  ;;  %v12753_v45 = vmax.f32 %v11740_v39, %v12230_v40  ;;  %v10763_v46 = vpop.f32.mrf.mxu0  ;;  %v11253_v47 = vpop.f32.mrf.mxu1 }
 0x5a9   : > { %v12558_v53 = vmax.f32 %v10763_v46, %v11253_v47 }
 0x5aa   : > { %13737 = vst.msk [vmem:[%s17303_s24 + $0x1b0] sm:$0xf] %vm13628_vm3, %v13540_v43  ;;  %v12949_v50 = vmax.f32 %v12557_v44, %v12753_v45 }
 0x5ab   : > { %15553 = vmatmul.msk.bf16.gmra.mxu0 %vm9295_vm2, %v15948_v41  ;;  %15651 = vmatmul.msk.bf16.gmra.mxu1 %vm9295_vm2, %v16046_v42 }
 0x5ac   : > { %v13149_v30 = vadd.f32 %v18045_v51, %v12949_v50  ;;  %15749 = vmatmul.msk.bf16.gmra.mxu2 %vm9295_vm2, %v16144_v48  ;;  %15847 = vmatmul.msk.bf16.gmra.mxu3 %vm9295_vm2, %v16242_v49  ;;  %v15951_v50 = vld [vmem:[%s17218_s20 + $0x210] sm:$0xff] }
 0x5ae   : > { %v13345_v52 = vmax.f32 %v13149_v30, 0.0  ;;  %v16049_v30 = vld [vmem:[%s17218_s20 + $0x520] sm:$0xff] }
 0x5af   : > { %v11743_v54 = vpop.f32.mrf.mxu2  ;;  %v12233_v55 = vpop.f32.mrf.mxu3 }
 0x5b0   : > { %v13541_v56 = vpack.c.bf16 %v13345_v52, %v13345_v52  ;;  %v12754_v57 = vmax.f32 %v11743_v54, %v12233_v55  ;;  %v10765_v58 = vpop.f32.mrf.mxu0  ;;  %v11255_v59 = vpop.f32.mrf.mxu1 }
 0x5b1   : > { %v12559_v5 = vmax.f32 %v10765_v58, %v11255_v59  ;;  %v16245_v58 = vld [vmem:[%s17218_s20 + $0xb40] sm:$0xff] }
 0x5b2   : > { %13738 = vst.msk [vmem:[%s17303_s24 + $0x1b4] sm:$0xf] %vm13628_vm3, %v13541_v56  ;;  %v12950_v60 = vmax.f32 %v12558_v53, %v12754_v57  ;;  %v16147_v57 = vld [vmem:[%s17218_s20 + $0x830] sm:$0xff] }
 0x5b4   : > { %v13150_v62 = vadd.f32 %v18045_v51, %v12950_v60 }
 0x5b6   : > { %v13346_v63 = vmax.f32 %v13150_v62, 0.0 }
 0x5b7   : > { %v11745_v0 = vpop.f32.mrf.mxu2  ;;  %v12235_v1 = vpop.f32.mrf.mxu3 }
 0x5b8   : > { %v13542_v4 = vpack.c.bf16 %v13346_v63, %v13346_v63  ;;  %v12755_v6 = vmax.f32 %v11745_v0, %v12235_v1  ;;  %v10768_v7 = vpop.f32.mrf.mxu0  ;;  %v11258_v8 = vpop.f32.mrf.mxu1 }
 0x5b9   : > { %v12560_v14 = vmax.f32 %v10768_v7, %v11258_v8 }
 0x5ba   : > { %13739 = vst.msk [vmem:[%s17303_s24 + $0x1b8] sm:$0xf] %vm13628_vm3, %v13542_v4  ;;  %v12951_v11 = vmax.f32 %v12559_v5, %v12755_v6 }
 0x5bb   : > { %15554 = vmatmul.msk.bf16.gmra.mxu0 %vm9295_vm2, %v15949_v2  ;;  %15652 = vmatmul.msk.bf16.gmra.mxu1 %vm9295_vm2, %v16047_v3 }
 0x5bc   : > { %v13151_v12 = vadd.f32 %v18045_v51, %v12951_v11  ;;  %15750 = vmatmul.msk.bf16.gmra.mxu2 %vm9295_vm2, %v16145_v9  ;;  %15848 = vmatmul.msk.bf16.gmra.mxu3 %vm9295_vm2, %v16243_v10  ;;  %v15952_v11 = vld [vmem:[%s17218_s20 + $0x218] sm:$0xff] }
 0x5be   : > { %v13347_v13 = vmax.f32 %v13151_v12, 0.0  ;;  %v16050_v12 = vld [vmem:[%s17218_s20 + $0x528] sm:$0xff] }
 0x5bf   : > { %v11748_v15 = vpop.f32.mrf.mxu2  ;;  %v12238_v16 = vpop.f32.mrf.mxu3 }
 0x5c0   : > { %v13543_v17 = vpack.c.bf16 %v13347_v13, %v13347_v13  ;;  %v12756_v18 = vmax.f32 %v11748_v15, %v12238_v16  ;;  %v10770_v19 = vpop.f32.mrf.mxu0  ;;  %v11260_v20 = vpop.f32.mrf.mxu1 }
 0x5c1   : > { %v12561_v29 = vmax.f32 %v10770_v19, %v11260_v20  ;;  %v16246_v19 = vld [vmem:[%s17218_s20 + $0xb48] sm:$0xff] }
 0x5c2   : > { %13740 = vst.msk [vmem:[%s17303_s24 + $0x1bc] sm:$0xf] %vm13628_vm3, %v13543_v17  ;;  %v12952_v21 = vmax.f32 %v12560_v14, %v12756_v18  ;;  %v16148_v18 = vld [vmem:[%s17218_s20 + $0x838] sm:$0xff] }
 0x5c4   : > { %v13152_v22 = vadd.f32 %v18045_v51, %v12952_v21 }
 0x5c6   : > { %v13348_v23 = vmax.f32 %v13152_v22, 0.0 }
 0x5c7   : > { %v11750_v24 = vpop.f32.mrf.mxu2  ;;  %v12240_v25 = vpop.f32.mrf.mxu3 }
 0x5c8   : > { %v13544_v28 = vpack.c.bf16 %v13348_v23, %v13348_v23  ;;  %v12757_v61 = vmax.f32 %v11750_v24, %v12240_v25  ;;  %v10773_v31 = vpop.f32.mrf.mxu0  ;;  %v11263_v32 = vpop.f32.mrf.mxu1 }
 0x5c9   : > { %v12562_v38 = vmax.f32 %v10773_v31, %v11263_v32 }
 0x5ca   : > { %13741 = vst.msk [vmem:[%s17303_s24 + $0x1c0] sm:$0xf] %vm13628_vm3, %v13544_v28  ;;  %v12953_v35 = vmax.f32 %v12561_v29, %v12757_v61 }
 0x5cb   : > { %15555 = vmatmul.msk.bf16.gmra.mxu0 %vm9295_vm2, %v15950_v26  ;;  %15653 = vmatmul.msk.bf16.gmra.mxu1 %vm9295_vm2, %v16048_v27 }
 0x5cc   : > { %v13153_v36 = vadd.f32 %v18045_v51, %v12953_v35  ;;  %15751 = vmatmul.msk.bf16.gmra.mxu2 %vm9295_vm2, %v16146_v33  ;;  %15849 = vmatmul.msk.bf16.gmra.mxu3 %vm9295_vm2, %v16244_v34  ;;  %v15953_v35 = vld [vmem:[%s17218_s20 + $0x220] sm:$0xff] }
 0x5ce   : > { %v13349_v37 = vmax.f32 %v13153_v36, 0.0  ;;  %v16051_v36 = vld [vmem:[%s17218_s20 + $0x530] sm:$0xff] }
 0x5cf   : > { %v11753_v39 = vpop.f32.mrf.mxu2  ;;  %v12243_v40 = vpop.f32.mrf.mxu3 }
 0x5d0   : > { %v13545_v41 = vpack.c.bf16 %v13349_v37, %v13349_v37  ;;  %v12758_v42 = vmax.f32 %v11753_v39, %v12243_v40  ;;  %v10775_v43 = vpop.f32.mrf.mxu0  ;;  %v11265_v44 = vpop.f32.mrf.mxu1 }
 0x5d1   : > { %v12563_v53 = vmax.f32 %v10775_v43, %v11265_v44  ;;  %v16247_v43 = vld [vmem:[%s17218_s20 + $0xb50] sm:$0xff] }
 0x5d2   : > { %13742 = vst.msk [vmem:[%s17303_s24 + $0x1c4] sm:$0xf] %vm13628_vm3, %v13545_v41  ;;  %v12954_v45 = vmax.f32 %v12562_v38, %v12758_v42  ;;  %v16149_v42 = vld [vmem:[%s17218_s20 + $0x840] sm:$0xff] }
 0x5d4   : > { %v13154_v46 = vadd.f32 %v18045_v51, %v12954_v45 }
 0x5d6   : > { %v13350_v47 = vmax.f32 %v13154_v46, 0.0 }
 0x5d7   : > { %v11755_v48 = vpop.f32.mrf.mxu2  ;;  %v12245_v49 = vpop.f32.mrf.mxu3 }
 0x5d8   : > { %v13546_v52 = vpack.c.bf16 %v13350_v47, %v13350_v47  ;;  %v12759_v54 = vmax.f32 %v11755_v48, %v12245_v49  ;;  %v10778_v55 = vpop.f32.mrf.mxu0  ;;  %v11268_v56 = vpop.f32.mrf.mxu1 }
 0x5d9   : > { %v12564_v63 = vmax.f32 %v10778_v55, %v11268_v56 }
 0x5da   : > { %13743 = vst.msk [vmem:[%s17303_s24 + $0x1c8] sm:$0xf] %vm13628_vm3, %v13546_v52  ;;  %v12955_v59 = vmax.f32 %v12563_v53, %v12759_v54 }
 0x5db   : > { %15556 = vmatmul.msk.bf16.gmra.mxu0 %vm9295_vm2, %v15951_v50  ;;  %15654 = vmatmul.msk.bf16.gmra.mxu1 %vm9295_vm2, %v16049_v30 }
 0x5dc   : > { %v13155_v60 = vadd.f32 %v18045_v51, %v12955_v59  ;;  %15752 = vmatmul.msk.bf16.gmra.mxu2 %vm9295_vm2, %v16147_v57  ;;  %15850 = vmatmul.msk.bf16.gmra.mxu3 %vm9295_vm2, %v16245_v58  ;;  %v15954_v59 = vld [vmem:[%s17218_s20 + $0x228] sm:$0xff] }
 0x5de   : > { %v13351_v62 = vmax.f32 %v13155_v60, 0.0  ;;  %v16052_v60 = vld [vmem:[%s17218_s20 + $0x538] sm:$0xff] }
 0x5df   : > { %v11758_v0 = vpop.f32.mrf.mxu2  ;;  %v12248_v1 = vpop.f32.mrf.mxu3 }
 0x5e0   : > { %v13547_v2 = vpack.c.bf16 %v13351_v62, %v13351_v62  ;;  %v12760_v3 = vmax.f32 %v11758_v0, %v12248_v1  ;;  %v10780_v4 = vpop.f32.mrf.mxu0  ;;  %v11270_v5 = vpop.f32.mrf.mxu1 }
 0x5e1   : > { %v12565_v14 = vmax.f32 %v10780_v4, %v11270_v5  ;;  %v16248_v4 = vld [vmem:[%s17218_s20 + $0xb58] sm:$0xff] }
 0x5e2   : > { %13744 = vst.msk [vmem:[%s17303_s24 + $0x1cc] sm:$0xf] %vm13628_vm3, %v13547_v2  ;;  %v12956_v6 = vmax.f32 %v12564_v63, %v12760_v3  ;;  %v16150_v3 = vld [vmem:[%s17218_s20 + $0x848] sm:$0xff] }
 0x5e4   : > { %v13156_v7 = vadd.f32 %v18045_v51, %v12956_v6 }
 0x5e6   : > { %v13352_v8 = vmax.f32 %v13156_v7, 0.0 }
 0x5e7   : > { %v11760_v9 = vpop.f32.mrf.mxu2  ;;  %v12250_v10 = vpop.f32.mrf.mxu3 }
 0x5e8   : > { %v13548_v13 = vpack.c.bf16 %v13352_v8, %v13352_v8  ;;  %v12761_v15 = vmax.f32 %v11760_v9, %v12250_v10  ;;  %v10783_v16 = vpop.f32.mrf.mxu0  ;;  %v11273_v17 = vpop.f32.mrf.mxu1 }
 0x5e9   : > { %v12566_v23 = vmax.f32 %v10783_v16, %v11273_v17 }
 0x5ea   : > { %13745 = vst.msk [vmem:[%s17303_s24 + $0x1d0] sm:$0xf] %vm13628_vm3, %v13548_v13  ;;  %v12957_v20 = vmax.f32 %v12565_v14, %v12761_v15 }
 0x5eb   : > { %15557 = vmatmul.msk.bf16.gmra.mxu0 %vm9295_vm2, %v15952_v11  ;;  %15655 = vmatmul.msk.bf16.gmra.mxu1 %vm9295_vm2, %v16050_v12 }
 0x5ec   : > { %v13157_v21 = vadd.f32 %v18045_v51, %v12957_v20  ;;  %15753 = vmatmul.msk.bf16.gmra.mxu2 %vm9295_vm2, %v16148_v18  ;;  %15851 = vmatmul.msk.bf16.gmra.mxu3 %vm9295_vm2, %v16246_v19  ;;  %v15955_v20 = vld [vmem:[%s17218_s20 + $0x230] sm:$0xff] }
 0x5ee   : > { %v13353_v22 = vmax.f32 %v13157_v21, 0.0  ;;  %v16053_v21 = vld [vmem:[%s17218_s20 + $0x540] sm:$0xff] }
 0x5ef   : > { %v11763_v24 = vpop.f32.mrf.mxu2  ;;  %v12253_v25 = vpop.f32.mrf.mxu3 }
 0x5f0   : > { %v13549_v26 = vpack.c.bf16 %v13353_v22, %v13353_v22  ;;  %v12762_v27 = vmax.f32 %v11763_v24, %v12253_v25  ;;  %v10785_v28 = vpop.f32.mrf.mxu0  ;;  %v11275_v29 = vpop.f32.mrf.mxu1 }
 0x5f1   : > { %v12567_v38 = vmax.f32 %v10785_v28, %v11275_v29  ;;  %v16249_v28 = vld [vmem:[%s17218_s20 + $0xb60] sm:$0xff] }
 0x5f2   : > { %13746 = vst.msk [vmem:[%s17303_s24 + $0x1d4] sm:$0xf] %vm13628_vm3, %v13549_v26  ;;  %v12958_v61 = vmax.f32 %v12566_v23, %v12762_v27  ;;  %v16151_v27 = vld [vmem:[%s17218_s20 + $0x850] sm:$0xff] }
 0x5f4   : > { %v13158_v31 = vadd.f32 %v18045_v51, %v12958_v61 }
 0x5f6   : > { %v13354_v32 = vmax.f32 %v13158_v31, 0.0 }
 0x5f7   : > { %v11765_v33 = vpop.f32.mrf.mxu2  ;;  %v12255_v34 = vpop.f32.mrf.mxu3 }
 0x5f8   : > { %v13550_v37 = vpack.c.bf16 %v13354_v32, %v13354_v32  ;;  %v12763_v39 = vmax.f32 %v11765_v33, %v12255_v34  ;;  %v10788_v40 = vpop.f32.mrf.mxu0  ;;  %v11278_v41 = vpop.f32.mrf.mxu1 }
 0x5f9   : > { %v12568_v47 = vmax.f32 %v10788_v40, %v11278_v41 }
 0x5fa   : > { %13747 = vst.msk [vmem:[%s17303_s24 + $0x1d8] sm:$0xf] %vm13628_vm3, %v13550_v37  ;;  %v12959_v44 = vmax.f32 %v12567_v38, %v12763_v39 }
 0x5fb   : > { %15558 = vmatmul.msk.bf16.gmra.mxu0 %vm9295_vm2, %v15953_v35  ;;  %15656 = vmatmul.msk.bf16.gmra.mxu1 %vm9295_vm2, %v16051_v36 }
 0x5fc   : > { %v13159_v45 = vadd.f32 %v18045_v51, %v12959_v44  ;;  %15754 = vmatmul.msk.bf16.gmra.mxu2 %vm9295_vm2, %v16149_v42  ;;  %15852 = vmatmul.msk.bf16.gmra.mxu3 %vm9295_vm2, %v16247_v43  ;;  %v15956_v44 = vld [vmem:[%s17218_s20 + $0x238] sm:$0xff] }
 0x5fe   : > { %v13355_v46 = vmax.f32 %v13159_v45, 0.0  ;;  %v16054_v45 = vld [vmem:[%s17218_s20 + $0x548] sm:$0xff] }
 0x5ff   : > { %v11768_v48 = vpop.f32.mrf.mxu2  ;;  %v12258_v49 = vpop.f32.mrf.mxu3 }
 0x600   : > { %v13551_v50 = vpack.c.bf16 %v13355_v46, %v13355_v46  ;;  %v12764_v30 = vmax.f32 %v11768_v48, %v12258_v49  ;;  %v10790_v52 = vpop.f32.mrf.mxu0  ;;  %v11280_v53 = vpop.f32.mrf.mxu1 }
 0x601   : > { %v12569_v63 = vmax.f32 %v10790_v52, %v11280_v53  ;;  %v16250_v52 = vld [vmem:[%s17218_s20 + $0xb68] sm:$0xff] }
 0x602   : > { %13748 = vst.msk [vmem:[%s17303_s24 + $0x1dc] sm:$0xf] %vm13628_vm3, %v13551_v50  ;;  %v12960_v54 = vmax.f32 %v12568_v47, %v12764_v30  ;;  %v16152_v30 = vld [vmem:[%s17218_s20 + $0x858] sm:$0xff] }
 0x604   : > { %v13160_v55 = vadd.f32 %v18045_v51, %v12960_v54 }
 0x606   : > { %v13356_v56 = vmax.f32 %v13160_v55, 0.0 }
 0x607   : > { %v11770_v57 = vpop.f32.mrf.mxu2  ;;  %v12260_v58 = vpop.f32.mrf.mxu3 }
 0x608   : > { %v13552_v62 = vpack.c.bf16 %v13356_v56, %v13356_v56  ;;  %v12765_v0 = vmax.f32 %v11770_v57, %v12260_v58  ;;  %v10793_v1 = vpop.f32.mrf.mxu0  ;;  %v11283_v2 = vpop.f32.mrf.mxu1 }
 0x609   : > { %v12570_v8 = vmax.f32 %v10793_v1, %v11283_v2 }
 0x60a   : > { %13749 = vst.msk [vmem:[%s17303_s24 + $0x1e0] sm:$0xf] %vm13628_vm3, %v13552_v62  ;;  %v12961_v5 = vmax.f32 %v12569_v63, %v12765_v0 }
 0x60b   : > { %15559 = vmatmul.msk.bf16.gmra.mxu0 %vm9295_vm2, %v15954_v59  ;;  %15657 = vmatmul.msk.bf16.gmra.mxu1 %vm9295_vm2, %v16052_v60 }
 0x60c   : > { %v13161_v6 = vadd.f32 %v18045_v51, %v12961_v5  ;;  %15755 = vmatmul.msk.bf16.gmra.mxu2 %vm9295_vm2, %v16150_v3  ;;  %15853 = vmatmul.msk.bf16.gmra.mxu3 %vm9295_vm2, %v16248_v4  ;;  %v15957_v5 = vld [vmem:[%s17218_s20 + $0x240] sm:$0xff] }
 0x60e   : > { %v13357_v7 = vmax.f32 %v13161_v6, 0.0  ;;  %v16055_v6 = vld [vmem:[%s17218_s20 + $0x550] sm:$0xff] }
 0x60f   : > { %v11773_v9 = vpop.f32.mrf.mxu2  ;;  %v12263_v10 = vpop.f32.mrf.mxu3 }
 0x610   : > { %v13553_v11 = vpack.c.bf16 %v13357_v7, %v13357_v7  ;;  %v12766_v12 = vmax.f32 %v11773_v9, %v12263_v10  ;;  %v10795_v13 = vpop.f32.mrf.mxu0  ;;  %v11285_v14 = vpop.f32.mrf.mxu1 }
 0x611   : > { %v12571_v23 = vmax.f32 %v10795_v13, %v11285_v14  ;;  %v16251_v13 = vld [vmem:[%s17218_s20 + $0xb70] sm:$0xff] }
 0x612   : > { %13750 = vst.msk [vmem:[%s17303_s24 + $0x1e4] sm:$0xf] %vm13628_vm3, %v13553_v11  ;;  %v12962_v15 = vmax.f32 %v12570_v8, %v12766_v12  ;;  %v16153_v12 = vld [vmem:[%s17218_s20 + $0x860] sm:$0xff] }
 0x614   : > { %v13162_v16 = vadd.f32 %v18045_v51, %v12962_v15 }
 0x616   : > { %v13358_v17 = vmax.f32 %v13162_v16, 0.0 }
 0x617   : > { %v11775_v18 = vpop.f32.mrf.mxu2  ;;  %v12265_v19 = vpop.f32.mrf.mxu3 }
 0x618   : > { %v13554_v22 = vpack.c.bf16 %v13358_v17, %v13358_v17  ;;  %v12767_v24 = vmax.f32 %v11775_v18, %v12265_v19  ;;  %v10798_v25 = vpop.f32.mrf.mxu0  ;;  %v11288_v26 = vpop.f32.mrf.mxu1 }
 0x619   : > { %v12572_v32 = vmax.f32 %v10798_v25, %v11288_v26 }
 0x61a   : > { %13751 = vst.msk [vmem:[%s17303_s24 + $0x1e8] sm:$0xf] %vm13628_vm3, %v13554_v22  ;;  %v12963_v29 = vmax.f32 %v12571_v23, %v12767_v24 }
 0x61b   : > { %15560 = vmatmul.msk.bf16.gmra.mxu0 %vm9295_vm2, %v15955_v20  ;;  %15658 = vmatmul.msk.bf16.gmra.mxu1 %vm9295_vm2, %v16053_v21 }
 0x61c   : > { %v13163_v61 = vadd.f32 %v18045_v51, %v12963_v29  ;;  %15756 = vmatmul.msk.bf16.gmra.mxu2 %vm9295_vm2, %v16151_v27  ;;  %15854 = vmatmul.msk.bf16.gmra.mxu3 %vm9295_vm2, %v16249_v28  ;;  %v15958_v29 = vld [vmem:[%s17218_s20 + $0x248] sm:$0xff] }
 0x61e   : > { %v13359_v31 = vmax.f32 %v13163_v61, 0.0  ;;  %v16056_v61 = vld [vmem:[%s17218_s20 + $0x558] sm:$0xff] }
 0x61f   : > { %v11778_v33 = vpop.f32.mrf.mxu2  ;;  %v12268_v34 = vpop.f32.mrf.mxu3 }
 0x620   : > { %v13555_v35 = vpack.c.bf16 %v13359_v31, %v13359_v31  ;;  %v12768_v36 = vmax.f32 %v11778_v33, %v12268_v34  ;;  %v10800_v37 = vpop.f32.mrf.mxu0  ;;  %v11290_v38 = vpop.f32.mrf.mxu1 }
 0x621   : > { %v12573_v47 = vmax.f32 %v10800_v37, %v11290_v38  ;;  %v16252_v37 = vld [vmem:[%s17218_s20 + $0xb78] sm:$0xff] }
 0x622   : > { %13752 = vst.msk [vmem:[%s17303_s24 + $0x1ec] sm:$0xf] %vm13628_vm3, %v13555_v35  ;;  %v12964_v39 = vmax.f32 %v12572_v32, %v12768_v36  ;;  %v16154_v36 = vld [vmem:[%s17218_s20 + $0x868] sm:$0xff] }
 0x624   : > { %v13164_v40 = vadd.f32 %v18045_v51, %v12964_v39 }
 0x626   : > { %v13360_v41 = vmax.f32 %v13164_v40, 0.0 }
 0x627   : > { %v11780_v42 = vpop.f32.mrf.mxu2  ;;  %v12270_v43 = vpop.f32.mrf.mxu3 }
 0x628   : > { %v13556_v46 = vpack.c.bf16 %v13360_v41, %v13360_v41  ;;  %v12769_v48 = vmax.f32 %v11780_v42, %v12270_v43  ;;  %v10803_v49 = vpop.f32.mrf.mxu0  ;;  %v11293_v50 = vpop.f32.mrf.mxu1 }
 0x629   : > { %v12574_v56 = vmax.f32 %v10803_v49, %v11293_v50 }
 0x62a   : > { %13753 = vst.msk [vmem:[%s17303_s24 + $0x1f0] sm:$0xf] %vm13628_vm3, %v13556_v46  ;;  %v12965_v53 = vmax.f32 %v12573_v47, %v12769_v48 }
 0x62b   : > { %15561 = vmatmul.msk.bf16.gmra.mxu0 %vm9295_vm2, %v15956_v44  ;;  %15659 = vmatmul.msk.bf16.gmra.mxu1 %vm9295_vm2, %v16054_v45 }
 0x62c   : > { %v13165_v54 = vadd.f32 %v18045_v51, %v12965_v53  ;;  %15757 = vmatmul.msk.bf16.gmra.mxu2 %vm9295_vm2, %v16152_v30  ;;  %15855 = vmatmul.msk.bf16.gmra.mxu3 %vm9295_vm2, %v16250_v52  ;;  %v15959_v53 = vld [vmem:[%s17218_s20 + $0x250] sm:$0xff] }
 0x62e   : > { %v13361_v55 = vmax.f32 %v13165_v54, 0.0  ;;  %v16057_v54 = vld [vmem:[%s17218_s20 + $0x560] sm:$0xff] }
 0x62f   : > { %v11783_v57 = vpop.f32.mrf.mxu2  ;;  %v12273_v58 = vpop.f32.mrf.mxu3 }
 0x630   : > { %v13557_v59 = vpack.c.bf16 %v13361_v55, %v13361_v55  ;;  %v12770_v60 = vmax.f32 %v11783_v57, %v12273_v58  ;;  %v10805_v62 = vpop.f32.mrf.mxu0  ;;  %v11295_v63 = vpop.f32.mrf.mxu1 }
 0x631   : > { %v12575_v8 = vmax.f32 %v10805_v62, %v11295_v63  ;;  %v16253_v62 = vld [vmem:[%s17218_s20 + $0xb80] sm:$0xff] }
 0x632   : > { %13754 = vst.msk [vmem:[%s17303_s24 + $0x1f4] sm:$0xf] %vm13628_vm3, %v13557_v59  ;;  %v12966_v0 = vmax.f32 %v12574_v56, %v12770_v60  ;;  %v16155_v60 = vld [vmem:[%s17218_s20 + $0x870] sm:$0xff] }
 0x634   : > { %v13166_v1 = vadd.f32 %v18045_v51, %v12966_v0 }
 0x636   : > { %v13362_v2 = vmax.f32 %v13166_v1, 0.0 }
 0x637   : > { %v11785_v3 = vpop.f32.mrf.mxu2  ;;  %v12275_v4 = vpop.f32.mrf.mxu3 }
 0x638   : > { %v13558_v7 = vpack.c.bf16 %v13362_v2, %v13362_v2  ;;  %v12771_v9 = vmax.f32 %v11785_v3, %v12275_v4  ;;  %v10808_v10 = vpop.f32.mrf.mxu0  ;;  %v11298_v11 = vpop.f32.mrf.mxu1 }
 0x639   : > { %v12576_v17 = vmax.f32 %v10808_v10, %v11298_v11 }
 0x63a   : > { %13755 = vst.msk [vmem:[%s17303_s24 + $0x1f8] sm:$0xf] %vm13628_vm3, %v13558_v7  ;;  %v12967_v14 = vmax.f32 %v12575_v8, %v12771_v9 }
 0x63b   : > { %15562 = vmatmul.msk.bf16.gmra.mxu0 %vm9295_vm2, %v15957_v5  ;;  %15660 = vmatmul.msk.bf16.gmra.mxu1 %vm9295_vm2, %v16055_v6 }
 0x63c   : > { %v13167_v15 = vadd.f32 %v18045_v51, %v12967_v14  ;;  %15758 = vmatmul.msk.bf16.gmra.mxu2 %vm9295_vm2, %v16153_v12  ;;  %15856 = vmatmul.msk.bf16.gmra.mxu3 %vm9295_vm2, %v16251_v13  ;;  %v15960_v14 = vld [vmem:[%s17218_s20 + $0x258] sm:$0xff] }
 0x63e   : > { %v13363_v16 = vmax.f32 %v13167_v15, 0.0  ;;  %v16058_v15 = vld [vmem:[%s17218_s20 + $0x568] sm:$0xff] }
 0x63f   : > { %v11788_v18 = vpop.f32.mrf.mxu2  ;;  %v12278_v19 = vpop.f32.mrf.mxu3 }
 0x640   : > { %v13559_v20 = vpack.c.bf16 %v13363_v16, %v13363_v16  ;;  %v12772_v21 = vmax.f32 %v11788_v18, %v12278_v19  ;;  %v10810_v22 = vpop.f32.mrf.mxu0  ;;  %v11300_v23 = vpop.f32.mrf.mxu1 }
 0x641   : > { %v12577_v32 = vmax.f32 %v10810_v22, %v11300_v23  ;;  %v16254_v22 = vld [vmem:[%s17218_s20 + $0xb88] sm:$0xff] }
 0x642   : > { %13756 = vst.msk [vmem:[%s17303_s24 + $0x1fc] sm:$0xf] %vm13628_vm3, %v13559_v20  ;;  %v12968_v24 = vmax.f32 %v12576_v17, %v12772_v21  ;;  %v16156_v21 = vld [vmem:[%s17218_s20 + $0x878] sm:$0xff] }
 0x644   : > { %v13168_v25 = vadd.f32 %v18045_v51, %v12968_v24 }
 0x646   : > { %v13364_v26 = vmax.f32 %v13168_v25, 0.0 }
 0x647   : > { %v11790_v27 = vpop.f32.mrf.mxu2  ;;  %v12280_v28 = vpop.f32.mrf.mxu3 }
 0x648   : > { %v13560_v31 = vpack.c.bf16 %v13364_v26, %v13364_v26  ;;  %v12773_v33 = vmax.f32 %v11790_v27, %v12280_v28  ;;  %v10813_v34 = vpop.f32.mrf.mxu0  ;;  %v11303_v35 = vpop.f32.mrf.mxu1 }
 0x649   : > { %v12578_v41 = vmax.f32 %v10813_v34, %v11303_v35 }
 0x64a   : > { %13757 = vst.msk [vmem:[%s17303_s24 + $0x200] sm:$0xf] %vm13628_vm3, %v13560_v31  ;;  %v12969_v38 = vmax.f32 %v12577_v32, %v12773_v33 }
 0x64b   : > { %15563 = vmatmul.msk.bf16.gmra.mxu0 %vm9295_vm2, %v15958_v29  ;;  %15661 = vmatmul.msk.bf16.gmra.mxu1 %vm9295_vm2, %v16056_v61 }
 0x64c   : > { %v13169_v39 = vadd.f32 %v18045_v51, %v12969_v38  ;;  %15759 = vmatmul.msk.bf16.gmra.mxu2 %vm9295_vm2, %v16154_v36  ;;  %15857 = vmatmul.msk.bf16.gmra.mxu3 %vm9295_vm2, %v16252_v37  ;;  %v15961_v38 = vld [vmem:[%s17218_s20 + $0x260] sm:$0xff] }
 0x64e   : > { %v13365_v40 = vmax.f32 %v13169_v39, 0.0  ;;  %v16059_v39 = vld [vmem:[%s17218_s20 + $0x570] sm:$0xff] }
 0x64f   : > { %v11793_v42 = vpop.f32.mrf.mxu2  ;;  %v12283_v43 = vpop.f32.mrf.mxu3 }
 0x650   : > { %v13561_v44 = vpack.c.bf16 %v13365_v40, %v13365_v40  ;;  %v12774_v45 = vmax.f32 %v11793_v42, %v12283_v43  ;;  %v10815_v46 = vpop.f32.mrf.mxu0  ;;  %v11305_v47 = vpop.f32.mrf.mxu1 }
 0x651   : > { %v12579_v56 = vmax.f32 %v10815_v46, %v11305_v47  ;;  %v16255_v46 = vld [vmem:[%s17218_s20 + $0xb90] sm:$0xff] }
 0x652   : > { %13758 = vst.msk [vmem:[%s17303_s24 + $0x204] sm:$0xf] %vm13628_vm3, %v13561_v44  ;;  %v12970_v48 = vmax.f32 %v12578_v41, %v12774_v45  ;;  %v16157_v45 = vld [vmem:[%s17218_s20 + $0x880] sm:$0xff] }
 0x654   : > { %v13170_v49 = vadd.f32 %v18045_v51, %v12970_v48 }
 0x656   : > { %v13366_v50 = vmax.f32 %v13170_v49, 0.0 }
 0x657   : > { %v11795_v30 = vpop.f32.mrf.mxu2  ;;  %v12285_v52 = vpop.f32.mrf.mxu3 }
 0x658   : > { %v13562_v55 = vpack.c.bf16 %v13366_v50, %v13366_v50  ;;  %v12775_v57 = vmax.f32 %v11795_v30, %v12285_v52  ;;  %v10818_v58 = vpop.f32.mrf.mxu0  ;;  %v11308_v59 = vpop.f32.mrf.mxu1 }
 0x659   : > { %v12580_v2 = vmax.f32 %v10818_v58, %v11308_v59 }
 0x65a   : > { %13759 = vst.msk [vmem:[%s17303_s24 + $0x208] sm:$0xf] %vm13628_vm3, %v13562_v55  ;;  %v12971_v63 = vmax.f32 %v12579_v56, %v12775_v57 }
 0x65b   : > { %15564 = vmatmul.msk.bf16.gmra.mxu0 %vm9295_vm2, %v15959_v53  ;;  %15662 = vmatmul.msk.bf16.gmra.mxu1 %vm9295_vm2, %v16057_v54 }
 0x65c   : > { %v13171_v0 = vadd.f32 %v18045_v51, %v12971_v63  ;;  %15760 = vmatmul.msk.bf16.gmra.mxu2 %vm9295_vm2, %v16155_v60  ;;  %15858 = vmatmul.msk.bf16.gmra.mxu3 %vm9295_vm2, %v16253_v62  ;;  %v15962_v63 = vld [vmem:[%s17218_s20 + $0x268] sm:$0xff] }
 0x65e   : > { %v13367_v1 = vmax.f32 %v13171_v0, 0.0  ;;  %v16060_v0 = vld [vmem:[%s17218_s20 + $0x578] sm:$0xff] }
 0x65f   : > { %v11798_v3 = vpop.f32.mrf.mxu2  ;;  %v12288_v4 = vpop.f32.mrf.mxu3 }
 0x660   : > { %v13563_v5 = vpack.c.bf16 %v13367_v1, %v13367_v1  ;;  %v12776_v6 = vmax.f32 %v11798_v3, %v12288_v4  ;;  %v10820_v7 = vpop.f32.mrf.mxu0  ;;  %v11310_v8 = vpop.f32.mrf.mxu1 }
 0x661   : > { %v12581_v17 = vmax.f32 %v10820_v7, %v11310_v8  ;;  %v16256_v7 = vld [vmem:[%s17218_s20 + $0xb98] sm:$0xff] }
 0x662   : > { %13760 = vst.msk [vmem:[%s17303_s24 + $0x20c] sm:$0xf] %vm13628_vm3, %v13563_v5  ;;  %v12972_v9 = vmax.f32 %v12580_v2, %v12776_v6  ;;  %v16158_v6 = vld [vmem:[%s17218_s20 + $0x888] sm:$0xff] }
 0x664   : > { %v13172_v10 = vadd.f32 %v18045_v51, %v12972_v9 }
 0x666   : > { %v13368_v11 = vmax.f32 %v13172_v10, 0.0 }
 0x667   : > { %v11800_v12 = vpop.f32.mrf.mxu2  ;;  %v12290_v13 = vpop.f32.mrf.mxu3 }
 0x668   : > { %v13564_v16 = vpack.c.bf16 %v13368_v11, %v13368_v11  ;;  %v12777_v18 = vmax.f32 %v11800_v12, %v12290_v13  ;;  %v10823_v19 = vpop.f32.mrf.mxu0  ;;  %v11313_v20 = vpop.f32.mrf.mxu1 }
 0x669   : > { %v12582_v26 = vmax.f32 %v10823_v19, %v11313_v20 }
 0x66a   : > { %13761 = vst.msk [vmem:[%s17303_s24 + $0x210] sm:$0xf] %vm13628_vm3, %v13564_v16  ;;  %v12973_v23 = vmax.f32 %v12581_v17, %v12777_v18 }
 0x66b   : > { %15565 = vmatmul.msk.bf16.gmra.mxu0 %vm9295_vm2, %v15960_v14  ;;  %15663 = vmatmul.msk.bf16.gmra.mxu1 %vm9295_vm2, %v16058_v15 }
 0x66c   : > { %v13173_v24 = vadd.f32 %v18045_v51, %v12973_v23  ;;  %15761 = vmatmul.msk.bf16.gmra.mxu2 %vm9295_vm2, %v16156_v21  ;;  %15859 = vmatmul.msk.bf16.gmra.mxu3 %vm9295_vm2, %v16254_v22  ;;  %v15963_v23 = vld [vmem:[%s17218_s20 + $0x270] sm:$0xff] }
 0x66e   : > { %v13369_v25 = vmax.f32 %v13173_v24, 0.0  ;;  %v16061_v24 = vld [vmem:[%s17218_s20 + $0x580] sm:$0xff] }
 0x66f   : > { %v11803_v27 = vpop.f32.mrf.mxu2  ;;  %v12293_v28 = vpop.f32.mrf.mxu3 }
 0x670   : > { %v13565_v29 = vpack.c.bf16 %v13369_v25, %v13369_v25  ;;  %v12778_v61 = vmax.f32 %v11803_v27, %v12293_v28  ;;  %v10825_v31 = vpop.f32.mrf.mxu0  ;;  %v11315_v32 = vpop.f32.mrf.mxu1 }
 0x671   : > { %v12583_v41 = vmax.f32 %v10825_v31, %v11315_v32  ;;  %v16257_v31 = vld [vmem:[%s17218_s20 + $0xba0] sm:$0xff] }
 0x672   : > { %13762 = vst.msk [vmem:[%s17303_s24 + $0x214] sm:$0xf] %vm13628_vm3, %v13565_v29  ;;  %v12974_v33 = vmax.f32 %v12582_v26, %v12778_v61  ;;  %v16159_v61 = vld [vmem:[%s17218_s20 + $0x890] sm:$0xff] }
 0x674   : > { %v13174_v34 = vadd.f32 %v18045_v51, %v12974_v33 }
 0x676   : > { %v13370_v35 = vmax.f32 %v13174_v34, 0.0 }
 0x677   : > { %v11805_v36 = vpop.f32.mrf.mxu2  ;;  %v12295_v37 = vpop.f32.mrf.mxu3 }
 0x678   : > { %v13566_v40 = vpack.c.bf16 %v13370_v35, %v13370_v35  ;;  %v12779_v42 = vmax.f32 %v11805_v36, %v12295_v37  ;;  %v10828_v43 = vpop.f32.mrf.mxu0  ;;  %v11318_v44 = vpop.f32.mrf.mxu1 }
 0x679   : > { %v12584_v50 = vmax.f32 %v10828_v43, %v11318_v44 }
 0x67a   : > { %13763 = vst.msk [vmem:[%s17303_s24 + $0x218] sm:$0xf] %vm13628_vm3, %v13566_v40  ;;  %v12975_v47 = vmax.f32 %v12583_v41, %v12779_v42 }
 0x67b   : > { %15566 = vmatmul.msk.bf16.gmra.mxu0 %vm9295_vm2, %v15961_v38  ;;  %15664 = vmatmul.msk.bf16.gmra.mxu1 %vm9295_vm2, %v16059_v39 }
 0x67c   : > { %v13175_v48 = vadd.f32 %v18045_v51, %v12975_v47  ;;  %15762 = vmatmul.msk.bf16.gmra.mxu2 %vm9295_vm2, %v16157_v45  ;;  %15860 = vmatmul.msk.bf16.gmra.mxu3 %vm9295_vm2, %v16255_v46  ;;  %v15964_v47 = vld [vmem:[%s17218_s20 + $0x278] sm:$0xff] }
 0x67e   : > { %v13371_v49 = vmax.f32 %v13175_v48, 0.0  ;;  %v16062_v48 = vld [vmem:[%s17218_s20 + $0x588] sm:$0xff] }
 0x67f   : > { %v11808_v30 = vpop.f32.mrf.mxu2  ;;  %v12298_v52 = vpop.f32.mrf.mxu3 }
 0x680   : > { %v13567_v53 = vpack.c.bf16 %v13371_v49, %v13371_v49  ;;  %v12780_v54 = vmax.f32 %v11808_v30, %v12298_v52  ;;  %v10830_v55 = vpop.f32.mrf.mxu0  ;;  %v11320_v56 = vpop.f32.mrf.mxu1 }
 0x681   : > { %v12585_v2 = vmax.f32 %v10830_v55, %v11320_v56  ;;  %v16258_v55 = vld [vmem:[%s17218_s20 + $0xba8] sm:$0xff] }
 0x682   : > { %13764 = vst.msk [vmem:[%s17303_s24 + $0x21c] sm:$0xf] %vm13628_vm3, %v13567_v53  ;;  %v12976_v57 = vmax.f32 %v12584_v50, %v12780_v54  ;;  %v16160_v54 = vld [vmem:[%s17218_s20 + $0x898] sm:$0xff] }
 0x684   : > { %v13176_v58 = vadd.f32 %v18045_v51, %v12976_v57 }
 0x686   : > { %v13372_v59 = vmax.f32 %v13176_v58, 0.0 }
 0x687   : > { %v11810_v60 = vpop.f32.mrf.mxu2  ;;  %v12300_v62 = vpop.f32.mrf.mxu3 }
 0x688   : > { %v13568_v1 = vpack.c.bf16 %v13372_v59, %v13372_v59  ;;  %v12781_v3 = vmax.f32 %v11810_v60, %v12300_v62  ;;  %v10833_v4 = vpop.f32.mrf.mxu0  ;;  %v11323_v5 = vpop.f32.mrf.mxu1 }
 0x689   : > { %v12586_v11 = vmax.f32 %v10833_v4, %v11323_v5 }
 0x68a   : > { %13765 = vst.msk [vmem:[%s17303_s24 + $0x220] sm:$0xf] %vm13628_vm3, %v13568_v1  ;;  %v12977_v8 = vmax.f32 %v12585_v2, %v12781_v3 }
 0x68b   : > { %15567 = vmatmul.msk.bf16.gmra.mxu0 %vm9295_vm2, %v15962_v63  ;;  %15665 = vmatmul.msk.bf16.gmra.mxu1 %vm9295_vm2, %v16060_v0 }
 0x68c   : > { %v13177_v9 = vadd.f32 %v18045_v51, %v12977_v8  ;;  %15763 = vmatmul.msk.bf16.gmra.mxu2 %vm9295_vm2, %v16158_v6  ;;  %15861 = vmatmul.msk.bf16.gmra.mxu3 %vm9295_vm2, %v16256_v7  ;;  %v15965_v8 = vld [vmem:[%s17218_s20 + $0x280] sm:$0xff] }
 0x68e   : > { %v13373_v10 = vmax.f32 %v13177_v9, 0.0  ;;  %v16063_v9 = vld [vmem:[%s17218_s20 + $0x590] sm:$0xff] }
 0x68f   : > { %v11813_v12 = vpop.f32.mrf.mxu2  ;;  %v12303_v13 = vpop.f32.mrf.mxu3 }
 0x690   : > { %v13569_v14 = vpack.c.bf16 %v13373_v10, %v13373_v10  ;;  %v12782_v15 = vmax.f32 %v11813_v12, %v12303_v13  ;;  %v10835_v16 = vpop.f32.mrf.mxu0  ;;  %v11325_v17 = vpop.f32.mrf.mxu1 }
 0x691   : > { %v12587_v26 = vmax.f32 %v10835_v16, %v11325_v17  ;;  %v16259_v16 = vld [vmem:[%s17218_s20 + $0xbb0] sm:$0xff] }
 0x692   : > { %13766 = vst.msk [vmem:[%s17303_s24 + $0x224] sm:$0xf] %vm13628_vm3, %v13569_v14  ;;  %v12978_v18 = vmax.f32 %v12586_v11, %v12782_v15  ;;  %v16161_v15 = vld [vmem:[%s17218_s20 + $0x8a0] sm:$0xff] }
 0x694   : > { %v13178_v19 = vadd.f32 %v18045_v51, %v12978_v18  ;;  %v18297_v51 = vld [vmem:[%s18641_s2] ss:$0 sm:$0xff] }
 0x696   : > { %v13374_v20 = vmax.f32 %v13178_v19, 0.0 }
 0x697   : > { %v11815_v21 = vpop.f32.mrf.mxu2  ;;  %v12305_v22 = vpop.f32.mrf.mxu3 }
 0x698   : > { %v13570_v25 = vpack.c.bf16 %v13374_v20, %v13374_v20  ;;  %v12783_v27 = vmax.f32 %v11815_v21, %v12305_v22  ;;  %v10838_v28 = vpop.f32.mrf.mxu0  ;;  %v11328_v29 = vpop.f32.mrf.mxu1 }
 0x699   : > { %v12588_v35 = vmax.f32 %v10838_v28, %v11328_v29 }
 0x69a   : > { %13767 = vst.msk [vmem:[%s17303_s24 + $0x228] sm:$0xf] %vm13628_vm3, %v13570_v25  ;;  %v12979_v32 = vmax.f32 %v12587_v26, %v12783_v27 }
 0x69b   : > { %15568 = vmatmul.msk.bf16.gmra.mxu0 %vm9295_vm2, %v15963_v23  ;;  %15666 = vmatmul.msk.bf16.gmra.mxu1 %vm9295_vm2, %v16061_v24 }
 0x69c   : > { %v13179_v33 = vadd.f32 %v18297_v51, %v12979_v32  ;;  %15764 = vmatmul.msk.bf16.gmra.mxu2 %vm9295_vm2, %v16159_v61  ;;  %15862 = vmatmul.msk.bf16.gmra.mxu3 %vm9295_vm2, %v16257_v31  ;;  %v15966_v32 = vld [vmem:[%s17218_s20 + $0x288] sm:$0xff] }
 0x69e   : > { %v13375_v34 = vmax.f32 %v13179_v33, 0.0  ;;  %v16064_v33 = vld [vmem:[%s17218_s20 + $0x598] sm:$0xff] }
 0x69f   : > { %v11818_v36 = vpop.f32.mrf.mxu2  ;;  %v12308_v37 = vpop.f32.mrf.mxu3 }
 0x6a0   : > { %v13571_v38 = vpack.c.bf16 %v13375_v34, %v13375_v34  ;;  %v12784_v39 = vmax.f32 %v11818_v36, %v12308_v37  ;;  %v10840_v40 = vpop.f32.mrf.mxu0  ;;  %v11330_v41 = vpop.f32.mrf.mxu1 }
 0x6a1   : > { %v12589_v50 = vmax.f32 %v10840_v40, %v11330_v41  ;;  %v16260_v40 = vld [vmem:[%s17218_s20 + $0xbb8] sm:$0xff] }
 0x6a2   : > { %13768 = vst.msk [vmem:[%s17303_s24 + $0x22c] sm:$0xf] %vm13628_vm3, %v13571_v38  ;;  %v12980_v42 = vmax.f32 %v12588_v35, %v12784_v39  ;;  %v16162_v39 = vld [vmem:[%s17218_s20 + $0x8a8] sm:$0xff] }
 0x6a4   : > { %v13180_v43 = vadd.f32 %v18297_v51, %v12980_v42 }
 0x6a6   : > { %v13376_v44 = vmax.f32 %v13180_v43, 0.0 }
 0x6a7   : > { %v11820_v45 = vpop.f32.mrf.mxu2  ;;  %v12310_v46 = vpop.f32.mrf.mxu3 }
 0x6a8   : > { %v13572_v49 = vpack.c.bf16 %v13376_v44, %v13376_v44  ;;  %v12785_v30 = vmax.f32 %v11820_v45, %v12310_v46  ;;  %v10843_v52 = vpop.f32.mrf.mxu0  ;;  %v11333_v53 = vpop.f32.mrf.mxu1 }
 0x6a9   : > { %v12590_v59 = vmax.f32 %v10843_v52, %v11333_v53 }
 0x6aa   : > { %13769 = vst.msk [vmem:[%s17303_s24 + $0x230] sm:$0xf] %vm13628_vm3, %v13572_v49  ;;  %v12981_v56 = vmax.f32 %v12589_v50, %v12785_v30 }
 0x6ab   : > { %15569 = vmatmul.msk.bf16.gmra.mxu0 %vm9295_vm2, %v15964_v47  ;;  %15667 = vmatmul.msk.bf16.gmra.mxu1 %vm9295_vm2, %v16062_v48 }
 0x6ac   : > { %v13181_v57 = vadd.f32 %v18297_v51, %v12981_v56  ;;  %15765 = vmatmul.msk.bf16.gmra.mxu2 %vm9295_vm2, %v16160_v54  ;;  %15863 = vmatmul.msk.bf16.gmra.mxu3 %vm9295_vm2, %v16258_v55  ;;  %v15967_v56 = vld [vmem:[%s17218_s20 + $0x290] sm:$0xff] }
 0x6ae   : > { %v13377_v58 = vmax.f32 %v13181_v57, 0.0  ;;  %v16065_v57 = vld [vmem:[%s17218_s20 + $0x5a0] sm:$0xff] }
 0x6af   : > { %v11823_v60 = vpop.f32.mrf.mxu2  ;;  %v12313_v62 = vpop.f32.mrf.mxu3 }
 0x6b0   : > { %v13573_v63 = vpack.c.bf16 %v13377_v58, %v13377_v58  ;;  %v12786_v0 = vmax.f32 %v11823_v60, %v12313_v62  ;;  %v10845_v1 = vpop.f32.mrf.mxu0  ;;  %v11335_v2 = vpop.f32.mrf.mxu1 }
 0x6b1   : > { %v12591_v11 = vmax.f32 %v10845_v1, %v11335_v2  ;;  %v16261_v1 = vld [vmem:[%s17218_s20 + $0xbc0] sm:$0xff] }
 0x6b2   : > { %13770 = vst.msk [vmem:[%s17303_s24 + $0x234] sm:$0xf] %vm13628_vm3, %v13573_v63  ;;  %v12982_v3 = vmax.f32 %v12590_v59, %v12786_v0  ;;  %v16163_v0 = vld [vmem:[%s17218_s20 + $0x8b0] sm:$0xff] }
 0x6b4   : > { %v13182_v4 = vadd.f32 %v18297_v51, %v12982_v3 }
 0x6b6   : > { %v13378_v5 = vmax.f32 %v13182_v4, 0.0 }
 0x6b7   : > { %v11825_v6 = vpop.f32.mrf.mxu2  ;;  %v12315_v7 = vpop.f32.mrf.mxu3 }
 0x6b8   : > { %v13574_v10 = vpack.c.bf16 %v13378_v5, %v13378_v5  ;;  %v12787_v12 = vmax.f32 %v11825_v6, %v12315_v7  ;;  %v10848_v13 = vpop.f32.mrf.mxu0  ;;  %v11338_v14 = vpop.f32.mrf.mxu1 }
 0x6b9   : > { %v12592_v20 = vmax.f32 %v10848_v13, %v11338_v14 }
 0x6ba   : > { %13771 = vst.msk [vmem:[%s17303_s24 + $0x238] sm:$0xf] %vm13628_vm3, %v13574_v10  ;;  %v12983_v17 = vmax.f32 %v12591_v11, %v12787_v12 }
 0x6bb   : > { %15570 = vmatmul.msk.bf16.gmra.mxu0 %vm9295_vm2, %v15965_v8  ;;  %15668 = vmatmul.msk.bf16.gmra.mxu1 %vm9295_vm2, %v16063_v9 }
 0x6bc   : > { %v13183_v18 = vadd.f32 %v18297_v51, %v12983_v17  ;;  %15766 = vmatmul.msk.bf16.gmra.mxu2 %vm9295_vm2, %v16161_v15  ;;  %15864 = vmatmul.msk.bf16.gmra.mxu3 %vm9295_vm2, %v16259_v16  ;;  %v15968_v17 = vld [vmem:[%s17218_s20 + $0x298] sm:$0xff] }
 0x6be   : > { %v13379_v19 = vmax.f32 %v13183_v18, 0.0  ;;  %v16066_v18 = vld [vmem:[%s17218_s20 + $0x5a8] sm:$0xff] }
 0x6bf   : > { %v11828_v21 = vpop.f32.mrf.mxu2  ;;  %v12318_v22 = vpop.f32.mrf.mxu3 }
 0x6c0   : > { %v13575_v23 = vpack.c.bf16 %v13379_v19, %v13379_v19  ;;  %v12788_v24 = vmax.f32 %v11828_v21, %v12318_v22  ;;  %v10850_v25 = vpop.f32.mrf.mxu0  ;;  %v11340_v26 = vpop.f32.mrf.mxu1 }
 0x6c1   : > { %v12593_v35 = vmax.f32 %v10850_v25, %v11340_v26  ;;  %v16262_v25 = vld [vmem:[%s17218_s20 + $0xbc8] sm:$0xff] }
 0x6c2   : > { %13772 = vst.msk [vmem:[%s17303_s24 + $0x23c] sm:$0xf] %vm13628_vm3, %v13575_v23  ;;  %v12984_v27 = vmax.f32 %v12592_v20, %v12788_v24  ;;  %v16164_v24 = vld [vmem:[%s17218_s20 + $0x8b8] sm:$0xff] }
 0x6c4   : > { %v13184_v28 = vadd.f32 %v18297_v51, %v12984_v27 }
 0x6c6   : > { %v13380_v29 = vmax.f32 %v13184_v28, 0.0 }
 0x6c7   : > { %v11830_v61 = vpop.f32.mrf.mxu2  ;;  %v12320_v31 = vpop.f32.mrf.mxu3 }
 0x6c8   : > { %v13576_v34 = vpack.c.bf16 %v13380_v29, %v13380_v29  ;;  %v12789_v36 = vmax.f32 %v11830_v61, %v12320_v31  ;;  %v10853_v37 = vpop.f32.mrf.mxu0  ;;  %v11343_v38 = vpop.f32.mrf.mxu1 }
 0x6c9   : > { %v12594_v44 = vmax.f32 %v10853_v37, %v11343_v38 }
 0x6ca   : > { %13773 = vst.msk [vmem:[%s17303_s24 + $0x240] sm:$0xf] %vm13628_vm3, %v13576_v34  ;;  %v12985_v41 = vmax.f32 %v12593_v35, %v12789_v36 }
 0x6cb   : > { %15571 = vmatmul.msk.bf16.gmra.mxu0 %vm9295_vm2, %v15966_v32  ;;  %15669 = vmatmul.msk.bf16.gmra.mxu1 %vm9295_vm2, %v16064_v33 }
 0x6cc   : > { %v13185_v42 = vadd.f32 %v18297_v51, %v12985_v41  ;;  %15767 = vmatmul.msk.bf16.gmra.mxu2 %vm9295_vm2, %v16162_v39  ;;  %15865 = vmatmul.msk.bf16.gmra.mxu3 %vm9295_vm2, %v16260_v40  ;;  %v15969_v41 = vld [vmem:[%s17218_s20 + $0x2a0] sm:$0xff] }
 0x6ce   : > { %v13381_v43 = vmax.f32 %v13185_v42, 0.0  ;;  %v16067_v42 = vld [vmem:[%s17218_s20 + $0x5b0] sm:$0xff] }
 0x6cf   : > { %v11833_v45 = vpop.f32.mrf.mxu2  ;;  %v12323_v46 = vpop.f32.mrf.mxu3 }
 0x6d0   : > { %v13577_v47 = vpack.c.bf16 %v13381_v43, %v13381_v43  ;;  %v12790_v48 = vmax.f32 %v11833_v45, %v12323_v46  ;;  %v10855_v49 = vpop.f32.mrf.mxu0  ;;  %v11345_v50 = vpop.f32.mrf.mxu1 }
 0x6d1   : > { %v12595_v59 = vmax.f32 %v10855_v49, %v11345_v50  ;;  %v16263_v49 = vld [vmem:[%s17218_s20 + $0xbd0] sm:$0xff] }
 0x6d2   : > { %13774 = vst.msk [vmem:[%s17303_s24 + $0x244] sm:$0xf] %vm13628_vm3, %v13577_v47  ;;  %v12986_v30 = vmax.f32 %v12594_v44, %v12790_v48  ;;  %v16165_v48 = vld [vmem:[%s17218_s20 + $0x8c0] sm:$0xff] }
 0x6d4   : > { %v13186_v52 = vadd.f32 %v18297_v51, %v12986_v30 }
 0x6d6   : > { %v13382_v53 = vmax.f32 %v13186_v52, 0.0 }
 0x6d7   : > { %v11835_v54 = vpop.f32.mrf.mxu2  ;;  %v12325_v55 = vpop.f32.mrf.mxu3 }
 0x6d8   : > { %v13578_v58 = vpack.c.bf16 %v13382_v53, %v13382_v53  ;;  %v12791_v60 = vmax.f32 %v11835_v54, %v12325_v55  ;;  %v10858_v62 = vpop.f32.mrf.mxu0  ;;  %v11348_v63 = vpop.f32.mrf.mxu1 }
 0x6d9   : > { %v12596_v5 = vmax.f32 %v10858_v62, %v11348_v63 }
 0x6da   : > { %13775 = vst.msk [vmem:[%s17303_s24 + $0x248] sm:$0xf] %vm13628_vm3, %v13578_v58  ;;  %v12987_v2 = vmax.f32 %v12595_v59, %v12791_v60 }
 0x6db   : > { %15572 = vmatmul.msk.bf16.gmra.mxu0 %vm9295_vm2, %v15967_v56  ;;  %15670 = vmatmul.msk.bf16.gmra.mxu1 %vm9295_vm2, %v16065_v57 }
 0x6dc   : > { %v13187_v3 = vadd.f32 %v18297_v51, %v12987_v2  ;;  %15768 = vmatmul.msk.bf16.gmra.mxu2 %vm9295_vm2, %v16163_v0  ;;  %15866 = vmatmul.msk.bf16.gmra.mxu3 %vm9295_vm2, %v16261_v1  ;;  %v15970_v2 = vld [vmem:[%s17218_s20 + $0x2a8] sm:$0xff] }
 0x6de   : > { %v13383_v4 = vmax.f32 %v13187_v3, 0.0  ;;  %v16068_v3 = vld [vmem:[%s17218_s20 + $0x5b8] sm:$0xff] }
 0x6df   : > { %v11838_v6 = vpop.f32.mrf.mxu2  ;;  %v12328_v7 = vpop.f32.mrf.mxu3 }
 0x6e0   : > { %v13579_v8 = vpack.c.bf16 %v13383_v4, %v13383_v4  ;;  %v12792_v9 = vmax.f32 %v11838_v6, %v12328_v7  ;;  %v10860_v10 = vpop.f32.mrf.mxu0  ;;  %v11350_v11 = vpop.f32.mrf.mxu1 }
 0x6e1   : > { %v12597_v20 = vmax.f32 %v10860_v10, %v11350_v11  ;;  %v16264_v10 = vld [vmem:[%s17218_s20 + $0xbd8] sm:$0xff] }
 0x6e2   : > { %13776 = vst.msk [vmem:[%s17303_s24 + $0x24c] sm:$0xf] %vm13628_vm3, %v13579_v8  ;;  %v12988_v12 = vmax.f32 %v12596_v5, %v12792_v9  ;;  %v16166_v9 = vld [vmem:[%s17218_s20 + $0x8c8] sm:$0xff] }
 0x6e4   : > { %v13188_v13 = vadd.f32 %v18297_v51, %v12988_v12 }
 0x6e6   : > { %v13384_v14 = vmax.f32 %v13188_v13, 0.0 }
 0x6e7   : > { %v11840_v15 = vpop.f32.mrf.mxu2  ;;  %v12330_v16 = vpop.f32.mrf.mxu3 }
 0x6e8   : > { %v13580_v19 = vpack.c.bf16 %v13384_v14, %v13384_v14  ;;  %v12793_v21 = vmax.f32 %v11840_v15, %v12330_v16  ;;  %v10863_v22 = vpop.f32.mrf.mxu0  ;;  %v11353_v23 = vpop.f32.mrf.mxu1 }
 0x6e9   : > { %v12598_v29 = vmax.f32 %v10863_v22, %v11353_v23 }
 0x6ea   : > { %13777 = vst.msk [vmem:[%s17303_s24 + $0x250] sm:$0xf] %vm13628_vm3, %v13580_v19  ;;  %v12989_v26 = vmax.f32 %v12597_v20, %v12793_v21 }
 0x6eb   : > { %15573 = vmatmul.msk.bf16.gmra.mxu0 %vm9295_vm2, %v15968_v17  ;;  %15671 = vmatmul.msk.bf16.gmra.mxu1 %vm9295_vm2, %v16066_v18 }
 0x6ec   : > { %v13189_v27 = vadd.f32 %v18297_v51, %v12989_v26  ;;  %15769 = vmatmul.msk.bf16.gmra.mxu2 %vm9295_vm2, %v16164_v24  ;;  %15867 = vmatmul.msk.bf16.gmra.mxu3 %vm9295_vm2, %v16262_v25  ;;  %v15971_v26 = vld [vmem:[%s17218_s20 + $0x2b0] sm:$0xff] }
 0x6ee   : > { %v13385_v28 = vmax.f32 %v13189_v27, 0.0  ;;  %v16069_v27 = vld [vmem:[%s17218_s20 + $0x5c0] sm:$0xff] }
 0x6ef   : > { %v11843_v61 = vpop.f32.mrf.mxu2  ;;  %v12333_v31 = vpop.f32.mrf.mxu3 }
 0x6f0   : > { %v13581_v32 = vpack.c.bf16 %v13385_v28, %v13385_v28  ;;  %v12794_v33 = vmax.f32 %v11843_v61, %v12333_v31  ;;  %v10865_v34 = vpop.f32.mrf.mxu0  ;;  %v11355_v35 = vpop.f32.mrf.mxu1 }
 0x6f1   : > { %v12599_v44 = vmax.f32 %v10865_v34, %v11355_v35  ;;  %v16265_v34 = vld [vmem:[%s17218_s20 + $0xbe0] sm:$0xff] }
 0x6f2   : > { %13778 = vst.msk [vmem:[%s17303_s24 + $0x254] sm:$0xf] %vm13628_vm3, %v13581_v32  ;;  %v12990_v36 = vmax.f32 %v12598_v29, %v12794_v33  ;;  %v16167_v33 = vld [vmem:[%s17218_s20 + $0x8d0] sm:$0xff] }
 0x6f4   : > { %v13190_v37 = vadd.f32 %v18297_v51, %v12990_v36 }
 0x6f6   : > { %v13386_v38 = vmax.f32 %v13190_v37, 0.0 }
 0x6f7   : > { %v11845_v39 = vpop.f32.mrf.mxu2  ;;  %v12335_v40 = vpop.f32.mrf.mxu3 }
 0x6f8   : > { %v13582_v43 = vpack.c.bf16 %v13386_v38, %v13386_v38  ;;  %v12795_v45 = vmax.f32 %v11845_v39, %v12335_v40  ;;  %v10868_v46 = vpop.f32.mrf.mxu0  ;;  %v11358_v47 = vpop.f32.mrf.mxu1 }
 0x6f9   : > { %v12600_v53 = vmax.f32 %v10868_v46, %v11358_v47 }
 0x6fa   : > { %13779 = vst.msk [vmem:[%s17303_s24 + $0x258] sm:$0xf] %vm13628_vm3, %v13582_v43  ;;  %v12991_v50 = vmax.f32 %v12599_v44, %v12795_v45 }
 0x6fb   : > { %15574 = vmatmul.msk.bf16.gmra.mxu0 %vm9295_vm2, %v15969_v41  ;;  %15672 = vmatmul.msk.bf16.gmra.mxu1 %vm9295_vm2, %v16067_v42 }
 0x6fc   : > { %v13191_v30 = vadd.f32 %v18297_v51, %v12991_v50  ;;  %15770 = vmatmul.msk.bf16.gmra.mxu2 %vm9295_vm2, %v16165_v48  ;;  %15868 = vmatmul.msk.bf16.gmra.mxu3 %vm9295_vm2, %v16263_v49  ;;  %v15972_v50 = vld [vmem:[%s17218_s20 + $0x2b8] sm:$0xff] }
 0x6fe   : > { %v13387_v52 = vmax.f32 %v13191_v30, 0.0  ;;  %v16070_v30 = vld [vmem:[%s17218_s20 + $0x5c8] sm:$0xff] }
 0x6ff   : > { %v11848_v54 = vpop.f32.mrf.mxu2  ;;  %v12338_v55 = vpop.f32.mrf.mxu3 }
 0x700   : > { %v13583_v56 = vpack.c.bf16 %v13387_v52, %v13387_v52  ;;  %v12796_v57 = vmax.f32 %v11848_v54, %v12338_v55  ;;  %v10870_v58 = vpop.f32.mrf.mxu0  ;;  %v11360_v59 = vpop.f32.mrf.mxu1 }
 0x701   : > { %v12601_v5 = vmax.f32 %v10870_v58, %v11360_v59  ;;  %v16266_v58 = vld [vmem:[%s17218_s20 + $0xbe8] sm:$0xff] }
 0x702   : > { %13780 = vst.msk [vmem:[%s17303_s24 + $0x25c] sm:$0xf] %vm13628_vm3, %v13583_v56  ;;  %v12992_v60 = vmax.f32 %v12600_v53, %v12796_v57  ;;  %v16168_v57 = vld [vmem:[%s17218_s20 + $0x8d8] sm:$0xff] }
 0x704   : > { %v13192_v62 = vadd.f32 %v18297_v51, %v12992_v60 }
 0x706   : > { %v13388_v63 = vmax.f32 %v13192_v62, 0.0 }
 0x707   : > { %v11850_v0 = vpop.f32.mrf.mxu2  ;;  %v12340_v1 = vpop.f32.mrf.mxu3 }
 0x708   : > { %v13584_v4 = vpack.c.bf16 %v13388_v63, %v13388_v63  ;;  %v12797_v6 = vmax.f32 %v11850_v0, %v12340_v1  ;;  %v10873_v7 = vpop.f32.mrf.mxu0  ;;  %v11363_v8 = vpop.f32.mrf.mxu1 }
 0x709   : > { %v12602_v14 = vmax.f32 %v10873_v7, %v11363_v8 }
 0x70a   : > { %13781 = vst.msk [vmem:[%s17303_s24 + $0x260] sm:$0xf] %vm13628_vm3, %v13584_v4  ;;  %v12993_v11 = vmax.f32 %v12601_v5, %v12797_v6 }
 0x70b   : > { %15575 = vmatmul.msk.bf16.gmra.mxu0 %vm9295_vm2, %v15970_v2  ;;  %15673 = vmatmul.msk.bf16.gmra.mxu1 %vm9295_vm2, %v16068_v3 }
 0x70c   : > { %v13193_v12 = vadd.f32 %v18297_v51, %v12993_v11  ;;  %15771 = vmatmul.msk.bf16.gmra.mxu2 %vm9295_vm2, %v16166_v9  ;;  %15869 = vmatmul.msk.bf16.gmra.mxu3 %vm9295_vm2, %v16264_v10  ;;  %v15973_v11 = vld [vmem:[%s17218_s20 + $0x2c0] sm:$0xff] }
 0x70e   : > { %v13389_v13 = vmax.f32 %v13193_v12, 0.0  ;;  %v16071_v12 = vld [vmem:[%s17218_s20 + $0x5d0] sm:$0xff] }
 0x70f   : > { %v11853_v15 = vpop.f32.mrf.mxu2  ;;  %v12343_v16 = vpop.f32.mrf.mxu3 }
 0x710   : > { %v13585_v17 = vpack.c.bf16 %v13389_v13, %v13389_v13  ;;  %v12798_v18 = vmax.f32 %v11853_v15, %v12343_v16  ;;  %v10875_v19 = vpop.f32.mrf.mxu0  ;;  %v11365_v20 = vpop.f32.mrf.mxu1 }
 0x711   : > { %v12603_v29 = vmax.f32 %v10875_v19, %v11365_v20  ;;  %v16267_v19 = vld [vmem:[%s17218_s20 + $0xbf0] sm:$0xff] }
 0x712   : > { %13782 = vst.msk [vmem:[%s17303_s24 + $0x264] sm:$0xf] %vm13628_vm3, %v13585_v17  ;;  %v12994_v21 = vmax.f32 %v12602_v14, %v12798_v18  ;;  %v16169_v18 = vld [vmem:[%s17218_s20 + $0x8e0] sm:$0xff] }
 0x714   : > { %v13194_v22 = vadd.f32 %v18297_v51, %v12994_v21 }
 0x716   : > { %v13390_v23 = vmax.f32 %v13194_v22, 0.0 }
 0x717   : > { %v11855_v24 = vpop.f32.mrf.mxu2  ;;  %v12345_v25 = vpop.f32.mrf.mxu3 }
 0x718   : > { %v13586_v28 = vpack.c.bf16 %v13390_v23, %v13390_v23  ;;  %v12799_v61 = vmax.f32 %v11855_v24, %v12345_v25  ;;  %v10878_v31 = vpop.f32.mrf.mxu0  ;;  %v11368_v32 = vpop.f32.mrf.mxu1 }
 0x719   : > { %v12604_v38 = vmax.f32 %v10878_v31, %v11368_v32 }
 0x71a   : > { %13783 = vst.msk [vmem:[%s17303_s24 + $0x268] sm:$0xf] %vm13628_vm3, %v13586_v28  ;;  %v12995_v35 = vmax.f32 %v12603_v29, %v12799_v61 }
 0x71b   : > { %15576 = vmatmul.msk.bf16.gmra.mxu0 %vm9295_vm2, %v15971_v26  ;;  %15674 = vmatmul.msk.bf16.gmra.mxu1 %vm9295_vm2, %v16069_v27 }
 0x71c   : > { %v13195_v36 = vadd.f32 %v18297_v51, %v12995_v35  ;;  %15772 = vmatmul.msk.bf16.gmra.mxu2 %vm9295_vm2, %v16167_v33  ;;  %15870 = vmatmul.msk.bf16.gmra.mxu3 %vm9295_vm2, %v16265_v34  ;;  %v15974_v35 = vld [vmem:[%s17218_s20 + $0x2c8] sm:$0xff] }
 0x71e   : > { %v13391_v37 = vmax.f32 %v13195_v36, 0.0  ;;  %v16072_v36 = vld [vmem:[%s17218_s20 + $0x5d8] sm:$0xff] }
 0x71f   : > { %v11858_v39 = vpop.f32.mrf.mxu2  ;;  %v12348_v40 = vpop.f32.mrf.mxu3 }
 0x720   : > { %v13587_v41 = vpack.c.bf16 %v13391_v37, %v13391_v37  ;;  %v12800_v42 = vmax.f32 %v11858_v39, %v12348_v40  ;;  %v10880_v43 = vpop.f32.mrf.mxu0  ;;  %v11370_v44 = vpop.f32.mrf.mxu1 }
 0x721   : > { %v12605_v53 = vmax.f32 %v10880_v43, %v11370_v44  ;;  %v16268_v43 = vld [vmem:[%s17218_s20 + $0xbf8] sm:$0xff] }
 0x722   : > { %13784 = vst.msk [vmem:[%s17303_s24 + $0x26c] sm:$0xf] %vm13628_vm3, %v13587_v41  ;;  %v12996_v45 = vmax.f32 %v12604_v38, %v12800_v42  ;;  %v16170_v42 = vld [vmem:[%s17218_s20 + $0x8e8] sm:$0xff] }
 0x724   : > { %v13196_v46 = vadd.f32 %v18297_v51, %v12996_v45 }
 0x726   : > { %v13392_v47 = vmax.f32 %v13196_v46, 0.0 }
 0x727   : > { %v11860_v48 = vpop.f32.mrf.mxu2  ;;  %v12350_v49 = vpop.f32.mrf.mxu3 }
 0x728   : > { %v13588_v52 = vpack.c.bf16 %v13392_v47, %v13392_v47  ;;  %v12801_v54 = vmax.f32 %v11860_v48, %v12350_v49  ;;  %v10883_v55 = vpop.f32.mrf.mxu0  ;;  %v11373_v56 = vpop.f32.mrf.mxu1 }
 0x729   : > { %v12606_v63 = vmax.f32 %v10883_v55, %v11373_v56 }
 0x72a   : > { %13785 = vst.msk [vmem:[%s17303_s24 + $0x270] sm:$0xf] %vm13628_vm3, %v13588_v52  ;;  %v12997_v59 = vmax.f32 %v12605_v53, %v12801_v54 }
 0x72b   : > { %15577 = vmatmul.msk.bf16.gmra.mxu0 %vm9295_vm2, %v15972_v50  ;;  %15675 = vmatmul.msk.bf16.gmra.mxu1 %vm9295_vm2, %v16070_v30 }
 0x72c   : > { %v13197_v60 = vadd.f32 %v18297_v51, %v12997_v59  ;;  %15773 = vmatmul.msk.bf16.gmra.mxu2 %vm9295_vm2, %v16168_v57  ;;  %15871 = vmatmul.msk.bf16.gmra.mxu3 %vm9295_vm2, %v16266_v58  ;;  %v15975_v59 = vld [vmem:[%s17218_s20 + $0x2d0] sm:$0xff] }
 0x72e   : > { %v13393_v62 = vmax.f32 %v13197_v60, 0.0  ;;  %v16073_v60 = vld [vmem:[%s17218_s20 + $0x5e0] sm:$0xff] }
 0x72f   : > { %v11863_v0 = vpop.f32.mrf.mxu2  ;;  %v12353_v1 = vpop.f32.mrf.mxu3 }
 0x730   : > { %v13589_v2 = vpack.c.bf16 %v13393_v62, %v13393_v62  ;;  %v12802_v3 = vmax.f32 %v11863_v0, %v12353_v1  ;;  %v10885_v4 = vpop.f32.mrf.mxu0  ;;  %v11375_v5 = vpop.f32.mrf.mxu1 }
 0x731   : > { %v12607_v14 = vmax.f32 %v10885_v4, %v11375_v5  ;;  %v16269_v4 = vld [vmem:[%s17218_s20 + $0xc00] sm:$0xff] }
 0x732   : > { %13786 = vst.msk [vmem:[%s17303_s24 + $0x274] sm:$0xf] %vm13628_vm3, %v13589_v2  ;;  %v12998_v6 = vmax.f32 %v12606_v63, %v12802_v3  ;;  %v16171_v3 = vld [vmem:[%s17218_s20 + $0x8f0] sm:$0xff] }
 0x734   : > { %v13198_v7 = vadd.f32 %v18297_v51, %v12998_v6 }
 0x736   : > { %v13394_v8 = vmax.f32 %v13198_v7, 0.0 }
 0x737   : > { %v11865_v9 = vpop.f32.mrf.mxu2  ;;  %v12355_v10 = vpop.f32.mrf.mxu3 }
 0x738   : > { %v13590_v13 = vpack.c.bf16 %v13394_v8, %v13394_v8  ;;  %v12803_v15 = vmax.f32 %v11865_v9, %v12355_v10  ;;  %v10888_v16 = vpop.f32.mrf.mxu0  ;;  %v11378_v17 = vpop.f32.mrf.mxu1 }
 0x739   : > { %v12608_v23 = vmax.f32 %v10888_v16, %v11378_v17 }
 0x73a   : > { %13787 = vst.msk [vmem:[%s17303_s24 + $0x278] sm:$0xf] %vm13628_vm3, %v13590_v13  ;;  %v12999_v20 = vmax.f32 %v12607_v14, %v12803_v15 }
 0x73b   : > { %15578 = vmatmul.msk.bf16.gmra.mxu0 %vm9295_vm2, %v15973_v11  ;;  %15676 = vmatmul.msk.bf16.gmra.mxu1 %vm9295_vm2, %v16071_v12 }
 0x73c   : > { %v13199_v21 = vadd.f32 %v18297_v51, %v12999_v20  ;;  %15774 = vmatmul.msk.bf16.gmra.mxu2 %vm9295_vm2, %v16169_v18  ;;  %15872 = vmatmul.msk.bf16.gmra.mxu3 %vm9295_vm2, %v16267_v19  ;;  %v15976_v20 = vld [vmem:[%s17218_s20 + $0x2d8] sm:$0xff] }
 0x73e   : > { %v13395_v22 = vmax.f32 %v13199_v21, 0.0  ;;  %v16074_v21 = vld [vmem:[%s17218_s20 + $0x5e8] sm:$0xff] }
 0x73f   : > { %v11868_v24 = vpop.f32.mrf.mxu2  ;;  %v12358_v25 = vpop.f32.mrf.mxu3 }
 0x740   : > { %v13591_v26 = vpack.c.bf16 %v13395_v22, %v13395_v22  ;;  %v12804_v27 = vmax.f32 %v11868_v24, %v12358_v25  ;;  %v10890_v28 = vpop.f32.mrf.mxu0  ;;  %v11380_v29 = vpop.f32.mrf.mxu1 }
 0x741   : > { %v12609_v38 = vmax.f32 %v10890_v28, %v11380_v29  ;;  %v16270_v28 = vld [vmem:[%s17218_s20 + $0xc08] sm:$0xff] }
 0x742   : > { %13788 = vst.msk [vmem:[%s17303_s24 + $0x27c] sm:$0xf] %vm13628_vm3, %v13591_v26  ;;  %v13000_v61 = vmax.f32 %v12608_v23, %v12804_v27  ;;  %v16172_v27 = vld [vmem:[%s17218_s20 + $0x8f8] sm:$0xff] }
 0x744   : > { %v13200_v31 = vadd.f32 %v18297_v51, %v13000_v61 }
 0x746   : > { %v13396_v32 = vmax.f32 %v13200_v31, 0.0 }
 0x747   : > { %v11870_v33 = vpop.f32.mrf.mxu2  ;;  %v12360_v34 = vpop.f32.mrf.mxu3 }
 0x748   : > { %v13592_v37 = vpack.c.bf16 %v13396_v32, %v13396_v32  ;;  %v12805_v39 = vmax.f32 %v11870_v33, %v12360_v34  ;;  %v10893_v40 = vpop.f32.mrf.mxu0  ;;  %v11383_v41 = vpop.f32.mrf.mxu1 }
 0x749   : > { %v12610_v47 = vmax.f32 %v10893_v40, %v11383_v41 }
 0x74a   : > { %13789 = vst.msk [vmem:[%s17303_s24 + $0x280] sm:$0xf] %vm13628_vm3, %v13592_v37  ;;  %v13001_v44 = vmax.f32 %v12609_v38, %v12805_v39 }
 0x74b   : > { %15579 = vmatmul.msk.bf16.gmra.mxu0 %vm9295_vm2, %v15974_v35  ;;  %15677 = vmatmul.msk.bf16.gmra.mxu1 %vm9295_vm2, %v16072_v36 }
 0x74c   : > { %v13201_v45 = vadd.f32 %v18297_v51, %v13001_v44  ;;  %15775 = vmatmul.msk.bf16.gmra.mxu2 %vm9295_vm2, %v16170_v42  ;;  %15873 = vmatmul.msk.bf16.gmra.mxu3 %vm9295_vm2, %v16268_v43  ;;  %v15977_v44 = vld [vmem:[%s17218_s20 + $0x2e0] sm:$0xff] }
 0x74e   : > { %v13397_v46 = vmax.f32 %v13201_v45, 0.0  ;;  %v16075_v45 = vld [vmem:[%s17218_s20 + $0x5f0] sm:$0xff] }
 0x74f   : > { %v11873_v48 = vpop.f32.mrf.mxu2  ;;  %v12363_v49 = vpop.f32.mrf.mxu3 }
 0x750   : > { %v13593_v50 = vpack.c.bf16 %v13397_v46, %v13397_v46  ;;  %v12806_v30 = vmax.f32 %v11873_v48, %v12363_v49  ;;  %v10895_v52 = vpop.f32.mrf.mxu0  ;;  %v11385_v53 = vpop.f32.mrf.mxu1 }
 0x751   : > { %v12611_v63 = vmax.f32 %v10895_v52, %v11385_v53  ;;  %v16271_v52 = vld [vmem:[%s17218_s20 + $0xc10] sm:$0xff] }
 0x752   : > { %13790 = vst.msk [vmem:[%s17303_s24 + $0x284] sm:$0xf] %vm13628_vm3, %v13593_v50  ;;  %v13002_v54 = vmax.f32 %v12610_v47, %v12806_v30  ;;  %v16173_v30 = vld [vmem:[%s17218_s20 + $0x900] sm:$0xff] }
 0x754   : > { %v13202_v55 = vadd.f32 %v18297_v51, %v13002_v54 }
 0x756   : > { %v13398_v56 = vmax.f32 %v13202_v55, 0.0 }
 0x757   : > { %v11875_v57 = vpop.f32.mrf.mxu2  ;;  %v12365_v58 = vpop.f32.mrf.mxu3 }
 0x758   : > { %v13594_v62 = vpack.c.bf16 %v13398_v56, %v13398_v56  ;;  %v12807_v0 = vmax.f32 %v11875_v57, %v12365_v58  ;;  %v10898_v1 = vpop.f32.mrf.mxu0  ;;  %v11388_v2 = vpop.f32.mrf.mxu1 }
 0x759   : > { %v12612_v8 = vmax.f32 %v10898_v1, %v11388_v2 }
 0x75a   : > { %13791 = vst.msk [vmem:[%s17303_s24 + $0x288] sm:$0xf] %vm13628_vm3, %v13594_v62  ;;  %v13003_v5 = vmax.f32 %v12611_v63, %v12807_v0 }
 0x75b   : > { %15580 = vmatmul.msk.bf16.gmra.mxu0 %vm9295_vm2, %v15975_v59  ;;  %15678 = vmatmul.msk.bf16.gmra.mxu1 %vm9295_vm2, %v16073_v60 }
 0x75c   : > { %v13203_v6 = vadd.f32 %v18297_v51, %v13003_v5  ;;  %15776 = vmatmul.msk.bf16.gmra.mxu2 %vm9295_vm2, %v16171_v3  ;;  %15874 = vmatmul.msk.bf16.gmra.mxu3 %vm9295_vm2, %v16269_v4  ;;  %v15978_v5 = vld [vmem:[%s17218_s20 + $0x2e8] sm:$0xff] }
 0x75e   : > { %v13399_v7 = vmax.f32 %v13203_v6, 0.0  ;;  %v16076_v6 = vld [vmem:[%s17218_s20 + $0x5f8] sm:$0xff] }
 0x75f   : > { %v11878_v9 = vpop.f32.mrf.mxu2  ;;  %v12368_v10 = vpop.f32.mrf.mxu3 }
 0x760   : > { %v13595_v11 = vpack.c.bf16 %v13399_v7, %v13399_v7  ;;  %v12808_v12 = vmax.f32 %v11878_v9, %v12368_v10  ;;  %v10900_v13 = vpop.f32.mrf.mxu0  ;;  %v11390_v14 = vpop.f32.mrf.mxu1 }
 0x761   : > { %v12613_v23 = vmax.f32 %v10900_v13, %v11390_v14  ;;  %v16272_v13 = vld [vmem:[%s17218_s20 + $0xc18] sm:$0xff] }
 0x762   : > { %13792 = vst.msk [vmem:[%s17303_s24 + $0x28c] sm:$0xf] %vm13628_vm3, %v13595_v11  ;;  %v13004_v15 = vmax.f32 %v12612_v8, %v12808_v12  ;;  %v16174_v12 = vld [vmem:[%s17218_s20 + $0x908] sm:$0xff] }
 0x764   : > { %v13204_v16 = vadd.f32 %v18297_v51, %v13004_v15 }
 0x766   : > { %v13400_v17 = vmax.f32 %v13204_v16, 0.0 }
 0x767   : > { %v11880_v18 = vpop.f32.mrf.mxu2  ;;  %v12370_v19 = vpop.f32.mrf.mxu3 }
 0x768   : > { %v13596_v22 = vpack.c.bf16 %v13400_v17, %v13400_v17  ;;  %v12809_v24 = vmax.f32 %v11880_v18, %v12370_v19  ;;  %v10903_v25 = vpop.f32.mrf.mxu0  ;;  %v11393_v26 = vpop.f32.mrf.mxu1 }
 0x769   : > { %v12614_v32 = vmax.f32 %v10903_v25, %v11393_v26 }
 0x76a   : > { %13793 = vst.msk [vmem:[%s17303_s24 + $0x290] sm:$0xf] %vm13628_vm3, %v13596_v22  ;;  %v13005_v29 = vmax.f32 %v12613_v23, %v12809_v24 }
 0x76b   : > { %15581 = vmatmul.msk.bf16.gmra.mxu0 %vm9295_vm2, %v15976_v20  ;;  %15679 = vmatmul.msk.bf16.gmra.mxu1 %vm9295_vm2, %v16074_v21 }
 0x76c   : > { %v13205_v61 = vadd.f32 %v18297_v51, %v13005_v29  ;;  %15777 = vmatmul.msk.bf16.gmra.mxu2 %vm9295_vm2, %v16172_v27  ;;  %15875 = vmatmul.msk.bf16.gmra.mxu3 %vm9295_vm2, %v16270_v28  ;;  %v15979_v29 = vld [vmem:[%s17218_s20 + $0x2f0] sm:$0xff] }
 0x76e   : > { %v13401_v31 = vmax.f32 %v13205_v61, 0.0  ;;  %v16077_v61 = vld [vmem:[%s17218_s20 + $0x600] sm:$0xff] }
 0x76f   : > { %v11883_v33 = vpop.f32.mrf.mxu2  ;;  %v12373_v34 = vpop.f32.mrf.mxu3 }
 0x770   : > { %v13597_v35 = vpack.c.bf16 %v13401_v31, %v13401_v31  ;;  %v12810_v36 = vmax.f32 %v11883_v33, %v12373_v34  ;;  %v10905_v37 = vpop.f32.mrf.mxu0  ;;  %v11395_v38 = vpop.f32.mrf.mxu1 }
 0x771   : > { %v12615_v47 = vmax.f32 %v10905_v37, %v11395_v38  ;;  %v16273_v37 = vld [vmem:[%s17218_s20 + $0xc20] sm:$0xff] }
 0x772   : > { %13794 = vst.msk [vmem:[%s17303_s24 + $0x294] sm:$0xf] %vm13628_vm3, %v13597_v35  ;;  %v13006_v39 = vmax.f32 %v12614_v32, %v12810_v36  ;;  %v16175_v36 = vld [vmem:[%s17218_s20 + $0x910] sm:$0xff] }
 0x774   : > { %v13206_v40 = vadd.f32 %v18297_v51, %v13006_v39 }
 0x776   : > { %v13402_v41 = vmax.f32 %v13206_v40, 0.0 }
 0x777   : > { %v11885_v42 = vpop.f32.mrf.mxu2  ;;  %v12375_v43 = vpop.f32.mrf.mxu3 }
 0x778   : > { %v13598_v46 = vpack.c.bf16 %v13402_v41, %v13402_v41  ;;  %v12811_v48 = vmax.f32 %v11885_v42, %v12375_v43  ;;  %v10908_v49 = vpop.f32.mrf.mxu0  ;;  %v11398_v50 = vpop.f32.mrf.mxu1 }
 0x779   : > { %v12616_v56 = vmax.f32 %v10908_v49, %v11398_v50 }
 0x77a   : > { %13795 = vst.msk [vmem:[%s17303_s24 + $0x298] sm:$0xf] %vm13628_vm3, %v13598_v46  ;;  %v13007_v53 = vmax.f32 %v12615_v47, %v12811_v48 }
 0x77b   : > { %15582 = vmatmul.msk.bf16.gmra.mxu0 %vm9295_vm2, %v15977_v44  ;;  %15680 = vmatmul.msk.bf16.gmra.mxu1 %vm9295_vm2, %v16075_v45 }
 0x77c   : > { %v13207_v54 = vadd.f32 %v18297_v51, %v13007_v53  ;;  %15778 = vmatmul.msk.bf16.gmra.mxu2 %vm9295_vm2, %v16173_v30  ;;  %15876 = vmatmul.msk.bf16.gmra.mxu3 %vm9295_vm2, %v16271_v52  ;;  %v15980_v53 = vld [vmem:[%s17218_s20 + $0x2f8] sm:$0xff] }
 0x77e   : > { %v13403_v55 = vmax.f32 %v13207_v54, 0.0  ;;  %v16078_v54 = vld [vmem:[%s17218_s20 + $0x608] sm:$0xff] }
 0x77f   : > { %v11888_v57 = vpop.f32.mrf.mxu2  ;;  %v12378_v58 = vpop.f32.mrf.mxu3 }
 0x780   : > { %v13599_v59 = vpack.c.bf16 %v13403_v55, %v13403_v55  ;;  %v12812_v60 = vmax.f32 %v11888_v57, %v12378_v58  ;;  %v10910_v62 = vpop.f32.mrf.mxu0  ;;  %v11400_v63 = vpop.f32.mrf.mxu1 }
 0x781   : > { %v12617_v8 = vmax.f32 %v10910_v62, %v11400_v63  ;;  %v16274_v62 = vld [vmem:[%s17218_s20 + $0xc28] sm:$0xff] }
 0x782   : > { %13796 = vst.msk [vmem:[%s17303_s24 + $0x29c] sm:$0xf] %vm13628_vm3, %v13599_v59  ;;  %v13008_v0 = vmax.f32 %v12616_v56, %v12812_v60  ;;  %v16176_v60 = vld [vmem:[%s17218_s20 + $0x918] sm:$0xff] }
 0x784   : > { %v13208_v1 = vadd.f32 %v18297_v51, %v13008_v0 }
 0x786   : > { %v13404_v2 = vmax.f32 %v13208_v1, 0.0 }
 0x787   : > { %v11890_v3 = vpop.f32.mrf.mxu2  ;;  %v12380_v4 = vpop.f32.mrf.mxu3 }
 0x788   : > { %v13600_v7 = vpack.c.bf16 %v13404_v2, %v13404_v2  ;;  %v12813_v9 = vmax.f32 %v11890_v3, %v12380_v4  ;;  %v10913_v10 = vpop.f32.mrf.mxu0  ;;  %v11403_v11 = vpop.f32.mrf.mxu1 }
 0x789   : > { %v12618_v17 = vmax.f32 %v10913_v10, %v11403_v11 }
 0x78a   : > { %13797 = vst.msk [vmem:[%s17303_s24 + $0x2a0] sm:$0xf] %vm13628_vm3, %v13600_v7  ;;  %v13009_v14 = vmax.f32 %v12617_v8, %v12813_v9  ;;  %v18545_v9 = vld [vmem:[%s18641_s2] ss:$0 sm:$0xff] }
 0x78b   : > { %15583 = vmatmul.msk.bf16.gmra.mxu0 %vm9295_vm2, %v15978_v5  ;;  %15681 = vmatmul.msk.bf16.gmra.mxu1 %vm9295_vm2, %v16076_v6 }
 0x78c   : > { %v13209_v15 = vadd.f32 %v18297_v51, %v13009_v14  ;;  %15779 = vmatmul.msk.bf16.gmra.mxu2 %vm9295_vm2, %v16174_v12  ;;  %15877 = vmatmul.msk.bf16.gmra.mxu3 %vm9295_vm2, %v16272_v13  ;;  %v15981_v14 = vld [vmem:[%s17218_s20 + $0x300] sm:$0xff] }
 0x78e   : > { %v13405_v16 = vmax.f32 %v13209_v15, 0.0  ;;  %v16079_v15 = vld [vmem:[%s17218_s20 + $0x610] sm:$0xff] }
 0x78f   : > { %v11893_v18 = vpop.f32.mrf.mxu2  ;;  %v12383_v19 = vpop.f32.mrf.mxu3 }
 0x790   : > { %v13601_v20 = vpack.c.bf16 %v13405_v16, %v13405_v16  ;;  %v12814_v21 = vmax.f32 %v11893_v18, %v12383_v19  ;;  %v10915_v22 = vpop.f32.mrf.mxu0  ;;  %v11405_v23 = vpop.f32.mrf.mxu1 }
 0x791   : > { %v12619_v32 = vmax.f32 %v10915_v22, %v11405_v23  ;;  %v16275_v22 = vld [vmem:[%s17218_s20 + $0xc30] sm:$0xff] }
 0x792   : > { %13798 = vst.msk [vmem:[%s17303_s24 + $0x2a4] sm:$0xf] %vm13628_vm3, %v13601_v20  ;;  %v13010_v24 = vmax.f32 %v12618_v17, %v12814_v21  ;;  %v16177_v21 = vld [vmem:[%s17218_s20 + $0x920] sm:$0xff] }
 0x794   : > { %v13210_v25 = vadd.f32 %v18297_v51, %v13010_v24 }
 0x796   : > { %v13406_v26 = vmax.f32 %v13210_v25, 0.0 }
 0x797   : > { %v11895_v27 = vpop.f32.mrf.mxu2  ;;  %v12385_v28 = vpop.f32.mrf.mxu3 }
 0x798   : > { %v13602_v31 = vpack.c.bf16 %v13406_v26, %v13406_v26  ;;  %v12815_v33 = vmax.f32 %v11895_v27, %v12385_v28  ;;  %v10918_v34 = vpop.f32.mrf.mxu0  ;;  %v11408_v35 = vpop.f32.mrf.mxu1 }
 0x799   : > { %v12620_v41 = vmax.f32 %v10918_v34, %v11408_v35 }
 0x79a   : > { %13799 = vst.msk [vmem:[%s17303_s24 + $0x2a8] sm:$0xf] %vm13628_vm3, %v13602_v31  ;;  %v13011_v38 = vmax.f32 %v12619_v32, %v12815_v33 }
 0x79b   : > { %15584 = vmatmul.msk.bf16.gmra.mxu0 %vm9295_vm2, %v15979_v29  ;;  %15682 = vmatmul.msk.bf16.gmra.mxu1 %vm9295_vm2, %v16077_v61 }
 0x79c   : > { %v13211_v39 = vadd.f32 %v18297_v51, %v13011_v38  ;;  %15780 = vmatmul.msk.bf16.gmra.mxu2 %vm9295_vm2, %v16175_v36  ;;  %15878 = vmatmul.msk.bf16.gmra.mxu3 %vm9295_vm2, %v16273_v37  ;;  %v15982_v38 = vld [vmem:[%s17218_s20 + $0x308] sm:$0xff] }
 0x79e   : > { %v13407_v40 = vmax.f32 %v13211_v39, 0.0  ;;  %v16080_v39 = vld [vmem:[%s17218_s20 + $0x618] sm:$0xff] }
 0x79f   : > { %v11898_v42 = vpop.f32.mrf.mxu2  ;;  %v12388_v43 = vpop.f32.mrf.mxu3 }
 0x7a0   : > { %v13603_v44 = vpack.c.bf16 %v13407_v40, %v13407_v40  ;;  %v12816_v45 = vmax.f32 %v11898_v42, %v12388_v43  ;;  %v10920_v46 = vpop.f32.mrf.mxu0  ;;  %v11410_v47 = vpop.f32.mrf.mxu1 }
 0x7a1   : > { %v12621_v56 = vmax.f32 %v10920_v46, %v11410_v47  ;;  %v16276_v46 = vld [vmem:[%s17218_s20 + $0xc38] sm:$0xff] }
 0x7a2   : > { %13800 = vst.msk [vmem:[%s17303_s24 + $0x2ac] sm:$0xf] %vm13628_vm3, %v13603_v44  ;;  %v13012_v48 = vmax.f32 %v12620_v41, %v12816_v45  ;;  %v16178_v45 = vld [vmem:[%s17218_s20 + $0x928] sm:$0xff] }
 0x7a4   : > { %v13212_v49 = vadd.f32 %v18297_v51, %v13012_v48 }
 0x7a6   : > { %v13408_v50 = vmax.f32 %v13212_v49, 0.0 }
 0x7a7   : > { %v11900_v30 = vpop.f32.mrf.mxu2  ;;  %v12390_v52 = vpop.f32.mrf.mxu3 }
 0x7a8   : > { %v13604_v55 = vpack.c.bf16 %v13408_v50, %v13408_v50  ;;  %v12817_v57 = vmax.f32 %v11900_v30, %v12390_v52  ;;  %v10923_v58 = vpop.f32.mrf.mxu0  ;;  %v11413_v59 = vpop.f32.mrf.mxu1 }
 0x7a9   : > { %v12622_v2 = vmax.f32 %v10923_v58, %v11413_v59 }
 0x7aa   : > { %13801 = vst.msk [vmem:[%s17303_s24 + $0x2b0] sm:$0xf] %vm13628_vm3, %v13604_v55  ;;  %v13013_v63 = vmax.f32 %v12621_v56, %v12817_v57 }
 0x7ab   : > { %15585 = vmatmul.msk.bf16.gmra.mxu0 %vm9295_vm2, %v15980_v53  ;;  %15683 = vmatmul.msk.bf16.gmra.mxu1 %vm9295_vm2, %v16078_v54 }
 0x7ac   : > { %v13213_v0 = vadd.f32 %v18297_v51, %v13013_v63  ;;  %15781 = vmatmul.msk.bf16.gmra.mxu2 %vm9295_vm2, %v16176_v60  ;;  %15879 = vmatmul.msk.bf16.gmra.mxu3 %vm9295_vm2, %v16274_v62 }
 0x7ae   : > { %v13409_v1 = vmax.f32 %v13213_v0, 0.0 }
 0x7af   : > { %v11903_v3 = vpop.f32.mrf.mxu2  ;;  %v12393_v4 = vpop.f32.mrf.mxu3 }
 0x7b0   : > { %v13605_v5 = vpack.c.bf16 %v13409_v1, %v13409_v1  ;;  %v12818_v6 = vmax.f32 %v11903_v3, %v12393_v4  ;;  %v10925_v7 = vpop.f32.mrf.mxu0  ;;  %v11415_v8 = vpop.f32.mrf.mxu1 }
 0x7b1   : > { %v12623_v17 = vmax.f32 %v10925_v7, %v11415_v8 }
 0x7b2   : > { %13802 = vst.msk [vmem:[%s17303_s24 + $0x2b4] sm:$0xf] %vm13628_vm3, %v13605_v5  ;;  %v13014_v51 = vmax.f32 %v12622_v2, %v12818_v6 }
 0x7b4   : > { %v13214_v10 = vadd.f32 %v18545_v9, %v13014_v51 }
 0x7b6   : > { %v13410_v11 = vmax.f32 %v13214_v10, 0.0 }
 0x7b7   : > { %v11905_v12 = vpop.f32.mrf.mxu2  ;;  %v12395_v13 = vpop.f32.mrf.mxu3 }
 0x7b8   : > { %v13606_v16 = vpack.c.bf16 %v13410_v11, %v13410_v11  ;;  %v12819_v18 = vmax.f32 %v11905_v12, %v12395_v13  ;;  %v10928_v19 = vpop.f32.mrf.mxu0  ;;  %v11418_v20 = vpop.f32.mrf.mxu1 }
 0x7b9   : > { %v12624_v26 = vmax.f32 %v10928_v19, %v11418_v20 }
 0x7ba   : > { %13803 = vst.msk [vmem:[%s17303_s24 + $0x2b8] sm:$0xf] %vm13628_vm3, %v13606_v16  ;;  %v13015_v23 = vmax.f32 %v12623_v17, %v12819_v18 }
 0x7bb   : > { %15586 = vmatmul.msk.bf16.gmra.mxu0 %vm9295_vm2, %v15981_v14  ;;  %15684 = vmatmul.msk.bf16.gmra.mxu1 %vm9295_vm2, %v16079_v15 }
 0x7bc   : > { %v13215_v24 = vadd.f32 %v18545_v9, %v13015_v23  ;;  %15782 = vmatmul.msk.bf16.gmra.mxu2 %vm9295_vm2, %v16177_v21  ;;  %15880 = vmatmul.msk.bf16.gmra.mxu3 %vm9295_vm2, %v16275_v22 }
 0x7be   : > { %v13411_v25 = vmax.f32 %v13215_v24, 0.0 }
 0x7bf   : > { %v11908_v27 = vpop.f32.mrf.mxu2  ;;  %v12398_v28 = vpop.f32.mrf.mxu3 }
 0x7c0   : > { %v13607_v29 = vpack.c.bf16 %v13411_v25, %v13411_v25  ;;  %v12820_v61 = vmax.f32 %v11908_v27, %v12398_v28  ;;  %v10930_v31 = vpop.f32.mrf.mxu0  ;;  %v11420_v32 = vpop.f32.mrf.mxu1 }
 0x7c1   : > { %v12625_v41 = vmax.f32 %v10930_v31, %v11420_v32 }
 0x7c2   : > { %13804 = vst.msk [vmem:[%s17303_s24 + $0x2bc] sm:$0xf] %vm13628_vm3, %v13607_v29  ;;  %v13016_v33 = vmax.f32 %v12624_v26, %v12820_v61 }
 0x7c4   : > { %v13216_v34 = vadd.f32 %v18545_v9, %v13016_v33 }
 0x7c6   : > { %v13412_v35 = vmax.f32 %v13216_v34, 0.0 }
 0x7c7   : > { %v11910_v36 = vpop.f32.mrf.mxu2  ;;  %v12400_v37 = vpop.f32.mrf.mxu3 }
 0x7c8   : > { %v13608_v40 = vpack.c.bf16 %v13412_v35, %v13412_v35  ;;  %v12821_v42 = vmax.f32 %v11910_v36, %v12400_v37  ;;  %v10933_v43 = vpop.f32.mrf.mxu0  ;;  %v11423_v44 = vpop.f32.mrf.mxu1 }
 0x7c9   : > { %v12626_v50 = vmax.f32 %v10933_v43, %v11423_v44 }
 0x7ca   : > { %13805 = vst.msk [vmem:[%s17303_s24 + $0x2c0] sm:$0xf] %vm13628_vm3, %v13608_v40  ;;  %v13017_v47 = vmax.f32 %v12625_v41, %v12821_v42 }
 0x7cb   : > { %15587 = vmatmul.msk.bf16.gmra.mxu0 %vm9295_vm2, %v15982_v38  ;;  %15685 = vmatmul.msk.bf16.gmra.mxu1 %vm9295_vm2, %v16080_v39 }
 0x7cc   : > { %v13217_v48 = vadd.f32 %v18545_v9, %v13017_v47  ;;  %15783 = vmatmul.msk.bf16.gmra.mxu2 %vm9295_vm2, %v16178_v45  ;;  %15881 = vmatmul.msk.bf16.gmra.mxu3 %vm9295_vm2, %v16276_v46 }
 0x7ce   : > { %v13413_v49 = vmax.f32 %v13217_v48, 0.0 }
 0x7cf   : > { %v11913_v30 = vpop.f32.mrf.mxu2  ;;  %v12403_v52 = vpop.f32.mrf.mxu3 }
 0x7d0   : > { %v13609_v53 = vpack.c.bf16 %v13413_v49, %v13413_v49  ;;  %v12822_v54 = vmax.f32 %v11913_v30, %v12403_v52  ;;  %v10935_v55 = vpop.f32.mrf.mxu0  ;;  %v11425_v56 = vpop.f32.mrf.mxu1 }
 0x7d1   : > { %v12627_v0 = vmax.f32 %v10935_v55, %v11425_v56 }
 0x7d2   : > { %13806 = vst.msk [vmem:[%s17303_s24 + $0x2c4] sm:$0xf] %vm13628_vm3, %v13609_v53  ;;  %v13018_v57 = vmax.f32 %v12626_v50, %v12822_v54 }
 0x7d4   : > { %v13218_v58 = vadd.f32 %v18545_v9, %v13018_v57 }
 0x7d6   : > { %v13414_v59 = vmax.f32 %v13218_v58, 0.0 }
 0x7d7   : > { %v11915_v60 = vpop.f32.mrf.mxu2  ;;  %v12405_v62 = vpop.f32.mrf.mxu3 }
 0x7d8   : > { %v13610_v63 = vpack.c.bf16 %v13414_v59, %v13414_v59  ;;  %v12823_v1 = vmax.f32 %v11915_v60, %v12405_v62  ;;  %v10938_v2 = vpop.f32.mrf.mxu0  ;;  %v11428_v3 = vpop.f32.mrf.mxu1 }
 0x7d9   : > { %v12628_v7 = vmax.f32 %v10938_v2, %v11428_v3 }
 0x7da   : > { %13807 = vst.msk [vmem:[%s17303_s24 + $0x2c8] sm:$0xf] %vm13628_vm3, %v13610_v63  ;;  %v13019_v4 = vmax.f32 %v12627_v0, %v12823_v1 }
 0x7dc   : > { %v13219_v5 = vadd.f32 %v18545_v9, %v13019_v4 }
 0x7de   : > { %v13415_v6 = vmax.f32 %v13219_v5, 0.0 }
 0x7df   : > { %v11918_v8 = vpop.f32.mrf.mxu2  ;;  %v12408_v51 = vpop.f32.mrf.mxu3 }
 0x7e0   : > { %v13611_v10 = vpack.c.bf16 %v13415_v6, %v13415_v6  ;;  %v12824_v11 = vmax.f32 %v11918_v8, %v12408_v51  ;;  %v10940_v12 = vpop.f32.mrf.mxu0  ;;  %v11430_v13 = vpop.f32.mrf.mxu1 }
 0x7e1   : > { %v12629_v20 = vmax.f32 %v10940_v12, %v11430_v13 }
 0x7e2   : > { %13808 = vst.msk [vmem:[%s17303_s24 + $0x2cc] sm:$0xf] %vm13628_vm3, %v13611_v10  ;;  %v13020_v14 = vmax.f32 %v12628_v7, %v12824_v11 }
 0x7e4   : > { %v13220_v15 = vadd.f32 %v18545_v9, %v13020_v14 }
 0x7e6   : > { %v13416_v16 = vmax.f32 %v13220_v15, 0.0 }
 0x7e7   : > { %v11920_v17 = vpop.f32.mrf.mxu2  ;;  %v12410_v18 = vpop.f32.mrf.mxu3 }
 0x7e8   : > { %v13612_v19 = vpack.c.bf16 %v13416_v16, %v13416_v16  ;;  %v12825_v21 = vmax.f32 %v11920_v17, %v12410_v18  ;;  %v10943_v22 = vpop.f32.mrf.mxu0  ;;  %v11433_v23 = vpop.f32.mrf.mxu1 }
 0x7e9   : > { %v12630_v27 = vmax.f32 %v10943_v22, %v11433_v23 }
 0x7ea   : > { %13809 = vst.msk [vmem:[%s17303_s24 + $0x2d0] sm:$0xf] %vm13628_vm3, %v13612_v19  ;;  %v13021_v24 = vmax.f32 %v12629_v20, %v12825_v21 }
 0x7ec   : > { %v13221_v25 = vadd.f32 %v18545_v9, %v13021_v24 }
 0x7ee   : > { %v13417_v26 = vmax.f32 %v13221_v25, 0.0 }
 0x7ef   : > { %v11923_v28 = vpop.f32.mrf.mxu2  ;;  %v12413_v29 = vpop.f32.mrf.mxu3 }
 0x7f0   : > { %v13613_v61 = vpack.c.bf16 %v13417_v26, %v13417_v26  ;;  %v12826_v31 = vmax.f32 %v11923_v28, %v12413_v29  ;;  %v10945_v32 = vpop.f32.mrf.mxu0  ;;  %v11435_v33 = vpop.f32.mrf.mxu1 }
 0x7f1   : > { %v12631_v40 = vmax.f32 %v10945_v32, %v11435_v33 }
 0x7f2   : > { %13810 = vst.msk [vmem:[%s17303_s24 + $0x2d4] sm:$0xf] %vm13628_vm3, %v13613_v61  ;;  %v13022_v34 = vmax.f32 %v12630_v27, %v12826_v31 }
 0x7f4   : > { %v13222_v35 = vadd.f32 %v18545_v9, %v13022_v34 }
 0x7f6   : > { %v13418_v36 = vmax.f32 %v13222_v35, 0.0 }
 0x7f7   : > { %v11925_v37 = vpop.f32.mrf.mxu2  ;;  %v12415_v38 = vpop.f32.mrf.mxu3 }
 0x7f8   : > { %v13614_v39 = vpack.c.bf16 %v13418_v36, %v13418_v36  ;;  %v12827_v41 = vmax.f32 %v11925_v37, %v12415_v38  ;;  %v10948_v42 = vpop.f32.mrf.mxu0  ;;  %v11438_v43 = vpop.f32.mrf.mxu1 }
 0x7f9   : > { %v12632_v47 = vmax.f32 %v10948_v42, %v11438_v43 }
 0x7fa   : > { %13811 = vst.msk [vmem:[%s17303_s24 + $0x2d8] sm:$0xf] %vm13628_vm3, %v13614_v39  ;;  %v13023_v44 = vmax.f32 %v12631_v40, %v12827_v41 }
 0x7fc   : > { %v13223_v45 = vadd.f32 %v18545_v9, %v13023_v44 }
 0x7fe   : > { %v13419_v46 = vmax.f32 %v13223_v45, 0.0 }
 0x7ff   : > { %v11928_v48 = vpop.f32.mrf.mxu2  ;;  %v12418_v49 = vpop.f32.mrf.mxu3 }
 0x800   : > { %v13615_v50 = vpack.c.bf16 %v13419_v46, %v13419_v46  ;;  %v12828_v30 = vmax.f32 %v11928_v48, %v12418_v49  ;;  %v10950_v52 = vpop.f32.mrf.mxu0  ;;  %v11440_v53 = vpop.f32.mrf.mxu1 }
 0x801   : > { %v12633_v60 = vmax.f32 %v10950_v52, %v11440_v53 }
 0x802   : > { %13812 = vst.msk [vmem:[%s17303_s24 + $0x2dc] sm:$0xf] %vm13628_vm3, %v13615_v50  ;;  %v13024_v54 = vmax.f32 %v12632_v47, %v12828_v30 }
 0x804   : > { %v13224_v55 = vadd.f32 %v18545_v9, %v13024_v54 }
 0x806   : > { %v13420_v56 = vmax.f32 %v13224_v55, 0.0 }
 0x807   : > { %v11930_v57 = vpop.f32.mrf.mxu2  ;;  %v12420_v58 = vpop.f32.mrf.mxu3 }
 0x808   : > { %v13616_v59 = vpack.c.bf16 %v13420_v56, %v13420_v56  ;;  %v12829_v62 = vmax.f32 %v11930_v57, %v12420_v58  ;;  %v10953_v63 = vpop.f32.mrf.mxu0  ;;  %v11443_v0 = vpop.f32.mrf.mxu1 }
 0x809   : > { %v12634_v4 = vmax.f32 %v10953_v63, %v11443_v0 }
 0x80a   : > { %13813 = vst.msk [vmem:[%s17303_s24 + $0x2e0] sm:$0xf] %vm13628_vm3, %v13616_v59  ;;  %v13025_v1 = vmax.f32 %v12633_v60, %v12829_v62 }
 0x80c   : > { %v13225_v2 = vadd.f32 %v18545_v9, %v13025_v1 }
 0x80e   : > { %v13421_v3 = vmax.f32 %v13225_v2, 0.0 }
 0x80f   : > { %v11933_v5 = vpop.f32.mrf.mxu2  ;;  %v12423_v6 = vpop.f32.mrf.mxu3 }
 0x810   : > { %v13617_v7 = vpack.c.bf16 %v13421_v3, %v13421_v3  ;;  %v12830_v8 = vmax.f32 %v11933_v5, %v12423_v6  ;;  %v10955_v51 = vpop.f32.mrf.mxu0  ;;  %v11445_v10 = vpop.f32.mrf.mxu1 }
 0x811   : > { %v12635_v17 = vmax.f32 %v10955_v51, %v11445_v10 }
 0x812   : > { %13814 = vst.msk [vmem:[%s17303_s24 + $0x2e4] sm:$0xf] %vm13628_vm3, %v13617_v7  ;;  %v13026_v11 = vmax.f32 %v12634_v4, %v12830_v8 }
 0x814   : > { %v13226_v12 = vadd.f32 %v18545_v9, %v13026_v11 }
 0x816   : > { %v13422_v13 = vmax.f32 %v13226_v12, 0.0 }
 0x817   : > { %v11935_v14 = vpop.f32.mrf.mxu2  ;;  %v12425_v15 = vpop.f32.mrf.mxu3 }
 0x818   : > { %v13618_v16 = vpack.c.bf16 %v13422_v13, %v13422_v13  ;;  %v12831_v18 = vmax.f32 %v11935_v14, %v12425_v15  ;;  %v10958_v19 = vpop.f32.mrf.mxu0  ;;  %v11448_v20 = vpop.f32.mrf.mxu1 }
 0x819   : > { %v12636_v24 = vmax.f32 %v10958_v19, %v11448_v20 }
 0x81a   : > { %13815 = vst.msk [vmem:[%s17303_s24 + $0x2e8] sm:$0xf] %vm13628_vm3, %v13618_v16  ;;  %v13027_v21 = vmax.f32 %v12635_v17, %v12831_v18 }
 0x81c   : > { %v13227_v22 = vadd.f32 %v18545_v9, %v13027_v21 }
 0x81e   : > { %v13423_v23 = vmax.f32 %v13227_v22, 0.0 }
 0x81f   : > { %v11938_v25 = vpop.f32.mrf.mxu2  ;;  %v12428_v26 = vpop.f32.mrf.mxu3 }
 0x820   : > { %v13619_v27 = vpack.c.bf16 %v13423_v23, %v13423_v23  ;;  %v12832_v28 = vmax.f32 %v11938_v25, %v12428_v26  ;;  %v10960_v29 = vpop.f32.mrf.mxu0  ;;  %v11450_v61 = vpop.f32.mrf.mxu1 }
 0x821   : > { %v12637_v37 = vmax.f32 %v10960_v29, %v11450_v61 }
 0x822   : > { %13816 = vst.msk [vmem:[%s17303_s24 + $0x2ec] sm:$0xf] %vm13628_vm3, %v13619_v27  ;;  %v13028_v31 = vmax.f32 %v12636_v24, %v12832_v28 }
 0x824   : > { %v13228_v32 = vadd.f32 %v18545_v9, %v13028_v31 }
 0x826   : > { %v13424_v33 = vmax.f32 %v13228_v32, 0.0 }
 0x827   : > { %v11940_v34 = vpop.f32.mrf.mxu2  ;;  %v12430_v35 = vpop.f32.mrf.mxu3 }
 0x828   : > { %v13620_v36 = vpack.c.bf16 %v13424_v33, %v13424_v33  ;;  %v12833_v38 = vmax.f32 %v11940_v34, %v12430_v35  ;;  %v10963_v39 = vpop.f32.mrf.mxu0  ;;  %v11453_v40 = vpop.f32.mrf.mxu1 }
 0x829   : > { %v12638_v44 = vmax.f32 %v10963_v39, %v11453_v40 }
 0x82a   : > { %13817 = vst.msk [vmem:[%s17303_s24 + $0x2f0] sm:$0xf] %vm13628_vm3, %v13620_v36  ;;  %v13029_v41 = vmax.f32 %v12637_v37, %v12833_v38 }
 0x82c   : > { %v13229_v42 = vadd.f32 %v18545_v9, %v13029_v41 }
 0x82e   : > { %v13425_v43 = vmax.f32 %v13229_v42, 0.0 }
 0x82f   : > { %v11943_v45 = vpop.f32.mrf.mxu2  ;;  %v12433_v46 = vpop.f32.mrf.mxu3 }
 0x830   : > { %v13621_v47 = vpack.c.bf16 %v13425_v43, %v13425_v43  ;;  %v12834_v48 = vmax.f32 %v11943_v45, %v12433_v46  ;;  %v10965_v49 = vpop.f32.mrf.mxu0  ;;  %v11455_v50 = vpop.f32.mrf.mxu1 }
 0x831   : > { %v12639_v57 = vmax.f32 %v10965_v49, %v11455_v50 }
 0x832   : > { %13818 = vst.msk [vmem:[%s17303_s24 + $0x2f4] sm:$0xf] %vm13628_vm3, %v13621_v47  ;;  %v13030_v30 = vmax.f32 %v12638_v44, %v12834_v48 }
 0x834   : > { %v13230_v52 = vadd.f32 %v18545_v9, %v13030_v30 }
 0x836   : > { %v13426_v53 = vmax.f32 %v13230_v52, 0.0 }
 0x837   : > { %v11945_v54 = vpop.f32.mrf.mxu2  ;;  %v12435_v55 = vpop.f32.mrf.mxu3 }
 0x838   : > { %v13622_v56 = vpack.c.bf16 %v13426_v53, %v13426_v53  ;;  %v12835_v58 = vmax.f32 %v11945_v54, %v12435_v55  ;;  %v10968_v59 = vpop.f32.mrf.mxu0  ;;  %v11458_v60 = vpop.f32.mrf.mxu1 }
 0x839   : > { %v12640_v1 = vmax.f32 %v10968_v59, %v11458_v60 }
 0x83a   : > { %13819 = vst.msk [vmem:[%s17303_s24 + $0x2f8] sm:$0xf] %vm13628_vm3, %v13622_v56  ;;  %v13031_v62 = vmax.f32 %v12639_v57, %v12835_v58 }
 0x83c   : > { %v13231_v63 = vadd.f32 %v18545_v9, %v13031_v62 }
 0x83e   : > { %v13427_v0 = vmax.f32 %v13231_v63, 0.0 }
 0x83f   : > { %v11948_v2 = vpop.f32.mrf.mxu2  ;;  %v12438_v3 = vpop.f32.mrf.mxu3 }
 0x840   : > { %v13623_v4 = vpack.c.bf16 %v13427_v0, %v13427_v0  ;;  %v12836_v5 = vmax.f32 %v11948_v2, %v12438_v3  ;;  %v10970_v6 = vpop.f32.mrf.mxu0  ;;  %v11460_v7 = vpop.f32.mrf.mxu1 }
 0x841   : > { %v12641_v14 = vmax.f32 %v10970_v6, %v11460_v7 }
 0x842   : > { %13820 = vst.msk [vmem:[%s17303_s24 + $0x2fc] sm:$0xf] %vm13628_vm3, %v13623_v4  ;;  %v13032_v8 = vmax.f32 %v12640_v1, %v12836_v5 }
 0x844   : > { %v13232_v51 = vadd.f32 %v18545_v9, %v13032_v8 }
 0x846   : > { %v13428_v10 = vmax.f32 %v13232_v51, 0.0 }
 0x847   : > { %v11950_v11 = vpop.f32.mrf.mxu2  ;;  %v12440_v12 = vpop.f32.mrf.mxu3 }
 0x848   : > { %v13624_v13 = vpack.c.bf16 %v13428_v10, %v13428_v10  ;;  %v12837_v15 = vmax.f32 %v11950_v11, %v12440_v12  ;;  %v10973_v17 = vpop.f32.mrf.mxu0  ;;  %v11463_v18 = vpop.f32.mrf.mxu1 }
 0x849   : > { %v12642_v21 = vmax.f32 %v10973_v17, %v11463_v18 }
 0x84a   : > { %13821 = vst.msk [vmem:[%s17303_s24 + $0x300] sm:$0xf] %vm13628_vm3, %v13624_v13  ;;  %v13033_v16 = vmax.f32 %v12641_v14, %v12837_v15 }
 0x84c   : > { %v13233_v19 = vadd.f32 %v18545_v9, %v13033_v16 }
 0x84e   : > { %v13429_v20 = vmax.f32 %v13233_v19, 0.0 }
 0x84f   : > { %v11953_v22 = vpop.f32.mrf.mxu2  ;;  %v12443_v23 = vpop.f32.mrf.mxu3 }
 0x850   : > { %v13625_v24 = vpack.c.bf16 %v13429_v20, %v13429_v20  ;;  %v12838_v25 = vmax.f32 %v11953_v22, %v12443_v23  ;;  %v10975_v28 = vpop.f32.mrf.mxu0  ;;  %v11465_v29 = vpop.f32.mrf.mxu1 }
 0x851   : > { %v12643_v34 = vmax.f32 %v10975_v28, %v11465_v29 }
 0x852   : > { %13822 = vst.msk [vmem:[%s17303_s24 + $0x304] sm:$0xf] %vm13628_vm3, %v13625_v24  ;;  %v13034_v26 = vmax.f32 %v12642_v21, %v12838_v25 }
 0x854   : > { %v13234_v27 = vadd.f32 %v18545_v9, %v13034_v26 }
 0x856   : > { %v13430_v61 = vmax.f32 %v13234_v27, 0.0 }
 0x857   : > { %v11955_v31 = vpop.f32.mrf.mxu2  ;;  %v12445_v32 = vpop.f32.mrf.mxu3 }
 0x858   : > { %v13626_v33 = vpack.c.bf16 %v13430_v61, %v13430_v61  ;;  %v12839_v35 = vmax.f32 %v11955_v31, %v12445_v32 }
 0x85a   : > { %13823 = vst.msk [vmem:[%s17303_s24 + $0x308] sm:$0xf] %vm13628_vm3, %v13626_v33  ;;  %v13035_v36 = vmax.f32 %v12643_v34, %v12839_v35 }
 0x85c   : > { %v13235_v37 = vadd.f32 %v18545_v9, %v13035_v36 }
 0x85e   : > { %v13431_v38 = vmax.f32 %v13235_v37, 0.0 }
 0x860   : > { %v13627_v39 = vpack.c.bf16 %v13431_v38, %v13431_v38 }
 0x862   : > { %13824 = vst.msk [vmem:[%s17303_s24 + $0x30c] sm:$0xf] %vm13628_vm3, %v13627_v39 }
 0x863 PF: > { %p10_p9 = scmp.ge.s32.totalorder %s16392_s16, 4   ;;  %s18643_s12 = smov %s16348_s13 }
 0x864   : > { %s18644_s13 = smov %s16401_s19  ;;  %s18645_s14 = smov %s16392_s16 }
 0x865   :  { %12 = sbr.rel (!%p10_p9) target bundleno = 2 (0x2), region = 123 }

// kernel: net_forward.3
= control target key start
LH: loop header
LB: loop body
LE: loop exit
PB: predicated region body
PF: predicated region fallthrough
CT: control target
= control target key end

     0   :  { %vm1534_vm0 = vcmask 1043456   ;;  %vm1233_vm1 = vcmask 588800   ;;  %s4552_s14 = smov 48   ;;  %s4553_s30 = smov 64   ;;  %vm2922_vm2 = vcmask 130048   ;;  %vm2925_vm3 = vcmask 261120   ;;  %s6991_s1 = inlined_call_operand.vmem [shape: bf16[200,16], index: 1, kind: input, shape index: {}]   ;;  %s6992_s0 = inlined_call_operand.vmem [shape: bf16[4,25,16,200], index: 0, kind: input, shape index: {}]   ;;  %s6993_s3 = inlined_call_operand.vmem [shape: f32[400,128], index: 3, kind: input, shape index: {}]   ;;  %s6994_s2 = inlined_call_operand.vmem [shape: f32[1,16], index: 2, kind: input, shape index: {}]   ;;  %s6995_s4 = inlined_call_operand.vmem [shape: f32[1,128], index: 4, kind: input, shape index: {}]   ;;  %s6996_s5 = inlined_call_operand.vmem [shape: f32[128,128], index: 5, kind: input, shape index: {}]   ;;  %s6997_s6 = inlined_call_operand.vmem [shape: f32[1,128], index: 6, kind: input, shape index: {}]   ;;  %s6998_s7 = inlined_call_operand.vmem [shape: f32[128,128], index: 7, kind: input, shape index: {}]   ;;  %s6999_s8 = inlined_call_operand.vmem [shape: f32[1,128], index: 8, kind: input, shape index: {}]   ;;  %s7000_s9 = inlined_call_operand.vmem [shape: f32[16,128], index: 9, kind: output, shape index: {}]  }
   0x1   :  { %v4432_v0 = vld [vmem:[%s6991_s1 + $0x38] sm:$0xff]  ;;  %v257_v1 = vld [vmem:[%s6991_s1 + $0x60] sm:$0xf]  ;;  %v4431_v3 = vld [vmem:[%s6991_s1 + $0x30] sm:$0xff]  ;;  %s4554_s27 = smov 80   ;;  %s4555_s16 = smov 96  }
   0x2   :  { %v1207_v2 = vunpack.c.l.b16 %v257_v1  ;;  %1538 = vmatpush.bf16.msra.mxu0 %v4432_v0  ;;  %4437 = vmatpush.bf16.msra.mxu3 %v4432_v0  ;;  %v4430_v6 = vld [vmem:[%s6991_s1 + $0x28] sm:$0xff]  ;;  %v4436_v7 = vld [vmem:[%s6991_s1 + $0x58] sm:$0xff]  ;;  %v4429_v8 = vld [vmem:[%s6991_s1 + $0x20] sm:$0xff]  ;;  %s4556_s25 = smov 112   ;;  %vm2928_vm4 = vcmask 392192   ;;  %vm2931_vm5 = vcmask 523264  }
   0x3   :  { %v4435_v9 = vld [vmem:[%s6991_s1 + $0x50] sm:$0xff]  ;;  %v4428_v10 = vld [vmem:[%s6991_s1 + $0x18] sm:$0xff]  ;;  %v4434_v11 = vld [vmem:[%s6991_s1 + $0x48] sm:$0xff]  ;;  %vm2937_vm6 = vcmask 785408   ;;  %vm2934_vm7 = vcmask 654336   ;;  %vm2940_vm8 = vcmask 916480  }
   0x4   :  { %v1220_v4 = vpack.c.b16 %v1207_v2, %v1207_v2  ;;  %v4427_v12 = vld [vmem:[%s6991_s1 + $0x10] sm:$0xff]  ;;  %v4433_v13 = vld [vmem:[%s6991_s1 + $0x40] sm:$0xff]  ;;  %v3279_v15 = vld [vmem:[%s6992_s0 + $0x8] sm:$0xf0] }
   0x5   :  { %v4225_v14 = vld [vmem:[%s6992_s0 + $0x4] sm:$0xf]  ;;  %v4331_v16 = vld [vmem:[%s6992_s0 + $0x354] sm:$0xf]  ;;  %v3703_v17 = vld [vmem:[%s6992_s0 + $0x358] sm:$0xf0] }
   0x6   :  { %v1536_v5 = vsel %vm1534_vm0, %v1220_v4, 0  ;;  %1539 = vmatpush.bf16.msra.mxu0 %v4431_v3  ;;  %4438 = vmatpush.bf16.msra.mxu3 %v4431_v3  ;;  %v3282_v18 = vor.u32 %v4225_v14, %v3279_v15  ;;  %v4426_v19 = vld [vmem:[%s6991_s1 + $0x8] sm:$0xff]  ;;  %v3706_v20 = vor.u32 %v4331_v16, %v3703_v17  ;;  %v4425_v21 = vld [vmem:[%s6991_s1] sm:$0xff]  ;;  %v3701_v24 = vld [vmem:[%s6992_s0 + $0x350] sm:$0xf]  ;;  %s4557_s1 = smov 16  }
   0x7   :  { %2050 = vmatpush.bf16.msra.mxu1 %v1536_v5  ;;  %4445 = vmatpush.bf16.msra.mxu2 %v1536_v5  ;;  %v3277_v22 = vld [vmem:[%s6992_s0] sm:$0xf]  ;;  %v4226_v23 = vld [vmem:[%s6992_s0 + $0x4] sm:$0xf0]  ;;  %v4332_v25 = vld [vmem:[%s6992_s0 + $0x354] sm:$0xf0] }
   0x8   :  { %v3278_v26 = vor.u32 %v4226_v23, %v3277_v22  ;;  %v3702_v27 = vor.u32 %v4332_v25, %v3701_v24  ;;  %v4227_v28 = vld [vmem:[%s6992_s0 + $0x14] sm:$0xf]  ;;  %v3287_v29 = vld [vmem:[%s6992_s0 + $0x18] sm:$0xf0]  ;;  %v4333_v30 = vld [vmem:[%s6992_s0 + $0x364] sm:$0xf] }
   0x9   :  { %v3711_v31 = vld [vmem:[%s6992_s0 + $0x368] sm:$0xf0]  ;;  %v3290_v32 = vor.u32 %v4227_v28, %v3287_v29  ;;  %v3285_v34 = vld [vmem:[%s6992_s0 + $0x10] sm:$0xf]  ;;  %v4228_v35 = vld [vmem:[%s6992_s0 + $0x14] sm:$0xf0] }
   0xa   :  { %1540 = vmatpush.bf16.msra.mxu0 %v4430_v6  ;;  %4439 = vmatpush.bf16.msra.mxu3 %v4430_v6  ;;  %v3714_v33 = vor.u32 %v4333_v30, %v3711_v31  ;;  %v3709_v36 = vld [vmem:[%s6992_s0 + $0x360] sm:$0xf]  ;;  %v4334_v37 = vld [vmem:[%s6992_s0 + $0x364] sm:$0xf0]  ;;  %v3286_v38 = vor.u32 %v4228_v35, %v3285_v34  ;;  %v4229_v40 = vld [vmem:[%s6992_s0 + $0x24] sm:$0xf] }
   0xb   :  { %2051 = vmatpush.bf16.msra.mxu1 %v4436_v7  ;;  %4446 = vmatpush.bf16.msra.mxu2 %v4436_v7  ;;  %v3710_v39 = vor.u32 %v4334_v37, %v3709_v36  ;;  %v3295_v41 = vld [vmem:[%s6992_s0 + $0x28] sm:$0xf0]  ;;  %v4335_v42 = vld [vmem:[%s6992_s0 + $0x374] sm:$0xf]  ;;  %v3719_v43 = vld [vmem:[%s6992_s0 + $0x378] sm:$0xf0] }
   0xc   :  { %v3298_v44 = vor.u32 %v4229_v40, %v3295_v41  ;;  %v3722_v45 = vor.u32 %v4335_v42, %v3719_v43  ;;  %v3293_v46 = vld [vmem:[%s6992_s0 + $0x20] sm:$0xf]  ;;  %v4230_v47 = vld [vmem:[%s6992_s0 + $0x24] sm:$0xf0]  ;;  %v3717_v48 = vld [vmem:[%s6992_s0 + $0x370] sm:$0xf] }
   0xd   :  { %v4336_v49 = vld [vmem:[%s6992_s0 + $0x374] sm:$0xf0]  ;;  %v3294_v50 = vor.u32 %v4230_v47, %v3293_v46  ;;  %v4231_v52 = vld [vmem:[%s6992_s0 + $0x34] sm:$0xf]  ;;  %v3303_v53 = vld [vmem:[%s6992_s0 + $0x38] sm:$0xf0] }
   0xe   :  { %1541 = vmatpush.bf16.msra.mxu0 %v4429_v8  ;;  %4440 = vmatpush.bf16.msra.mxu3 %v4429_v8  ;;  %v3718_v51 = vor.u32 %v4336_v49, %v3717_v48  ;;  %v4337_v54 = vld [vmem:[%s6992_s0 + $0x384] sm:$0xf]  ;;  %v3727_v55 = vld [vmem:[%s6992_s0 + $0x388] sm:$0xf0]  ;;  %v3306_v56 = vor.u32 %v4231_v52, %v3303_v53  ;;  %v3301_v58 = vld [vmem:[%s6992_s0 + $0x30] sm:$0xf] }
   0xf   :  { %2052 = vmatpush.bf16.msra.mxu1 %v4435_v9  ;;  %4447 = vmatpush.bf16.msra.mxu2 %v4435_v9  ;;  %v3730_v57 = vor.u32 %v4337_v54, %v3727_v55  ;;  %v4232_v59 = vld [vmem:[%s6992_s0 + $0x34] sm:$0xf0]  ;;  %v3725_v60 = vld [vmem:[%s6992_s0 + $0x380] sm:$0xf]  ;;  %v4338_v61 = vld [vmem:[%s6992_s0 + $0x384] sm:$0xf0] }
  0x10   :  { %v3302_v62 = vor.u32 %v4232_v59, %v3301_v58  ;;  %v3726_v63 = vor.u32 %v4338_v61, %v3725_v60  ;;  %v4233_v0 = vld [vmem:[%s6992_s0 + $0x44] sm:$0xf]  ;;  %v3311_v1 = vld [vmem:[%s6992_s0 + $0x48] sm:$0xf0]  ;;  %v4339_v2 = vld [vmem:[%s6992_s0 + $0x394] sm:$0xf] }
  0x11   :  { %v3735_v3 = vld [vmem:[%s6992_s0 + $0x398] sm:$0xf0]  ;;  %v3314_v4 = vor.u32 %v4233_v0, %v3311_v1  ;;  %v3309_v6 = vld [vmem:[%s6992_s0 + $0x40] sm:$0xf]  ;;  %v4234_v7 = vld [vmem:[%s6992_s0 + $0x44] sm:$0xf0] }
  0x12   :  { %1542 = vmatpush.bf16.msra.mxu0 %v4428_v10  ;;  %4441 = vmatpush.bf16.msra.mxu3 %v4428_v10  ;;  %v3738_v5 = vor.u32 %v4339_v2, %v3735_v3  ;;  %v3733_v8 = vld [vmem:[%s6992_s0 + $0x390] sm:$0xf]  ;;  %v4340_v9 = vld [vmem:[%s6992_s0 + $0x394] sm:$0xf0]  ;;  %v3310_v10 = vor.u32 %v4234_v7, %v3309_v6  ;;  %v4341_v14 = vld [vmem:[%s6992_s0 + $0x3a4] sm:$0xf] }
  0x13   :  { %2053 = vmatpush.bf16.msra.mxu1 %v4434_v11  ;;  %4448 = vmatpush.bf16.msra.mxu2 %v4434_v11  ;;  %v3734_v11 = vor.u32 %v4340_v9, %v3733_v8  ;;  %v3743_v15 = vld [vmem:[%s6992_s0 + $0x3a8] sm:$0xf0]  ;;  %v4237_v24 = vld [vmem:[%s6992_s0 + $0x64] sm:$0xf]  ;;  %v3325_v30 = vld [vmem:[%s6992_s0 + $0x60] sm:$0xf] }
  0x14   :  { %v3746_v17 = vor.u32 %v4341_v14, %v3743_v15  ;;  %v3327_v25 = vld [vmem:[%s6992_s0 + $0x68] sm:$0xf0]  ;;  %v4238_v31 = vld [vmem:[%s6992_s0 + $0x64] sm:$0xf0]  ;;  %v4239_v36 = vld [vmem:[%s6992_s0 + $0x74] sm:$0xf] }
  0x15   :  { %v3330_v28 = vor.u32 %v4237_v24, %v3327_v25  ;;  %v3326_v34 = vor.u32 %v4238_v31, %v3325_v30  ;;  %v3335_v37 = vld [vmem:[%s6992_s0 + $0x78] sm:$0xf0]  ;;  %v3333_v42 = vld [vmem:[%s6992_s0 + $0x70] sm:$0xf]  ;;  %v4240_v43 = vld [vmem:[%s6992_s0 + $0x74] sm:$0xf0] }
  0x16   :  { %1543 = vmatpush.bf16.msra.mxu0 %v4427_v12  ;;  %4442 = vmatpush.bf16.msra.mxu3 %v4427_v12  ;;  %v4235_v12 = vld [vmem:[%s6992_s0 + $0x54] sm:$0xf]  ;;  %v3338_v40 = vor.u32 %v4239_v36, %v3335_v37  ;;  %v3334_v46 = vor.u32 %v4240_v43, %v3333_v42  ;;  %v4241_v48 = vld [vmem:[%s6992_s0 + $0x84] sm:$0xf]  ;;  %v3343_v49 = vld [vmem:[%s6992_s0 + $0x88] sm:$0xf0] }
  0x17   :  { %2054 = vmatpush.bf16.msra.mxu1 %v4433_v13  ;;  %4449 = vmatpush.bf16.msra.mxu2 %v4433_v13  ;;  %v3319_v13 = vld [vmem:[%s6992_s0 + $0x58] sm:$0xf0]  ;;  %v3346_v52 = vor.u32 %v4241_v48, %v3343_v49  ;;  %v3341_v55 = vld [vmem:[%s6992_s0 + $0x80] sm:$0xf]  ;;  %v4348_v58 = vld [vmem:[%s6992_s0 + $0x3d4] sm:$0xf0] }
  0x18   :  { %v3322_v16 = vor.u32 %v4235_v12, %v3319_v13  ;;  %v4243_v1 = vld [vmem:[%s6992_s0 + $0x94] sm:$0xf]  ;;  %v3351_v2 = vld [vmem:[%s6992_s0 + $0x98] sm:$0xf0]  ;;  %v4349_v3 = vld [vmem:[%s6992_s0 + $0x3e4] sm:$0xf] }
  0x19   :  { %v3354_v8 = vor.u32 %v4243_v1, %v3351_v2  ;;  %v3349_v13 = vld [vmem:[%s6992_s0 + $0x90] sm:$0xf]  ;;  %v4244_v14 = vld [vmem:[%s6992_s0 + $0x94] sm:$0xf0]  ;;  %v3773_v15 = vld [vmem:[%s6992_s0 + $0x3e0] sm:$0xf] }
  0x1a   :  { %4123 = vmatmul.msk.bf16.vlgmr.msra.gmra.mxu1 %vm1233_vm1, %v3282_v18  ;;  %1544 = vmatpush.bf16.msra.mxu0 %v4426_v19  ;;  %v3317_v18 = vld [vmem:[%s6992_s0 + $0x50] sm:$0xf]  ;;  %v4245_v25 = vld [vmem:[%s6992_s0 + $0xa4] sm:$0xf]  ;;  %v3357_v37 = vld [vmem:[%s6992_s0 + $0xa0] sm:$0xf] }
  0x1b   :  { %4443 = vmatpush.bf16.msra.mxu3 %v4426_v19  ;;  %4176 = vmatmul.msk.bf16.vlgmr.msra.gmra.mxu2 %vm1233_vm1, %v3706_v20  ;;  %v4236_v19 = vld [vmem:[%s6992_s0 + $0x54] sm:$0xf0]  ;;  %v3741_v20 = vld [vmem:[%s6992_s0 + $0x3a0] sm:$0xf]  ;;  %v4247_v49 = vld [vmem:[%s6992_s0 + $0xb4] sm:$0xf] }
  0x1c   :  { %v3318_v22 = vor.u32 %v4236_v19, %v3317_v18  ;;  %v3350_v18 = vor.u32 %v4244_v14, %v3349_v13  ;;  %v4354_v1 = vld [vmem:[%s6992_s0 + $0x404] sm:$0xf0]  ;;  %v3375_v13 = vld [vmem:[%s6992_s0 + $0xc8] sm:$0xf0]  ;;  %v4355_v14 = vld [vmem:[%s6992_s0 + $0x414] sm:$0xf] }
  0x1e   :  { %1545 = vmatpush.bf16.msra.mxu0 %v4425_v21 }
  0x1f   :  { %4444 = vmatpush.bf16.msra.mxu3 %v4425_v21  ;;  %v4342_v21 = vld [vmem:[%s6992_s0 + $0x3a4] sm:$0xf0] }
  0x20   :  { %v3742_v23 = vor.u32 %v4342_v21, %v3741_v20 }
  0x21   :  { %1546 = vmatmul.bf16.vlgmr.msra.gmra.mxu0 %v3278_v26  ;;  %v4343_v26 = vld [vmem:[%s6992_s0 + $0x3b4] sm:$0xf] }
  0x22   :  { %1811 = vmatmul.bf16.vlgmr.msra.gmra.mxu3 %v3702_v27  ;;  %v3751_v27 = vld [vmem:[%s6992_s0 + $0x3b8] sm:$0xf0] }
  0x23   :  { %v3754_v29 = vor.u32 %v4343_v26, %v3751_v27  ;;  %v3359_v26 = vld [vmem:[%s6992_s0 + $0xa8] sm:$0xf0]  ;;  %v4351_v27 = vld [vmem:[%s6992_s0 + $0x3f4] sm:$0xf] }
  0x2a   :  { %4124 = vmatmul.msk.bf16.gmra.mxu1 %vm1233_vm1, %v3290_v32  ;;  %v3749_v32 = vld [vmem:[%s6992_s0 + $0x3b0] sm:$0xf] }
  0x2b   :  { %4177 = vmatmul.msk.bf16.gmra.mxu2 %vm1233_vm1, %v3714_v33  ;;  %v4344_v33 = vld [vmem:[%s6992_s0 + $0x3b4] sm:$0xf0] }
  0x2c   :  { %v3750_v35 = vor.u32 %v4344_v33, %v3749_v32  ;;  %v3362_v32 = vor.u32 %v4245_v25, %v3359_v26  ;;  %v3373_v26 = vld [vmem:[%s6992_s0 + $0xc0] sm:$0xf] }
  0x31   :  { %1551 = vmatmul.bf16.gmra.mxu0 %v3286_v38  ;;  %v4345_v38 = vld [vmem:[%s6992_s0 + $0x3c4] sm:$0xf] }
  0x32   :  { %1816 = vmatmul.bf16.gmra.mxu3 %v3710_v39  ;;  %v3759_v39 = vld [vmem:[%s6992_s0 + $0x3c8] sm:$0xf0] }
  0x33   :  { %v3762_v41 = vor.u32 %v4345_v38, %v3759_v39  ;;  %v4246_v38 = vld [vmem:[%s6992_s0 + $0xa4] sm:$0xf0]  ;;  %v3781_v39 = vld [vmem:[%s6992_s0 + $0x3f0] sm:$0xf] }
  0x34   :  { %v3358_v42 = vor.u32 %v4246_v38, %v3357_v37 }
  0x3a   :  { %4125 = vmatmul.msk.bf16.gmra.mxu1 %vm1233_vm1, %v3298_v44  ;;  %v3757_v44 = vld [vmem:[%s6992_s0 + $0x3c0] sm:$0xf] }
  0x3b   :  { %4178 = vmatmul.msk.bf16.gmra.mxu2 %vm1233_vm1, %v3722_v45  ;;  %v4346_v45 = vld [vmem:[%s6992_s0 + $0x3c4] sm:$0xf0] }
  0x3c   :  { %v3758_v47 = vor.u32 %v4346_v45, %v3757_v44 }
  0x41   :  { %1556 = vmatmul.bf16.gmra.mxu0 %v3294_v50  ;;  %v4347_v50 = vld [vmem:[%s6992_s0 + $0x3d4] sm:$0xf] }
  0x42   :  { %1821 = vmatmul.bf16.gmra.mxu3 %v3718_v51  ;;  %v3767_v51 = vld [vmem:[%s6992_s0 + $0x3d8] sm:$0xf0] }
  0x43   :  { %v3770_v54 = vor.u32 %v4347_v50, %v3767_v51  ;;  %v3367_v50 = vld [vmem:[%s6992_s0 + $0xb8] sm:$0xf0]  ;;  %v4353_v51 = vld [vmem:[%s6992_s0 + $0x404] sm:$0xf] }
  0x4a   :  { %4126 = vmatmul.msk.bf16.gmra.mxu1 %vm1233_vm1, %v3306_v56  ;;  %v4242_v56 = vld [vmem:[%s6992_s0 + $0x84] sm:$0xf0] }
  0x4b   :  { %4179 = vmatmul.msk.bf16.gmra.mxu2 %vm1233_vm1, %v3730_v57  ;;  %v3765_v57 = vld [vmem:[%s6992_s0 + $0x3d0] sm:$0xf]  ;;  %v3342_v59 = vor.u32 %v4242_v56, %v3341_v55  ;;  %v3370_v56 = vor.u32 %v4247_v49, %v3367_v50 }
  0x4c   :  { %v3766_v61 = vor.u32 %v4348_v58, %v3765_v57 }
  0x51   :  { %1561 = vmatmul.bf16.gmra.mxu0 %v3302_v62 }
  0x52   :  { %1826 = vmatmul.bf16.gmra.mxu3 %v3726_v63 }
  0x5a   :  { %4127 = vmatmul.msk.bf16.gmra.mxu1 %vm1233_vm1, %v3314_v4  ;;  %v3775_v4 = vld [vmem:[%s6992_s0 + $0x3e8] sm:$0xf0] }
  0x5b   :  { %4180 = vmatmul.msk.bf16.gmra.mxu2 %vm1233_vm1, %v3738_v5  ;;  %v3778_v12 = vor.u32 %v4349_v3, %v3775_v4 }
  0x61   :  { %1566 = vmatmul.bf16.gmra.mxu0 %v3310_v10 }
  0x62   :  { %1831 = vmatmul.bf16.gmra.mxu3 %v3734_v11 }
  0x6a   :  { %4128 = vmatmul.msk.bf16.gmra.mxu1 %vm1233_vm1, %v3322_v16  ;;  %v4350_v16 = vld [vmem:[%s6992_s0 + $0x3e4] sm:$0xf0] }
  0x6b   :  { %4181 = vmatmul.msk.bf16.gmra.mxu2 %vm1233_vm1, %v3746_v17  ;;  %v3774_v21 = vor.u32 %v4350_v16, %v3773_v15  ;;  %v3799_v15 = vld [vmem:[%s6992_s0 + $0x418] sm:$0xf0] }
  0x6c   :  { %v3802_v25 = vor.u32 %v4355_v14, %v3799_v15 }
  0x71   :  { %1571 = vmatmul.bf16.gmra.mxu0 %v3318_v22 }
  0x72   :  { %1836 = vmatmul.bf16.gmra.mxu3 %v3742_v23 }
  0x7a   :  { %4129 = vmatmul.msk.bf16.gmra.mxu1 %vm1233_vm1, %v3330_v28  ;;  %v3783_v28 = vld [vmem:[%s6992_s0 + $0x3f8] sm:$0xf0] }
  0x7b   :  { %4182 = vmatmul.msk.bf16.gmra.mxu2 %vm1233_vm1, %v3754_v29  ;;  %v3786_v36 = vor.u32 %v4351_v27, %v3783_v28  ;;  %v4250_v27 = vld [vmem:[%s6992_s0 + $0xc4] sm:$0xf0]  ;;  %v3797_v28 = vld [vmem:[%s6992_s0 + $0x410] sm:$0xf] }
  0x81   :  { %1576 = vmatmul.bf16.gmra.mxu0 %v3326_v34 }
  0x82   :  { %1841 = vmatmul.bf16.gmra.mxu3 %v3750_v35 }
  0x8a   :  { %4130 = vmatmul.msk.bf16.gmra.mxu1 %vm1233_vm1, %v3338_v40  ;;  %v4352_v40 = vld [vmem:[%s6992_s0 + $0x3f4] sm:$0xf0] }
  0x8b   :  { %4183 = vmatmul.msk.bf16.gmra.mxu2 %vm1233_vm1, %v3762_v41  ;;  %v3782_v45 = vor.u32 %v4352_v40, %v3781_v39  ;;  %v4251_v40 = vld [vmem:[%s6992_s0 + $0xd4] sm:$0xf] }
  0x91   :  { %1581 = vmatmul.bf16.gmra.mxu0 %v3334_v46 }
  0x92   :  { %1846 = vmatmul.bf16.gmra.mxu3 %v3758_v47 }
  0x97   :  { %v2056_v53 = vpop.f32.mrf.mxu1 }
  0x9a   :  { %4131 = vmatmul.msk.bf16.gmra.mxu1 %vm1233_vm1, %v3346_v52  ;;  %v3791_v52 = vld [vmem:[%s6992_s0 + $0x408] sm:$0xf0] }
  0x9b   :  { %4184 = vmatmul.msk.bf16.gmra.mxu2 %vm1233_vm1, %v3770_v54 }
  0x9e   :  { %v1547_v60 = vpop.f32.mrf.mxu0  ;;  %v2321_v62 = vpop.f32.mrf.mxu2 }
  0x9f   :  { %v4882_v63 = vadd.f32 %v2056_v53, %v1547_v60  ;;  %v2058_v0 = vpop.f32.mrf.mxu1  ;;  %v3794_v60 = vor.u32 %v4353_v51, %v3791_v52 }
  0xa1   :  { %7016 = vst [vmem:[#allocation2_spill] sm:$0xff] %v4882_v63  ;;  %1586 = vmatmul.bf16.gmra.mxu0 %v3342_v59 }
  0xa2   :  { %1851 = vmatmul.bf16.gmra.mxu3 %v3766_v61  ;;  %v3365_v61 = vld [vmem:[%s6992_s0 + $0xb0] sm:$0xf] }
  0xa5   :  { %v1812_v5 = vpop.f32.mrf.mxu3 }
  0xa6   :  { %v4896_v6 = vadd.f32 %v2321_v62, %v1812_v5  ;;  %v1549_v7 = vpop.f32.mrf.mxu0  ;;  %v2323_v9 = vpop.f32.mrf.mxu2  ;;  %v4248_v62 = vld [vmem:[%s6992_s0 + $0xb4] sm:$0xf0] }
  0xa7   :  { %v4898_v10 = vadd.f32 %v2058_v0, %v1549_v7  ;;  %v2061_v11 = vpop.f32.mrf.mxu1  ;;  %v3789_v0 = vld [vmem:[%s6992_s0 + $0x400] sm:$0xf]  ;;  %v3366_v3 = vor.u32 %v4248_v62, %v3365_v61 }
  0xa8   :  { %v3790_v7 = vor.u32 %v4354_v1, %v3789_v0 }
  0xa9   :  { %7017 = vst [vmem:[#allocation3_spill] sm:$0xff] %v4898_v10 }
  0xaa   :  { %4132 = vmatmul.msk.bf16.gmra.mxu1 %vm1233_vm1, %v3354_v8 }
  0xab   :  { %4185 = vmatmul.msk.bf16.gmra.mxu2 %vm1233_vm1, %v3778_v12  ;;  %v4249_v12 = vld [vmem:[%s6992_s0 + $0xc4] sm:$0xf] }
  0xad   :  { %v1814_v17 = vpop.f32.mrf.mxu3 }
  0xae   :  { %v4914_v19 = vadd.f32 %v2323_v9, %v1814_v17  ;;  %v1552_v20 = vpop.f32.mrf.mxu0  ;;  %v2326_v22 = vpop.f32.mrf.mxu2 }
  0xaf   :  { %v4916_v23 = vadd.f32 %v2061_v11, %v1552_v20  ;;  %v2063_v24 = vpop.f32.mrf.mxu1  ;;  %v3378_v20 = vor.u32 %v4249_v12, %v3375_v13  ;;  %v3815_v12 = vld [vmem:[%s6992_s0 + $0x438] sm:$0xf0] }
  0xb1   :  { %7018 = vst [vmem:[#allocation4_spill] sm:$0xff] %v4916_v23  ;;  %1591 = vmatmul.bf16.gmra.mxu0 %v3350_v18 }
  0xb2   :  { %1856 = vmatmul.bf16.gmra.mxu3 %v3774_v21 }
  0xb5   :  { %v1817_v29 = vpop.f32.mrf.mxu3 }
  0xb6   :  { %v4930_v30 = vadd.f32 %v2326_v22, %v1817_v29  ;;  %v1554_v31 = vpop.f32.mrf.mxu0  ;;  %v2328_v33 = vpop.f32.mrf.mxu2  ;;  %v4356_v29 = vld [vmem:[%s6992_s0 + $0x414] sm:$0xf0] }
  0xb7   :  { %v4932_v34 = vadd.f32 %v2063_v24, %v1554_v31  ;;  %v2066_v35 = vpop.f32.mrf.mxu1 }
  0xb9   :  { %7019 = vst [vmem:[#allocation5_spill] sm:$0xff] %v4932_v34 }
  0xba   :  { %4133 = vmatmul.msk.bf16.gmra.mxu1 %vm1233_vm1, %v3362_v32  ;;  %v3374_v32 = vor.u32 %v4250_v27, %v3373_v26  ;;  %v4254_v26 = vld [vmem:[%s6992_s0 + $0xe4] sm:$0xf0]  ;;  %v3813_v27 = vld [vmem:[%s6992_s0 + $0x430] sm:$0xf] }
  0xbb   :  { %4186 = vmatmul.msk.bf16.gmra.mxu2 %vm1233_vm1, %v3786_v36  ;;  %v3798_v36 = vor.u32 %v4356_v29, %v3797_v28  ;;  %v4360_v28 = vld [vmem:[%s6992_s0 + $0x434] sm:$0xf0] }
  0xbd   :  { %v1819_v41 = vpop.f32.mrf.mxu3 }
  0xbe   :  { %v4948_v43 = vadd.f32 %v2328_v33, %v1819_v41  ;;  %v1557_v44 = vpop.f32.mrf.mxu0  ;;  %v2331_v46 = vpop.f32.mrf.mxu2  ;;  %v3383_v41 = vld [vmem:[%s6992_s0 + $0xd8] sm:$0xf0] }
  0xbf   :  { %v4950_v47 = vadd.f32 %v2066_v35, %v1557_v44  ;;  %v2068_v48 = vpop.f32.mrf.mxu1  ;;  %v3807_v44 = vld [vmem:[%s6992_s0 + $0x428] sm:$0xf0]  ;;  %v3386_v49 = vor.u32 %v4251_v40, %v3383_v41  ;;  %v4255_v41 = vld [vmem:[%s6992_s0 + $0xf4] sm:$0xf] }
  0xc1   :  { %7020 = vst [vmem:[#allocation6_spill] sm:$0xff] %v4950_v47  ;;  %1596 = vmatmul.bf16.gmra.mxu0 %v3358_v42  ;;  %v4357_v42 = vld [vmem:[%s6992_s0 + $0x424] sm:$0xf] }
  0xc2   :  { %1861 = vmatmul.bf16.gmra.mxu3 %v3782_v45 }
  0xc5   :  { %v1822_v53 = vpop.f32.mrf.mxu3 }
  0xc6   :  { %v4964_v54 = vadd.f32 %v2331_v46, %v1822_v53  ;;  %v1559_v55 = vpop.f32.mrf.mxu0  ;;  %v2333_v57 = vpop.f32.mrf.mxu2  ;;  %v3810_v53 = vor.u32 %v4357_v42, %v3807_v44  ;;  %v3399_v42 = vld [vmem:[%s6992_s0 + $0xf8] sm:$0xf0]  ;;  %v4361_v44 = vld [vmem:[%s6992_s0 + $0x444] sm:$0xf] }
  0xc7   :  { %v4966_v58 = vadd.f32 %v2068_v48, %v1559_v55  ;;  %v2071_v59 = vpop.f32.mrf.mxu1  ;;  %v3381_v55 = vld [vmem:[%s6992_s0 + $0xd0] sm:$0xf] }
  0xc9   :  { %7021 = vst [vmem:[#allocation7_spill] sm:$0xff] %v4966_v58 }
  0xca   :  { %4134 = vmatmul.msk.bf16.gmra.mxu1 %vm1233_vm1, %v3370_v56  ;;  %v4252_v56 = vld [vmem:[%s6992_s0 + $0xd4] sm:$0xf0] }
  0xcb   :  { %4187 = vmatmul.msk.bf16.gmra.mxu2 %vm1233_vm1, %v3794_v60  ;;  %v3382_v61 = vor.u32 %v4252_v56, %v3381_v55 }
  0xcd   :  { %v1824_v2 = vpop.f32.mrf.mxu3 }
  0xce   :  { %v4982_v4 = vadd.f32 %v2333_v57, %v1824_v2  ;;  %v1562_v5 = vpop.f32.mrf.mxu0  ;;  %v2336_v8 = vpop.f32.mrf.mxu2  ;;  %v3805_v57 = vld [vmem:[%s6992_s0 + $0x420] sm:$0xf] }
  0xcf   :  { %v4984_v9 = vadd.f32 %v2071_v59, %v1562_v5  ;;  %v2073_v11 = vpop.f32.mrf.mxu1  ;;  %v4358_v59 = vld [vmem:[%s6992_s0 + $0x424] sm:$0xf0] }
  0xd0   :  { %v3806_v1 = vor.u32 %v4358_v59, %v3805_v57  ;;  %v3397_v59 = vld [vmem:[%s6992_s0 + $0xf0] sm:$0xf] }
  0xd1   :  { %1601 = vmatmul.bf16.gmra.mxu0 %v3366_v3 }
  0xd2   :  { %1866 = vmatmul.bf16.gmra.mxu3 %v3790_v7  ;;  %v4253_v7 = vld [vmem:[%s6992_s0 + $0xe4] sm:$0xf] }
  0xd5   :  { %v1827_v16 = vpop.f32.mrf.mxu3 }
  0xd6   :  { %v4998_v17 = vadd.f32 %v2336_v8, %v1827_v16  ;;  %v1564_v18 = vpop.f32.mrf.mxu0  ;;  %v2338_v21 = vpop.f32.mrf.mxu2  ;;  %v3391_v8 = vld [vmem:[%s6992_s0 + $0xe8] sm:$0xf0] }
  0xd7   :  { %v5000_v22 = vadd.f32 %v2073_v11, %v1564_v18  ;;  %v2076_v24 = vpop.f32.mrf.mxu1  ;;  %v4359_v11 = vld [vmem:[%s6992_s0 + $0x434] sm:$0xf]  ;;  %v3394_v16 = vor.u32 %v4253_v7, %v3391_v8 }
  0xda   :  { %4135 = vmatmul.msk.bf16.gmra.mxu1 %vm1233_vm1, %v3378_v20 }
  0xdb   :  { %4188 = vmatmul.msk.bf16.gmra.mxu2 %vm1233_vm1, %v3802_v25  ;;  %v3389_v25 = vld [vmem:[%s6992_s0 + $0xe0] sm:$0xf] }
  0xdd   :  { %v1829_v31 = vpop.f32.mrf.mxu3 }
  0xde   :  { %v5016_v33 = vadd.f32 %v2338_v21, %v1829_v31  ;;  %v1567_v35 = vpop.f32.mrf.mxu0  ;;  %v2341_v37 = vpop.f32.mrf.mxu2  ;;  %v3390_v31 = vor.u32 %v4254_v26, %v3389_v25 }
  0xdf   :  { %v5018_v38 = vadd.f32 %v2076_v24, %v1567_v35  ;;  %v2078_v39 = vpop.f32.mrf.mxu1  ;;  %v3818_v24 = vor.u32 %v4359_v11, %v3815_v12 }
  0xe1   :  { %1606 = vmatmul.bf16.gmra.mxu0 %v3374_v32 }
  0xe2   :  { %1871 = vmatmul.bf16.gmra.mxu3 %v3798_v36  ;;  %v3814_v36 = vor.u32 %v4360_v28, %v3813_v27 }
  0xe5   :  { %v1832_v45 = vpop.f32.mrf.mxu3 }
  0xe6   :  { %v5032_v46 = vadd.f32 %v2341_v37, %v1832_v45  ;;  %v1569_v48 = vpop.f32.mrf.mxu0  ;;  %v2343_v50 = vpop.f32.mrf.mxu2  ;;  %v3823_v45 = vld [vmem:[%s6992_s0 + $0x448] sm:$0xf0] }
  0xe7   :  { %v5034_v51 = vadd.f32 %v2078_v39, %v1569_v48  ;;  %v2081_v52 = vpop.f32.mrf.mxu1  ;;  %v3826_v57 = vor.u32 %v4361_v44, %v3823_v45 }
  0xea   :  { %4136 = vmatmul.msk.bf16.gmra.mxu1 %vm1233_vm1, %v3386_v49 }
  0xeb   :  { %4189 = vmatmul.msk.bf16.gmra.mxu2 %vm1233_vm1, %v3810_v53 }
  0xed   :  { %v1834_v60 = vpop.f32.mrf.mxu3 }
  0xee   :  { %v5050_v62 = vadd.f32 %v2343_v50, %v1834_v60  ;;  %v1572_v0 = vpop.f32.mrf.mxu0  ;;  %v2346_v2 = vpop.f32.mrf.mxu2  ;;  %v4256_v60 = vld [vmem:[%s6992_s0 + $0xf4] sm:$0xf0] }
  0xef   :  { %v5052_v3 = vadd.f32 %v2081_v52, %v1572_v0  ;;  %v2083_v5 = vpop.f32.mrf.mxu1  ;;  %v3402_v52 = vor.u32 %v4255_v41, %v3399_v42  ;;  %v4362_v0 = vld [vmem:[%s6992_s0 + $0x444] sm:$0xf0]  ;;  %v4364_v41 = vld [vmem:[%s6992_s0 + $0x454] sm:$0xf0] }
  0xf1   :  { %1611 = vmatmul.bf16.gmra.mxu0 %v3382_v61  ;;  %v3821_v61 = vld [vmem:[%s6992_s0 + $0x440] sm:$0xf] }
  0xf2   :  { %1876 = vmatmul.bf16.gmra.mxu3 %v3806_v1  ;;  %v3822_v8 = vor.u32 %v4362_v0, %v3821_v61  ;;  %v3839_v61 = vld [vmem:[%s6992_s0 + $0x468] sm:$0xf0] }
  0xf5   :  { %v1837_v13 = vpop.f32.mrf.mxu3 }
  0xf6   :  { %v5066_v14 = vadd.f32 %v2346_v2, %v1837_v13  ;;  %v1574_v15 = vpop.f32.mrf.mxu0  ;;  %v2348_v18 = vpop.f32.mrf.mxu2  ;;  %v3398_v2 = vor.u32 %v4256_v60, %v3397_v59  ;;  %v3415_v59 = vld [vmem:[%s6992_s0 + $0x118] sm:$0xf0]  ;;  %v4365_v60 = vld [vmem:[%s6992_s0 + $0x464] sm:$0xf] }
  0xf7   :  { %v5068_v20 = vadd.f32 %v2083_v5, %v1574_v15  ;;  %v2086_v21 = vpop.f32.mrf.mxu1  ;;  %v4257_v15 = vld [vmem:[%s6992_s0 + $0x104] sm:$0xf] }
  0xfa   :  { %4137 = vmatmul.msk.bf16.gmra.mxu1 %vm1233_vm1, %v3394_v16  ;;  %v3407_v16 = vld [vmem:[%s6992_s0 + $0x108] sm:$0xf0] }
  0xfb   :  { %4190 = vmatmul.msk.bf16.gmra.mxu2 %vm1233_vm1, %v3818_v24  ;;  %v3410_v27 = vor.u32 %v4257_v15, %v3407_v16  ;;  %v3842_v15 = vor.u32 %v4365_v60, %v3839_v61  ;;  %v3413_v16 = vld [vmem:[%s6992_s0 + $0x110] sm:$0xf] }
  0xfd   :  { %v1839_v29 = vpop.f32.mrf.mxu3 }
  0xfe   :  { %v5084_v32 = vadd.f32 %v2348_v18, %v1839_v29  ;;  %v1577_v35 = vpop.f32.mrf.mxu0  ;;  %v2351_v37 = vpop.f32.mrf.mxu2  ;;  %v4363_v18 = vld [vmem:[%s6992_s0 + $0x454] sm:$0xf] }
  0xff   :  { %v5086_v39 = vadd.f32 %v2086_v21, %v1577_v35  ;;  %v2088_v40 = vpop.f32.mrf.mxu1  ;;  %v3831_v21 = vld [vmem:[%s6992_s0 + $0x458] sm:$0xf0] }
 0x100   :  { %v3834_v35 = vor.u32 %v4363_v18, %v3831_v21  ;;  %v4260_v18 = vld [vmem:[%s6992_s0 + $0x114] sm:$0xf0]  ;;  %v3837_v21 = vld [vmem:[%s6992_s0 + $0x460] sm:$0xf] }
 0x101   :  { %1616 = vmatmul.bf16.gmra.mxu0 %v3390_v31 }
 0x102   :  { %1881 = vmatmul.bf16.gmra.mxu3 %v3814_v36  ;;  %v3405_v36 = vld [vmem:[%s6992_s0 + $0x100] sm:$0xf] }
 0x105   :  { %v1842_v48 = vpop.f32.mrf.mxu3 }
 0x106   :  { %v5100_v49 = vadd.f32 %v2351_v37, %v1842_v48  ;;  %v1579_v50 = vpop.f32.mrf.mxu0  ;;  %v2353_v53 = vpop.f32.mrf.mxu2  ;;  %v4258_v37 = vld [vmem:[%s6992_s0 + $0x104] sm:$0xf0] }
 0x107   :  { %v5102_v55 = vadd.f32 %v2088_v40, %v1579_v50  ;;  %v2091_v56 = vpop.f32.mrf.mxu1  ;;  %v3829_v40 = vld [vmem:[%s6992_s0 + $0x450] sm:$0xf]  ;;  %v3406_v44 = vor.u32 %v4258_v37, %v3405_v36 }
 0x108   :  { %v3830_v50 = vor.u32 %v4364_v41, %v3829_v40  ;;  %v4261_v41 = vld [vmem:[%s6992_s0 + $0x124] sm:$0xf] }
 0x10a   :  { %4138 = vmatmul.msk.bf16.gmra.mxu1 %vm1233_vm1, %v3402_v52 }
 0x10b   :  { %4191 = vmatmul.msk.bf16.gmra.mxu2 %vm1233_vm1, %v3826_v57  ;;  %v4259_v57 = vld [vmem:[%s6992_s0 + $0x114] sm:$0xf] }
 0x10d   :  { %v1844_v1 = vpop.f32.mrf.mxu3 }
 0x10e   :  { %v5118_v5 = vadd.f32 %v2353_v53, %v1844_v1  ;;  %v1582_v7 = vpop.f32.mrf.mxu0  ;;  %v2356_v11 = vpop.f32.mrf.mxu2 }
 0x10f   :  { %v5120_v12 = vadd.f32 %v2091_v56, %v1582_v7  ;;  %v2093_v13 = vpop.f32.mrf.mxu1  ;;  %v3418_v7 = vor.u32 %v4259_v57, %v3415_v59 }
 0x111   :  { %1621 = vmatmul.bf16.gmra.mxu0 %v3398_v2 }
 0x112   :  { %1886 = vmatmul.bf16.gmra.mxu3 %v3822_v8 }
 0x115   :  { %v1847_v24 = vpop.f32.mrf.mxu3 }
 0x116   :  { %v5134_v25 = vadd.f32 %v2356_v11, %v1847_v24  ;;  %v1584_v26 = vpop.f32.mrf.mxu0  ;;  %v2358_v28 = vpop.f32.mrf.mxu2  ;;  %v4366_v24 = vld [vmem:[%s6992_s0 + $0x464] sm:$0xf0] }
 0x117   :  { %v5136_v29 = vadd.f32 %v2093_v13, %v1584_v26  ;;  %v2096_v31 = vpop.f32.mrf.mxu1 }
 0x11a   :  { %4139 = vmatmul.msk.bf16.gmra.mxu1 %vm1233_vm1, %v3410_v27  ;;  %v3414_v27 = vor.u32 %v4260_v18, %v3413_v16 }
 0x11b   :  { %4192 = vmatmul.msk.bf16.gmra.mxu2 %vm1233_vm1, %v3834_v35  ;;  %v3838_v35 = vor.u32 %v4366_v24, %v3837_v21 }
 0x11d   :  { %v1849_v42 = vpop.f32.mrf.mxu3 }
 0x11e   :  { %v5152_v45 = vadd.f32 %v2358_v28, %v1849_v42  ;;  %v1587_v48 = vpop.f32.mrf.mxu0  ;;  %v2361_v52 = vpop.f32.mrf.mxu2  ;;  %v3423_v42 = vld [vmem:[%s6992_s0 + $0x128] sm:$0xf0] }
 0x11f   :  { %v5154_v53 = vadd.f32 %v2096_v31, %v1587_v48  ;;  %v2098_v56 = vpop.f32.mrf.mxu1  ;;  %v3847_v48 = vld [vmem:[%s6992_s0 + $0x478] sm:$0xf0]  ;;  %v3426_v57 = vor.u32 %v4261_v41, %v3423_v42  ;;  %v3855_v41 = vld [vmem:[%s6992_s0 + $0x488] sm:$0xf0] }
 0x121   :  { %1626 = vmatmul.bf16.gmra.mxu0 %v3406_v44  ;;  %v4367_v44 = vld [vmem:[%s6992_s0 + $0x474] sm:$0xf] }
 0x122   :  { %1891 = vmatmul.bf16.gmra.mxu3 %v3830_v50 }
 0x125   :  { %v1852_v0 = vpop.f32.mrf.mxu3 }
 0x126   :  { %v5168_v1 = vadd.f32 %v2361_v52, %v1852_v0  ;;  %v1589_v2 = vpop.f32.mrf.mxu0  ;;  %v2363_v8 = vpop.f32.mrf.mxu2  ;;  %v3850_v0 = vor.u32 %v4367_v44, %v3847_v48 }
 0x127   :  { %v5170_v11 = vadd.f32 %v2098_v56, %v1589_v2  ;;  %v2101_v13 = vpop.f32.mrf.mxu1  ;;  %v3421_v2 = vld [vmem:[%s6992_s0 + $0x120] sm:$0xf] }
 0x12a   :  { %4140 = vmatmul.msk.bf16.gmra.mxu1 %vm1233_vm1, %v3418_v7  ;;  %v4262_v7 = vld [vmem:[%s6992_s0 + $0x124] sm:$0xf0] }
 0x12b   :  { %4193 = vmatmul.msk.bf16.gmra.mxu2 %vm1233_vm1, %v3842_v15  ;;  %v3422_v16 = vor.u32 %v4262_v7, %v3421_v2  ;;  %v4264_v2 = vld [vmem:[%s6992_s0 + $0x134] sm:$0xf0]  ;;  %v3853_v7 = vld [vmem:[%s6992_s0 + $0x480] sm:$0xf] }
 0x12d   :  { %v1854_v26 = vpop.f32.mrf.mxu3 }
 0x12e   :  { %v5186_v28 = vadd.f32 %v2363_v8, %v1854_v26  ;;  %v1592_v31 = vpop.f32.mrf.mxu0  ;;  %v2366_v36 = vpop.f32.mrf.mxu2  ;;  %v3845_v8 = vld [vmem:[%s6992_s0 + $0x470] sm:$0xf] }
 0x12f   :  { %v5188_v37 = vadd.f32 %v2101_v13, %v1592_v31  ;;  %v2103_v40 = vpop.f32.mrf.mxu1  ;;  %v4368_v13 = vld [vmem:[%s6992_s0 + $0x474] sm:$0xf0] }
 0x130   :  { %v3846_v24 = vor.u32 %v4368_v13, %v3845_v8  ;;  %v4370_v8 = vld [vmem:[%s6992_s0 + $0x484] sm:$0xf0] }
 0x131   :  { %1631 = vmatmul.bf16.gmra.mxu0 %v3414_v27 }
 0x132   :  { %1896 = vmatmul.bf16.gmra.mxu3 %v3838_v35  ;;  %v4263_v35 = vld [vmem:[%s6992_s0 + $0x134] sm:$0xf] }
 0x135   :  { %v1857_v50 = vpop.f32.mrf.mxu3 }
 0x136   :  { %v5202_v52 = vadd.f32 %v2366_v36, %v1857_v50  ;;  %v1594_v56 = vpop.f32.mrf.mxu0  ;;  %v2368_v59 = vpop.f32.mrf.mxu2  ;;  %v3431_v36 = vld [vmem:[%s6992_s0 + $0x138] sm:$0xf0] }
 0x137   :  { %v5204_v60 = vadd.f32 %v2103_v40, %v1594_v56  ;;  %v2106_v61 = vpop.f32.mrf.mxu1  ;;  %v4369_v40 = vld [vmem:[%s6992_s0 + $0x484] sm:$0xf]  ;;  %v3434_v50 = vor.u32 %v4263_v35, %v3431_v36 }
 0x138   :  { %v4265_v36 = vld [vmem:[%s6992_s0 + $0x144] sm:$0xf] }
 0x13a   :  { %4141 = vmatmul.msk.bf16.gmra.mxu1 %vm1233_vm1, %v3426_v57 }
 0x13b   :  { %4194 = vmatmul.msk.bf16.gmra.mxu2 %vm1233_vm1, %v3850_v0  ;;  %v3429_v0 = vld [vmem:[%s6992_s0 + $0x130] sm:$0xf] }
 0x13d   :  { %v1859_v15 = vpop.f32.mrf.mxu3 }
 0x13e   :  { %v5220_v18 = vadd.f32 %v2368_v59, %v1859_v15  ;;  %v1597_v21 = vpop.f32.mrf.mxu0  ;;  %v2371_v26 = vpop.f32.mrf.mxu2  ;;  %v3430_v15 = vor.u32 %v4264_v2, %v3429_v0 }
 0x13f   :  { %v5222_v27 = vadd.f32 %v2106_v61, %v1597_v21  ;;  %v2108_v31 = vpop.f32.mrf.mxu1  ;;  %v3858_v61 = vor.u32 %v4369_v40, %v3855_v41  ;;  %v3439_v40 = vld [vmem:[%s6992_s0 + $0x148] sm:$0xf0]  ;;  %v4371_v41 = vld [vmem:[%s6992_s0 + $0x494] sm:$0xf] }
 0x141   :  { %1636 = vmatmul.bf16.gmra.mxu0 %v3422_v16 }
 0x142   :  { %1901 = vmatmul.bf16.gmra.mxu3 %v3846_v24  ;;  %v3854_v24 = vor.u32 %v4370_v8, %v3853_v7  ;;  %v3437_v8 = vld [vmem:[%s6992_s0 + $0x140] sm:$0xf] }
 0x145   :  { %v1862_v42 = vpop.f32.mrf.mxu3 }
 0x146   :  { %v5236_v44 = vadd.f32 %v2371_v26, %v1862_v42  ;;  %v1599_v48 = vpop.f32.mrf.mxu0  ;;  %v2373_v56 = vpop.f32.mrf.mxu2  ;;  %v3863_v42 = vld [vmem:[%s6992_s0 + $0x498] sm:$0xf0] }
 0x147   :  { %v5238_v57 = vadd.f32 %v2108_v31, %v1599_v48  ;;  %v2111_v59 = vpop.f32.mrf.mxu1  ;;  %v3866_v7 = vor.u32 %v4371_v41, %v3863_v42 }
 0x14a   :  { %4142 = vmatmul.msk.bf16.gmra.mxu1 %vm1233_vm1, %v3434_v50 }
 0x14b   :  { %4195 = vmatmul.msk.bf16.gmra.mxu2 %vm1233_vm1, %v3858_v61 }
 0x14d   :  { %v1864_v13 = vpop.f32.mrf.mxu3 }
 0x14e   :  { %v5254_v16 = vadd.f32 %v2373_v56, %v1864_v13  ;;  %v1602_v21 = vpop.f32.mrf.mxu0  ;;  %v2376_v26 = vpop.f32.mrf.mxu2  ;;  %v4266_v13 = vld [vmem:[%s6992_s0 + $0x144] sm:$0xf0] }
 0x14f   :  { %v5256_v31 = vadd.f32 %v2111_v59, %v1602_v21  ;;  %v2113_v35 = vpop.f32.mrf.mxu1  ;;  %v3442_v59 = vor.u32 %v4265_v36, %v3439_v40  ;;  %v3058_v21 = vld [vmem:[%s6993_s3 + $0xf8] sm:$0xff]  ;;  %v3438_v36 = vor.u32 %v4266_v13, %v3437_v8 }
 0x150   :  { %7022 = vst [vmem:[#allocation8_spill] sm:$0xff] %v5254_v16  ;;  %3110 = vmatpush.msrb.mxu3 %v3058_v21  ;;  %v4270_v16 = vld [vmem:[%s6992_s0 + $0x164] sm:$0xf0] }
 0x151   :  { %1641 = vmatmul.bf16.gmra.mxu0 %v3430_v15  ;;  %v3042_v15 = vld [vmem:[%s6993_s3 + $0x78] sm:$0xff] }
 0x152   :  { %1906 = vmatmul.bf16.gmra.mxu3 %v3854_v24  ;;  %v3861_v24 = vld [vmem:[%s6992_s0 + $0x490] sm:$0xf]  ;;  %3087 = vmatpush.msrb.mxu2 %v3042_v15 }
 0x155   :  { %v1867_v48 = vpop.f32.mrf.mxu3 }
 0x156   :  { %v5270_v50 = vadd.f32 %v2376_v26, %v1867_v48  ;;  %v1604_v56 = vpop.f32.mrf.mxu0  ;;  %v2378_v61 = vpop.f32.mrf.mxu2  ;;  %v4372_v26 = vld [vmem:[%s6992_s0 + $0x494] sm:$0xf0] }
 0x157   :  { %v5272_v0 = vadd.f32 %v2113_v35, %v1604_v56  ;;  %v2116_v2 = vpop.f32.mrf.mxu1  ;;  %v3862_v42 = vor.u32 %v4372_v26, %v3861_v24 }
 0x158   :  { %7023 = vst [vmem:[#allocation9_spill] sm:$0xff] %v5270_v50  ;;  %v4267_v50 = vld [vmem:[%s6992_s0 + $0x154] sm:$0xf] }
 0x15a   :  { %4143 = vmatmul.msk.bf16.gmra.mxu1 %vm1233_vm1, %v3442_v59 }
 0x15b   :  { %4196 = vmatmul.msk.bf16.gmra.mxu2 %vm1233_vm1, %v3866_v7  ;;  %v3447_v7 = vld [vmem:[%s6992_s0 + $0x158] sm:$0xf0] }
 0x15c   :  { %v3450_v21 = vor.u32 %v4267_v50, %v3447_v7  ;;  %v4374_v50 = vld [vmem:[%s6992_s0 + $0x4a4] sm:$0xf0] }
 0x15d   :  { %v1869_v35 = vpop.f32.mrf.mxu3 }
 0x15e   :  { %v5294_v40 = vadd.f32 %v2378_v61, %v1869_v35  ;;  %v1607_v41 = vpop.f32.mrf.mxu0  ;;  %v2381_v48 = vpop.f32.mrf.mxu2  ;;  %v4373_v61 = vld [vmem:[%s6992_s0 + $0x4a4] sm:$0xf] }
 0x15f   :  { %v5296_v56 = vadd.f32 %v2116_v2, %v1607_v41  ;;  %v2118_v59 = vpop.f32.mrf.mxu1  ;;  %v3871_v2 = vld [vmem:[%s6992_s0 + $0x4a8] sm:$0xf0]  ;;  %v3445_v41 = vld [vmem:[%s6992_s0 + $0x150] sm:$0xf] }
 0x160   :  { %7024 = vst [vmem:[#allocation10_spill] sm:$0xff] %v5294_v40  ;;  %v4269_v40 = vld [vmem:[%s6992_s0 + $0x164] sm:$0xf] }
 0x161   :  { %1646 = vmatmul.bf16.gmra.mxu0 %v3438_v36  ;;  %v3874_v36 = vor.u32 %v4373_v61, %v3871_v2 }
 0x162   :  { %1911 = vmatmul.bf16.gmra.mxu3 %v3862_v42  ;;  %v4268_v42 = vld [vmem:[%s6992_s0 + $0x154] sm:$0xf0] }
 0x163   :  { %v3446_v7 = vor.u32 %v4268_v42, %v3445_v41 }
 0x165   :  { %v1872_v8 = vpop.f32.mrf.mxu3 }
 0x166   :  { %v5310_v13 = vadd.f32 %v2381_v48, %v1872_v8  ;;  %v1609_v15 = vpop.f32.mrf.mxu0  ;;  %v2383_v24 = vpop.f32.mrf.mxu2  ;;  %v3869_v48 = vld [vmem:[%s6992_s0 + $0x4a0] sm:$0xf] }
 0x167   :  { %v5312_v26 = vadd.f32 %v2118_v59, %v1609_v15  ;;  %v2121_v35 = vpop.f32.mrf.mxu1  ;;  %v3870_v8 = vor.u32 %v4374_v50, %v3869_v48 }
 0x168   :  { %7025 = vst [vmem:[#allocation11_spill] sm:$0xff] %v5310_v13 }
 0x16a   :  { %4144 = vmatmul.msk.bf16.gmra.mxu1 %vm1233_vm1, %v3450_v21 }
 0x16b   :  { %4197 = vmatmul.msk.bf16.gmra.mxu2 %vm1233_vm1, %v3874_v36  ;;  %v3455_v36 = vld [vmem:[%s6992_s0 + $0x168] sm:$0xf0] }
 0x16c   :  { %v3458_v50 = vor.u32 %v4269_v40, %v3455_v36  ;;  %v4376_v40 = vld [vmem:[%s6992_s0 + $0x4b4] sm:$0xf0] }
 0x16d   :  { %v1874_v59 = vpop.f32.mrf.mxu3 }
 0x16e   :  { %v5328_v61 = vadd.f32 %v2383_v24, %v1874_v59  ;;  %v1612_v2 = vpop.f32.mrf.mxu0  ;;  %v2386_v15 = vpop.f32.mrf.mxu2  ;;  %v4375_v24 = vld [vmem:[%s6992_s0 + $0x4b4] sm:$0xf] }
 0x16f   :  { %v5330_v21 = vadd.f32 %v2121_v35, %v1612_v2  ;;  %v2123_v13 = vpop.f32.mrf.mxu1  ;;  %v3879_v35 = vld [vmem:[%s6992_s0 + $0x4b8] sm:$0xf0] }
 0x170   :  { %7026 = vst [vmem:[#allocation12_spill] sm:$0xff] %v5328_v61  ;;  %v3453_v61 = vld [vmem:[%s6992_s0 + $0x160] sm:$0xf] }
 0x171   :  { %7027 = vst [vmem:[#allocation13_spill] sm:$0xff] %v5330_v21  ;;  %1651 = vmatmul.bf16.gmra.mxu0 %v3446_v7  ;;  %v3454_v36 = vor.u32 %v4270_v16, %v3453_v61  ;;  %v4377_v16 = vld [vmem:[%s6992_s0 + $0x4c4] sm:$0xf]  ;;  %v3887_v61 = vld [vmem:[%s6992_s0 + $0x4c8] sm:$0xf0] }
 0x172   :  { %1916 = vmatmul.bf16.gmra.mxu3 %v3870_v8  ;;  %v3882_v8 = vor.u32 %v4375_v24, %v3879_v35  ;;  %v4273_v21 = vld [vmem:[%s6992_s0 + $0x184] sm:$0xf] }
 0x175   :  { %v1877_v41 = vpop.f32.mrf.mxu3 }
 0x176   :  { %v5344_v42 = vadd.f32 %v2386_v15, %v1877_v41  ;;  %v1614_v48 = vpop.f32.mrf.mxu0  ;;  %v2388_v59 = vpop.f32.mrf.mxu2  ;;  %v3877_v15 = vld [vmem:[%s6992_s0 + $0x4b0] sm:$0xf] }
 0x177   :  { %v5346_v7 = vadd.f32 %v2123_v13, %v1614_v48  ;;  %v2126_v2 = vpop.f32.mrf.mxu1  ;;  %v3878_v41 = vor.u32 %v4376_v40, %v3877_v15 }
 0x178   :  { %7028 = vst [vmem:[#allocation14_spill] sm:$0xff] %v5344_v42  ;;  %v4271_v42 = vld [vmem:[%s6992_s0 + $0x174] sm:$0xf] }
 0x179   :  { %7029 = vst [vmem:[#allocation15_spill] sm:$0xff] %v5346_v7 }
 0x17a   :  { %4145 = vmatmul.msk.bf16.gmra.mxu1 %vm1233_vm1, %v3458_v50 }
 0x17b   :  { %4198 = vmatmul.msk.bf16.gmra.mxu2 %vm1233_vm1, %v3882_v8  ;;  %v3463_v8 = vld [vmem:[%s6992_s0 + $0x178] sm:$0xf0] }
 0x17c   :  { %v3466_v40 = vor.u32 %v4271_v42, %v3463_v8  ;;  %v4272_v42 = vld [vmem:[%s6992_s0 + $0x174] sm:$0xf0] }
 0x17d   :  { %v1879_v13 = vpop.f32.mrf.mxu3 }
 0x17e   :  { %v5362_v24 = vadd.f32 %v2388_v59, %v1879_v13  ;;  %v1617_v35 = vpop.f32.mrf.mxu0  ;;  %v2391_v48 = vpop.f32.mrf.mxu2 }
 0x17f   :  { %v5364_v50 = vadd.f32 %v2126_v2, %v1617_v35  ;;  %v2128_v7 = vpop.f32.mrf.mxu1 }
 0x180   :  { %7030 = vst [vmem:[#allocation16_spill] sm:$0xff] %v5362_v24  ;;  %v3461_v24 = vld [vmem:[%s6992_s0 + $0x170] sm:$0xf] }
 0x181   :  { %7031 = vst [vmem:[#allocation17_spill] sm:$0xff] %v5364_v50  ;;  %1656 = vmatmul.bf16.gmra.mxu0 %v3454_v36  ;;  %v3041_v50 = vld [vmem:[%s6993_s3 + $0x70] sm:$0xff] }
 0x182   :  { %1921 = vmatmul.bf16.gmra.mxu3 %v3878_v41  ;;  %v3890_v41 = vor.u32 %v4377_v16, %v3887_v61  ;;  %3088 = vmatpush.msrb.mxu2 %v3041_v50  ;;  %v4378_v50 = vld [vmem:[%s6992_s0 + $0x4c4] sm:$0xf0]  ;;  %v3462_v16 = vor.u32 %v4272_v42, %v3461_v24  ;;  %v4379_v24 = vld [vmem:[%s6992_s0 + $0x4d4] sm:$0xf] }
 0x185   :  { %v1882_v59 = vpop.f32.mrf.mxu3 }
 0x186   :  { %v5378_v2 = vadd.f32 %v2391_v48, %v1882_v59  ;;  %v1619_v15 = vpop.f32.mrf.mxu0  ;;  %v2393_v13 = vpop.f32.mrf.mxu2  ;;  %v3885_v48 = vld [vmem:[%s6992_s0 + $0x4c0] sm:$0xf] }
 0x187   :  { %v5380_v36 = vadd.f32 %v2128_v7, %v1619_v15  ;;  %v2131_v35 = vpop.f32.mrf.mxu1  ;;  %v3057_v7 = vld [vmem:[%s6993_s3 + $0xf0] sm:$0xff]  ;;  %v3886_v15 = vor.u32 %v4378_v50, %v3885_v48 }
 0x188   :  { %7032 = vst [vmem:[#allocation18_spill] sm:$0xff] %v5378_v2  ;;  %3111 = vmatpush.msrb.mxu3 %v3057_v7 }
 0x189   :  { %7033 = vst [vmem:[#allocation19_spill] sm:$0xff] %v5380_v36 }
 0x18a   :  { %4146 = vmatmul.msk.bf16.gmra.mxu1 %vm1233_vm1, %v3466_v40 }
 0x18b   :  { %4199 = vmatmul.msk.bf16.gmra.mxu2 %vm1233_vm1, %v3890_v41  ;;  %v3471_v41 = vld [vmem:[%s6992_s0 + $0x188] sm:$0xf0] }
 0x18c   :  { %v3474_v48 = vor.u32 %v4273_v21, %v3471_v41  ;;  %v4380_v21 = vld [vmem:[%s6992_s0 + $0x4d4] sm:$0xf0] }
 0x18d   :  { %v1884_v8 = vpop.f32.mrf.mxu3 }
 0x18e   :  { %v5402_v61 = vadd.f32 %v2393_v13, %v1884_v8  ;;  %v1622_v59 = vpop.f32.mrf.mxu0  ;;  %v2396_v40 = vpop.f32.mrf.mxu2  ;;  %v3895_v13 = vld [vmem:[%s6992_s0 + $0x4d8] sm:$0xf0] }
 0x18f   :  { %v5404_v2 = vadd.f32 %v2131_v35, %v1622_v59  ;;  %v2133_v36 = vpop.f32.mrf.mxu1  ;;  %v3898_v59 = vor.u32 %v4379_v24, %v3895_v13 }
 0x190   :  { %7034 = vst [vmem:[#allocation20_spill] sm:$0xff] %v5402_v61  ;;  %v4274_v61 = vld [vmem:[%s6992_s0 + $0x184] sm:$0xf0] }
 0x191   :  { %7035 = vst [vmem:[#allocation21_spill] sm:$0xff] %v5404_v2  ;;  %1661 = vmatmul.bf16.gmra.mxu0 %v3462_v16  ;;  %v4279_v2 = vld [vmem:[%s6992_s0 + $0x1b4] sm:$0xf] }
 0x192   :  { %1926 = vmatmul.bf16.gmra.mxu3 %v3886_v15  ;;  %v3469_v15 = vld [vmem:[%s6992_s0 + $0x180] sm:$0xf] }
 0x193   :  { %v3470_v41 = vor.u32 %v4274_v61, %v3469_v15  ;;  %v4381_v61 = vld [vmem:[%s6992_s0 + $0x4e4] sm:$0xf] }
 0x195   :  { %v1887_v35 = vpop.f32.mrf.mxu3 }
 0x196   :  { %v5418_v42 = vadd.f32 %v2396_v40, %v1887_v35  ;;  %v1624_v7 = vpop.f32.mrf.mxu0  ;;  %v2398_v50 = vpop.f32.mrf.mxu2  ;;  %v3893_v40 = vld [vmem:[%s6992_s0 + $0x4d0] sm:$0xf] }
 0x197   :  { %v5420_v8 = vadd.f32 %v2133_v36, %v1624_v7  ;;  %v2136_v16 = vpop.f32.mrf.mxu1  ;;  %v3894_v35 = vor.u32 %v4380_v21, %v3893_v40 }
 0x198   :  { %7036 = vst [vmem:[#allocation22_spill] sm:$0xff] %v5418_v42  ;;  %v4275_v42 = vld [vmem:[%s6992_s0 + $0x194] sm:$0xf] }
 0x199   :  { %7037 = vst [vmem:[#allocation23_spill] sm:$0xff] %v5420_v8 }
 0x19a   :  { %4147 = vmatmul.msk.bf16.gmra.mxu1 %vm1233_vm1, %v3474_v48 }
 0x19b   :  { %4200 = vmatmul.msk.bf16.gmra.mxu2 %vm1233_vm1, %v3898_v59  ;;  %v3479_v59 = vld [vmem:[%s6992_s0 + $0x198] sm:$0xf0] }
 0x19c   :  { %v3482_v21 = vor.u32 %v4275_v42, %v3479_v59  ;;  %v4382_v42 = vld [vmem:[%s6992_s0 + $0x4e4] sm:$0xf0] }
 0x19d   :  { %v1889_v36 = vpop.f32.mrf.mxu3 }
 0x19e   :  { %v5436_v24 = vadd.f32 %v2398_v50, %v1889_v36  ;;  %v1627_v13 = vpop.f32.mrf.mxu0  ;;  %v2401_v7 = vpop.f32.mrf.mxu2  ;;  %v3903_v50 = vld [vmem:[%s6992_s0 + $0x4e8] sm:$0xf0] }
 0x19f   :  { %v5438_v48 = vadd.f32 %v2136_v16, %v1627_v13  ;;  %v2138_v8 = vpop.f32.mrf.mxu1 }
 0x1a0   :  { %7038 = vst [vmem:[#allocation24_spill] sm:$0xff] %v5436_v24  ;;  %v3477_v24 = vld [vmem:[%s6992_s0 + $0x190] sm:$0xf] }
 0x1a1   :  { %7039 = vst [vmem:[#allocation25_spill] sm:$0xff] %v5438_v48  ;;  %1666 = vmatmul.bf16.gmra.mxu0 %v3470_v41  ;;  %v4276_v48 = vld [vmem:[%s6992_s0 + $0x194] sm:$0xf0] }
 0x1a2   :  { %1931 = vmatmul.bf16.gmra.mxu3 %v3894_v35  ;;  %v3906_v35 = vor.u32 %v4381_v61, %v3903_v50  ;;  %v3478_v59 = vor.u32 %v4276_v48, %v3477_v24  ;;  %v4383_v24 = vld [vmem:[%s6992_s0 + $0x4f4] sm:$0xf]  ;;  %v3911_v48 = vld [vmem:[%s6992_s0 + $0x4f8] sm:$0xf0] }
 0x1a5   :  { %v1892_v16 = vpop.f32.mrf.mxu3 }
 0x1a6   :  { %v5452_v15 = vadd.f32 %v2401_v7, %v1892_v16  ;;  %v1629_v40 = vpop.f32.mrf.mxu0  ;;  %v2403_v36 = vpop.f32.mrf.mxu2  ;;  %v3901_v7 = vld [vmem:[%s6992_s0 + $0x4e0] sm:$0xf] }
 0x1a7   :  { %v5454_v41 = vadd.f32 %v2138_v8, %v1629_v40  ;;  %v2141_v13 = vpop.f32.mrf.mxu1  ;;  %v3902_v16 = vor.u32 %v4382_v42, %v3901_v7 }
 0x1a8   :  { %7040 = vst [vmem:[#allocation26_spill] sm:$0xff] %v5452_v15 }
 0x1a9   :  { %7041 = vst [vmem:[#allocation27_spill] sm:$0xff] %v5454_v41  ;;  %v4277_v41 = vld [vmem:[%s6992_s0 + $0x1a4] sm:$0xf] }
 0x1aa   :  { %4148 = vmatmul.msk.bf16.gmra.mxu1 %vm1233_vm1, %v3482_v21 }
 0x1ab   :  { %4201 = vmatmul.msk.bf16.gmra.mxu2 %vm1233_vm1, %v3906_v35  ;;  %v3487_v35 = vld [vmem:[%s6992_s0 + $0x1a8] sm:$0xf0] }
 0x1ac   :  { %v3490_v42 = vor.u32 %v4277_v41, %v3487_v35  ;;  %v4278_v41 = vld [vmem:[%s6992_s0 + $0x1a4] sm:$0xf0] }
 0x1ad   :  { %v1894_v8 = vpop.f32.mrf.mxu3 }
 0x1ae   :  { %v5470_v61 = vadd.f32 %v2403_v36, %v1894_v8  ;;  %v1632_v50 = vpop.f32.mrf.mxu0  ;;  %v2406_v40 = vpop.f32.mrf.mxu2 }
 0x1af   :  { %v5472_v21 = vadd.f32 %v2141_v13, %v1632_v50  ;;  %v2143_v15 = vpop.f32.mrf.mxu1 }
 0x1b0   :  { %7042 = vst [vmem:[#allocation28_spill] sm:$0xff] %v5470_v61  ;;  %v3040_v61 = vld [vmem:[%s6993_s3 + $0x68] sm:$0xff] }
 0x1b1   :  { %7043 = vst [vmem:[#allocation29_spill] sm:$0xff] %v5472_v21  ;;  %1671 = vmatmul.bf16.gmra.mxu0 %v3478_v59  ;;  %3089 = vmatpush.msrb.mxu2 %v3040_v61  ;;  %v3485_v21 = vld [vmem:[%s6992_s0 + $0x1a0] sm:$0xf]  ;;  %v4384_v61 = vld [vmem:[%s6992_s0 + $0x4f4] sm:$0xf0] }
 0x1b2   :  { %1936 = vmatmul.bf16.gmra.mxu3 %v3902_v16  ;;  %v3914_v16 = vor.u32 %v4383_v24, %v3911_v48  ;;  %v3486_v24 = vor.u32 %v4278_v41, %v3485_v21  ;;  %v4385_v21 = vld [vmem:[%s6992_s0 + $0x504] sm:$0xf] }
 0x1b5   :  { %v1897_v36 = vpop.f32.mrf.mxu3 }
 0x1b6   :  { %v5486_v13 = vadd.f32 %v2406_v40, %v1897_v36  ;;  %v1634_v7 = vpop.f32.mrf.mxu0  ;;  %v2408_v8 = vpop.f32.mrf.mxu2  ;;  %v3909_v40 = vld [vmem:[%s6992_s0 + $0x4f0] sm:$0xf] }
 0x1b7   :  { %v5488_v59 = vadd.f32 %v2143_v15, %v1634_v7  ;;  %v2146_v50 = vpop.f32.mrf.mxu1  ;;  %v3056_v15 = vld [vmem:[%s6993_s3 + $0xe8] sm:$0xff]  ;;  %v3910_v7 = vor.u32 %v4384_v61, %v3909_v40 }
 0x1b8   :  { %7044 = vst [vmem:[#allocation30_spill] sm:$0xff] %v5486_v13  ;;  %3112 = vmatpush.msrb.mxu3 %v3056_v15 }
 0x1b9   :  { %7045 = vst [vmem:[#allocation31_spill] sm:$0xff] %v5488_v59 }
 0x1ba   :  { %4149 = vmatmul.msk.bf16.gmra.mxu1 %vm1233_vm1, %v3490_v42 }
 0x1bb   :  { %4202 = vmatmul.msk.bf16.gmra.mxu2 %vm1233_vm1, %v3914_v16  ;;  %v3495_v16 = vld [vmem:[%s6992_s0 + $0x1b8] sm:$0xf0] }
 0x1bc   :  { %v3498_v40 = vor.u32 %v4279_v2, %v3495_v16  ;;  %v4386_v2 = vld [vmem:[%s6992_s0 + $0x504] sm:$0xf0] }
 0x1bd   :  { %v1899_v35 = vpop.f32.mrf.mxu3 }
 0x1be   :  { %v5510_v48 = vadd.f32 %v2408_v8, %v1899_v35  ;;  %v1637_v36 = vpop.f32.mrf.mxu0  ;;  %v2411_v42 = vpop.f32.mrf.mxu2  ;;  %v3919_v8 = vld [vmem:[%s6992_s0 + $0x508] sm:$0xf0] }
 0x1bf   :  { %v5512_v13 = vadd.f32 %v2146_v50, %v1637_v36  ;;  %v2148_v59 = vpop.f32.mrf.mxu1  ;;  %v3922_v36 = vor.u32 %v4385_v21, %v3919_v8 }
 0x1c0   :  { %7046 = vst [vmem:[#allocation32_spill] sm:$0xff] %v5510_v48  ;;  %v4280_v48 = vld [vmem:[%s6992_s0 + $0x1b4] sm:$0xf0] }
 0x1c1   :  { %7047 = vst [vmem:[#allocation33_spill] sm:$0xff] %v5512_v13  ;;  %1676 = vmatmul.bf16.gmra.mxu0 %v3486_v24  ;;  %v4293_v13 = vld [vmem:[%s6992_s0 + $0x224] sm:$0xf] }
 0x1c2   :  { %1941 = vmatmul.bf16.gmra.mxu3 %v3910_v7  ;;  %v3493_v7 = vld [vmem:[%s6992_s0 + $0x1b0] sm:$0xf] }
 0x1c3   :  { %v3494_v16 = vor.u32 %v4280_v48, %v3493_v7  ;;  %v4387_v48 = vld [vmem:[%s6992_s0 + $0x514] sm:$0xf] }
 0x1c5   :  { %v1902_v50 = vpop.f32.mrf.mxu3 }
 0x1c6   :  { %v5526_v41 = vadd.f32 %v2411_v42, %v1902_v50  ;;  %v1639_v15 = vpop.f32.mrf.mxu0  ;;  %v2413_v61 = vpop.f32.mrf.mxu2  ;;  %v3917_v42 = vld [vmem:[%s6992_s0 + $0x500] sm:$0xf] }
 0x1c7   :  { %v5528_v35 = vadd.f32 %v2148_v59, %v1639_v15  ;;  %v2151_v24 = vpop.f32.mrf.mxu1  ;;  %v3918_v50 = vor.u32 %v4386_v2, %v3917_v42 }
 0x1c8   :  { %7048 = vst [vmem:[#allocation34_spill] sm:$0xff] %v5526_v41 }
 0x1c9   :  { %7049 = vst [vmem:[#allocation35_spill] sm:$0xff] %v5528_v35  ;;  %v4281_v35 = vld [vmem:[%s6992_s0 + $0x1c4] sm:$0xf] }
 0x1ca   :  { %4150 = vmatmul.msk.bf16.gmra.mxu1 %vm1233_vm1, %v3498_v40 }
 0x1cb   :  { %4203 = vmatmul.msk.bf16.gmra.mxu2 %vm1233_vm1, %v3922_v36  ;;  %v3503_v36 = vld [vmem:[%s6992_s0 + $0x1c8] sm:$0xf0] }
 0x1cc   :  { %v3506_v2 = vor.u32 %v4281_v35, %v3503_v36 }
 0x1cd   :  { %v1904_v59 = vpop.f32.mrf.mxu3 }
 0x1ce   :  { %v5544_v21 = vadd.f32 %v2413_v61, %v1904_v59  ;;  %v1642_v8 = vpop.f32.mrf.mxu0  ;;  %v2416_v15 = vpop.f32.mrf.mxu2  ;;  %v3927_v61 = vld [vmem:[%s6992_s0 + $0x518] sm:$0xf0] }
 0x1cf   :  { %v5546_v40 = vadd.f32 %v2151_v24, %v1642_v8  ;;  %v2153_v41 = vpop.f32.mrf.mxu1 }
 0x1d0   :  { %7050 = vst [vmem:[#allocation36_spill] sm:$0xff] %v5544_v21  ;;  %v3501_v21 = vld [vmem:[%s6992_s0 + $0x1c0] sm:$0xf] }
 0x1d1   :  { %7051 = vst [vmem:[#allocation37_spill] sm:$0xff] %v5546_v40  ;;  %1681 = vmatmul.bf16.gmra.mxu0 %v3494_v16  ;;  %v4282_v40 = vld [vmem:[%s6992_s0 + $0x1c4] sm:$0xf0] }
 0x1d2   :  { %1946 = vmatmul.bf16.gmra.mxu3 %v3918_v50  ;;  %v3930_v50 = vor.u32 %v4387_v48, %v3927_v61  ;;  %v3502_v36 = vor.u32 %v4282_v40, %v3501_v21  ;;  %v4389_v21 = vld [vmem:[%s6992_s0 + $0x524] sm:$0xf]  ;;  %v3935_v40 = vld [vmem:[%s6992_s0 + $0x528] sm:$0xf0] }
 0x1d5   :  { %v1907_v24 = vpop.f32.mrf.mxu3 }
 0x1d6   :  { %v5560_v7 = vadd.f32 %v2416_v15, %v1907_v24  ;;  %v1644_v42 = vpop.f32.mrf.mxu0  ;;  %v2418_v59 = vpop.f32.mrf.mxu2  ;;  %v3925_v15 = vld [vmem:[%s6992_s0 + $0x510] sm:$0xf] }
 0x1d7   :  { %v5562_v16 = vadd.f32 %v2153_v41, %v1644_v42  ;;  %v2156_v8 = vpop.f32.mrf.mxu1  ;;  %v4388_v41 = vld [vmem:[%s6992_s0 + $0x514] sm:$0xf0] }
 0x1d8   :  { %7052 = vst [vmem:[#allocation38_spill] sm:$0xff] %v5560_v7  ;;  %v3926_v24 = vor.u32 %v4388_v41, %v3925_v15 }
 0x1d9   :  { %7053 = vst [vmem:[#allocation39_spill] sm:$0xff] %v5562_v16  ;;  %v4283_v16 = vld [vmem:[%s6992_s0 + $0x1d4] sm:$0xf] }
 0x1da   :  { %4151 = vmatmul.msk.bf16.gmra.mxu1 %vm1233_vm1, %v3506_v2 }
 0x1db   :  { %4204 = vmatmul.msk.bf16.gmra.mxu2 %vm1233_vm1, %v3930_v50  ;;  %v3511_v50 = vld [vmem:[%s6992_s0 + $0x1d8] sm:$0xf0] }
 0x1dc   :  { %v3514_v41 = vor.u32 %v4283_v16, %v3511_v50  ;;  %v3509_v16 = vld [vmem:[%s6992_s0 + $0x1d0] sm:$0xf]  ;;  %v4390_v50 = vld [vmem:[%s6992_s0 + $0x524] sm:$0xf0] }
 0x1dd   :  { %v1909_v35 = vpop.f32.mrf.mxu3 }
 0x1de   :  { %v5578_v48 = vadd.f32 %v2418_v59, %v1909_v35  ;;  %v1647_v61 = vpop.f32.mrf.mxu0  ;;  %v2421_v42 = vpop.f32.mrf.mxu2 }
 0x1df   :  { %v5580_v2 = vadd.f32 %v2156_v8, %v1647_v61  ;;  %v2158_v7 = vpop.f32.mrf.mxu1 }
 0x1e0   :  { %7054 = vst [vmem:[#allocation40_spill] sm:$0xff] %v5578_v48  ;;  %v3039_v48 = vld [vmem:[%s6993_s3 + $0x60] sm:$0xff] }
 0x1e1   :  { %7055 = vst [vmem:[#allocation41_spill] sm:$0xff] %v5580_v2  ;;  %1686 = vmatmul.bf16.gmra.mxu0 %v3502_v36  ;;  %v3055_v2 = vld [vmem:[%s6993_s3 + $0xe0] sm:$0xff]  ;;  %3090 = vmatpush.msrb.mxu2 %v3039_v48 }
 0x1e2   :  { %1951 = vmatmul.bf16.gmra.mxu3 %v3926_v24  ;;  %v3938_v24 = vor.u32 %v4389_v21, %v3935_v40 }
 0x1e3   :  { %3113 = vmatpush.msrb.mxu3 %v3055_v2 }
 0x1e5   :  { %v1912_v59 = vpop.f32.mrf.mxu3 }
 0x1e6   :  { %v5594_v8 = vadd.f32 %v2421_v42, %v1912_v59  ;;  %v1649_v15 = vpop.f32.mrf.mxu0  ;;  %v2423_v35 = vpop.f32.mrf.mxu2  ;;  %v3933_v42 = vld [vmem:[%s6992_s0 + $0x520] sm:$0xf] }
 0x1e7   :  { %v5596_v36 = vadd.f32 %v2158_v7, %v1649_v15  ;;  %v2161_v61 = vpop.f32.mrf.mxu1  ;;  %v4284_v7 = vld [vmem:[%s6992_s0 + $0x1d4] sm:$0xf0]  ;;  %v3934_v59 = vor.u32 %v4390_v50, %v3933_v42 }
 0x1e8   :  { %7056 = vst [vmem:[#allocation42_spill] sm:$0xff] %v5594_v8  ;;  %v3510_v2 = vor.u32 %v4284_v7, %v3509_v16 }
 0x1e9   :  { %7057 = vst [vmem:[#allocation43_spill] sm:$0xff] %v5596_v36  ;;  %v4285_v36 = vld [vmem:[%s6992_s0 + $0x1e4] sm:$0xf] }
 0x1ea   :  { %4152 = vmatmul.msk.bf16.gmra.mxu1 %vm1233_vm1, %v3514_v41 }
 0x1eb   :  { %4205 = vmatmul.msk.bf16.gmra.mxu2 %vm1233_vm1, %v3938_v24  ;;  %v3519_v24 = vld [vmem:[%s6992_s0 + $0x1e8] sm:$0xf0] }
 0x1ec   :  { %v3522_v50 = vor.u32 %v4285_v36, %v3519_v24 }
 0x1ed   :  { %v1914_v48 = vpop.f32.mrf.mxu3 }
 0x1ee   :  { %v5618_v21 = vadd.f32 %v2423_v35, %v1914_v48  ;;  %v1652_v40 = vpop.f32.mrf.mxu0  ;;  %v2426_v15 = vpop.f32.mrf.mxu2  ;;  %v4391_v35 = vld [vmem:[%s6992_s0 + $0x534] sm:$0xf] }
 0x1ef   :  { %v5620_v41 = vadd.f32 %v2161_v61, %v1652_v40  ;;  %v2163_v8 = vpop.f32.mrf.mxu1  ;;  %v3943_v61 = vld [vmem:[%s6992_s0 + $0x538] sm:$0xf0] }
 0x1f0   :  { %7058 = vst [vmem:[#allocation44_spill] sm:$0xff] %v5618_v21  ;;  %v3517_v21 = vld [vmem:[%s6992_s0 + $0x1e0] sm:$0xf] }
 0x1f1   :  { %7059 = vst [vmem:[#allocation45_spill] sm:$0xff] %v5620_v41  ;;  %1691 = vmatmul.bf16.gmra.mxu0 %v3510_v2  ;;  %v4286_v41 = vld [vmem:[%s6992_s0 + $0x1e4] sm:$0xf0] }
 0x1f2   :  { %1956 = vmatmul.bf16.gmra.mxu3 %v3934_v59  ;;  %v3946_v59 = vor.u32 %v4391_v35, %v3943_v61  ;;  %v3518_v24 = vor.u32 %v4286_v41, %v3517_v21  ;;  %v4393_v21 = vld [vmem:[%s6992_s0 + $0x544] sm:$0xf]  ;;  %v3951_v41 = vld [vmem:[%s6992_s0 + $0x548] sm:$0xf0] }
 0x1f5   :  { %v1917_v16 = vpop.f32.mrf.mxu3 }
 0x1f6   :  { %v5634_v7 = vadd.f32 %v2426_v15, %v1917_v16  ;;  %v1654_v42 = vpop.f32.mrf.mxu0  ;;  %v2428_v48 = vpop.f32.mrf.mxu2  ;;  %v3941_v15 = vld [vmem:[%s6992_s0 + $0x530] sm:$0xf] }
 0x1f7   :  { %v5636_v2 = vadd.f32 %v2163_v8, %v1654_v42  ;;  %v2166_v40 = vpop.f32.mrf.mxu1  ;;  %v4392_v8 = vld [vmem:[%s6992_s0 + $0x534] sm:$0xf0] }
 0x1f8   :  { %7060 = vst [vmem:[#allocation46_spill] sm:$0xff] %v5634_v7  ;;  %v3942_v16 = vor.u32 %v4392_v8, %v3941_v15 }
 0x1f9   :  { %7061 = vst [vmem:[#allocation47_spill] sm:$0xff] %v5636_v2  ;;  %v4287_v2 = vld [vmem:[%s6992_s0 + $0x1f4] sm:$0xf] }
 0x1fa   :  { %4153 = vmatmul.msk.bf16.gmra.mxu1 %vm1233_vm1, %v3522_v50 }
 0x1fb   :  { %4206 = vmatmul.msk.bf16.gmra.mxu2 %vm1233_vm1, %v3946_v59  ;;  %v3527_v59 = vld [vmem:[%s6992_s0 + $0x1f8] sm:$0xf0] }
 0x1fc   :  { %v3530_v8 = vor.u32 %v4287_v2, %v3527_v59 }
 0x1fd   :  { %v1919_v36 = vpop.f32.mrf.mxu3 }
 0x1fe   :  { %v5652_v35 = vadd.f32 %v2428_v48, %v1919_v36  ;;  %v1657_v61 = vpop.f32.mrf.mxu0  ;;  %v2431_v42 = vpop.f32.mrf.mxu2 }
 0x1ff   :  { %v5654_v50 = vadd.f32 %v2166_v40, %v1657_v61  ;;  %v2168_v7 = vpop.f32.mrf.mxu1 }
 0x200   :  { %7062 = vst [vmem:[#allocation48_spill] sm:$0xff] %v5652_v35  ;;  %v3525_v35 = vld [vmem:[%s6992_s0 + $0x1f0] sm:$0xf] }
 0x201   :  { %7063 = vst [vmem:[#allocation49_spill] sm:$0xff] %v5654_v50  ;;  %1696 = vmatmul.bf16.gmra.mxu0 %v3518_v24  ;;  %v4288_v50 = vld [vmem:[%s6992_s0 + $0x1f4] sm:$0xf0] }
 0x202   :  { %1961 = vmatmul.bf16.gmra.mxu3 %v3942_v16  ;;  %v3954_v16 = vor.u32 %v4393_v21, %v3951_v41  ;;  %v3526_v59 = vor.u32 %v4288_v50, %v3525_v35  ;;  %v4395_v35 = vld [vmem:[%s6992_s0 + $0x554] sm:$0xf]  ;;  %v3959_v50 = vld [vmem:[%s6992_s0 + $0x558] sm:$0xf0] }
 0x205   :  { %v1922_v48 = vpop.f32.mrf.mxu3 }
 0x206   :  { %v5668_v40 = vadd.f32 %v2431_v42, %v1922_v48  ;;  %v1659_v15 = vpop.f32.mrf.mxu0  ;;  %v2433_v36 = vpop.f32.mrf.mxu2  ;;  %v3949_v42 = vld [vmem:[%s6992_s0 + $0x540] sm:$0xf] }
 0x207   :  { %v5670_v24 = vadd.f32 %v2168_v7, %v1659_v15  ;;  %v2171_v61 = vpop.f32.mrf.mxu1  ;;  %v4394_v7 = vld [vmem:[%s6992_s0 + $0x544] sm:$0xf0] }
 0x208   :  { %7064 = vst [vmem:[#allocation50_spill] sm:$0xff] %v5668_v40  ;;  %v3950_v48 = vor.u32 %v4394_v7, %v3949_v42 }
 0x209   :  { %7065 = vst [vmem:[#allocation51_spill] sm:$0xff] %v5670_v24  ;;  %v4289_v24 = vld [vmem:[%s6992_s0 + $0x204] sm:$0xf] }
 0x20a   :  { %4154 = vmatmul.msk.bf16.gmra.mxu1 %vm1233_vm1, %v3530_v8 }
 0x20b   :  { %4207 = vmatmul.msk.bf16.gmra.mxu2 %vm1233_vm1, %v3954_v16  ;;  %v3535_v16 = vld [vmem:[%s6992_s0 + $0x208] sm:$0xf0] }
 0x20c   :  { %v3538_v7 = vor.u32 %v4289_v24, %v3535_v16  ;;  %v3533_v24 = vld [vmem:[%s6992_s0 + $0x200] sm:$0xf] }
 0x20d   :  { %v1924_v2 = vpop.f32.mrf.mxu3 }
 0x20e   :  { %v5686_v21 = vadd.f32 %v2433_v36, %v1924_v2  ;;  %v1662_v41 = vpop.f32.mrf.mxu0  ;;  %v2436_v15 = vpop.f32.mrf.mxu2 }
 0x20f   :  { %v5688_v8 = vadd.f32 %v2171_v61, %v1662_v41  ;;  %v2173_v40 = vpop.f32.mrf.mxu1 }
 0x210   :  { %7066 = vst [vmem:[#allocation52_spill] sm:$0xff] %v5686_v21  ;;  %v3038_v21 = vld [vmem:[%s6993_s3 + $0x58] sm:$0xff] }
 0x211   :  { %7067 = vst [vmem:[#allocation53_spill] sm:$0xff] %v5688_v8  ;;  %1701 = vmatmul.bf16.gmra.mxu0 %v3526_v59  ;;  %3091 = vmatpush.msrb.mxu2 %v3038_v21  ;;  %v3054_v8 = vld [vmem:[%s6993_s3 + $0xd8] sm:$0xff] }
 0x212   :  { %1966 = vmatmul.bf16.gmra.mxu3 %v3950_v48  ;;  %v3962_v48 = vor.u32 %v4395_v35, %v3959_v50  ;;  %v4396_v21 = vld [vmem:[%s6992_s0 + $0x554] sm:$0xf0] }
 0x213   :  { %3114 = vmatpush.msrb.mxu3 %v3054_v8 }
 0x215   :  { %v1927_v36 = vpop.f32.mrf.mxu3 }
 0x216   :  { %v5702_v61 = vadd.f32 %v2436_v15, %v1927_v36  ;;  %v1664_v42 = vpop.f32.mrf.mxu0  ;;  %v2438_v2 = vpop.f32.mrf.mxu2  ;;  %v3957_v15 = vld [vmem:[%s6992_s0 + $0x550] sm:$0xf] }
 0x217   :  { %v5704_v59 = vadd.f32 %v2173_v40, %v1664_v42  ;;  %v2176_v41 = vpop.f32.mrf.mxu1  ;;  %v4290_v40 = vld [vmem:[%s6992_s0 + $0x204] sm:$0xf0]  ;;  %v3958_v42 = vor.u32 %v4396_v21, %v3957_v15 }
 0x218   :  { %7068 = vst [vmem:[#allocation54_spill] sm:$0xff] %v5702_v61  ;;  %v3534_v35 = vor.u32 %v4290_v40, %v3533_v24 }
 0x219   :  { %7069 = vst [vmem:[#allocation55_spill] sm:$0xff] %v5704_v59  ;;  %v4291_v59 = vld [vmem:[%s6992_s0 + $0x214] sm:$0xf] }
 0x21a   :  { %4155 = vmatmul.msk.bf16.gmra.mxu1 %vm1233_vm1, %v3538_v7 }
 0x21b   :  { %4208 = vmatmul.msk.bf16.gmra.mxu2 %vm1233_vm1, %v3962_v48  ;;  %v3543_v48 = vld [vmem:[%s6992_s0 + $0x218] sm:$0xf0] }
 0x21c   :  { %v3546_v21 = vor.u32 %v4291_v59, %v3543_v48  ;;  %v4398_v59 = vld [vmem:[%s6992_s0 + $0x564] sm:$0xf0] }
 0x21d   :  { %v1929_v16 = vpop.f32.mrf.mxu3 }
 0x21e   :  { %v5726_v50 = vadd.f32 %v2438_v2, %v1929_v16  ;;  %v1667_v36 = vpop.f32.mrf.mxu0  ;;  %v2441_v7 = vpop.f32.mrf.mxu2  ;;  %v4397_v2 = vld [vmem:[%s6992_s0 + $0x564] sm:$0xf] }
 0x21f   :  { %v5728_v61 = vadd.f32 %v2176_v41, %v1667_v36  ;;  %v2178_v8 = vpop.f32.mrf.mxu1  ;;  %v3967_v41 = vld [vmem:[%s6992_s0 + $0x568] sm:$0xf0] }
 0x220   :  { %7070 = vst [vmem:[#allocation56_spill] sm:$0xff] %v5726_v50  ;;  %v3541_v50 = vld [vmem:[%s6992_s0 + $0x210] sm:$0xf] }
 0x221   :  { %7071 = vst [vmem:[#allocation57_spill] sm:$0xff] %v5728_v61  ;;  %1706 = vmatmul.bf16.gmra.mxu0 %v3534_v35  ;;  %v4292_v61 = vld [vmem:[%s6992_s0 + $0x214] sm:$0xf0] }
 0x222   :  { %1971 = vmatmul.bf16.gmra.mxu3 %v3958_v42  ;;  %v3970_v42 = vor.u32 %v4397_v2, %v3967_v41  ;;  %v3542_v48 = vor.u32 %v4292_v61, %v3541_v50  ;;  %v3551_v61 = vld [vmem:[%s6992_s0 + $0x228] sm:$0xf0]  ;;  %v4399_v50 = vld [vmem:[%s6992_s0 + $0x574] sm:$0xf] }
 0x225   :  { %v1932_v24 = vpop.f32.mrf.mxu3 }
 0x226   :  { %v5742_v40 = vadd.f32 %v2441_v7, %v1932_v24  ;;  %v1669_v15 = vpop.f32.mrf.mxu0  ;;  %v2443_v16 = vpop.f32.mrf.mxu2  ;;  %v3965_v7 = vld [vmem:[%s6992_s0 + $0x560] sm:$0xf] }
 0x227   :  { %v5744_v35 = vadd.f32 %v2178_v8, %v1669_v15  ;;  %v2181_v36 = vpop.f32.mrf.mxu1  ;;  %v3966_v24 = vor.u32 %v4398_v59, %v3965_v7  ;;  %v3554_v59 = vor.u32 %v4293_v13, %v3551_v61  ;;  %v4294_v13 = vld [vmem:[%s6992_s0 + $0x224] sm:$0xf0]  ;;  %v4400_v61 = vld [vmem:[%s6992_s0 + $0x574] sm:$0xf0] }
 0x228   :  { %7072 = vst [vmem:[#allocation58_spill] sm:$0xff] %v5742_v40 }
 0x229   :  { %7073 = vst [vmem:[#allocation59_spill] sm:$0xff] %v5744_v35 }
 0x22a   :  { %4156 = vmatmul.msk.bf16.gmra.mxu1 %vm1233_vm1, %v3546_v21 }
 0x22b   :  { %4209 = vmatmul.msk.bf16.gmra.mxu2 %vm1233_vm1, %v3970_v42 }
 0x22d   :  { %v1934_v8 = vpop.f32.mrf.mxu3 }
 0x22e   :  { %v5760_v2 = vadd.f32 %v2443_v16, %v1934_v8  ;;  %v1672_v41 = vpop.f32.mrf.mxu0  ;;  %v2446_v15 = vpop.f32.mrf.mxu2  ;;  %v3975_v16 = vld [vmem:[%s6992_s0 + $0x578] sm:$0xf0] }
 0x22f   :  { %v5762_v21 = vadd.f32 %v2181_v36, %v1672_v41  ;;  %v2183_v40 = vpop.f32.mrf.mxu1 }
 0x230   :  { %7074 = vst [vmem:[#allocation60_spill] sm:$0xff] %v5760_v2 }
 0x231   :  { %7075 = vst [vmem:[#allocation61_spill] sm:$0xff] %v5762_v21  ;;  %1711 = vmatmul.bf16.gmra.mxu0 %v3542_v48 }
 0x232   :  { %1976 = vmatmul.bf16.gmra.mxu3 %v3966_v24  ;;  %v3978_v24 = vor.u32 %v4399_v50, %v3975_v16 }
 0x235   :  { %v1937_v36 = vpop.f32.mrf.mxu3 }
 0x236   :  { %v5778_v42 = vadd.f32 %v2446_v15, %v1937_v36  ;;  %v1674_v7 = vpop.f32.mrf.mxu0  ;;  %v2448_v8 = vpop.f32.mrf.mxu2  ;;  %v3549_v15 = vld [vmem:[%s6992_s0 + $0x220] sm:$0xf] }
 0x237   :  { %v5780_v48 = vadd.f32 %v2183_v40, %v1674_v7  ;;  %v2186_v41 = vpop.f32.mrf.mxu1  ;;  %v3973_v40 = vld [vmem:[%s6992_s0 + $0x570] sm:$0xf]  ;;  %v3550_v16 = vor.u32 %v4294_v13, %v3549_v15  ;;  %v3983_v15 = vld [vmem:[%s6992_s0 + $0x588] sm:$0xf0] }
 0x238   :  { %v7081_v63 = vmax.f32 %v4896_v6, %v5778_v42 }
 0x239   :  { %7076 = vst [vmem:[#allocation62_spill] sm:$0xff] %v5780_v48 }
 0x23a   :  { %4157 = vmatmul.msk.bf16.gmra.mxu1 %vm1233_vm1, %v3554_v59  ;;  %v3974_v59 = vor.u32 %v4400_v61, %v3973_v40 }
 0x23b   :  { %4210 = vmatmul.msk.bf16.gmra.mxu2 %vm1233_vm1, %v3978_v24  ;;  %v4295_v24 = vld [vmem:[%s6992_s0 + $0x234] sm:$0xf] }
 0x23d   :  { %v1939_v50 = vpop.f32.mrf.mxu3 }
 0x23e   :  { %v5800_v36 = vadd.f32 %v2448_v8, %v1939_v50  ;;  %v1677_v7 = vpop.f32.mrf.mxu0  ;;  %v2451_v2 = vpop.f32.mrf.mxu2  ;;  %v3559_v8 = vld [vmem:[%s6992_s0 + $0x238] sm:$0xf0] }
 0x23f   :  { %v5802_v35 = vadd.f32 %v2186_v41, %v1677_v7  ;;  %v2188_v48 = vpop.f32.mrf.mxu1  ;;  %v4401_v41 = vld [vmem:[%s6992_s0 + $0x584] sm:$0xf]  ;;  %v3562_v50 = vor.u32 %v4295_v24, %v3559_v8  ;;  %v3981_v24 = vld [vmem:[%s6992_s0 + $0x580] sm:$0xf]  ;;  %v4402_v8 = vld [vmem:[%s6992_s0 + $0x584] sm:$0xf0] }
 0x240   :  { %v3986_v21 = vor.u32 %v4401_v41, %v3983_v15 }
 0x241   :  { %7077 = vst [vmem:[#allocation63_spill] sm:$0xff] %v5802_v35  ;;  %1716 = vmatmul.bf16.gmra.mxu0 %v3550_v16  ;;  %v3037_v35 = vld [vmem:[%s6993_s3 + $0x50] sm:$0xff] }
 0x242   :  { %1981 = vmatmul.bf16.gmra.mxu3 %v3974_v59  ;;  %3092 = vmatpush.msrb.mxu2 %v3037_v35  ;;  %v3053_v35 = vld [vmem:[%s6993_s3 + $0xd0] sm:$0xff] }
 0x243   :  { %3115 = vmatpush.msrb.mxu3 %v3053_v35 }
 0x245   :  { %v1942_v13 = vpop.f32.mrf.mxu3 }
 0x246   :  { %v5820_v40 = vadd.f32 %v2451_v2, %v1942_v13  ;;  %v1679_v61 = vpop.f32.mrf.mxu0  ;;  %v2453_v16 = vpop.f32.mrf.mxu2  ;;  %v3557_v2 = vld [vmem:[%s6992_s0 + $0x230] sm:$0xf] }
 0x247   :  { %v5822_v7 = vadd.f32 %v2188_v48, %v1679_v61  ;;  %v2191_v59 = vpop.f32.mrf.mxu1  ;;  %v4296_v48 = vld [vmem:[%s6992_s0 + $0x234] sm:$0xf0] }
 0x248   :  { %v3558_v15 = vor.u32 %v4296_v48, %v3557_v2  ;;  %v4297_v2 = vld [vmem:[%s6992_s0 + $0x244] sm:$0xf]  ;;  %v3991_v48 = vld [vmem:[%s6992_s0 + $0x598] sm:$0xf0] }
 0x249   :  { %7078 = vst [vmem:[#allocation64_spill] sm:$0xff] %v5822_v7 }
 0x24a   :  { %4158 = vmatmul.msk.bf16.gmra.mxu1 %vm1233_vm1, %v3562_v50  ;;  %v3982_v50 = vor.u32 %v4402_v8, %v3981_v24 }
 0x24b   :  { %4211 = vmatmul.msk.bf16.gmra.mxu2 %vm1233_vm1, %v3986_v21 }
 0x24d   :  { %v1944_v41 = vpop.f32.mrf.mxu3 }
 0x24e   :  { %v5848_v13 = vadd.f32 %v2453_v16, %v1944_v41  ;;  %v1682_v61 = vpop.f32.mrf.mxu0  ;;  %v2456_v23 = vpop.f32.mrf.mxu2  ;;  %v3567_v16 = vld [vmem:[%s6992_s0 + $0x248] sm:$0xf0] }
 0x24f   :  { %v5850_v10 = vadd.f32 %v2191_v59, %v1682_v61  ;;  %v2193_v7 = vpop.f32.mrf.mxu1  ;;  %v4403_v59 = vld [vmem:[%s6992_s0 + $0x594] sm:$0xf]  ;;  %v3570_v41 = vor.u32 %v4297_v2, %v3567_v16  ;;  %v4298_v2 = vld [vmem:[%s6992_s0 + $0x244] sm:$0xf0]  ;;  %v4404_v16 = vld [vmem:[%s6992_s0 + $0x594] sm:$0xf0] }
 0x250   :  { %v3994_v21 = vor.u32 %v4403_v59, %v3991_v48 }
 0x251   :  { %7079 = vst [vmem:[#allocation65_spill] sm:$0xff] %v5850_v10  ;;  %1721 = vmatmul.bf16.gmra.mxu0 %v3558_v15 }
 0x252   :  { %1986 = vmatmul.bf16.gmra.mxu3 %v3982_v50 }
 0x255   :  { %v1947_v24 = vpop.f32.mrf.mxu3 }
 0x256   :  { %v5868_v8 = vadd.f32 %v2456_v23, %v1947_v24  ;;  %v1684_v35 = vpop.f32.mrf.mxu0  ;;  %v2458_v15 = vpop.f32.mrf.mxu2  ;;  %v3565_v23 = vld [vmem:[%s6992_s0 + $0x240] sm:$0xf] }
 0x257   :  { %v5870_v61 = vadd.f32 %v2193_v7, %v1684_v35  ;;  %v2196_v50 = vpop.f32.mrf.mxu1  ;;  %v3989_v7 = vld [vmem:[%s6992_s0 + $0x590] sm:$0xf]  ;;  %v3566_v48 = vor.u32 %v4298_v2, %v3565_v23  ;;  %v4405_v23 = vld [vmem:[%s6992_s0 + $0x5a4] sm:$0xf] }
 0x259   :  { %7080 = vst [vmem:[#allocation66_spill] sm:$0xff] %v5870_v61 }
 0x25a   :  { %4159 = vmatmul.msk.bf16.gmra.mxu1 %vm1233_vm1, %v3570_v41  ;;  %v3990_v41 = vor.u32 %v4404_v16, %v3989_v7 }
 0x25b   :  { %4212 = vmatmul.msk.bf16.gmra.mxu2 %vm1233_vm1, %v3994_v21 }
 0x25d   :  { %v1949_v59 = vpop.f32.mrf.mxu3 }
 0x25e   :  { %v5890_v24 = vadd.f32 %v2458_v15, %v1949_v59  ;;  %v1687_v35 = vpop.f32.mrf.mxu0  ;;  %v2461_v10 = vpop.f32.mrf.mxu2  ;;  %v4299_v15 = vld [vmem:[%s6992_s0 + $0x254] sm:$0xf] }
 0x25f   :  { %v2197_v34 = vadd.f32 %v2196_v50, %v1687_v35  ;;  %v2198_v61 = vpop.f32.mrf.mxu1  ;;  %v3575_v50 = vld [vmem:[%s6992_s0 + $0x258] sm:$0xf0]  ;;  %v3573_v35 = vld [vmem:[%s6992_s0 + $0x250] sm:$0xf] }
 0x260   :  { %v2617_v58 = vmax.f32 %v4982_v4, %v5890_v24 }
 0x261   :  { %v2562_v47 = vmax.f32 %v4984_v9, %v2197_v34  ;;  %1726 = vmatmul.bf16.gmra.mxu0 %v3566_v48  ;;  %v3999_v34 = vld [vmem:[%s6992_s0 + $0x5a8] sm:$0xf0] }
 0x262   :  { %1991 = vmatmul.bf16.gmra.mxu3 %v3990_v41  ;;  %v4002_v16 = vor.u32 %v4405_v23, %v3999_v34 }
 0x263   :  { %v5898_v21 = vmax.f32 %v2562_v47, %v7081_v63  ;;  %v3578_v47 = vor.u32 %v4299_v15, %v3575_v50  ;;  %v3997_v15 = vld [vmem:[%s6992_s0 + $0x5a0] sm:$0xf] }
 0x265   :  { %v1952_v9 = vpop.f32.mrf.mxu3 }
 0x266   :  { %v5912_v6 = vadd.f32 %v2461_v10, %v1952_v9  ;;  %v1689_v63 = vpop.f32.mrf.mxu0  ;;  %v2463_v42 = vpop.f32.mrf.mxu2  ;;  %v4300_v10 = vld [vmem:[%s6992_s0 + $0x254] sm:$0xf0] }
 0x267   :  { %v2199_v2 = vadd.f32 %v2198_v61, %v1689_v63  ;;  %v2201_v7 = vpop.f32.mrf.mxu1  ;;  %v7082_v61 = vmax.f32 %v4914_v19, %v5800_v36  ;;  %v3574_v23 = vor.u32 %v4300_v10, %v3573_v35  ;;  %v3036_v35 = vld [vmem:[%s6993_s3 + $0x48] sm:$0xff] }
 0x268   :  { %v2618_v59 = vmax.f32 %v4998_v17, %v5912_v6  ;;  %3093 = vmatpush.msrb.mxu2 %v3036_v35  ;;  %v4408_v35 = vld [vmem:[%s6992_s0 + $0x5b4] sm:$0xf0] }
 0x269   :  { %v2563_v48 = vmax.f32 %v5000_v22, %v2199_v2  ;;  %v4406_v22 = vld [vmem:[%s6992_s0 + $0x5a4] sm:$0xf0] }
 0x26a   :  { %4160 = vmatmul.msk.bf16.gmra.mxu1 %vm1233_vm1, %v3578_v47  ;;  %v3998_v63 = vor.u32 %v4406_v22, %v3997_v15 }
 0x26b   :  { %v5927_v41 = vmax.f32 %v2563_v48, %v7082_v61  ;;  %4213 = vmatmul.msk.bf16.gmra.mxu2 %vm1233_vm1, %v4002_v16  ;;  %v7083_v61 = vmax.f32 %v4930_v30, %v5820_v40  ;;  %v4007_v30 = vld [vmem:[%s6992_s0 + $0x5b8] sm:$0xf0] }
 0x26d   :  { %v1954_v50 = vpop.f32.mrf.mxu3 }
 0x26e   :  { %v5936_v34 = vadd.f32 %v2463_v42, %v1954_v50  ;;  %v1692_v9 = vpop.f32.mrf.mxu0  ;;  %v2466_v47 = vpop.f32.mrf.mxu2  ;;  %v4301_v42 = vld [vmem:[%s6992_s0 + $0x264] sm:$0xf] }
 0x26f   :  { %v2202_v19 = vadd.f32 %v2201_v7, %v1692_v9  ;;  %v2203_v36 = vpop.f32.mrf.mxu1  ;;  %v3583_v7 = vld [vmem:[%s6992_s0 + $0x268] sm:$0xf0] }
 0x270   :  { %v2619_v2 = vmax.f32 %v5016_v33, %v5936_v34  ;;  %v3586_v22 = vor.u32 %v4301_v42, %v3583_v7  ;;  %v7084_v42 = vmax.f32 %v4948_v43, %v5848_v13 }
 0x271   :  { %v2564_v48 = vmax.f32 %v5018_v38, %v2202_v19  ;;  %1731 = vmatmul.bf16.gmra.mxu0 %v3574_v23  ;;  %v4407_v38 = vld [vmem:[%s6992_s0 + $0x5b4] sm:$0xf] }
 0x272   :  { %1996 = vmatmul.bf16.gmra.mxu3 %v3998_v63  ;;  %v4010_v63 = vor.u32 %v4407_v38, %v4007_v30 }
 0x273   :  { %v5944_v16 = vmax.f32 %v2564_v48, %v7083_v61  ;;  %v3052_v48 = vld [vmem:[%s6993_s3 + $0xc8] sm:$0xff] }
 0x274   :  { %3116 = vmatpush.msrb.mxu3 %v3052_v48 }
 0x275   :  { %v1957_v40 = vpop.f32.mrf.mxu3 }
 0x276   :  { %v5961_v10 = vadd.f32 %v2466_v47, %v1957_v40  ;;  %v1694_v15 = vpop.f32.mrf.mxu0  ;;  %v2468_v50 = vpop.f32.mrf.mxu2  ;;  %v3581_v47 = vld [vmem:[%s6992_s0 + $0x260] sm:$0xf] }
 0x277   :  { %v2204_v23 = vadd.f32 %v2203_v36, %v1694_v15  ;;  %v2206_v9 = vpop.f32.mrf.mxu1  ;;  %v4302_v36 = vld [vmem:[%s6992_s0 + $0x264] sm:$0xf0] }
 0x278   :  { %v2620_v19 = vmax.f32 %v5032_v46, %v5961_v10  ;;  %v3582_v30 = vor.u32 %v4302_v36, %v3581_v47  ;;  %v4409_v47 = vld [vmem:[%s6992_s0 + $0x5c4] sm:$0xf]  ;;  %v4031_v46 = vld [vmem:[%s6992_s0 + $0x5e8] sm:$0xf0] }
 0x279   :  { %v2565_v61 = vmax.f32 %v5034_v51, %v2204_v23  ;;  %v4005_v51 = vld [vmem:[%s6992_s0 + $0x5b0] sm:$0xf] }
 0x27a   :  { %4161 = vmatmul.msk.bf16.gmra.mxu1 %vm1233_vm1, %v3586_v22  ;;  %v4006_v22 = vor.u32 %v4408_v35, %v4005_v51 }
 0x27b   :  { %v5979_v7 = vmax.f32 %v2565_v61, %v7084_v42  ;;  %4214 = vmatmul.msk.bf16.gmra.mxu2 %vm1233_vm1, %v4010_v63  ;;  %v7085_v42 = vmax.f32 %v4964_v54, %v5868_v8 }
 0x27d   :  { %v1959_v38 = vpop.f32.mrf.mxu3 }
 0x27e   :  { %v5988_v40 = vadd.f32 %v2468_v50, %v1959_v38  ;;  %v1697_v15 = vpop.f32.mrf.mxu0  ;;  %v2471_v23 = vpop.f32.mrf.mxu2  ;;  %v4303_v50 = vld [vmem:[%s6992_s0 + $0x274] sm:$0xf] }
 0x27f   :  { %v2207_v43 = vadd.f32 %v2206_v9, %v1697_v15  ;;  %v2208_v13 = vpop.f32.mrf.mxu1  ;;  %v3591_v9 = vld [vmem:[%s6992_s0 + $0x278] sm:$0xf0] }
 0x280   :  { %v2621_v48 = vmax.f32 %v5050_v62, %v5988_v40  ;;  %v3594_v51 = vor.u32 %v4303_v50, %v3591_v9 }
 0x281   :  { %v2566_v61 = vmax.f32 %v5052_v3, %v2207_v43  ;;  %1736 = vmatmul.bf16.gmra.mxu0 %v3582_v30  ;;  %v4015_v3 = vld [vmem:[%s6992_s0 + $0x5c8] sm:$0xf0] }
 0x282   :  { %2001 = vmatmul.bf16.gmra.mxu3 %v4006_v22  ;;  %v4018_v15 = vor.u32 %v4409_v47, %v4015_v3 }
 0x283   :  { %v5996_v63 = vmax.f32 %v2566_v61, %v7085_v42  ;;  %v3589_v61 = vld [vmem:[%s6992_s0 + $0x270] sm:$0xf]  ;;  %v4013_v42 = vld [vmem:[%s6992_s0 + $0x5c0] sm:$0xf] }
 0x285   :  { %v1962_v36 = vpop.f32.mrf.mxu3 }
 0x286   :  { %v6010_v54 = vadd.f32 %v2471_v23, %v1962_v36  ;;  %v1699_v8 = vpop.f32.mrf.mxu0  ;;  %v2473_v35 = vpop.f32.mrf.mxu2  ;;  %v4304_v23 = vld [vmem:[%s6992_s0 + $0x274] sm:$0xf0] }
 0x287   :  { %v2209_v38 = vadd.f32 %v2208_v13, %v1699_v8  ;;  %v2211_v30 = vpop.f32.mrf.mxu1  ;;  %v3590_v9 = vor.u32 %v4304_v23, %v3589_v61 }
 0x288   :  { %v2622_v22 = vmax.f32 %v5066_v14, %v6010_v54 }
 0x289   :  { %v2567_v43 = vmax.f32 %v5068_v20, %v2209_v38  ;;  %v4410_v20 = vld [vmem:[%s6992_s0 + $0x5c4] sm:$0xf0] }
 0x28a   :  { %4162 = vmatmul.msk.bf16.gmra.mxu1 %vm1233_vm1, %v3594_v51  ;;  %v4014_v36 = vor.u32 %v4410_v20, %v4013_v42 }
 0x28b   :  { %v6025_v13 = vmax.f32 %v2567_v43, %v2617_v58  ;;  %4215 = vmatmul.msk.bf16.gmra.mxu2 %vm1233_vm1, %v4018_v15  ;;  %v4411_v15 = vld [vmem:[%s6992_s0 + $0x5d4] sm:$0xf] }
 0x28d   :  { %v1964_v50 = vpop.f32.mrf.mxu3 }
 0x28e   :  { %v6034_v47 = vadd.f32 %v2473_v35, %v1964_v50  ;;  %v1702_v3 = vpop.f32.mrf.mxu0  ;;  %v2476_v8 = vpop.f32.mrf.mxu2  ;;  %v4305_v35 = vld [vmem:[%s6992_s0 + $0x284] sm:$0xf] }
 0x28f   :  { %v2212_v4 = vadd.f32 %v2211_v30, %v1702_v3  ;;  %v2213_v58 = vpop.f32.mrf.mxu1  ;;  %v3599_v30 = vld [vmem:[%s6992_s0 + $0x288] sm:$0xf0]  ;;  %v3597_v3 = vld [vmem:[%s6992_s0 + $0x280] sm:$0xf] }
 0x290   :  { %v2623_v24 = vmax.f32 %v5084_v32, %v6034_v47 }
 0x291   :  { %v2568_v51 = vmax.f32 %v5086_v39, %v2212_v4  ;;  %1741 = vmatmul.bf16.gmra.mxu0 %v3590_v9  ;;  %v4023_v39 = vld [vmem:[%s6992_s0 + $0x5d8] sm:$0xf0]  ;;  %v4021_v4 = vld [vmem:[%s6992_s0 + $0x5d0] sm:$0xf] }
 0x292   :  { %2006 = vmatmul.bf16.gmra.mxu3 %v4014_v36  ;;  %v4026_v20 = vor.u32 %v4411_v15, %v4023_v39  ;;  %v4306_v36 = vld [vmem:[%s6992_s0 + $0x284] sm:$0xf0] }
 0x293   :  { %v6042_v38 = vmax.f32 %v2568_v51, %v2618_v59  ;;  %v3602_v59 = vor.u32 %v4305_v35, %v3599_v30  ;;  %v3598_v51 = vor.u32 %v4306_v36, %v3597_v3 }
 0x295   :  { %v1967_v43 = vpop.f32.mrf.mxu3 }
 0x296   :  { %v6056_v17 = vadd.f32 %v2476_v8, %v1967_v43  ;;  %v1704_v6 = vpop.f32.mrf.mxu0  ;;  %v2478_v61 = vpop.f32.mrf.mxu2 }
 0x297   :  { %v2214_v23 = vadd.f32 %v2213_v58, %v1704_v6  ;;  %v2216_v42 = vpop.f32.mrf.mxu1 }
 0x298   :  { %v2624_v50 = vmax.f32 %v5100_v49, %v6056_v17 }
 0x299   :  { %v2569_v9 = vmax.f32 %v5102_v55, %v2214_v23  ;;  %v4412_v55 = vld [vmem:[%s6992_s0 + $0x5d4] sm:$0xf0]  ;;  %v3035_v23 = vld [vmem:[%s6993_s3 + $0x40] sm:$0xff] }
 0x29a   :  { %4163 = vmatmul.msk.bf16.gmra.mxu1 %vm1233_vm1, %v3602_v59  ;;  %v4022_v15 = vor.u32 %v4412_v55, %v4021_v4  ;;  %v4307_v59 = vld [vmem:[%s6992_s0 + $0x294] sm:$0xf]  ;;  %3094 = vmatpush.msrb.mxu2 %v3035_v23 }
 0x29b   :  { %v6071_v8 = vmax.f32 %v2569_v9, %v2619_v2  ;;  %4216 = vmatmul.msk.bf16.gmra.mxu2 %vm1233_vm1, %v4026_v20 }
 0x29d   :  { %v1969_v58 = vpop.f32.mrf.mxu3 }
 0x29e   :  { %v6080_v35 = vadd.f32 %v2478_v61, %v1969_v58  ;;  %v1707_v30 = vpop.f32.mrf.mxu0  ;;  %v2481_v39 = vpop.f32.mrf.mxu2  ;;  %v3607_v61 = vld [vmem:[%s6992_s0 + $0x298] sm:$0xf0]  ;;  %v3051_v58 = vld [vmem:[%s6993_s3 + $0xc0] sm:$0xff] }
 0x29f   :  { %v2217_v33 = vadd.f32 %v2216_v42, %v1707_v30  ;;  %v2218_v34 = vpop.f32.mrf.mxu1  ;;  %v3610_v20 = vor.u32 %v4307_v59, %v3607_v61  ;;  %3117 = vmatpush.msrb.mxu3 %v3051_v58  ;;  %v3605_v30 = vld [vmem:[%s6992_s0 + $0x290] sm:$0xf] }
 0x2a0   :  { %v2625_v2 = vmax.f32 %v5118_v5, %v6080_v35 }
 0x2a1   :  { %v2570_v43 = vmax.f32 %v5120_v12, %v2217_v33  ;;  %1746 = vmatmul.bf16.gmra.mxu0 %v3598_v51  ;;  %v4413_v12 = vld [vmem:[%s6992_s0 + $0x5e4] sm:$0xf]  ;;  %v4414_v33 = vld [vmem:[%s6992_s0 + $0x5e4] sm:$0xf0] }
 0x2a2   :  { %2011 = vmatmul.bf16.gmra.mxu3 %v4022_v15  ;;  %v4034_v4 = vor.u32 %v4413_v12, %v4031_v46  ;;  %v4308_v15 = vld [vmem:[%s6992_s0 + $0x294] sm:$0xf0] }
 0x2a3   :  { %v6088_v6 = vmax.f32 %v2570_v43, %v2620_v19  ;;  %v3606_v43 = vor.u32 %v4308_v15, %v3605_v30  ;;  %v3613_v30 = vld [vmem:[%s6992_s0 + $0x2a0] sm:$0xf]  ;;  %v4310_v15 = vld [vmem:[%s6992_s0 + $0x2a4] sm:$0xf0] }
 0x2a5   :  { %v1972_v10 = vpop.f32.mrf.mxu3 }
 0x2a6   :  { %v6105_v19 = vadd.f32 %v2481_v39, %v1972_v10  ;;  %v1709_v42 = vpop.f32.mrf.mxu0  ;;  %v2483_v9 = vpop.f32.mrf.mxu2 }
 0x2a7   :  { %v2219_v3 = vadd.f32 %v2218_v34, %v1709_v42  ;;  %v2221_v36 = vpop.f32.mrf.mxu1  ;;  %v4309_v42 = vld [vmem:[%s6992_s0 + $0x2a4] sm:$0xf] }
 0x2a8   :  { %v2626_v55 = vmax.f32 %v5134_v25, %v6105_v19  ;;  %v4055_v25 = vld [vmem:[%s6992_s0 + $0x618] sm:$0xf0] }
 0x2a9   :  { %v2571_v51 = vmax.f32 %v5136_v29, %v2219_v3  ;;  %v4029_v29 = vld [vmem:[%s6992_s0 + $0x5e0] sm:$0xf] }
 0x2aa   :  { %4164 = vmatmul.msk.bf16.gmra.mxu1 %vm1233_vm1, %v3610_v20  ;;  %v4030_v23 = vor.u32 %v4414_v33, %v4029_v29  ;;  %v3615_v20 = vld [vmem:[%s6992_s0 + $0x2a8] sm:$0xf0]  ;;  %v4037_v33 = vld [vmem:[%s6992_s0 + $0x5f0] sm:$0xf] }
 0x2ab   :  { %v6123_v39 = vmax.f32 %v2571_v51, %v2621_v48  ;;  %4217 = vmatmul.msk.bf16.gmra.mxu2 %vm1233_vm1, %v4034_v4  ;;  %v3618_v54 = vor.u32 %v4309_v42, %v3615_v20  ;;  %v3623_v42 = vld [vmem:[%s6992_s0 + $0x2b8] sm:$0xf0]  ;;  %v4417_v20 = vld [vmem:[%s6992_s0 + $0x604] sm:$0xf] }
 0x2ad   :  { %v1974_v34 = vpop.f32.mrf.mxu3 }
 0x2ae   :  { %v6132_v59 = vadd.f32 %v2483_v9, %v1974_v34  ;;  %v1712_v61 = vpop.f32.mrf.mxu0  ;;  %v6134_v12 = vpop.f32.mrf.mxu2  ;;  %v4415_v9 = vld [vmem:[%s6992_s0 + $0x5f4] sm:$0xf] }
 0x2af   :  { %v2222_v62 = vadd.f32 %v2221_v36, %v1712_v61  ;;  %v2223_v40 = vpop.f32.mrf.mxu1 }
 0x2b0   :  { %v2627_v48 = vmax.f32 %v5152_v45, %v6132_v59 }
 0x2b1   :  { %v2572_v46 = vmax.f32 %v5154_v53, %v2222_v62  ;;  %1751 = vmatmul.bf16.gmra.mxu0 %v3606_v43  ;;  %v4039_v53 = vld [vmem:[%s6992_s0 + $0x5f8] sm:$0xf0]  ;;  %v3614_v43 = vor.u32 %v4310_v15, %v3613_v30  ;;  %v4045_v30 = vld [vmem:[%s6992_s0 + $0x600] sm:$0xf] }
 0x2b2   :  { %2016 = vmatmul.bf16.gmra.mxu3 %v4030_v23  ;;  %v4042_v58 = vor.u32 %v4415_v9, %v4039_v53 }
 0x2b3   :  { %v6142_v10 = vmax.f32 %v2572_v46, %v2622_v22  ;;  %v4311_v46 = vld [vmem:[%s6992_s0 + $0x2b4] sm:$0xf] }
 0x2b4   :  { %v3626_v17 = vor.u32 %v4311_v46, %v3623_v42  ;;  %v4419_v46 = vld [vmem:[%s6992_s0 + $0x614] sm:$0xf] }
 0x2b5   :  { %v6156_v3 = vpop.f32.mrf.mxu3 }
 0x2b6   :  { %v1714_v14 = vpop.f32.mrf.mxu0  ;;  %v6158_v22 = vpop.f32.mrf.mxu2 }
 0x2b7   :  { %v2224_v36 = vadd.f32 %v2223_v40, %v1714_v14  ;;  %v2226_v4 = vpop.f32.mrf.mxu1 }
 0x2b9   :  { %v2573_v51 = vmax.f32 %v5170_v11, %v2224_v36  ;;  %v4416_v11 = vld [vmem:[%s6992_s0 + $0x5f4] sm:$0xf0] }
 0x2ba   :  { %4165 = vmatmul.msk.bf16.gmra.mxu1 %vm1233_vm1, %v3618_v54  ;;  %v4038_v23 = vor.u32 %v4416_v11, %v4037_v33 }
 0x2bb   :  { %v6171_v29 = vmax.f32 %v2573_v51, %v2623_v24  ;;  %4218 = vmatmul.msk.bf16.gmra.mxu2 %vm1233_vm1, %v4042_v58  ;;  %v4312_v58 = vld [vmem:[%s6992_s0 + $0x2b4] sm:$0xf0] }
 0x2bd   :  { %v6180_v34 = vpop.f32.mrf.mxu3 }
 0x2be   :  { %v1717_v61 = vpop.f32.mrf.mxu0  ;;  %v6182_v62 = vpop.f32.mrf.mxu2 }
 0x2bf   :  { %v2227_v32 = vadd.f32 %v2226_v4, %v1717_v61  ;;  %v2228_v47 = vpop.f32.mrf.mxu1  ;;  %v3621_v4 = vld [vmem:[%s6992_s0 + $0x2b0] sm:$0xf] }
 0x2c0   :  { %v3622_v33 = vor.u32 %v4312_v58, %v3621_v4  ;;  %v4053_v4 = vld [vmem:[%s6992_s0 + $0x610] sm:$0xf]  ;;  %v2487_v58 = vadd.f32 %v6134_v12, %v6156_v3  ;;  %v4315_v3 = vld [vmem:[%s6992_s0 + $0x2d4] sm:$0xf] }
 0x2c1   :  { %v2574_v24 = vmax.f32 %v5188_v37, %v2227_v32  ;;  %1756 = vmatmul.bf16.gmra.mxu0 %v3614_v43  ;;  %v4047_v37 = vld [vmem:[%s6992_s0 + $0x608] sm:$0xf0] }
 0x2c2   :  { %2021 = vmatmul.bf16.gmra.mxu3 %v4038_v23  ;;  %v4050_v54 = vor.u32 %v4417_v20, %v4047_v37  ;;  %v4313_v23 = vld [vmem:[%s6992_s0 + $0x2c4] sm:$0xf] }
 0x2c3   :  { %v6188_v40 = vmax.f32 %v2574_v24, %v2624_v50  ;;  %v3034_v24 = vld [vmem:[%s6993_s3 + $0x38] sm:$0xff] }
 0x2c4   :  { %3095 = vmatpush.msrb.mxu2 %v3034_v24 }
 0x2c5   :  { %v6202_v9 = vpop.f32.mrf.mxu3 }
 0x2c6   :  { %v1719_v49 = vpop.f32.mrf.mxu0  ;;  %v6204_v50 = vpop.f32.mrf.mxu2 }
 0x2c7   :  { %v2229_v53 = vadd.f32 %v2228_v47, %v1719_v49  ;;  %v2231_v14 = vpop.f32.mrf.mxu1  ;;  %v3631_v47 = vld [vmem:[%s6992_s0 + $0x2c8] sm:$0xf0] }
 0x2c8   :  { %v3634_v42 = vor.u32 %v4313_v23, %v3631_v47  ;;  %v2489_v47 = vadd.f32 %v6158_v22, %v6180_v34  ;;  %v3637_v22 = vld [vmem:[%s6992_s0 + $0x2d0] sm:$0xf]  ;;  %v4316_v34 = vld [vmem:[%s6992_s0 + $0x2d4] sm:$0xf0] }
 0x2c9   :  { %v2575_v36 = vmax.f32 %v5204_v60, %v2229_v53  ;;  %v4418_v60 = vld [vmem:[%s6992_s0 + $0x604] sm:$0xf0] }
 0x2ca   :  { %4166 = vmatmul.msk.bf16.gmra.mxu1 %vm1233_vm1, %v3626_v17  ;;  %v4046_v43 = vor.u32 %v4418_v60, %v4045_v30  ;;  %v4058_v17 = vor.u32 %v4419_v46, %v4055_v25 }
 0x2cb   :  { %v6217_v51 = vmax.f32 %v2575_v36, %v2625_v2  ;;  %4219 = vmatmul.msk.bf16.gmra.mxu2 %vm1233_vm1, %v4050_v54  ;;  %v4314_v54 = vld [vmem:[%s6992_s0 + $0x2c4] sm:$0xf0] }
 0x2cd   :  { %v6226_v15 = vpop.f32.mrf.mxu3 }
 0x2ce   :  { %v1722_v11 = vpop.f32.mrf.mxu0  ;;  %v6228_v61 = vpop.f32.mrf.mxu2 }
 0x2cf   :  { %v2232_v5 = vadd.f32 %v2231_v14, %v1722_v11  ;;  %v2233_v35 = vpop.f32.mrf.mxu1  ;;  %v3629_v14 = vld [vmem:[%s6992_s0 + $0x2c0] sm:$0xf] }
 0x2d0   :  { %v3630_v60 = vor.u32 %v4314_v54, %v3629_v14 }
 0x2d1   :  { %v2576_v2 = vmax.f32 %v5222_v27, %v2232_v5  ;;  %1761 = vmatmul.bf16.gmra.mxu0 %v3622_v33  ;;  %v3050_v27 = vld [vmem:[%s6993_s3 + $0xb8] sm:$0xff]  ;;  %v2628_v5 = vmax.f32 %v5168_v1, %v2487_v58  ;;  %v4421_v1 = vld [vmem:[%s6992_s0 + $0x624] sm:$0xf]  ;;  %v2492_v58 = vadd.f32 %v6182_v62, %v6202_v9 }
 0x2d2   :  { %2026 = vmatmul.bf16.gmra.mxu3 %v4046_v43  ;;  %v4317_v9 = vld [vmem:[%s6992_s0 + $0x2e4] sm:$0xf] }
 0x2d3   :  { %v6237_v32 = vmax.f32 %v2576_v2, %v2626_v55  ;;  %3118 = vmatpush.msrb.mxu3 %v3050_v27  ;;  %v3639_v2 = vld [vmem:[%s6992_s0 + $0x2d8] sm:$0xf0] }
 0x2d4   :  { %v3642_v25 = vor.u32 %v4315_v3, %v3639_v2 }
 0x2d5   :  { %v6254_v19 = vpop.f32.mrf.mxu3 }
 0x2d6   :  { %v1724_v55 = vpop.f32.mrf.mxu0  ;;  %v6256_v20 = vpop.f32.mrf.mxu2 }
 0x2d7   :  { %v2234_v37 = vadd.f32 %v2233_v35, %v1724_v55  ;;  %v2236_v49 = vpop.f32.mrf.mxu1 }
 0x2d9   :  { %v2577_v53 = vmax.f32 %v5238_v57, %v2234_v37  ;;  %v4420_v57 = vld [vmem:[%s6992_s0 + $0x614] sm:$0xf0] }
 0x2da   :  { %4167 = vmatmul.msk.bf16.gmra.mxu1 %vm1233_vm1, %v3634_v42  ;;  %v4054_v45 = vor.u32 %v4420_v57, %v4053_v4 }
 0x2db   :  { %v6269_v36 = vmax.f32 %v2577_v53, %v2627_v48  ;;  %4220 = vmatmul.msk.bf16.gmra.mxu2 %vm1233_vm1, %v4058_v17  ;;  %v6287_v48 = vld [vmem:[%s6994_s2] ss:$0 sm:$0xff]  ;;  %v2629_v53 = vmax.f32 %v5186_v28, %v2489_v47 }
 0x2dc   :  { %v2716_v23 = vadd.f32 %v6287_v48, %v5898_v21  ;;  %v4061_v28 = vld [vmem:[%s6992_s0 + $0x620] sm:$0xf]  ;;  %v2717_v57 = vadd.f32 %v6287_v48, %v5927_v41  ;;  %v2718_v47 = vadd.f32 %v6287_v48, %v5944_v16 }
 0x2dd   :  { %v6280_v30 = vpop.f32.mrf.mxu3 }
 0x2de   :  { %v1727_v33 = vpop.f32.mrf.mxu0  ;;  %v6282_v59 = vpop.f32.mrf.mxu2  ;;  %v2766_v37 = vmax.f32 %v2716_v23, 0.0  ;;  %v2767_v3 = vmax.f32 %v2717_v57, 0.0  ;;  %v2630_v23 = vmax.f32 %v5202_v52, %v2492_v58  ;;  %v4423_v52 = vld [vmem:[%s6992_s0 + $0x634] sm:$0xf] }
 0x2df   :  { %v2237_v11 = vadd.f32 %v2236_v49, %v1727_v33  ;;  %v2238_v43 = vpop.f32.mrf.mxu1  ;;  %v3638_v33 = vor.u32 %v4316_v34, %v3637_v22 }
 0x2e1   :  { %v2578_v35 = vmax.f32 %v5256_v31, %v2237_v11  ;;  %1766 = vmatmul.bf16.gmra.mxu0 %v3630_v60  ;;  %v4063_v31 = vld [vmem:[%s6992_s0 + $0x628] sm:$0xf0] }
 0x2e2   :  { %2031 = vmatmul.bf16.gmra.mxu3 %v4054_v45  ;;  %v4066_v17 = vor.u32 %v4421_v1, %v4063_v31  ;;  %v3647_v31 = vld [vmem:[%s6992_s0 + $0x2e8] sm:$0xf0] }
 0x2e3   :  { %v2678_v12 = vmax.f32 %v2578_v35, %v2628_v5 }
 0x2e5   :  { %v6307_v24 = vpop.f32.mrf.mxu3  ;;  %v2732_v27 = vadd.f32 %v6287_v48, %v2678_v12 }
 0x2e6   :  { %v1729_v46 = vpop.f32.mrf.mxu0  ;;  %v6310_v55 = vpop.f32.mrf.mxu2 }
 0x2e7   :  { %v2239_v21 = vadd.f32 %v2238_v43, %v1729_v46  ;;  %v2241_v42 = vpop.f32.mrf.mxu1  ;;  %v2782_v49 = vmax.f32 %v2732_v27, 0.0  ;;  %v2494_v27 = vadd.f32 %v6204_v50, %v6226_v15  ;;  %v3645_v50 = vld [vmem:[%s6992_s0 + $0x2e0] sm:$0xf]  ;;  %v4318_v15 = vld [vmem:[%s6992_s0 + $0x2e4] sm:$0xf0] }
 0x2e8   :  { %v3646_v58 = vor.u32 %v4318_v15, %v3645_v50  ;;  %v4320_v15 = vld [vmem:[%s6992_s0 + $0x2f4] sm:$0xf0] }
 0x2e9   :  { %v2579_v14 = vmax.f32 %v5272_v0, %v2239_v21  ;;  %v4457_v54 = vpack.i.bf16 %v2782_v49, %v2766_v37  ;;  %v4422_v0 = vld [vmem:[%s6992_s0 + $0x624] sm:$0xf0] }
 0x2ea   :  { %4168 = vmatmul.msk.bf16.gmra.mxu1 %vm1233_vm1, %v3642_v25  ;;  %v4062_v43 = vor.u32 %v4422_v0, %v4061_v28  ;;  %v2719_v28 = vadd.f32 %v6287_v48, %v5979_v7  ;;  %v2497_v0 = vadd.f32 %v6228_v61, %v6254_v19  ;;  %v4319_v61 = vld [vmem:[%s6992_s0 + $0x2f4] sm:$0xf] }
 0x2eb   :  { %v2679_v4 = vmax.f32 %v2579_v14, %v2629_v53  ;;  %4458 = vrot.lane.b32.xlu1 %v4457_v54, %s4552_s14  ;;  %4221 = vmatmul.msk.bf16.gmra.mxu2 %vm1233_vm1, %v4066_v17  ;;  %v2768_v17 = vmax.f32 %v2718_v47, 0.0  ;;  %v2631_v54 = vmax.f32 %v5220_v18, %v2494_v27  ;;  %v4069_v18 = vld [vmem:[%s6992_s0 + $0x630] sm:$0xf]  ;;  %v2499_v47 = vadd.f32 %v6256_v20, %v6280_v30 }
 0x2ec   :  { %v3653_v30 = vld [vmem:[%s6992_s0 + $0x2f0] sm:$0xf] }
 0x2ed   :  { %v6333_v60 = vpop.f32.mrf.mxu3  ;;  %v2733_v45 = vadd.f32 %v6287_v48, %v2679_v4 }
 0x2ee   :  { %v1732_v11 = vpop.f32.mrf.mxu0  ;;  %v6336_v5 = vpop.f32.mrf.mxu2 }
 0x2ef   :  { %v2242_v35 = vadd.f32 %v2241_v42, %v1732_v11  ;;  %v2243_v12 = vpop.f32.mrf.mxu1  ;;  %v2783_v2 = vmax.f32 %v2733_v45, 0.0  ;;  %v3650_v42 = vor.u32 %v4317_v9, %v3647_v31  ;;  %v2720_v9 = vadd.f32 %v6287_v48, %v5996_v63  ;;  %v3049_v31 = vld [vmem:[%s6993_s3 + $0xb0] sm:$0xff] }
 0x2f0   :  { %3119 = vmatpush.msrb.mxu3 %v3049_v31 }
 0x2f1   :  { %v2580_v41 = vmax.f32 %v5296_v56, %v2242_v35  ;;  %1771 = vmatmul.bf16.gmra.mxu0 %v3638_v33  ;;  %v4462_v1 = vpack.i.bf16 %v2783_v2, %v2767_v3  ;;  %v4071_v56 = vld [vmem:[%s6992_s0 + $0x638] sm:$0xf0]  ;;  %v2769_v3 = vmax.f32 %v2719_v28, 0.0 }
 0x2f2   :  { %2036 = vmatmul.bf16.gmra.mxu3 %v4062_v43  ;;  %v4074_v14 = vor.u32 %v4423_v52, %v4071_v56 }
 0x2f3   :  { %v2680_v62 = vmax.f32 %v2580_v41, %v2630_v23  ;;  %4463 = vrot.lane.b32.xlu0 %v4462_v1, %s4552_s14  ;;  %v2632_v23 = vmax.f32 %v5236_v44, %v2497_v0  ;;  %v7086_v41 = vld [vmem:[#allocation13_spill] sm:$0xff]  ;;  %v3033_v44 = vld [vmem:[%s6993_s3 + $0x30] sm:$0xff]  ;;  %v3654_v0 = vor.u32 %v4320_v15, %v3653_v30 }
 0x2f4   :  { %3096 = vmatpush.msrb.mxu2 %v3033_v44 }
 0x2f5   :  { %v6357_v46 = vpop.f32.mrf.mxu3  ;;  %v2734_v25 = vadd.f32 %v6287_v48, %v2680_v62  ;;  %v3655_v62 = vld [vmem:[%s6992_s0 + $0x2f8] sm:$0xf0] }
 0x2f6   :  { %v1734_v21 = vpop.f32.mrf.mxu0  ;;  %v6360_v37 = vpop.f32.mrf.mxu2  ;;  %v3658_v63 = vor.u32 %v4319_v61, %v3655_v62  ;;  %v4321_v61 = vld [vmem:[%s6992_s0 + $0x304] sm:$0xf]  ;;  %v2722_v62 = vadd.f32 %v6287_v48, %v6042_v38  ;;  %v3661_v38 = vld [vmem:[%s6992_s0 + $0x300] sm:$0xf] }
 0x2f7   :  { %v2244_v16 = vadd.f32 %v2243_v12, %v1734_v21  ;;  %v2246_v49 = vpop.f32.mrf.mxu1  ;;  %v2784_v53 = vmax.f32 %v2734_v25, 0.0 }
 0x2f9   :  { %v2581_v22 = vmax.f32 %v5312_v26, %v2244_v16  ;;  %v4467_v34 = vpack.i.bf16 %v2784_v53, %v2768_v17  ;;  %v4424_v26 = vld [vmem:[%s6992_s0 + $0x634] sm:$0xf0]  ;;  %v7087_v53 = vld [vmem:[#allocation14_spill] sm:$0xff] }
 0x2fa   :  { %4169 = vmatmul.msk.bf16.gmra.mxu1 %vm1233_vm1, %v3650_v42  ;;  %v4070_v11 = vor.u32 %v4424_v26, %v4069_v18  ;;  %v2721_v18 = vadd.f32 %v6287_v48, %v6025_v13  ;;  %v2502_v26 = vadd.f32 %v6282_v59, %v6307_v24  ;;  %v7091_v13 = vld [vmem:[#allocation9_spill] sm:$0xff] }
 0x2fb   :  { %v2681_v4 = vmax.f32 %v2581_v22, %v2631_v54  ;;  %4468 = vrot.lane.b32.xlu1 %v4467_v34, %s4553_s30  ;;  %4222 = vmatmul.msk.bf16.gmra.mxu2 %vm1233_vm1, %v4074_v14  ;;  %v7088_v54 = vld [vmem:[#allocation8_spill] sm:$0xff]  ;;  %v7089_v34 = vld [vmem:[#allocation15_spill] sm:$0xff] }
 0x2fc   :  { %v2633_v22 = vmax.f32 %v7088_v54, %v2499_v47 }
 0x2fd   :  { %v6383_v57 = vpop.f32.mrf.mxu3  ;;  %v2735_v33 = vadd.f32 %v6287_v48, %v2681_v4 }
 0x2fe   :  { %v1737_v45 = vpop.f32.mrf.mxu0  ;;  %v2511_v43 = vpop.f32.mrf.mxu2 }
 0x2ff   :  { %v2247_v35 = vadd.f32 %v2246_v49, %v1737_v45  ;;  %v2248_v12 = vpop.f32.mrf.mxu1  ;;  %v2785_v2 = vmax.f32 %v2735_v33, 0.0  ;;  %v2770_v49 = vmax.f32 %v2720_v9, 0.0  ;;  %v2504_v9 = vadd.f32 %v6310_v55, %v6333_v60  ;;  %v4322_v55 = vld [vmem:[%s6992_s0 + $0x304] sm:$0xf0] }
 0x300   :  { %v3662_v30 = vor.u32 %v4322_v55, %v3661_v38 }
 0x301   :  { %v2582_v1 = vmax.f32 %v7086_v41, %v2247_v35  ;;  %1776 = vmatmul.bf16.gmra.mxu0 %v3646_v58  ;;  %v4472_v7 = vpack.i.bf16 %v2785_v2, %v2769_v3  ;;  %v2771_v35 = vmax.f32 %v2721_v18, 0.0  ;;  %v7090_v2 = vld [vmem:[#allocation16_spill] sm:$0xff]  ;;  %v2634_v41 = vmax.f32 %v7091_v13, %v2502_v26 }
 0x302   :  { %2041 = vmatmul.bf16.gmra.mxu3 %v4070_v11  ;;  %v2724_v13 = vadd.f32 %v6287_v48, %v6088_v6  ;;  %v7099_v6 = vld [vmem:[#allocation23_spill] sm:$0xff] }
 0x303   :  { %v2682_v19 = vmax.f32 %v2582_v1, %v2632_v23  ;;  %4473 = vrot.lane.b32.xlu1 %v4472_v7, %s4553_s30  ;;  %v7092_v1 = vld [vmem:[#allocation17_spill] sm:$0xff] }
 0x305   :  { %v2002_v52 = vpop.f32.mrf.mxu3  ;;  %v2736_v56 = vadd.f32 %v6287_v48, %v2682_v19  ;;  %v3663_v19 = vld [vmem:[%s6992_s0 + $0x308] sm:$0xf0] }
 0x306   :  { %v6406_v27 = vadd.f32 %v2511_v43, %v2002_v52  ;;  %v1739_v25 = vpop.f32.mrf.mxu0  ;;  %v2513_v21 = vpop.f32.mrf.mxu2  ;;  %v3666_v52 = vor.u32 %v4321_v61, %v3663_v19 }
 0x307   :  { %v2249_v42 = vadd.f32 %v2248_v12, %v1739_v25  ;;  %v2251_v16 = vpop.f32.mrf.mxu1  ;;  %v2786_v17 = vmax.f32 %v2736_v56, 0.0 }
 0x308   :  { %v2638_v14 = vmax.f32 %v7087_v53, %v6406_v27 }
 0x309   :  { %v2583_v50 = vmax.f32 %v7089_v34, %v2249_v42  ;;  %v4477_v20 = vpack.i.bf16 %v2786_v17, %v2770_v49  ;;  %v7093_v42 = vld [vmem:[#allocation10_spill] sm:$0xff]  ;;  %v7094_v49 = vld [vmem:[#allocation19_spill] sm:$0xff]  ;;  %v2723_v34 = vadd.f32 %v6287_v48, %v6071_v8 }
 0x30a   :  { %4170 = vmatmul.msk.bf16.gmra.mxu1 %vm1233_vm1, %v3658_v63  ;;  %v2772_v63 = vmax.f32 %v2722_v62, 0.0 }
 0x30b   :  { %v2683_v4 = vmax.f32 %v2583_v50, %v2633_v22  ;;  %4478 = vrot.lane.b32.xlu2 %v4477_v20, %s4554_s27  ;;  %v2507_v50 = vadd.f32 %v6336_v5, %v6357_v46  ;;  %v4323_v5 = vld [vmem:[%s6992_s0 + $0x314] sm:$0xf]  ;;  %v3671_v46 = vld [vmem:[%s6992_s0 + $0x318] sm:$0xf0] }
 0x30c   :  { %v3674_v61 = vor.u32 %v4323_v5, %v3671_v46 }
 0x30d   :  { %v2004_v28 = vpop.f32.mrf.mxu3  ;;  %v2737_v58 = vadd.f32 %v6287_v48, %v2683_v4 }
 0x30e   :  { %v6425_v33 = vadd.f32 %v2513_v21, %v2004_v28  ;;  %v1742_v45 = vpop.f32.mrf.mxu0  ;;  %v6427_v3 = vpop.f32.mrf.mxu2  ;;  %v2773_v28 = vmax.f32 %v2723_v34, 0.0 }
 0x30f   :  { %v2252_v11 = vadd.f32 %v2251_v16, %v1742_v45  ;;  %v2253_v43 = vpop.f32.mrf.mxu1  ;;  %v2787_v12 = vmax.f32 %v2737_v58, 0.0  ;;  %v2635_v16 = vmax.f32 %v7093_v42, %v2504_v9  ;;  %v7095_v58 = vld [vmem:[#allocation11_spill] sm:$0xff]  ;;  %v2774_v9 = vmax.f32 %v2724_v13, 0.0 }
 0x310   :  { %v2639_v23 = vmax.f32 %v7090_v2, %v6425_v33  ;;  %v2636_v45 = vmax.f32 %v7095_v58, %v2507_v50  ;;  %v7100_v50 = vld [vmem:[#allocation25_spill] sm:$0xff]  ;;  %v4327_v33 = vld [vmem:[%s6992_s0 + $0x334] sm:$0xf] }
 0x311   :  { %v2584_v59 = vmax.f32 %v7092_v1, %v2252_v11  ;;  %1781 = vmatmul.bf16.gmra.mxu0 %v3654_v0  ;;  %v4482_v24 = vpack.i.bf16 %v2787_v12, %v2771_v35  ;;  %v7096_v11 = vld [vmem:[#allocation21_spill] sm:$0xff] }
 0x312   :  { %v3687_v2 = vld [vmem:[%s6992_s0 + $0x338] sm:$0xf0] }
 0x313   :  { %v2684_v7 = vmax.f32 %v2584_v59, %v2634_v41  ;;  %4483 = vrot.lane.b32.xlu2 %v4482_v24, %s4554_s27  ;;  %v2509_v41 = vadd.f32 %v6360_v37, %v6383_v57  ;;  %v3669_v37 = vld [vmem:[%s6992_s0 + $0x310] sm:$0xf]  ;;  %v4324_v57 = vld [vmem:[%s6992_s0 + $0x314] sm:$0xf0] }
 0x315   :  { %v6444_v44 = vpop.f32.mrf.mxu3  ;;  %v2738_v31 = vadd.f32 %v6287_v48, %v2684_v7 }
 0x316   :  { %v1744_v47 = vpop.f32.mrf.mxu0  ;;  %v6449_v22 = vpop.f32.mrf.mxu2  ;;  %v2517_v46 = vadd.f32 %v6427_v3, %v6444_v44 }
 0x317   :  { %v2254_v56 = vadd.f32 %v2253_v43, %v1744_v47  ;;  %v2256_v25 = vpop.f32.mrf.mxu1  ;;  %v2788_v21 = vmax.f32 %v2738_v31, 0.0  ;;  %v7097_v47 = vld [vmem:[#allocation22_spill] sm:$0xff] }
 0x319   :  { %v2585_v17 = vmax.f32 %v7094_v49, %v2254_v56  ;;  %v4487_v54 = vpack.i.bf16 %v2788_v21, %v2772_v63  ;;  %v7098_v56 = vld [vmem:[#allocation12_spill] sm:$0xff]  ;;  %v3670_v49 = vor.u32 %v4324_v57, %v3669_v37  ;;  %v7105_v37 = vld [vmem:[#allocation31_spill] sm:$0xff] }
 0x31a   :  { %4171 = vmatmul.msk.bf16.gmra.mxu1 %vm1233_vm1, %v3666_v52 }
 0x31b   :  { %v2685_v60 = vmax.f32 %v2585_v17, %v2635_v16  ;;  %4488 = vrot.lane.b32.xlu2 %v4487_v54, %s4555_s16  ;;  %v2725_v16 = vadd.f32 %v6287_v48, %v6123_v39 }
 0x31d   :  { %v6463_v20 = vpop.f32.mrf.mxu3  ;;  %v2739_v15 = vadd.f32 %v6287_v48, %v2685_v60  ;;  %v2775_v60 = vmax.f32 %v2725_v16, 0.0  ;;  %v4328_v16 = vld [vmem:[%s6992_s0 + $0x334] sm:$0xf0] }
 0x31e   :  { %v1747_v4 = vpop.f32.mrf.mxu0  ;;  %v2521_v12 = vpop.f32.mrf.mxu2 }
 0x31f   :  { %v2257_v18 = vadd.f32 %v2256_v25, %v1747_v4  ;;  %v2258_v26 = vpop.f32.mrf.mxu1  ;;  %v2789_v0 = vmax.f32 %v2739_v15, 0.0  ;;  %v2637_v25 = vmax.f32 %v7098_v56, %v2509_v41  ;;  %v4325_v4 = vld [vmem:[%s6992_s0 + $0x324] sm:$0xf]  ;;  %v3690_v56 = vor.u32 %v4327_v33, %v3687_v2 }
 0x321   :  { %v2586_v43 = vmax.f32 %v7096_v11, %v2257_v18  ;;  %1786 = vmatmul.bf16.gmra.mxu0 %v3662_v30  ;;  %v6468_v35 = vpack.i.bf16 %v2789_v0, %v2773_v28  ;;  %v3679_v18 = vld [vmem:[%s6992_s0 + $0x328] sm:$0xf0] }
 0x322   :  { %v3048_v28 = vld [vmem:[%s6993_s3 + $0xa8] sm:$0xff]  ;;  %v3682_v58 = vor.u32 %v4325_v4, %v3679_v18  ;;  %v7106_v4 = vld [vmem:[#allocation33_spill] sm:$0xff] }
 0x323   :  { %v2686_v8 = vmax.f32 %v2586_v43, %v2636_v45  ;;  %3120 = vmatpush.msrb.mxu3 %v3048_v28 }
 0x325   :  { %v2012_v1 = vpop.f32.mrf.mxu3  ;;  %v2740_v59 = vadd.f32 %v6287_v48, %v2686_v8  ;;  %v3677_v8 = vld [vmem:[%s6992_s0 + $0x320] sm:$0xf] }
 0x326   :  { %v6481_v24 = vadd.f32 %v2521_v12, %v2012_v1  ;;  %v1749_v7 = vpop.f32.mrf.mxu0  ;;  %v2523_v53 = vpop.f32.mrf.mxu2  ;;  %v4326_v12 = vld [vmem:[%s6992_s0 + $0x324] sm:$0xf0] }
 0x327   :  { %v2259_v19 = vadd.f32 %v2258_v26, %v1749_v7  ;;  %v2261_v62 = vpop.f32.mrf.mxu1  ;;  %v2790_v31 = vmax.f32 %v2740_v59, 0.0  ;;  %v3032_v26 = vld [vmem:[%s6993_s3 + $0x28] sm:$0xff]  ;;  %v3678_v13 = vor.u32 %v4326_v12, %v3677_v8  ;;  %v7102_v7 = vld [vmem:[#allocation18_spill] sm:$0xff] }
 0x328   :  { %v2642_v52 = vmax.f32 %v7097_v47, %v6481_v24  ;;  %3097 = vmatpush.msrb.mxu2 %v3032_v26  ;;  %v7107_v24 = vld [vmem:[#allocation24_spill] sm:$0xff] }
 0x329   :  { %v2587_v63 = vmax.f32 %v7099_v6, %v2259_v19  ;;  %v4492_v21 = vpack.i.bf16 %v2790_v31, %v2774_v9  ;;  %v7103_v19 = vld [vmem:[#allocation29_spill] sm:$0xff] }
 0x32a   :  { %4172 = vmatmul.msk.bf16.gmra.mxu1 %vm1233_vm1, %v3674_v61  ;;  %v2640_v61 = vmax.f32 %v7102_v7, %v2517_v46 }
 0x32b   :  { %v2687_v42 = vmax.f32 %v2587_v63, %v2637_v25  ;;  %4493 = vrot.lane.b32.xlu0 %v4492_v21, %s4556_s25  ;;  %v7104_v63 = vld [vmem:[#allocation20_spill] sm:$0xff] }
 0x32d   :  { %v2741_v17 = vadd.f32 %v6287_v48, %v2687_v42  ;;  %v2014_v43 = vpop.f32.mrf.mxu3  ;;  %v3685_v42 = vld [vmem:[%s6992_s0 + $0x330] sm:$0xf] }
 0x32e   :  { %v1752_v54 = vpop.f32.mrf.mxu0  ;;  %v2526_v9 = vpop.f32.mrf.mxu2 }
 0x32f   :  { %v2262_v38 = vadd.f32 %v2261_v62, %v1752_v54  ;;  %v2263_v55 = vpop.f32.mrf.mxu1  ;;  %v2791_v34 = vmax.f32 %v2741_v17, 0.0  ;;  %v3686_v17 = vor.u32 %v4328_v16, %v3685_v42 }
 0x331   :  { %v2588_v30 = vmax.f32 %v7100_v50, %v2262_v38  ;;  %1791 = vmatmul.bf16.gmra.mxu0 %v3670_v49  ;;  %v6499_v15 = vpack.i.bf16 %v2791_v34, %v2775_v60 }
 0x333   :  { %v6507_v39 = vmax.f32 %v2588_v30, %v2638_v14  ;;  %v7101_v14 = vld [vmem:[#allocation27_spill] sm:$0xff] }
 0x335   :  { %v2017_v3 = vpop.f32.mrf.mxu3 }
 0x336   :  { %v1754_v0 = vpop.f32.mrf.mxu0 }
 0x337   :  { %v2264_v45 = vadd.f32 %v2263_v55, %v1754_v0  ;;  %v2266_v27 = vpop.f32.mrf.mxu1  ;;  %v4329_v0 = vld [vmem:[%s6992_s0 + $0x344] sm:$0xf] }
 0x339   :  { %v2589_v11 = vmax.f32 %v7101_v14, %v2264_v45  ;;  %v2524_v45 = vadd.f32 %v2523_v53, %v2014_v43  ;;  %v4330_v53 = vld [vmem:[%s6992_s0 + $0x344] sm:$0xf0] }
 0x33a   :  { %4173 = vmatmul.msk.bf16.gmra.mxu1 %vm1233_vm1, %v3682_v58  ;;  %v3695_v58 = vld [vmem:[%s6992_s0 + $0x348] sm:$0xf0] }
 0x33b   :  { %v6529_v5 = vmax.f32 %v2589_v11, %v2639_v23  ;;  %v2519_v23 = vadd.f32 %v6449_v22, %v6463_v20  ;;  %v2528_v20 = vpop.f32.mrf.mxu2  ;;  %v3698_v14 = vor.u32 %v4329_v0, %v3695_v58  ;;  %v2643_v47 = vmax.f32 %v7107_v24, %v2524_v45 }
 0x33d   :  { %v2641_v21 = vmax.f32 %v7104_v63, %v2519_v23  ;;  %v2019_v38 = vpop.f32.mrf.mxu3  ;;  %v7109_v23 = vld [vmem:[#allocation26_spill] sm:$0xff] }
 0x33e   :  { %v1757_v41 = vpop.f32.mrf.mxu0 }
 0x33f   :  { %v2267_v1 = vadd.f32 %v2266_v27, %v1757_v41  ;;  %v2268_v59 = vpop.f32.mrf.mxu1  ;;  %v3693_v41 = vld [vmem:[%s6992_s0 + $0x340] sm:$0xf] }
 0x340   :  { %v3694_v7 = vor.u32 %v4330_v53, %v3693_v41 }
 0x341   :  { %v2590_v62 = vmax.f32 %v7103_v19, %v2267_v1  ;;  %1796 = vmatmul.bf16.gmra.mxu0 %v3678_v13 }
 0x343   :  { %v2690_v31 = vmax.f32 %v2590_v62, %v2640_v61  ;;  %v2531_v11 = vpop.f32.mrf.mxu2 }
 0x345   :  { %v2744_v22 = vadd.f32 %v6287_v48, %v2690_v31  ;;  %v2022_v46 = vpop.f32.mrf.mxu3 }
 0x346   :  { %v1759_v44 = vpop.f32.mrf.mxu0 }
 0x347   :  { %v2269_v25 = vadd.f32 %v2268_v59, %v1759_v44  ;;  %v2271_v6 = vpop.f32.mrf.mxu1  ;;  %v2794_v50 = vmax.f32 %v2744_v22, 0.0  ;;  %v2527_v59 = vadd.f32 %v2526_v9, %v2017_v3  ;;  %v3031_v9 = vld [vmem:[%s6993_s3 + $0x20] sm:$0xff]  ;;  %v7111_v22 = vld [vmem:[#allocation28_spill] sm:$0xff] }
 0x348   :  { %v3047_v3 = vld [vmem:[%s6993_s3 + $0xa0] sm:$0xff]  ;;  %3098 = vmatpush.msrb.mxu2 %v3031_v9 }
 0x349   :  { %v2591_v57 = vmax.f32 %v7105_v37, %v2269_v25  ;;  %v2644_v44 = vmax.f32 %v7109_v23, %v2527_v59  ;;  %v7110_v25 = vld [vmem:[#allocation37_spill] sm:$0xff]  ;;  %3121 = vmatpush.msrb.mxu3 %v3047_v3 }
 0x34a   :  { %4174 = vmatmul.msk.bf16.gmra.mxu1 %vm1233_vm1, %v3690_v56 }
 0x34b   :  { %v2691_v49 = vmax.f32 %v2591_v57, %v2641_v21  ;;  %v2533_v56 = vpop.f32.mrf.mxu2  ;;  %v2529_v57 = vadd.f32 %v2528_v20, %v2019_v38  ;;  %v7113_v38 = vld [vmem:[#allocation30_spill] sm:$0xff] }
 0x34d   :  { %v2745_v54 = vadd.f32 %v6287_v48, %v2691_v49  ;;  %v2024_v21 = vpop.f32.mrf.mxu3 }
 0x34e   :  { %v1762_v55 = vpop.f32.mrf.mxu0  ;;  %v2534_v24 = vadd.f32 %v2533_v56, %v2024_v21  ;;  %v7118_v21 = vld [vmem:[#allocation45_spill] sm:$0xff] }
 0x34f   :  { %v2272_v60 = vadd.f32 %v2271_v6, %v1762_v55  ;;  %v2273_v34 = vpop.f32.mrf.mxu1  ;;  %v2795_v30 = vmax.f32 %v2745_v54, 0.0  ;;  %v7112_v54 = vld [vmem:[#allocation39_spill] sm:$0xff] }
 0x351   :  { %v2592_v18 = vmax.f32 %v7106_v4, %v2272_v60  ;;  %1801 = vmatmul.bf16.gmra.mxu0 %v3686_v17  ;;  %v4522_v26 = vpack.i.bf16 %v2795_v30, %v2794_v50  ;;  %v2645_v17 = vmax.f32 %v7111_v22, %v2529_v57  ;;  %v2532_v4 = vadd.f32 %v2531_v11, %v2022_v46  ;;  %v7115_v46 = vld [vmem:[#allocation32_spill] sm:$0xff] }
 0x352   :  { %v2647_v53 = vmax.f32 %v7115_v46, %v2534_v24  ;;  %v7119_v22 = vld [vmem:[#allocation36_spill] sm:$0xff]  ;;  %v7124_v46 = vld [vmem:[#allocation51_spill] sm:$0xff] }
 0x353   :  { %v2692_v28 = vmax.f32 %v2592_v18, %v2642_v52  ;;  %4523 = vrot.lane.b32.xlu2 %v4522_v26, %s4557_s1  ;;  %v7108_v52 = vld [vmem:[#allocation35_spill] sm:$0xff]  ;;  %v2536_v60 = vpop.f32.mrf.mxu2  ;;  %v2646_v45 = vmax.f32 %v7113_v38, %v2532_v4 }
 0x355   :  { %v2746_v1 = vadd.f32 %v6287_v48, %v2692_v28  ;;  %v2027_v30 = vpop.f32.mrf.mxu3 }
 0x356   :  { %v1764_v27 = vpop.f32.mrf.mxu0 }
 0x357   :  { %v2274_v8 = vadd.f32 %v2273_v34, %v1764_v27  ;;  %v2276_v12 = vpop.f32.mrf.mxu1  ;;  %v2796_v33 = vmax.f32 %v2746_v1, 0.0  ;;  %v7114_v27 = vld [vmem:[#allocation41_spill] sm:$0xff] }
 0x359   :  { %v2593_v13 = vmax.f32 %v7108_v52, %v2274_v8 }
 0x35a   :  { %4175 = vmatmul.msk.bf16.gmra.mxu1 %vm1233_vm1, %v3698_v14 }
 0x35b   :  { %v2693_v43 = vmax.f32 %v2593_v13, %v2643_v47  ;;  %v2538_v47 = vpop.f32.mrf.mxu2 }
 0x35d   :  { %v2747_v61 = vadd.f32 %v6287_v48, %v2693_v43  ;;  %v2029_v52 = vpop.f32.mrf.mxu3  ;;  %v7116_v43 = vld [vmem:[#allocation43_spill] sm:$0xff] }
 0x35e   :  { %v1767_v19 = vpop.f32.mrf.mxu0  ;;  %v2539_v57 = vadd.f32 %v2538_v47, %v2029_v52 }
 0x35f   :  { %v2277_v62 = vadd.f32 %v2276_v12, %v1767_v19  ;;  %v2278_v31 = vpop.f32.mrf.mxu1  ;;  %v2797_v2 = vmax.f32 %v2747_v61, 0.0  ;;  %v2537_v61 = vadd.f32 %v2536_v60, %v2027_v30  ;;  %v3030_v30 = vld [vmem:[%s6993_s3 + $0x18] sm:$0xff] }
 0x360   :  { %3099 = vmatpush.msrb.mxu2 %v3030_v30  ;;  %v7129_v30 = vld [vmem:[#allocation46_spill] sm:$0xff] }
 0x361   :  { %v2594_v6 = vmax.f32 %v7110_v25, %v2277_v62  ;;  %1806 = vmatmul.bf16.gmra.mxu0 %v3694_v7  ;;  %v6578_v63 = vpack.i.bf16 %v2797_v2, %v2796_v33  ;;  %v7117_v25 = vld [vmem:[#allocation34_spill] sm:$0xff] }
 0x363   :  { %v2694_v37 = vmax.f32 %v2594_v6, %v2644_v44  ;;  %v2648_v6 = vmax.f32 %v7117_v25, %v2537_v61 }
 0x365   :  { %v2748_v50 = vadd.f32 %v6287_v48, %v2694_v37  ;;  %v2032_v56 = vpop.f32.mrf.mxu3 }
 0x366   :  { %v1769_v42 = vpop.f32.mrf.mxu0 }
 0x367   :  { %v2279_v16 = vadd.f32 %v2278_v31, %v1769_v42  ;;  %v2281_v49 = vpop.f32.mrf.mxu1  ;;  %v2798_v58 = vmax.f32 %v2748_v50, 0.0  ;;  %v2541_v31 = vpop.f32.mrf.mxu2 }
 0x368   :  { %v2542_v4 = vadd.f32 %v2541_v31, %v2032_v56  ;;  %v7125_v31 = vld [vmem:[#allocation42_spill] sm:$0xff] }
 0x369   :  { %v2595_v55 = vmax.f32 %v7112_v54, %v2279_v16 }
 0x36b   :  { %v2695_v34 = vmax.f32 %v2595_v55, %v2645_v17  ;;  %v2649_v17 = vmax.f32 %v7119_v22, %v2539_v57  ;;  %v7120_v55 = vld [vmem:[#allocation47_spill] sm:$0xff] }
 0x36d   :  { %v2749_v18 = vadd.f32 %v6287_v48, %v2695_v34  ;;  %v2034_v34 = vpop.f32.mrf.mxu3 }
 0x36e   :  { %v1772_v26 = vpop.f32.mrf.mxu0 }
 0x36f   :  { %v2282_v28 = vadd.f32 %v2281_v49, %v1772_v26  ;;  %v2283_v0 = vpop.f32.mrf.mxu1  ;;  %v2799_v20 = vmax.f32 %v2749_v18, 0.0  ;;  %v2543_v54 = vpop.f32.mrf.mxu2 }
 0x371   :  { %v2596_v14 = vmax.f32 %v7114_v27, %v2282_v28  ;;  %v6592_v8 = vpack.i.bf16 %v2799_v20, %v2798_v58  ;;  %v7122_v20 = vld [vmem:[#allocation49_spill] sm:$0xff] }
 0x373   :  { %v2696_v12 = vmax.f32 %v2596_v14, %v2646_v45 }
 0x375   :  { %v2750_v7 = vadd.f32 %v6287_v48, %v2696_v12  ;;  %v2037_v14 = vpop.f32.mrf.mxu3  ;;  %v2544_v12 = vadd.f32 %v2543_v54, %v2034_v34 }
 0x376   :  { %v1774_v13 = vpop.f32.mrf.mxu0 }
 0x377   :  { %v2284_v41 = vadd.f32 %v2283_v0, %v1774_v13  ;;  %v2286_v11 = vpop.f32.mrf.mxu1  ;;  %v2800_v23 = vmax.f32 %v2750_v7, 0.0  ;;  %v7121_v0 = vld [vmem:[#allocation38_spill] sm:$0xff]  ;;  %v2546_v45 = vpop.f32.mrf.mxu2  ;;  %v3046_v13 = vld [vmem:[%s6993_s3 + $0x98] sm:$0xff] }
 0x378   :  { %v2650_v58 = vmax.f32 %v7121_v0, %v2542_v4  ;;  %3122 = vmatpush.msrb.mxu3 %v3046_v13 }
 0x379   :  { %v2597_v1 = vmax.f32 %v7116_v43, %v2284_v41  ;;  %v7123_v41 = vld [vmem:[#allocation40_spill] sm:$0xff] }
 0x37b   :  { %v2697_v59 = vmax.f32 %v2597_v1, %v2647_v53  ;;  %v2547_v1 = vadd.f32 %v2546_v45, %v2037_v14 }
 0x37d   :  { %v2751_v19 = vadd.f32 %v6287_v48, %v2697_v59  ;;  %v2039_v7 = vpop.f32.mrf.mxu3 }
 0x37e   :  { %v1777_v62 = vpop.f32.mrf.mxu0 }
 0x37f   :  { %v2287_v33 = vadd.f32 %v2286_v11, %v1777_v62  ;;  %v2288_v2 = vpop.f32.mrf.mxu1  ;;  %v2801_v44 = vmax.f32 %v2751_v19, 0.0  ;;  %v2651_v11 = vmax.f32 %v7123_v41, %v2544_v12  ;;  %v2548_v59 = vpop.f32.mrf.mxu2  ;;  %v7131_v12 = vld [vmem:[#allocation48_spill] sm:$0xff] }
 0x380   :  { %v2549_v56 = vadd.f32 %v2548_v59, %v2039_v7  ;;  %v3029_v41 = vld [vmem:[%s6993_s3 + $0x10] sm:$0xff]  ;;  %v7134_v7 = vld [vmem:[#allocation2_spill] sm:$0xff] }
 0x381   :  { %v2598_v37 = vmax.f32 %v7118_v21, %v2287_v33  ;;  %v6600_v9 = vpack.i.bf16 %v2801_v44, %v2800_v23  ;;  %v2652_v33 = vmax.f32 %v7125_v31, %v2547_v1  ;;  %3100 = vmatpush.msrb.mxu2 %v3029_v41  ;;  %v7133_v1 = vld [vmem:[#allocation50_spill] sm:$0xff]  ;;  %v3045_v31 = vld [vmem:[%s6993_s3 + $0x90] sm:$0xff]  ;;  %v2729_v41 = vadd.f32 %v6287_v48, %v6217_v51  ;;  %v3028_v51 = vld [vmem:[%s6993_s3 + $0x8] sm:$0xff] }
 0x382   :  { %3123 = vmatpush.msrb.mxu3 %v3045_v31  ;;  %v7150_v31 = vld [vmem:[#allocation6_spill] sm:$0xff] }
 0x383   :  { %v6602_v3 = vmax.f32 %v2598_v37, %v2648_v6  ;;  %3101 = vmatpush.msrb.mxu2 %v3028_v51  ;;  %v3075_v51 = vld [vmem:[%s6993_s3 + $0x180] sm:$0xff] }
 0x385   :  { %v2042_v37 = vpop.f32.mrf.mxu3 }
 0x386   :  { %v1779_v42 = vpop.f32.mrf.mxu0 }
 0x387   :  { %v2289_v16 = vadd.f32 %v2288_v2, %v1779_v42  ;;  %v2291_v49 = vpop.f32.mrf.mxu1  ;;  %v7126_v2 = vld [vmem:[#allocation53_spill] sm:$0xff]  ;;  %v2551_v57 = vpop.f32.mrf.mxu2  ;;  %v7127_v42 = vld [vmem:[#allocation44_spill] sm:$0xff] }
 0x388   :  { %v2552_v54 = vadd.f32 %v2551_v57, %v2042_v37 }
 0x389   :  { %v2599_v60 = vmax.f32 %v7120_v55, %v2289_v16  ;;  %v2653_v16 = vmax.f32 %v7127_v42, %v2549_v56  ;;  %v7137_v56 = vld [vmem:[#allocation52_spill] sm:$0xff] }
 0x38a   :  { %v2654_v4 = vmax.f32 %v7129_v30, %v2552_v54 }
 0x38b   :  { %v6606_v50 = vmax.f32 %v2599_v60, %v2649_v17 }
 0x38e   :  { %v1782_v18 = vpop.f32.mrf.mxu0 }
 0x38f   :  { %v2292_v26 = vadd.f32 %v2291_v49, %v1782_v18  ;;  %v2293_v28 = vpop.f32.mrf.mxu1  ;;  %v7128_v49 = vld [vmem:[#allocation55_spill] sm:$0xff]  ;;  %v7130_v18 = vld [vmem:[#allocation57_spill] sm:$0xff]  ;;  %v2553_v0 = vpop.f32.mrf.mxu2 }
 0x391   :  { %v2600_v38 = vmax.f32 %v7122_v20, %v2292_v26 }
 0x393   :  { %v6613_v27 = vmax.f32 %v2600_v38, %v2650_v58 }
 0x396   :  { %v1784_v24 = vpop.f32.mrf.mxu0 }
 0x397   :  { %v2294_v47 = vadd.f32 %v2293_v28, %v1784_v24  ;;  %v2296_v52 = vpop.f32.mrf.mxu1  ;;  %v2044_v28 = vpop.f32.mrf.mxu3 }
 0x398   :  { %v2554_v20 = vadd.f32 %v2553_v0, %v2044_v28 }
 0x399   :  { %v2601_v53 = vmax.f32 %v7124_v46, %v2294_v47  ;;  %v7132_v47 = vld [vmem:[#allocation59_spill] sm:$0xff] }
 0x39a   :  { %v2655_v24 = vmax.f32 %v7131_v12, %v2554_v20  ;;  %v7146_v12 = vld [vmem:[#allocation5_spill] sm:$0xff] }
 0x39b   :  { %v6620_v43 = vmax.f32 %v2601_v53, %v2651_v11 }
 0x39e   :  { %v1787_v61 = vpop.f32.mrf.mxu0 }
 0x39f   :  { %v2297_v19 = vadd.f32 %v2296_v52, %v1787_v61  ;;  %v2298_v62 = vpop.f32.mrf.mxu1  ;;  %v7135_v61 = vld [vmem:[#allocation61_spill] sm:$0xff] }
 0x3a1   :  { %v2602_v23 = vmax.f32 %v7126_v2, %v2297_v19  ;;  %v7136_v19 = vmax.f32 %v7134_v7, %v7135_v61  ;;  %v7149_v7 = vld [vmem:[#allocation58_spill] sm:$0xff] }
 0x3a3   :  { %v6624_v44 = vmax.f32 %v2602_v23, %v2652_v33 }
 0x3a6   :  { %v1789_v25 = vpop.f32.mrf.mxu0 }
 0x3a7   :  { %v2299_v6 = vadd.f32 %v2298_v62, %v1789_v25  ;;  %v2301_v21 = vpop.f32.mrf.mxu1 }
 0x3a9   :  { %v2603_v22 = vmax.f32 %v7128_v49, %v2299_v6  ;;  %v7138_v6 = vld [vmem:[#allocation3_spill] sm:$0xff]  ;;  %v7141_v49 = vld [vmem:[#allocation54_spill] sm:$0xff] }
 0x3ab   :  { %v6628_v17 = vmax.f32 %v2603_v22, %v2653_v16 }
 0x3ae   :  { %v1792_v55 = vpop.f32.mrf.mxu0 }
 0x3af   :  { %v2302_v60 = vadd.f32 %v2301_v21, %v1792_v55  ;;  %v2303_v34 = vpop.f32.mrf.mxu1  ;;  %v7139_v21 = vld [vmem:[#allocation62_spill] sm:$0xff]  ;;  %v7142_v55 = vld [vmem:[#allocation4_spill] sm:$0xff] }
 0x3b0   :  { %v7140_v37 = vmax.f32 %v7138_v6, %v7139_v21 }
 0x3b1   :  { %v2604_v26 = vmax.f32 %v7130_v18, %v2302_v60  ;;  %v7143_v60 = vld [vmem:[#allocation63_spill] sm:$0xff] }
 0x3b3   :  { %v6632_v58 = vmax.f32 %v2604_v26, %v2654_v4  ;;  %v2728_v4 = vadd.f32 %v6287_v48, %v6188_v40 }
 0x3b5   :  { %v2778_v20 = vmax.f32 %v2728_v4, 0.0  ;;  %v3044_v4 = vld [vmem:[%s6993_s3 + $0x88] sm:$0xff] }
 0x3b6   :  { %v1794_v38 = vpop.f32.mrf.mxu0  ;;  %3124 = vmatpush.msrb.mxu3 %v3044_v4 }
 0x3b7   :  { %v2304_v45 = vadd.f32 %v2303_v34, %v1794_v38  ;;  %v2306_v14 = vpop.f32.mrf.mxu1  ;;  %v7144_v34 = vmax.f32 %v7142_v55, %v7143_v60  ;;  %v7145_v38 = vld [vmem:[#allocation56_spill] sm:$0xff]  ;;  %v7154_v55 = vld [vmem:[#allocation7_spill] sm:$0xff]  ;;  %v7155_v60 = vld [vmem:[#allocation66_spill] sm:$0xff] }
 0x3b9   :  { %v2605_v52 = vmax.f32 %v7132_v47, %v2304_v45 }
 0x3bb   :  { %v6636_v13 = vmax.f32 %v2605_v52, %v2655_v24  ;;  %v7147_v24 = vld [vmem:[#allocation64_spill] sm:$0xff] }
 0x3bc   :  { %v7148_v47 = vmax.f32 %v7146_v12, %v7147_v24  ;;  %v3074_v24 = vld [vmem:[%s6993_s3 + $0x178] sm:$0xff] }
 0x3be   :  { %v1797_v11 = vpop.f32.mrf.mxu0 }
 0x3bf   :  { %v2307_v46 = vadd.f32 %v2306_v14, %v1797_v11  ;;  %v2308_v53 = vpop.f32.mrf.mxu1 }
 0x3c1   :  { %v2606_v59 = vmax.f32 %v2307_v46, %v7133_v1 }
 0x3c3   :  { %v6645_v62 = vmax.f32 %v7136_v19, %v2606_v59  ;;  %v2779_v59 = vmax.f32 %v2729_v41, 0.0  ;;  %v3070_v41 = vld [vmem:[%s6993_s3 + $0x158] sm:$0xff] }
 0x3c6   :  { %v1799_v33 = vpop.f32.mrf.mxu0 }
 0x3c7   :  { %v2309_v2 = vadd.f32 %v2308_v53, %v1799_v33  ;;  %v2311_v23 = vpop.f32.mrf.mxu1  ;;  %v7151_v33 = vld [vmem:[#allocation65_spill] sm:$0xff] }
 0x3c9   :  { %v2607_v25 = vmax.f32 %v2309_v2, %v7137_v56  ;;  %v7152_v2 = vmax.f32 %v7150_v31, %v7151_v33  ;;  %v2730_v56 = vadd.f32 %v6287_v48, %v6237_v32  ;;  %v2731_v32 = vadd.f32 %v6287_v48, %v6269_v36 }
 0x3cb   :  { %v6654_v57 = vmax.f32 %v7140_v37, %v2607_v25 }
 0x3ce   :  { %v1802_v42 = vpop.f32.mrf.mxu0 }
 0x3cf   :  { %v2312_v16 = vadd.f32 %v2311_v23, %v1802_v42  ;;  %v2313_v54 = vpop.f32.mrf.mxu1 }
 0x3d1   :  { %v2608_v22 = vmax.f32 %v2312_v16, %v7141_v49  ;;  %v2780_v16 = vmax.f32 %v2730_v56, 0.0  ;;  %v7153_v49 = vld [vmem:[#allocation60_spill] sm:$0xff]  ;;  %v3062_v56 = vld [vmem:[%s6993_s3 + $0x118] sm:$0xff] }
 0x3d3   :  { %v2658_v30 = vmax.f32 %v7144_v34, %v2608_v22  ;;  %v7156_v34 = vmax.f32 %v7154_v55, %v7155_v60  ;;  %v3059_v55 = vld [vmem:[%s6993_s3 + $0x100] sm:$0xff] }
 0x3d5   :  { %v2712_v18 = vadd.f32 %v6287_v48, %v2658_v30 }
 0x3d6   :  { %v1804_v26 = vpop.f32.mrf.mxu0 }
 0x3d7   :  { %v2314_v28 = vadd.f32 %v2313_v54, %v1804_v26  ;;  %v2762_v0 = vmax.f32 %v2712_v18, 0.0  ;;  %v2316_v11 = vpop.f32.mrf.mxu1  ;;  %v3027_v18 = vld [vmem:[%s6993_s3] sm:$0xff] }
 0x3d8   :  { %v3043_v26 = vld [vmem:[%s6993_s3 + $0x80] sm:$0xff]  ;;  %3102 = vmatpush.msrb.mxu2 %v3027_v18 }
 0x3d9   :  { %v2609_v45 = vmax.f32 %v2314_v28, %v7145_v38  ;;  %v4497_v14 = vpack.i.bf16 %v2778_v20, %v2762_v0  ;;  %v2781_v0 = vmax.f32 %v2731_v32, 0.0  ;;  %3125 = vmatpush.msrb.mxu3 %v3043_v26  ;;  %v2754_v20 = vadd.f32 %v6287_v48, %v6613_v27 }
 0x3da   :  { %3133 = vmatpush.msra.mxu2 %v3074_v24 }
 0x3db   :  { %v2659_v52 = vmax.f32 %v7148_v47, %v2609_v45  ;;  %4498 = vrot.lane.b32.xlu0 %v4497_v14, %s4557_s1  ;;  %v2804_v38 = vmax.f32 %v2754_v20, 0.0  ;;  %v2756_v45 = vadd.f32 %v6287_v48, %v6624_v44  ;;  %v3073_v47 = vld [vmem:[%s6993_s3 + $0x170] sm:$0xff] }
 0x3dc   :  { %3134 = vmatpush.msra.mxu2 %v3073_v47 }
 0x3dd   :  { %v2713_v40 = vadd.f32 %v6287_v48, %v2659_v52  ;;  %v2806_v14 = vmax.f32 %v2756_v45, 0.0 }
 0x3de   :  { %v1807_v46 = vpop.f32.mrf.mxu0 }
 0x3df   :  { %v2317_v53 = vadd.f32 %v2316_v11, %v1807_v46  ;;  %v2763_v1 = vmax.f32 %v2713_v40, 0.0  ;;  %v2318_v6 = vpop.f32.mrf.mxu1  ;;  %v3069_v11 = vld [vmem:[%s6993_s3 + $0x150] sm:$0xff]  ;;  %v6751_v46 = vpop.permute.xlu0 %4463 }
 0x3e0   :  { %v4466_v26 = vunpack.i.h.bf16 %v6751_v46 }
 0x3e1   :  { %v2610_v61 = vmax.f32 %v2317_v53, %v7149_v7  ;;  %v4502_v19 = vpack.i.bf16 %v2779_v59, %v2763_v1  ;;  %v3068_v53 = vld [vmem:[%s6993_s3 + $0x148] sm:$0xff]  ;;  %v3067_v1 = vld [vmem:[%s6993_s3 + $0x140] sm:$0xff]  ;;  %v3066_v7 = vld [vmem:[%s6993_s3 + $0x138] sm:$0xff] }
 0x3e2   :  { %v3076_v59 = vld [vmem:[%s6993_s3 + $0x188] sm:$0xff] }
 0x3e3   :  { %v2660_v23 = vmax.f32 %v7152_v2, %v2610_v61  ;;  %4503 = vrot.lane.b32.xlu1 %v4502_v19, %s4557_s1  ;;  %s4558_s1 = smov 32   ;;  %3170 = vmatpush.msra.mxu3 %v3076_v59  ;;  %v3065_v61 = vld [vmem:[%s6993_s3 + $0x130] sm:$0xff]  ;;  %v3064_v2 = vld [vmem:[%s6993_s3 + $0x128] sm:$0xff] }
 0x3e5   :  { %v2714_v25 = vadd.f32 %v6287_v48, %v2660_v23  ;;  %v3063_v23 = vld [vmem:[%s6993_s3 + $0x120] sm:$0xff]  ;;  %3171 = vmatpush.msra.mxu3 %v3075_v51 }
 0x3e6   :  { %v1809_v21 = vpop.f32.mrf.mxu0 }
 0x3e7   :  { %v2319_v37 = vadd.f32 %v2318_v6, %v1809_v21  ;;  %v2764_v42 = vmax.f32 %v2714_v25, 0.0  ;;  %v6770_v31 = vpop.permute.xlu0 %4493  ;;  %v3061_v25 = vld [vmem:[%s6993_s3 + $0x110] sm:$0xff]  ;;  %v6794_v21 = vld [vmem:[%s6994_s2] ss:$0 sm:$0xff] }
 0x3e8   :  { %v2710_v32 = vadd.f32 %v6794_v21, %v6645_v62  ;;  %v4495_v24 = vunpack.i.l.bf16 %v6770_v31 }
 0x3e9   :  { %v2611_v22 = vmax.f32 %v2319_v37, %v7153_v49  ;;  %v4507_v54 = vpack.i.bf16 %v2780_v16, %v2764_v42  ;;  %v2726_v37 = vadd.f32 %v6794_v21, %v6142_v10  ;;  %v2727_v42 = vadd.f32 %v6794_v21, %v6171_v29 }
 0x3eb   :  { %v2661_v30 = vmax.f32 %v7156_v34, %v2611_v22  ;;  %4518 = vrot.lane.b32.xlu1 %v6499_v15, %s4556_s25  ;;  %4508 = vrot.lane.b32.xlu0 %v4507_v54, %s4558_s1  ;;  %v3060_v22 = vld [vmem:[%s6993_s3 + $0x108] sm:$0xff]  ;;  %v2711_v54 = vadd.f32 %v6794_v21, %v6654_v57  ;;  %v2776_v60 = vmax.f32 %v2726_v37, 0.0  ;;  %v2777_v10 = vmax.f32 %v2727_v42, 0.0 }
 0x3ed   :  { %v2715_v28 = vadd.f32 %v6287_v48, %v2661_v30 }
 0x3ef   :  { %v2765_v15 = vmax.f32 %v2715_v28, 0.0  ;;  %v4465_v28 = vunpack.i.l.bf16 %v6751_v46 }
 0x3f1   :  { %v4537_v36 = vpack.i.bf16 %v2781_v0, %v2765_v15 }
 0x3f3   :  { %4538 = vrot.lane.b32.xlu2 %v4537_v36, %s4558_s1  ;;  %4533 = vrot.lane.b32.xlu1 %v6592_v8, %s4552_s14  ;;  %v2755_v8 = vadd.f32 %v6287_v48, %v6620_v43  ;;  %v2761_v36 = vmax.f32 %v2711_v54, 0.0 }
 0x3f4   :  { %4513 = vrot.lane.b32.xlu0 %v6468_v35, %s4555_s16  ;;  %v2752_v35 = vadd.f32 %v6287_v48, %v6602_v3  ;;  %v6725_v3 = vpop.permute.xlu2 %4478 }
 0x3f5   :  { %v2805_v12 = vmax.f32 %v2755_v8, 0.0  ;;  %v4481_v30 = vunpack.i.h.bf16 %v6725_v3  ;;  %v4480_v57 = vunpack.i.l.bf16 %v6725_v3 }
 0x3f6   :  { %v2802_v27 = vmax.f32 %v2752_v35, 0.0  ;;  %v4496_v35 = vunpack.i.h.bf16 %v6770_v31 }
 0x3fb   :  { %4543 = vrot.lane.b32.xlu2 %v6600_v9, %s4553_s30  ;;  %2999 = vrot.lane.b32.xlu1 %v2804_v38, %s4555_s16  ;;  %v2753_v9 = vadd.f32 %v6287_v48, %v6606_v50  ;;  %v3071_v50 = vld [vmem:[%s6993_s3 + $0x160] sm:$0xff] }
 0x3fc   :  { %4528 = vrot.lane.b32.xlu0 %v6578_v63, %s4558_s1  ;;  %v2757_v63 = vadd.f32 %v6287_v48, %v6628_v17  ;;  %v6733_v17 = vpop.permute.xlu1 %4458  ;;  %v3072_v48 = vld [vmem:[%s6993_s3 + $0x168] sm:$0xff]  ;;  %v6741_v52 = vpop.permute.xlu2 %4483 }
 0x3fd   :  { %v2803_v43 = vmax.f32 %v2753_v9, 0.0  ;;  %3135 = vmatpush.msra.mxu2 %v3072_v48  ;;  %v4461_v34 = vunpack.i.h.bf16 %v6733_v17  ;;  %v4460_v29 = vunpack.i.l.bf16 %v6733_v17 }
 0x3fe   :  { %v2807_v44 = vmax.f32 %v2757_v63, 0.0 }
 0x3ff   :  { %3136 = vmatpush.msra.mxu2 %v3071_v50 }
 0x401   :  { %3137 = vmatpush.msra.mxu2 %v3070_v41 }
 0x403   :  { %3007 = vrot.lane.b32.xlu2 %v2806_v14, %s4556_s25  ;;  %3001 = vrot.lane.b32.xlu1 %v2805_v12, %s4555_s16  ;;  %v2760_v14 = vmax.f32 %v2710_v32, 0.0 }
 0x404   :  { %2991 = vrot.lane.b32.xlu0 %v2802_v27, %s4554_s27  ;;  %v6749_v40 = vpop.permute.xlu1 %4468  ;;  %3138 = vmatpush.msra.mxu2 %v3069_v11  ;;  %v6768_v19 = vpop.permute.xlu2 %4488 }
 0x405   :  { %v4471_v15 = vunpack.i.h.bf16 %v6749_v40  ;;  %v4470_v0 = vunpack.i.l.bf16 %v6749_v40  ;;  %v4491_v8 = vunpack.i.h.bf16 %v6768_v19  ;;  %v4490_v62 = vunpack.i.l.bf16 %v6768_v19 }
 0x406   :  { %3139 = vmatpush.msra.mxu2 %v3068_v53 }
 0x408   :  { %3140 = vmatpush.msra.mxu2 %v3067_v1 }
 0x40a   :  { %3141 = vmatpush.msra.mxu2 %v3066_v7 }
 0x40b   :  { %3009 = vrot.lane.b32.xlu2 %v2807_v44, %s4556_s25 }
 0x40c   :  { %2993 = vrot.lane.b32.xlu0 %v2803_v43, %s4554_s27  ;;  %3142 = vmatpush.msra.mxu2 %v3065_v61  ;;  %v6772_v33 = vpop.permute.xlu1 %4473  ;;  %v6789_v6 = vpop.permute.xlu2 %4523 }
 0x40e   :  { %3143 = vmatpush.msra.mxu2 %v3064_v2  ;;  %v4476_v2 = vunpack.i.h.bf16 %v6772_v33 }
 0x410   :  { %3144 = vmatpush.msra.mxu2 %v3063_v23  ;;  %v4475_v23 = vunpack.i.l.bf16 %v6772_v33 }
 0x412   :  { %3145 = vmatpush.msra.mxu2 %v3062_v56 }
 0x414   :  { %3146 = vmatpush.msra.mxu2 %v3061_v25  ;;  %v3196_v25 = vld [vmem:[%s6996_s5 + $0x78] sm:$0xff] }
 0x416   :  { %3147 = vmatpush.msra.mxu2 %v3060_v22 }
 0x418   :  { %3148 = vmatpush.msra.mxu2 %v3059_v55  ;;  %v3195_v55 = vld [vmem:[%s6996_s5 + $0x70] sm:$0xff] }
 0x44d   :  { %v4499_v16 = vpop.permute.xlu0 %4498  ;;  %v4539_v20 = vpop.permute.xlu2 %4538 }
 0x44e   :  { %v4501_v38 = vunpack.i.h.bf16 %v4499_v16  ;;  %v4500_v45 = vunpack.i.l.bf16 %v4499_v16  ;;  %v4541_v9 = vunpack.i.h.bf16 %v4539_v20  ;;  %v4540_v44 = vunpack.i.l.bf16 %v4539_v20 }
 0x450   :  { %v2943_v47 = vsel %vm2922_vm2, %v2776_v60, %v4501_v38  ;;  %v2923_v17 = vsel %vm2922_vm2, %v2760_v14, %v4500_v45  ;;  %v4486_v60 = vunpack.i.h.bf16 %v6741_v52 }
 0x455   :  { %v4504_v49 = vpop.permute.xlu1 %4503 }
 0x456   :  { %v4506_v4 = vunpack.i.h.bf16 %v4504_v49  ;;  %v4505_v18 = vunpack.i.l.bf16 %v4504_v49 }
 0x458   :  { %v2944_v12 = vsel %vm2922_vm2, %v2777_v10, %v4506_v4  ;;  %v2924_v27 = vsel %vm2922_vm2, %v2761_v36, %v4505_v18  ;;  %v4485_v10 = vunpack.i.l.bf16 %v6741_v52  ;;  %v4525_v52 = vunpack.i.l.bf16 %v6789_v6 }
 0x459   :  { %v2946_v48 = vsel %vm2925_vm3, %v2944_v12, %v4541_v9  ;;  %v2927_v50 = vsel %vm2925_vm3, %v2924_v27, %v4540_v44  ;;  %v4526_v12 = vunpack.i.h.bf16 %v6789_v6 }
 0x45a   :  { %v2930_v19 = vsel %vm2928_vm4, %v2927_v50, %v4465_v28  ;;  %v2948_v31 = vsel %vm2928_vm4, %v2946_v48, %v4466_v26  ;;  %v4544_v26 = vpop.permute.xlu2 %4543  ;;  %v2759_v50 = vadd.f32 %v6794_v21, %v6636_v13 }
 0x45b   :  { %v2933_v54 = vsel %vm2931_vm5, %v2930_v19, %v4475_v23  ;;  %v2950_v33 = vsel %vm2931_vm5, %v2948_v31, %v4476_v2  ;;  %v3192_v2 = vld [vmem:[%s6996_s5 + $0x58] sm:$0xff]  ;;  %v3191_v23 = vld [vmem:[%s6996_s5 + $0x50] sm:$0xff] }
 0x45c   :  { %v2952_v32 = vsel %vm2934_vm7, %v2950_v33, %v4486_v60  ;;  %v3181_v33 = vld [vmem:[%s6996_s5] sm:$0xff] }
 0x45d   :  { %v4509_v63 = vpop.permute.xlu0 %4508  ;;  %v4519_v41 = vpop.permute.xlu1 %4518 }
 0x45e   :  { %v4511_v43 = vunpack.i.h.bf16 %v4509_v63  ;;  %v4510_v3 = vunpack.i.l.bf16 %v4509_v63  ;;  %v4521_v28 = vunpack.i.h.bf16 %v4519_v41  ;;  %v4545_v63 = vunpack.i.l.bf16 %v4544_v26 }
 0x460   :  { %v2926_v11 = vsel %vm2925_vm3, %v2923_v17, %v4510_v3  ;;  %v2945_v40 = vsel %vm2925_vm3, %v2943_v47, %v4511_v43 }
 0x461   :  { %v2929_v46 = vsel %vm2928_vm4, %v2926_v11, %v4460_v29  ;;  %v2947_v53 = vsel %vm2928_vm4, %v2945_v40, %v4461_v34  ;;  %v3194_v34 = vld [vmem:[%s6996_s5 + $0x68] sm:$0xff]  ;;  %v2742_v29 = vadd.f32 %v6794_v21, %v6507_v39 }
 0x462   :  { %v2932_v1 = vsel %vm2931_vm5, %v2929_v46, %v4470_v0  ;;  %v2949_v59 = vsel %vm2931_vm5, %v2947_v53, %v4471_v15  ;;  %v4520_v15 = vunpack.i.l.bf16 %v4519_v41  ;;  %v4546_v46 = vunpack.i.h.bf16 %v4544_v26  ;;  %v3235_v26 = vld [vmem:[%s6998_s7 + $0x48] sm:$0xff] }
 0x463   :  { %v2935_v7 = vsel %vm2934_vm7, %v2932_v1, %v4480_v57  ;;  %v2951_v61 = vsel %vm2934_vm7, %v2949_v59, %v4481_v30  ;;  %v2936_v30 = vsel %vm2934_vm7, %v2933_v54, %v4485_v10  ;;  %v2792_v0 = vmax.f32 %v2742_v29, 0.0  ;;  %v3182_v54 = vld [vmem:[%s6996_s5 + $0x8] sm:$0xff]  ;;  %v3241_v10 = vld [vmem:[%s6998_s7 + $0x78] sm:$0xff] }
 0x464   :  { %v2938_v56 = vsel %vm2937_vm6, %v2935_v7, %v4490_v62  ;;  %v2953_v51 = vsel %vm2937_vm6, %v2951_v61, %v4491_v8  ;;  %v2743_v8 = vadd.f32 %v6794_v21, %v6529_v5  ;;  %v2758_v62 = vadd.f32 %v6794_v21, %v6632_v58  ;;  %v3193_v21 = vld [vmem:[%s6996_s5 + $0x60] sm:$0xff]  ;;  %v3239_v29 = vld [vmem:[%s6998_s7 + $0x68] sm:$0xff] }
 0x465   :  { %v2941_v42 = vsel %vm2940_vm8, %v2938_v56, %v4495_v24  ;;  %v2955_v16 = vsel %vm2940_vm8, %v2953_v51, %v4496_v35  ;;  %v4534_v4 = vpop.permute.xlu1 %4533  ;;  %v3013_v45 = vsel %vm2922_vm2, %v2792_v0, %v4525_v52  ;;  %v3008_v24 = vpop.permute.xlu2 %3007  ;;  %v2809_v53 = vmax.f32 %v2759_v50, 0.0  ;;  %v3190_v56 = vld [vmem:[%s6996_s5 + $0x48] sm:$0xff]  ;;  %v3189_v51 = vld [vmem:[%s6996_s5 + $0x40] sm:$0xff]  ;;  %v3233_v0 = vld [vmem:[%s6998_s7 + $0x38] sm:$0xff] }
 0x466   :  { %v4514_v37 = vpop.permute.xlu0 %4513  ;;  %3103 = vmatmul.f32.vlgmr.msrb.gmra.mxu2 %v2941_v42  ;;  %3126 = vmatmul.f32.vlgmr.msrb.gmra.mxu3 %v2955_v16  ;;  %v4535_v35 = vunpack.i.l.bf16 %v4534_v4  ;;  %v2793_v44 = vmax.f32 %v2743_v8, 0.0  ;;  %v2808_v43 = vmax.f32 %v2758_v62, 0.0  ;;  %v4536_v41 = vunpack.i.h.bf16 %v4534_v4  ;;  %v3186_v42 = vld [vmem:[%s6996_s5 + $0x28] sm:$0xff]  ;;  %v3185_v16 = vld [vmem:[%s6996_s5 + $0x20] sm:$0xff] }
 0x467   :  { %v4516_v49 = vunpack.i.h.bf16 %v4514_v37  ;;  %v4515_v22 = vunpack.i.l.bf16 %v4514_v37  ;;  %3201 = vmatpush.msrb.mxu3 %v3196_v25  ;;  %v3188_v25 = vld [vmem:[%s6996_s5 + $0x38] sm:$0xff]  ;;  %v3187_v37 = vld [vmem:[%s6996_s5 + $0x30] sm:$0xff]  ;;  %3246 = vmatpush.msrb.mxu2 %v3241_v10  ;;  %v3231_v8 = vld [vmem:[%s6998_s7 + $0x28] sm:$0xff] }
 0x468   :  { %v3014_v5 = vsel %vm2922_vm2, %v2793_v44, %v4526_v12 }
 0x469   :  { %3202 = vmatpush.msrb.mxu3 %v3195_v55  ;;  %v2939_v18 = vsel %vm2937_vm6, %v2936_v30, %v4515_v22  ;;  %v2954_v57 = vsel %vm2937_vm6, %v2952_v32, %v4516_v49  ;;  %v3184_v49 = vld [vmem:[%s6996_s5 + $0x18] sm:$0xff]  ;;  %v3183_v22 = vld [vmem:[%s6996_s5 + $0x10] sm:$0xff]  ;;  %v3238_v30 = vld [vmem:[%s6998_s7 + $0x60] sm:$0xff] }
 0x46a   :  { %v2942_v39 = vsel %vm2940_vm8, %v2939_v18, %v4520_v15  ;;  %v2956_v20 = vsel %vm2940_vm8, %v2954_v57, %v4521_v28  ;;  %v3237_v32 = vld [vmem:[%s6998_s7 + $0x58] sm:$0xff]  ;;  %v4548_v18 = vld [vmem:[%s6995_s4] ss:$0 sm:$0xff]  ;;  %v3236_v57 = vld [vmem:[%s6998_s7 + $0x50] sm:$0xff] }
 0x46b   :  { %3203 = vmatpush.msrb.mxu3 %v3194_v34  ;;  %v3240_v34 = vld [vmem:[%s6998_s7 + $0x70] sm:$0xff]  ;;  %v3234_v15 = vld [vmem:[%s6998_s7 + $0x40] sm:$0xff] }
 0x46c   :  { %3247 = vmatpush.msrb.mxu2 %v3240_v34 }
 0x46d   :  { %v3000_v3 = vpop.permute.xlu1 %2999  ;;  %v3010_v19 = vpop.permute.xlu2 %3009  ;;  %3204 = vmatpush.msrb.mxu3 %v3193_v21 }
 0x46e   :  { %v4529_v36 = vpop.permute.xlu0 %4528  ;;  %3106 = vmatmul.f32.gmra.mxu2 %v2942_v39  ;;  %3129 = vmatmul.f32.gmra.mxu3 %v2956_v20  ;;  %v3232_v39 = vld [vmem:[%s6998_s7 + $0x30] sm:$0xff] }
 0x46f   :  { %v4530_v38 = vunpack.i.l.bf16 %v4529_v36  ;;  %v4531_v9 = vunpack.i.h.bf16 %v4529_v36  ;;  %3205 = vmatpush.msrb.mxu3 %v3192_v2  ;;  %3248 = vmatpush.msrb.mxu2 %v3239_v29 }
 0x471   :  { %v3015_v14 = vsel %vm2925_vm3, %v3013_v45, %v4530_v38  ;;  %v3016_v48 = vsel %vm2925_vm3, %v3014_v5, %v4531_v9  ;;  %3206 = vmatpush.msrb.mxu3 %v3191_v23  ;;  %3249 = vmatpush.msrb.mxu2 %v3238_v30  ;;  %v3226_v5 = vld [vmem:[%s6998_s7] sm:$0xff] }
 0x472   :  { %v3017_v27 = vsel %vm2928_vm4, %v3015_v14, %v4535_v35  ;;  %v3018_v40 = vsel %vm2928_vm4, %v3016_v48, %v4536_v41  ;;  %v3230_v14 = vld [vmem:[%s6998_s7 + $0x20] sm:$0xff] }
 0x473   :  { %v3019_v17 = vsel %vm2931_vm5, %v3017_v27, %v4545_v63  ;;  %v3020_v59 = vsel %vm2931_vm5, %v3018_v40, %v4546_v46  ;;  %3207 = vmatpush.msrb.mxu3 %v3190_v56  ;;  %3250 = vmatpush.msrb.mxu2 %v3237_v32  ;;  %v3229_v27 = vld [vmem:[%s6998_s7 + $0x18] sm:$0xff]  ;;  %v4550_v46 = vld [vmem:[%s6999_s8] ss:$0 sm:$0xff] }
 0x475   :  { %v3002_v7 = vpop.permute.xlu1 %3001  ;;  %3208 = vmatpush.msrb.mxu3 %v3189_v51  ;;  %3251 = vmatpush.msrb.mxu2 %v3236_v57 }
 0x476   :  { %v2992_v47 = vpop.permute.xlu0 %2991  ;;  %4223 = vmatmul.msk.f32.vlgmr.msra.gmra.mxu3 %vm2922_vm2, %v2808_v43 }
 0x477   :  { %v3021_v58 = vsel %vm2934_vm7, %v3019_v17, %v2992_v47  ;;  %3209 = vmatpush.msrb.mxu3 %v3188_v25  ;;  %3252 = vmatpush.msrb.mxu2 %v3235_v26  ;;  %v3228_v47 = vld [vmem:[%s6998_s7 + $0x10] sm:$0xff]  ;;  %v3227_v17 = vld [vmem:[%s6998_s7 + $0x8] sm:$0xff] }
 0x478   :  { %v3023_v6 = vsel %vm2937_vm6, %v3021_v58, %v3000_v3  ;;  %v4549_v58 = vld [vmem:[%s6997_s6] ss:$0 sm:$0xff] }
 0x479   :  { %v3025_v11 = vsel %vm2940_vm8, %v3023_v6, %v3008_v24  ;;  %3210 = vmatpush.msrb.mxu3 %v3187_v37  ;;  %3253 = vmatpush.msrb.mxu2 %v3234_v15 }
 0x47a   :  { %3149 = vmatmul.f32.vlgmr.msra.gmra.mxu2 %v3025_v11 }
 0x47b   :  { %3211 = vmatpush.msrb.mxu3 %v3186_v42  ;;  %3254 = vmatpush.msrb.mxu2 %v3233_v0 }
 0x47d   :  { %3212 = vmatpush.msrb.mxu3 %v3185_v16  ;;  %3255 = vmatpush.msrb.mxu2 %v3232_v39 }
 0x47e   :  { %v2994_v1 = vpop.permute.xlu0 %2993  ;;  %4224 = vmatmul.msk.f32.gmra.mxu3 %vm2922_vm2, %v2809_v53 }
 0x47f   :  { %v3022_v61 = vsel %vm2934_vm7, %v3020_v59, %v2994_v1  ;;  %3213 = vmatpush.msrb.mxu3 %v3184_v49  ;;  %3256 = vmatpush.msrb.mxu2 %v3231_v8 }
 0x480   :  { %v3024_v31 = vsel %vm2937_vm6, %v3022_v61, %v3002_v7 }
 0x481   :  { %v3026_v13 = vsel %vm2940_vm8, %v3024_v31, %v3010_v19  ;;  %3214 = vmatpush.msrb.mxu3 %v3183_v22  ;;  %3257 = vmatpush.msrb.mxu2 %v3230_v14 }
 0x482   :  { %3152 = vmatmul.f32.gmra.mxu2 %v3026_v13 }
 0x483   :  { %3215 = vmatpush.msrb.mxu3 %v3182_v54  ;;  %3258 = vmatpush.msrb.mxu2 %v3229_v27 }
 0x485   :  { %3216 = vmatpush.msrb.mxu3 %v3181_v33  ;;  %3259 = vmatpush.msrb.mxu2 %v3228_v47 }
 0x487   :  { %3260 = vmatpush.msrb.mxu2 %v3227_v17 }
 0x489   :  { %3261 = vmatpush.msrb.mxu2 %v3226_v5 }
 0x4e9   :  { %v3127_v55 = vpop.f32.mrf.mxu3  ;;  %v3104_v60 = vpop.f32.mrf.mxu2 }
 0x4ea   :  { %v3105_v28 = vadd.f32 %v4548_v18, %v3104_v60 }
 0x4ec   :  { %v3128_v36 = vadd.f32 %v3127_v55, %v3105_v28 }
 0x4f1   :  { %v3130_v4 = vpop.f32.mrf.mxu3  ;;  %v3107_v52 = vpop.f32.mrf.mxu2 }
 0x4f2   :  { %v3108_v62 = vadd.f32 %v4548_v18, %v3107_v52 }
 0x4f4   :  { %v3131_v63 = vadd.f32 %v3130_v4, %v3108_v62 }
 0x4f9   :  { %v3173_v20 = vpop.f32.mrf.mxu3 }
 0x4fd   :  { %v3150_v38 = vpop.f32.mrf.mxu2 }
 0x4fe   :  { %v3151_v45 = vadd.f32 %v3150_v38, %v3128_v36 }
 0x500   :  { %v3174_v35 = vadd.f32 %v3173_v20, %v3151_v45 }
 0x501   :  { %v3176_v43 = vpop.f32.mrf.mxu3 }
 0x502   :  { %v3179_v12 = vmax.f32 %v3174_v35, 0.0 }
 0x504   :  { %3217 = vmatmul.f32.vlgmr.msrb.gmra.mxu3 %v3179_v12 }
 0x505   :  { %v3153_v9 = vpop.f32.mrf.mxu2 }
 0x506   :  { %v3154_v44 = vadd.f32 %v3153_v9, %v3131_v63 }
 0x508   :  { %v3177_v3 = vadd.f32 %v3176_v43, %v3154_v44 }
 0x50a   :  { %v3180_v24 = vmax.f32 %v3177_v3, 0.0 }
 0x50c   :  { %3220 = vmatmul.f32.gmra.mxu3 %v3180_v24 }
 0x587   :  { %v3218_v48 = vpop.f32.mrf.mxu3 }
 0x588   :  { %v3219_v6 = vadd.f32 %v4549_v58, %v3218_v48 }
 0x58a   :  { %v3224_v50 = vmax.f32 %v3219_v6, 0.0 }
 0x58c   :  { %3262 = vmatmul.f32.vlgmr.msrb.gmra.mxu2 %v3224_v50 }
 0x58f   :  { %v3221_v41 = vpop.f32.mrf.mxu3 }
 0x590   :  { %v3222_v11 = vadd.f32 %v4549_v58, %v3221_v41 }
 0x592   :  { %v3225_v40 = vmax.f32 %v3222_v11, 0.0 }
 0x594   :  { %3265 = vmatmul.f32.gmra.mxu2 %v3225_v40 }
 0x60f   :  { %v3263_v53 = vpop.f32.mrf.mxu2 }
 0x610   :  { %v3264_v1 = vadd.f32 %v4550_v46, %v3263_v53 }
 0x612   :  { %3269 = vst [vmem:[%s7000_s9] sm:$0xff] %v3264_v1 }
 0x617   :  { %v3266_v59 = vpop.f32.mrf.mxu2 }
 0x618   :  { %v3267_v7 = vadd.f32 %v4550_v46, %v3266_v59 }
 0x61a   :  { %3270 = vst [vmem:[%s7000_s9 + $0x8] sm:$0xff] %v3267_v7 }

</bundles_post_ra>
